<compile_context>
chip_gen: v6e
topology: v6e:2x2x1
jax: 0.10.0
libtpu: 0.0.40
codegen_flags: <defaults>
</compile_context>

<pallas_src>
import math

import jax
import jax.numpy as jnp
import numpy as np
from jax import lax
from jax.experimental import pallas as pl
from jax.experimental.pallas import tpu as pltpu


# ---------------------------------------------------------------------------
# Static bilinear taps (PyTorch F.interpolate, mode='bilinear', align_corners=False)
# ---------------------------------------------------------------------------
def _bilinear_taps(out_size, in_size):
    scale = in_size / out_size
    i0s, i1s, w0s, w1s = [], [], [], []
    for o in range(out_size):
        src = max((o + 0.5) * scale - 0.5, 0.0)          # PyTorch clamps negative coords
        i0 = min(int(math.floor(src)), in_size - 1)
        i1 = min(i0 + 1, in_size - 1)
        frac = src - i0
        i0s.append(i0)
        i1s.append(i1)
        w0s.append(1.0 - frac)
        w1s.append(frac)
    return i0s, i1s, w0s, w1s


def _taps_to_matrix(out_size, in_size):
    i0, i1, w0, w1 = _bilinear_taps(out_size, in_size)
    m = np.zeros((out_size, in_size), np.float32)
    for o in range(out_size):
        m[o, i0[o]] += w0[o]
        m[o, i1[o]] += w1[o]
    return jnp.asarray(m)


# ---------------------------------------------------------------------------
# Fused Pallas kernel (per batch element) + wrapper
# ---------------------------------------------------------------------------
def aux_head_pallas(x_nhwc, w3_packed, b3, w1_kc, h_out, w_out):
    N, H, W, C = x_nhwc.shape
    K = w1_kc.shape[0]
    HW = H * W
    OUT = h_out * w_out

    wi0, wi1, ww0, ww1 = _bilinear_taps(w_out, W)
    hi0, hi1, hw0, hw1 = _bilinear_taps(h_out, H)

    def kernel(x_ref, w3_ref, b3_ref, w1_ref, o_ref, xpad_ref):
        # ---- assemble zero-padded input tile in VMEM (padding=1 for 3x3 conv) ----
        xpad_ref[...] = jnp.zeros_like(xpad_ref)
        xpad_ref[1:H + 1, 1:W + 1, :] = x_ref[0]

        # ---- 3x3 conv (+ folded BN scale) as 3 row-packed bf16 MXU matmuls ------
        acc = jnp.zeros((HW, C), jnp.float32)
        for dy in range(3):
            taps = [xpad_ref[dy:dy + H, dx:dx + W, :].reshape(HW, C)
                    for dx in range(3)]
            patch = jnp.concatenate(taps, axis=1)              # (HW, 3C) bf16
            acc = acc + jnp.dot(patch, w3_ref[dy],
                                preferred_element_type=jnp.float32)

        # ---- folded BN bias + ReLU6; Dropout(0.1) is identity in eval mode ------
        feat = jnp.clip(acc + b3_ref[...], 0.0, 6.0)           # (HW, C) f32
        feat3 = feat.reshape(H, W, C)

        # ---- separable bilinear upsample with static taps (VPU lerps) -----------
        # (upsample and the 1x1 conv are both linear on different axes -> commute
        #  exactly; doing the upsample first lets the 1x1 conv emit the lane-dense
        #  transposed output directly.)
        cols = []
        for wo in range(w_out):                                # along W
            c = feat3[:, wi0[wo], :] * ww0[wo] + feat3[:, wi1[wo], :] * ww1[wo]
            cols.append(c[:, None, :])                         # (H, 1, C)
        fw = jnp.concatenate(cols, axis=1)                     # (H, Wout, C)

        rows = []
        for ho in range(h_out):                                # along H
            r = fw[hi0[ho]] * hw0[ho] + fw[hi1[ho]] * hw1[ho]
            rows.append(r[None])                               # (1, Wout, C)
        g = jnp.concatenate(rows, axis=0)                      # (Hout, Wout, C) f32
        g2 = g.reshape(OUT, C).astype(jnp.bfloat16)            # (Hout*Wout, C)

        # ---- 1x1 conv, transposed contraction -> lane-dense (K, Hout*Wout) ------
        out_t = lax.dot_general(w1_ref[...], g2,
                                dimension_numbers=(((1,), (1,)), ((), ())),
                                preferred_element_type=jnp.float32)
        o_ref[0] = out_t                                       # (K, Hout*Wout)

    out = pl.pallas_call(
        kernel,
        out_shape=jax.ShapeDtypeStruct((N, K, OUT), jnp.float32),
        grid_spec=pltpu.PrefetchScalarGridSpec(
            num_scalar_prefetch=0,
            grid=(N,),
            in_specs=[
                pl.BlockSpec((1, H, W, C), lambda n: (n, 0, 0, 0)),
                pl.BlockSpec((3, 3 * C, C), lambda n: (0, 0, 0)),
                pl.BlockSpec((1, C), lambda n: (0, 0)),
                pl.BlockSpec((K, C), lambda n: (0, 0)),
            ],
            out_specs=pl.BlockSpec((1, K, OUT), lambda n: (n, 0, 0)),
            scratch_shapes=[pltpu.VMEM((H + 2, W + 2, C), jnp.bfloat16)],
        ),
        compiler_params=pltpu.CompilerParams(dimension_semantics=("parallel",)),
    )(x_nhwc.astype(jnp.bfloat16), w3_packed, b3, w1_kc)

    return out.reshape(N, K, h_out, w_out)   # NCHW, matching PyTorch's output layout


# ---------------------------------------------------------------------------
# Main
# ---------------------------------------------------------------------------
if __name__ == "__main__":
    # AuxHead defaults: in_channels=64, num_classes=8
    N, C, H, W = 2, 64, 16, 16
    K = 8
    h_out, w_out = 32, 32
    eps = 1e-5

    key = jax.random.PRNGKey(0)
    ks = jax.random.split(key, 8)

    # ConvBNReLU: Conv2d(C, C, 3, padding=1, bias=False) + BatchNorm2d(C) + ReLU6
    w_conv3 = jax.random.normal(ks[0], (C, C, 3, 3), jnp.float32) * 0.05   # (O, I, kH, kW)
    gamma = 1.0 + 0.1 * jax.random.normal(ks[1], (C,), jnp.float32)
    beta = 0.1 * jax.random.normal(ks[2], (C,), jnp.float32)
    run_mean = 0.1 * jax.random.normal(ks[3], (C,), jnp.float32)
    run_var = jnp.abs(jax.random.normal(ks[4], (C,), jnp.float32)) + 0.5

    # Conv: Conv2d(C, K, 1, bias=False)
    w_conv1 = jax.random.normal(ks[5], (K, C, 1, 1), jnp.float32) * 0.05

    # Fold BN (eval) into the 3x3 conv; pack taps along the contraction axis.
    bn_scale = gamma / jnp.sqrt(run_var + eps)                              # (C,)
    w3_hwio = jnp.transpose(w_conv3, (2, 3, 1, 0))                          # (3,3,I,O)
    w3_folded = w3_hwio * bn_scale[None, None, None, :]
    w3_packed = w3_folded.reshape(3, 3 * C, C).astype(jnp.bfloat16)         # (3, 3C, C)
    b3 = (beta - run_mean * bn_scale).reshape(1, C)                         # f32
    w1_kc = w_conv1[:, :, 0, 0].astype(jnp.bfloat16)                        # (K, C)

    # Deterministic input (PyTorch NCHW) -> NHWC for the kernel wrapper.
    x_nchw = jax.random.normal(ks[6], (N, C, H, W), jnp.float32)
    x_nhwc = jnp.transpose(x_nchw, (0, 2, 3, 1))

    out = aux_head_pallas(x_nhwc, w3_packed, b3, w1_kc, h_out, w_out)       # (N, K, Hout, Wout)
    out = jax.block_until_ready(out)

    # --- pure-JAX f32 HIGHEST-precision reference ----------------------------
    conv = lax.conv_general_dilated(
        x_nhwc, w3_hwio, window_strides=(1, 1), padding=((1, 1), (1, 1)),
        dimension_numbers=("NHWC", "HWIO", "NHWC"),
        precision=lax.Precision.HIGHEST)
    bn = (conv - run_mean) * bn_scale + beta
    act = jnp.clip(bn, 0.0, 6.0)
    w1_ck = jnp.transpose(w_conv1[:, :, 0, 0], (1, 0))                      # (C, K) f32
    logits = jnp.einsum("nhwc,ck->nhwk", act, w1_ck,
                        precision=lax.Precision.HIGHEST)
    Mh = _taps_to_matrix(h_out, H)
    Mw = _taps_to_matrix(w_out, W)
    t = jnp.einsum("oh,nhwk->nowk", Mh, logits, precision=lax.Precision.HIGHEST)
    ref = jnp.einsum("pw,nowk->nopk", Mw, t, precision=lax.Precision.HIGHEST)
    ref_nchw = jnp.transpose(ref, (0, 3, 1, 2))                             # (N, K, Hout, Wout)

    assert out.shape == (N, K, h_out, w_out)
    assert bool(jnp.all(jnp.isfinite(out)))
    max_diff = float(jnp.max(jnp.abs(out - ref_nchw)))
    assert jnp.allclose(out, ref_nchw, rtol=2e-2, atol=3e-2), \
        f"max abs diff {max_diff}"

    print("KERNEL_OK")
</pallas_src>

<mosaic_0001>
module attributes {stable_mosaic.version = 11 : i64} {
  func.func @kernel(%arg0: i32, %arg1: memref<1x16x16x64xbf16, #tpu.memory_space<vmem>>, %arg2: memref<3x192x64xbf16, #tpu.memory_space<vmem>>, %arg3: memref<1x64xf32, #tpu.memory_space<vmem>>, %arg4: memref<8x64xbf16, #tpu.memory_space<vmem>>, %arg5: memref<1x8x1024xf32, #tpu.memory_space<vmem>>, %arg6: memref<18x18x64xbf16, #tpu.memory_space<vmem>>) attributes {dimension_semantics = [#tpu.dimension_semantics<parallel>], iteration_bounds = array<i64: 2>, scalar_prefetch = 0 : i64, scratch_operands = 1 : i64, tpu.core_type = #tpu.core_type<tc>, window_params = [{transform_indices = @transform_0, window_bounds = array<i64: 1, 16, 16, 64>}, {pipeline_mode = #tpu.pipeline_mode<synchronous>, transform_indices = @transform_1, window_bounds = array<i64: 3, 192, 64>}, {pipeline_mode = #tpu.pipeline_mode<synchronous>, transform_indices = @transform_2, window_bounds = array<i64: 1, 64>}, {pipeline_mode = #tpu.pipeline_mode<synchronous>, transform_indices = @transform_3, window_bounds = array<i64: 8, 64>}, {transform_indices = @transform_4, window_bounds = array<i64: 1, 8, 1024>}]} {
    %cst = arith.constant 0.000000e+00 : bf16
    %0 = vector.broadcast %cst : bf16 to vector<18x18x64xbf16>
    %c0 = arith.constant 0 : index
    %c0_0 = arith.constant 0 : index
    %c0_1 = arith.constant 0 : index
    %1 = vector.load %arg6[%c0, %c0_0, %c0_1] : memref<18x18x64xbf16, #tpu.memory_space<vmem>>, vector<18x18x64xbf16>
    tpu.vector_store %arg6[%c0, %c0_0, %c0_1], %0 {strides = array<i32>} : memref<18x18x64xbf16, #tpu.memory_space<vmem>>, vector<18x18x64xbf16>,
    %c0_2 = arith.constant 0 : index
    %c0_3 = arith.constant 0 : index
    %c0_4 = arith.constant 0 : index
    %c0_5 = arith.constant 0 : index
    %2 = vector.load %arg1[%c0_2, %c0_3, %c0_4, %c0_5] : memref<1x16x16x64xbf16, #tpu.memory_space<vmem>>, vector<1x16x16x64xbf16>
    %3 = vector.shape_cast %2 : vector<1x16x16x64xbf16> to vector<16x16x64xbf16>
    %c1 = arith.constant 1 : index
    %c1_6 = arith.constant 1 : index
    %c0_7 = arith.constant 0 : index
    %4 = vector.load %arg6[%c1, %c1_6, %c0_7] : memref<18x18x64xbf16, #tpu.memory_space<vmem>>, vector<16x16x64xbf16>
    tpu.vector_store %arg6[%c1, %c1_6, %c0_7], %3 {strides = array<i32>} : memref<18x18x64xbf16, #tpu.memory_space<vmem>>, vector<16x16x64xbf16>,
    %cst_8 = arith.constant 0.000000e+00 : f32
    %5 = vector.broadcast %cst_8 : f32 to vector<256x64xf32>
    %c0_9 = arith.constant 0 : index
    %c0_10 = arith.constant 0 : index
    %c0_11 = arith.constant 0 : index
    %6 = vector.load %arg6[%c0_9, %c0_10, %c0_11] : memref<18x18x64xbf16, #tpu.memory_space<vmem>>, vector<16x16x64xbf16>
    %7 = vector.shape_cast %6 : vector<16x16x64xbf16> to vector<256x64xbf16>
    %c0_12 = arith.constant 0 : index
    %c1_13 = arith.constant 1 : index
    %c0_14 = arith.constant 0 : index
    %8 = vector.load %arg6[%c0_12, %c1_13, %c0_14] : memref<18x18x64xbf16, #tpu.memory_space<vmem>>, vector<16x16x64xbf16>
    %9 = vector.shape_cast %8 : vector<16x16x64xbf16> to vector<256x64xbf16>
    %c0_15 = arith.constant 0 : index
    %c2 = arith.constant 2 : index
    %c0_16 = arith.constant 0 : index
    %10 = vector.load %arg6[%c0_15, %c2, %c0_16] : memref<18x18x64xbf16, #tpu.memory_space<vmem>>, vector<16x16x64xbf16>
    %11 = vector.shape_cast %10 : vector<16x16x64xbf16> to vector<256x64xbf16>
    %12 = tpu.concatenate %7, %9, %11 in 1 : vector<256x64xbf16>, vector<256x64xbf16>, vector<256x64xbf16> -> vector<256x192xbf16>
    %c0_17 = arith.constant 0 : index
    %c0_18 = arith.constant 0 : index
    %c0_19 = arith.constant 0 : index
    %13 = vector.load %arg2[%c0_17, %c0_18, %c0_19] : memref<3x192x64xbf16, #tpu.memory_space<vmem>>, vector<1x192x64xbf16>
    %14 = vector.shape_cast %13 : vector<1x192x64xbf16> to vector<192x64xbf16>
    %cst_20 = arith.constant dense<0.000000e+00> : vector<256x64xf32>
    %15 = tpu.matmul %12, %14, %cst_20 {dimension_numbers = #tpu.dot_dimension_numbers<[1], [0], [0], [1], [0, 0, 1, 1], [], []>} : vector<256x192xbf16>, vector<192x64xbf16>, vector<256x64xf32> -> vector<256x64xf32>
    %16 = arith.addf %5, %15 : vector<256x64xf32>
    %c1_21 = arith.constant 1 : index
    %c0_22 = arith.constant 0 : index
    %c0_23 = arith.constant 0 : index
    %17 = vector.load %arg6[%c1_21, %c0_22, %c0_23] : memref<18x18x64xbf16, #tpu.memory_space<vmem>>, vector<16x16x64xbf16>
    %18 = vector.shape_cast %17 : vector<16x16x64xbf16> to vector<256x64xbf16>
    %c1_24 = arith.constant 1 : index
    %c1_25 = arith.constant 1 : index
    %c0_26 = arith.constant 0 : index
    %19 = vector.load %arg6[%c1_24, %c1_25, %c0_26] : memref<18x18x64xbf16, #tpu.memory_space<vmem>>, vector<16x16x64xbf16>
    %20 = vector.shape_cast %19 : vector<16x16x64xbf16> to vector<256x64xbf16>
    %c1_27 = arith.constant 1 : index
    %c2_28 = arith.constant 2 : index
    %c0_29 = arith.constant 0 : index
    %21 = vector.load %arg6[%c1_27, %c2_28, %c0_29] : memref<18x18x64xbf16, #tpu.memory_space<vmem>>, vector<16x16x64xbf16>
    %22 = vector.shape_cast %21 : vector<16x16x64xbf16> to vector<256x64xbf16>
    %23 = tpu.concatenate %18, %20, %22 in 1 : vector<256x64xbf16>, vector<256x64xbf16>, vector<256x64xbf16> -> vector<256x192xbf16>
    %c1_30 = arith.constant 1 : index
    %c0_31 = arith.constant 0 : index
    %c0_32 = arith.constant 0 : index
    %24 = vector.load %arg2[%c1_30, %c0_31, %c0_32] : memref<3x192x64xbf16, #tpu.memory_space<vmem>>, vector<1x192x64xbf16>
    %25 = vector.shape_cast %24 : vector<1x192x64xbf16> to vector<192x64xbf16>
    %cst_33 = arith.constant dense<0.000000e+00> : vector<256x64xf32>
    %26 = tpu.matmul %23, %25, %cst_33 {dimension_numbers = #tpu.dot_dimension_numbers<[1], [0], [0], [1], [0, 0, 1, 1], [], []>} : vector<256x192xbf16>, vector<192x64xbf16>, vector<256x64xf32> -> vector<256x64xf32>
    %27 = arith.addf %16, %26 : vector<256x64xf32>
    %c2_34 = arith.constant 2 : index
    %c0_35 = arith.constant 0 : index
    %c0_36 = arith.constant 0 : index
    %28 = vector.load %arg6[%c2_34, %c0_35, %c0_36] : memref<18x18x64xbf16, #tpu.memory_space<vmem>>, vector<16x16x64xbf16>
    %29 = vector.shape_cast %28 : vector<16x16x64xbf16> to vector<256x64xbf16>
    %c2_37 = arith.constant 2 : index
    %c1_38 = arith.constant 1 : index
    %c0_39 = arith.constant 0 : index
    %30 = vector.load %arg6[%c2_37, %c1_38, %c0_39] : memref<18x18x64xbf16, #tpu.memory_space<vmem>>, vector<16x16x64xbf16>
    %31 = vector.shape_cast %30 : vector<16x16x64xbf16> to vector<256x64xbf16>
    %c2_40 = arith.constant 2 : index
    %c2_41 = arith.constant 2 : index
    %c0_42 = arith.constant 0 : index
    %32 = vector.load %arg6[%c2_40, %c2_41, %c0_42] : memref<18x18x64xbf16, #tpu.memory_space<vmem>>, vector<16x16x64xbf16>
    %33 = vector.shape_cast %32 : vector<16x16x64xbf16> to vector<256x64xbf16>
    %34 = tpu.concatenate %29, %31, %33 in 1 : vector<256x64xbf16>, vector<256x64xbf16>, vector<256x64xbf16> -> vector<256x192xbf16>
    %c2_43 = arith.constant 2 : index
    %c0_44 = arith.constant 0 : index
    %c0_45 = arith.constant 0 : index
    %35 = vector.load %arg2[%c2_43, %c0_44, %c0_45] : memref<3x192x64xbf16, #tpu.memory_space<vmem>>, vector<1x192x64xbf16>
    %36 = vector.shape_cast %35 : vector<1x192x64xbf16> to vector<192x64xbf16>
    %cst_46 = arith.constant dense<0.000000e+00> : vector<256x64xf32>
    %37 = tpu.matmul %34, %36, %cst_46 {dimension_numbers = #tpu.dot_dimension_numbers<[1], [0], [0], [1], [0, 0, 1, 1], [], []>} : vector<256x192xbf16>, vector<192x64xbf16>, vector<256x64xf32> -> vector<256x64xf32>
    %38 = arith.addf %27, %37 : vector<256x64xf32>
    %c0_47 = arith.constant 0 : index
    %c0_48 = arith.constant 0 : index
    %39 = vector.load %arg3[%c0_47, %c0_48] : memref<1x64xf32, #tpu.memory_space<vmem>>, vector<1x64xf32>
    %40 = vector.broadcast %39 : vector<1x64xf32> to vector<256x64xf32>
    %41 = arith.addf %38, %40 : vector<256x64xf32>
    %cst_49 = arith.constant 0.000000e+00 : f32
    %cst_50 = arith.constant 6.000000e+00 : f32
    %42 = vector.broadcast %cst_49 : f32 to vector<256x64xf32>
    %43 = arith.maximumf %42, %41 : vector<256x64xf32>
    %44 = vector.broadcast %cst_50 : f32 to vector<256x64xf32>
    %45 = arith.minimumf %44, %43 : vector<256x64xf32>
    %46 = vector.shape_cast %45 : vector<256x64xf32> to vector<16x16x64xf32>
    %47 = vector.extract_strided_slice %46 {offsets = [0, 0, 0], sizes = [16, 1, 64], strides = [1, 1, 1]} : vector<16x16x64xf32> to vector<16x1x64xf32>
    %48 = vector.shape_cast %47 : vector<16x1x64xf32> to vector<16x64xf32>
    %cst_51 = arith.constant 1.000000e+00 : f32
    %49 = vector.broadcast %cst_51 : f32 to vector<16x64xf32>
    %50 = arith.mulf %48, %49 : vector<16x64xf32>
    %51 = vector.extract_strided_slice %46 {offsets = [0, 1, 0], sizes = [16, 1, 64], strides = [1, 1, 1]} : vector<16x16x64xf32> to vector<16x1x64xf32>
    %52 = vector.shape_cast %51 : vector<16x1x64xf32> to vector<16x64xf32>
    %cst_52 = arith.constant 0.000000e+00 : f32
    %53 = vector.broadcast %cst_52 : f32 to vector<16x64xf32>
    %54 = arith.mulf %52, %53 : vector<16x64xf32>
    %55 = arith.addf %50, %54 : vector<16x64xf32>
    %56 = vector.shape_cast %55 : vector<16x64xf32> to vector<16x1x64xf32>
    %57 = vector.extract_strided_slice %46 {offsets = [0, 0, 0], sizes = [16, 1, 64], strides = [1, 1, 1]} : vector<16x16x64xf32> to vector<16x1x64xf32>
    %58 = vector.shape_cast %57 : vector<16x1x64xf32> to vector<16x64xf32>
    %cst_53 = arith.constant 7.500000e-01 : f32
    %59 = vector.broadcast %cst_53 : f32 to vector<16x64xf32>
    %60 = arith.mulf %58, %59 : vector<16x64xf32>
    %61 = vector.extract_strided_slice %46 {offsets = [0, 1, 0], sizes = [16, 1, 64], strides = [1, 1, 1]} : vector<16x16x64xf32> to vector<16x1x64xf32>
    %62 = vector.shape_cast %61 : vector<16x1x64xf32> to vector<16x64xf32>
    %cst_54 = arith.constant 2.500000e-01 : f32
    %63 = vector.broadcast %cst_54 : f32 to vector<16x64xf32>
    %64 = arith.mulf %62, %63 : vector<16x64xf32>
    %65 = arith.addf %60, %64 : vector<16x64xf32>
    %66 = vector.shape_cast %65 : vector<16x64xf32> to vector<16x1x64xf32>
    %67 = vector.extract_strided_slice %46 {offsets = [0, 0, 0], sizes = [16, 1, 64], strides = [1, 1, 1]} : vector<16x16x64xf32> to vector<16x1x64xf32>
    %68 = vector.shape_cast %67 : vector<16x1x64xf32> to vector<16x64xf32>
    %cst_55 = arith.constant 2.500000e-01 : f32
    %69 = vector.broadcast %cst_55 : f32 to vector<16x64xf32>
    %70 = arith.mulf %68, %69 : vector<16x64xf32>
    %71 = vector.extract_strided_slice %46 {offsets = [0, 1, 0], sizes = [16, 1, 64], strides = [1, 1, 1]} : vector<16x16x64xf32> to vector<16x1x64xf32>
    %72 = vector.shape_cast %71 : vector<16x1x64xf32> to vector<16x64xf32>
    %cst_56 = arith.constant 7.500000e-01 : f32
    %73 = vector.broadcast %cst_56 : f32 to vector<16x64xf32>
    %74 = arith.mulf %72, %73 : vector<16x64xf32>
    %75 = arith.addf %70, %74 : vector<16x64xf32>
    %76 = vector.shape_cast %75 : vector<16x64xf32> to vector<16x1x64xf32>
    %77 = vector.extract_strided_slice %46 {offsets = [0, 1, 0], sizes = [16, 1, 64], strides = [1, 1, 1]} : vector<16x16x64xf32> to vector<16x1x64xf32>
    %78 = vector.shape_cast %77 : vector<16x1x64xf32> to vector<16x64xf32>
    %cst_57 = arith.constant 7.500000e-01 : f32
    %79 = vector.broadcast %cst_57 : f32 to vector<16x64xf32>
    %80 = arith.mulf %78, %79 : vector<16x64xf32>
    %81 = vector.extract_strided_slice %46 {offsets = [0, 2, 0], sizes = [16, 1, 64], strides = [1, 1, 1]} : vector<16x16x64xf32> to vector<16x1x64xf32>
    %82 = vector.shape_cast %81 : vector<16x1x64xf32> to vector<16x64xf32>
    %cst_58 = arith.constant 2.500000e-01 : f32
    %83 = vector.broadcast %cst_58 : f32 to vector<16x64xf32>
    %84 = arith.mulf %82, %83 : vector<16x64xf32>
    %85 = arith.addf %80, %84 : vector<16x64xf32>
    %86 = vector.shape_cast %85 : vector<16x64xf32> to vector<16x1x64xf32>
    %87 = vector.extract_strided_slice %46 {offsets = [0, 1, 0], sizes = [16, 1, 64], strides = [1, 1, 1]} : vector<16x16x64xf32> to vector<16x1x64xf32>
    %88 = vector.shape_cast %87 : vector<16x1x64xf32> to vector<16x64xf32>
    %cst_59 = arith.constant 2.500000e-01 : f32
    %89 = vector.broadcast %cst_59 : f32 to vector<16x64xf32>
    %90 = arith.mulf %88, %89 : vector<16x64xf32>
    %91 = vector.extract_strided_slice %46 {offsets = [0, 2, 0], sizes = [16, 1, 64], strides = [1, 1, 1]} : vector<16x16x64xf32> to vector<16x1x64xf32>
    %92 = vector.shape_cast %91 : vector<16x1x64xf32> to vector<16x64xf32>
    %cst_60 = arith.constant 7.500000e-01 : f32
    %93 = vector.broadcast %cst_60 : f32 to vector<16x64xf32>
    %94 = arith.mulf %92, %93 : vector<16x64xf32>
    %95 = arith.addf %90, %94 : vector<16x64xf32>
    %96 = vector.shape_cast %95 : vector<16x64xf32> to vector<16x1x64xf32>
    %97 = vector.extract_strided_slice %46 {offsets = [0, 2, 0], sizes = [16, 1, 64], strides = [1, 1, 1]} : vector<16x16x64xf32> to vector<16x1x64xf32>
    %98 = vector.shape_cast %97 : vector<16x1x64xf32> to vector<16x64xf32>
    %cst_61 = arith.constant 7.500000e-01 : f32
    %99 = vector.broadcast %cst_61 : f32 to vector<16x64xf32>
    %100 = arith.mulf %98, %99 : vector<16x64xf32>
    %101 = vector.extract_strided_slice %46 {offsets = [0, 3, 0], sizes = [16, 1, 64], strides = [1, 1, 1]} : vector<16x16x64xf32> to vector<16x1x64xf32>
    %102 = vector.shape_cast %101 : vector<16x1x64xf32> to vector<16x64xf32>
    %cst_62 = arith.constant 2.500000e-01 : f32
    %103 = vector.broadcast %cst_62 : f32 to vector<16x64xf32>
    %104 = arith.mulf %102, %103 : vector<16x64xf32>
    %105 = arith.addf %100, %104 : vector<16x64xf32>
    %106 = vector.shape_cast %105 : vector<16x64xf32> to vector<16x1x64xf32>
    %107 = vector.extract_strided_slice %46 {offsets = [0, 2, 0], sizes = [16, 1, 64], strides = [1, 1, 1]} : vector<16x16x64xf32> to vector<16x1x64xf32>
    %108 = vector.shape_cast %107 : vector<16x1x64xf32> to vector<16x64xf32>
    %cst_63 = arith.constant 2.500000e-01 : f32
    %109 = vector.broadcast %cst_63 : f32 to vector<16x64xf32>
    %110 = arith.mulf %108, %109 : vector<16x64xf32>
    %111 = vector.extract_strided_slice %46 {offsets = [0, 3, 0], sizes = [16, 1, 64], strides = [1, 1, 1]} : vector<16x16x64xf32> to vector<16x1x64xf32>
    %112 = vector.shape_cast %111 : vector<16x1x64xf32> to vector<16x64xf32>
    %cst_64 = arith.constant 7.500000e-01 : f32
    %113 = vector.broadcast %cst_64 : f32 to vector<16x64xf32>
    %114 = arith.mulf %112, %113 : vector<16x64xf32>
    %115 = arith.addf %110, %114 : vector<16x64xf32>
    %116 = vector.shape_cast %115 : vector<16x64xf32> to vector<16x1x64xf32>
    %117 = vector.extract_strided_slice %46 {offsets = [0, 3, 0], sizes = [16, 1, 64], strides = [1, 1, 1]} : vector<16x16x64xf32> to vector<16x1x64xf32>
    %118 = vector.shape_cast %117 : vector<16x1x64xf32> to vector<16x64xf32>
    %cst_65 = arith.constant 7.500000e-01 : f32
    %119 = vector.broadcast %cst_65 : f32 to vector<16x64xf32>
    %120 = arith.mulf %118, %119 : vector<16x64xf32>
    %121 = vector.extract_strided_slice %46 {offsets = [0, 4, 0], sizes = [16, 1, 64], strides = [1, 1, 1]} : vector<16x16x64xf32> to vector<16x1x64xf32>
    %122 = vector.shape_cast %121 : vector<16x1x64xf32> to vector<16x64xf32>
    %cst_66 = arith.constant 2.500000e-01 : f32
    %123 = vector.broadcast %cst_66 : f32 to vector<16x64xf32>
    %124 = arith.mulf %122, %123 : vector<16x64xf32>
    %125 = arith.addf %120, %124 : vector<16x64xf32>
    %126 = vector.shape_cast %125 : vector<16x64xf32> to vector<16x1x64xf32>
    %127 = vector.extract_strided_slice %46 {offsets = [0, 3, 0], sizes = [16, 1, 64], strides = [1, 1, 1]} : vector<16x16x64xf32> to vector<16x1x64xf32>
    %128 = vector.shape_cast %127 : vector<16x1x64xf32> to vector<16x64xf32>
    %cst_67 = arith.constant 2.500000e-01 : f32
    %129 = vector.broadcast %cst_67 : f32 to vector<16x64xf32>
    %130 = arith.mulf %128, %129 : vector<16x64xf32>
    %131 = vector.extract_strided_slice %46 {offsets = [0, 4, 0], sizes = [16, 1, 64], strides = [1, 1, 1]} : vector<16x16x64xf32> to vector<16x1x64xf32>
    %132 = vector.shape_cast %131 : vector<16x1x64xf32> to vector<16x64xf32>
    %cst_68 = arith.constant 7.500000e-01 : f32
    %133 = vector.broadcast %cst_68 : f32 to vector<16x64xf32>
    %134 = arith.mulf %132, %133 : vector<16x64xf32>
    %135 = arith.addf %130, %134 : vector<16x64xf32>
    %136 = vector.shape_cast %135 : vector<16x64xf32> to vector<16x1x64xf32>
    %137 = vector.extract_strided_slice %46 {offsets = [0, 4, 0], sizes = [16, 1, 64], strides = [1, 1, 1]} : vector<16x16x64xf32> to vector<16x1x64xf32>
    %138 = vector.shape_cast %137 : vector<16x1x64xf32> to vector<16x64xf32>
    %cst_69 = arith.constant 7.500000e-01 : f32
    %139 = vector.broadcast %cst_69 : f32 to vector<16x64xf32>
    %140 = arith.mulf %138, %139 : vector<16x64xf32>
    %141 = vector.extract_strided_slice %46 {offsets = [0, 5, 0], sizes = [16, 1, 64], strides = [1, 1, 1]} : vector<16x16x64xf32> to vector<16x1x64xf32>
    %142 = vector.shape_cast %141 : vector<16x1x64xf32> to vector<16x64xf32>
    %cst_70 = arith.constant 2.500000e-01 : f32
    %143 = vector.broadcast %cst_70 : f32 to vector<16x64xf32>
    %144 = arith.mulf %142, %143 : vector<16x64xf32>
    %145 = arith.addf %140, %144 : vector<16x64xf32>
    %146 = vector.shape_cast %145 : vector<16x64xf32> to vector<16x1x64xf32>
    %147 = vector.extract_strided_slice %46 {offsets = [0, 4, 0], sizes = [16, 1, 64], strides = [1, 1, 1]} : vector<16x16x64xf32> to vector<16x1x64xf32>
    %148 = vector.shape_cast %147 : vector<16x1x64xf32> to vector<16x64xf32>
    %cst_71 = arith.constant 2.500000e-01 : f32
    %149 = vector.broadcast %cst_71 : f32 to vector<16x64xf32>
    %150 = arith.mulf %148, %149 : vector<16x64xf32>
    %151 = vector.extract_strided_slice %46 {offsets = [0, 5, 0], sizes = [16, 1, 64], strides = [1, 1, 1]} : vector<16x16x64xf32> to vector<16x1x64xf32>
    %152 = vector.shape_cast %151 : vector<16x1x64xf32> to vector<16x64xf32>
    %cst_72 = arith.constant 7.500000e-01 : f32
    %153 = vector.broadcast %cst_72 : f32 to vector<16x64xf32>
    %154 = arith.mulf %152, %153 : vector<16x64xf32>
    %155 = arith.addf %150, %154 : vector<16x64xf32>
    %156 = vector.shape_cast %155 : vector<16x64xf32> to vector<16x1x64xf32>
    %157 = vector.extract_strided_slice %46 {offsets = [0, 5, 0], sizes = [16, 1, 64], strides = [1, 1, 1]} : vector<16x16x64xf32> to vector<16x1x64xf32>
    %158 = vector.shape_cast %157 : vector<16x1x64xf32> to vector<16x64xf32>
    %cst_73 = arith.constant 7.500000e-01 : f32
    %159 = vector.broadcast %cst_73 : f32 to vector<16x64xf32>
    %160 = arith.mulf %158, %159 : vector<16x64xf32>
    %161 = vector.extract_strided_slice %46 {offsets = [0, 6, 0], sizes = [16, 1, 64], strides = [1, 1, 1]} : vector<16x16x64xf32> to vector<16x1x64xf32>
    %162 = vector.shape_cast %161 : vector<16x1x64xf32> to vector<16x64xf32>
    %cst_74 = arith.constant 2.500000e-01 : f32
    %163 = vector.broadcast %cst_74 : f32 to vector<16x64xf32>
    %164 = arith.mulf %162, %163 : vector<16x64xf32>
    %165 = arith.addf %160, %164 : vector<16x64xf32>
    %166 = vector.shape_cast %165 : vector<16x64xf32> to vector<16x1x64xf32>
    %167 = vector.extract_strided_slice %46 {offsets = [0, 5, 0], sizes = [16, 1, 64], strides = [1, 1, 1]} : vector<16x16x64xf32> to vector<16x1x64xf32>
    %168 = vector.shape_cast %167 : vector<16x1x64xf32> to vector<16x64xf32>
    %cst_75 = arith.constant 2.500000e-01 : f32
    %169 = vector.broadcast %cst_75 : f32 to vector<16x64xf32>
    %170 = arith.mulf %168, %169 : vector<16x64xf32>
    %171 = vector.extract_strided_slice %46 {offsets = [0, 6, 0], sizes = [16, 1, 64], strides = [1, 1, 1]} : vector<16x16x64xf32> to vector<16x1x64xf32>
    %172 = vector.shape_cast %171 : vector<16x1x64xf32> to vector<16x64xf32>
    %cst_76 = arith.constant 7.500000e-01 : f32
    %173 = vector.broadcast %cst_76 : f32 to vector<16x64xf32>
    %174 = arith.mulf %172, %173 : vector<16x64xf32>
    %175 = arith.addf %170, %174 : vector<16x64xf32>
    %176 = vector.shape_cast %175 : vector<16x64xf32> to vector<16x1x64xf32>
    %177 = vector.extract_strided_slice %46 {offsets = [0, 6, 0], sizes = [16, 1, 64], strides = [1, 1, 1]} : vector<16x16x64xf32> to vector<16x1x64xf32>
    %178 = vector.shape_cast %177 : vector<16x1x64xf32> to vector<16x64xf32>
    %cst_77 = arith.constant 7.500000e-01 : f32
    %179 = vector.broadcast %cst_77 : f32 to vector<16x64xf32>
    %180 = arith.mulf %178, %179 : vector<16x64xf32>
    %181 = vector.extract_strided_slice %46 {offsets = [0, 7, 0], sizes = [16, 1, 64], strides = [1, 1, 1]} : vector<16x16x64xf32> to vector<16x1x64xf32>
    %182 = vector.shape_cast %181 : vector<16x1x64xf32> to vector<16x64xf32>
    %cst_78 = arith.constant 2.500000e-01 : f32
    %183 = vector.broadcast %cst_78 : f32 to vector<16x64xf32>
    %184 = arith.mulf %182, %183 : vector<16x64xf32>
    %185 = arith.addf %180, %184 : vector<16x64xf32>
    %186 = vector.shape_cast %185 : vector<16x64xf32> to vector<16x1x64xf32>
    %187 = vector.extract_strided_slice %46 {offsets = [0, 6, 0], sizes = [16, 1, 64], strides = [1, 1, 1]} : vector<16x16x64xf32> to vector<16x1x64xf32>
    %188 = vector.shape_cast %187 : vector<16x1x64xf32> to vector<16x64xf32>
    %cst_79 = arith.constant 2.500000e-01 : f32
    %189 = vector.broadcast %cst_79 : f32 to vector<16x64xf32>
    %190 = arith.mulf %188, %189 : vector<16x64xf32>
    %191 = vector.extract_strided_slice %46 {offsets = [0, 7, 0], sizes = [16, 1, 64], strides = [1, 1, 1]} : vector<16x16x64xf32> to vector<16x1x64xf32>
    %192 = vector.shape_cast %191 : vector<16x1x64xf32> to vector<16x64xf32>
    %cst_80 = arith.constant 7.500000e-01 : f32
    %193 = vector.broadcast %cst_80 : f32 to vector<16x64xf32>
    %194 = arith.mulf %192, %193 : vector<16x64xf32>
    %195 = arith.addf %190, %194 : vector<16x64xf32>
    %196 = vector.shape_cast %195 : vector<16x64xf32> to vector<16x1x64xf32>
    %197 = vector.extract_strided_slice %46 {offsets = [0, 7, 0], sizes = [16, 1, 64], strides = [1, 1, 1]} : vector<16x16x64xf32> to vector<16x1x64xf32>
    %198 = vector.shape_cast %197 : vector<16x1x64xf32> to vector<16x64xf32>
    %cst_81 = arith.constant 7.500000e-01 : f32
    %199 = vector.broadcast %cst_81 : f32 to vector<16x64xf32>
    %200 = arith.mulf %198, %199 : vector<16x64xf32>
    %201 = vector.extract_strided_slice %46 {offsets = [0, 8, 0], sizes = [16, 1, 64], strides = [1, 1, 1]} : vector<16x16x64xf32> to vector<16x1x64xf32>
    %202 = vector.shape_cast %201 : vector<16x1x64xf32> to vector<16x64xf32>
    %cst_82 = arith.constant 2.500000e-01 : f32
    %203 = vector.broadcast %cst_82 : f32 to vector<16x64xf32>
    %204 = arith.mulf %202, %203 : vector<16x64xf32>
    %205 = arith.addf %200, %204 : vector<16x64xf32>
    %206 = vector.shape_cast %205 : vector<16x64xf32> to vector<16x1x64xf32>
    %207 = vector.extract_strided_slice %46 {offsets = [0, 7, 0], sizes = [16, 1, 64], strides = [1, 1, 1]} : vector<16x16x64xf32> to vector<16x1x64xf32>
    %208 = vector.shape_cast %207 : vector<16x1x64xf32> to vector<16x64xf32>
    %cst_83 = arith.constant 2.500000e-01 : f32
    %209 = vector.broadcast %cst_83 : f32 to vector<16x64xf32>
    %210 = arith.mulf %208, %209 : vector<16x64xf32>
    %211 = vector.extract_strided_slice %46 {offsets = [0, 8, 0], sizes = [16, 1, 64], strides = [1, 1, 1]} : vector<16x16x64xf32> to vector<16x1x64xf32>
    %212 = vector.shape_cast %211 : vector<16x1x64xf32> to vector<16x64xf32>
    %cst_84 = arith.constant 7.500000e-01 : f32
    %213 = vector.broadcast %cst_84 : f32 to vector<16x64xf32>
    %214 = arith.mulf %212, %213 : vector<16x64xf32>
    %215 = arith.addf %210, %214 : vector<16x64xf32>
    %216 = vector.shape_cast %215 : vector<16x64xf32> to vector<16x1x64xf32>
    %217 = vector.extract_strided_slice %46 {offsets = [0, 8, 0], sizes = [16, 1, 64], strides = [1, 1, 1]} : vector<16x16x64xf32> to vector<16x1x64xf32>
    %218 = vector.shape_cast %217 : vector<16x1x64xf32> to vector<16x64xf32>
    %cst_85 = arith.constant 7.500000e-01 : f32
    %219 = vector.broadcast %cst_85 : f32 to vector<16x64xf32>
    %220 = arith.mulf %218, %219 : vector<16x64xf32>
    %221 = vector.extract_strided_slice %46 {offsets = [0, 9, 0], sizes = [16, 1, 64], strides = [1, 1, 1]} : vector<16x16x64xf32> to vector<16x1x64xf32>
    %222 = vector.shape_cast %221 : vector<16x1x64xf32> to vector<16x64xf32>
    %cst_86 = arith.constant 2.500000e-01 : f32
    %223 = vector.broadcast %cst_86 : f32 to vector<16x64xf32>
    %224 = arith.mulf %222, %223 : vector<16x64xf32>
    %225 = arith.addf %220, %224 : vector<16x64xf32>
    %226 = vector.shape_cast %225 : vector<16x64xf32> to vector<16x1x64xf32>
    %227 = vector.extract_strided_slice %46 {offsets = [0, 8, 0], sizes = [16, 1, 64], strides = [1, 1, 1]} : vector<16x16x64xf32> to vector<16x1x64xf32>
    %228 = vector.shape_cast %227 : vector<16x1x64xf32> to vector<16x64xf32>
    %cst_87 = arith.constant 2.500000e-01 : f32
    %229 = vector.broadcast %cst_87 : f32 to vector<16x64xf32>
    %230 = arith.mulf %228, %229 : vector<16x64xf32>
    %231 = vector.extract_strided_slice %46 {offsets = [0, 9, 0], sizes = [16, 1, 64], strides = [1, 1, 1]} : vector<16x16x64xf32> to vector<16x1x64xf32>
    %232 = vector.shape_cast %231 : vector<16x1x64xf32> to vector<16x64xf32>
    %cst_88 = arith.constant 7.500000e-01 : f32
    %233 = vector.broadcast %cst_88 : f32 to vector<16x64xf32>
    %234 = arith.mulf %232, %233 : vector<16x64xf32>
    %235 = arith.addf %230, %234 : vector<16x64xf32>
    %236 = vector.shape_cast %235 : vector<16x64xf32> to vector<16x1x64xf32>
    %237 = vector.extract_strided_slice %46 {offsets = [0, 9, 0], sizes = [16, 1, 64], strides = [1, 1, 1]} : vector<16x16x64xf32> to vector<16x1x64xf32>
    %238 = vector.shape_cast %237 : vector<16x1x64xf32> to vector<16x64xf32>
    %cst_89 = arith.constant 7.500000e-01 : f32
    %239 = vector.broadcast %cst_89 : f32 to vector<16x64xf32>
    %240 = arith.mulf %238, %239 : vector<16x64xf32>
    %241 = vector.extract_strided_slice %46 {offsets = [0, 10, 0], sizes = [16, 1, 64], strides = [1, 1, 1]} : vector<16x16x64xf32> to vector<16x1x64xf32>
    %242 = vector.shape_cast %241 : vector<16x1x64xf32> to vector<16x64xf32>
    %cst_90 = arith.constant 2.500000e-01 : f32
    %243 = vector.broadcast %cst_90 : f32 to vector<16x64xf32>
    %244 = arith.mulf %242, %243 : vector<16x64xf32>
    %245 = arith.addf %240, %244 : vector<16x64xf32>
    %246 = vector.shape_cast %245 : vector<16x64xf32> to vector<16x1x64xf32>
    %247 = vector.extract_strided_slice %46 {offsets = [0, 9, 0], sizes = [16, 1, 64], strides = [1, 1, 1]} : vector<16x16x64xf32> to vector<16x1x64xf32>
    %248 = vector.shape_cast %247 : vector<16x1x64xf32> to vector<16x64xf32>
    %cst_91 = arith.constant 2.500000e-01 : f32
    %249 = vector.broadcast %cst_91 : f32 to vector<16x64xf32>
    %250 = arith.mulf %248, %249 : vector<16x64xf32>
    %251 = vector.extract_strided_slice %46 {offsets = [0, 10, 0], sizes = [16, 1, 64], strides = [1, 1, 1]} : vector<16x16x64xf32> to vector<16x1x64xf32>
    %252 = vector.shape_cast %251 : vector<16x1x64xf32> to vector<16x64xf32>
    %cst_92 = arith.constant 7.500000e-01 : f32
    %253 = vector.broadcast %cst_92 : f32 to vector<16x64xf32>
    %254 = arith.mulf %252, %253 : vector<16x64xf32>
    %255 = arith.addf %250, %254 : vector<16x64xf32>
    %256 = vector.shape_cast %255 : vector<16x64xf32> to vector<16x1x64xf32>
    %257 = vector.extract_strided_slice %46 {offsets = [0, 10, 0], sizes = [16, 1, 64], strides = [1, 1, 1]} : vector<16x16x64xf32> to vector<16x1x64xf32>
    %258 = vector.shape_cast %257 : vector<16x1x64xf32> to vector<16x64xf32>
    %cst_93 = arith.constant 7.500000e-01 : f32
    %259 = vector.broadcast %cst_93 : f32 to vector<16x64xf32>
    %260 = arith.mulf %258, %259 : vector<16x64xf32>
    %261 = vector.extract_strided_slice %46 {offsets = [0, 11, 0], sizes = [16, 1, 64], strides = [1, 1, 1]} : vector<16x16x64xf32> to vector<16x1x64xf32>
    %262 = vector.shape_cast %261 : vector<16x1x64xf32> to vector<16x64xf32>
    %cst_94 = arith.constant 2.500000e-01 : f32
    %263 = vector.broadcast %cst_94 : f32 to vector<16x64xf32>
    %264 = arith.mulf %262, %263 : vector<16x64xf32>
    %265 = arith.addf %260, %264 : vector<16x64xf32>
    %266 = vector.shape_cast %265 : vector<16x64xf32> to vector<16x1x64xf32>
    %267 = vector.extract_strided_slice %46 {offsets = [0, 10, 0], sizes = [16, 1, 64], strides = [1, 1, 1]} : vector<16x16x64xf32> to vector<16x1x64xf32>
    %268 = vector.shape_cast %267 : vector<16x1x64xf32> to vector<16x64xf32>
    %cst_95 = arith.constant 2.500000e-01 : f32
    %269 = vector.broadcast %cst_95 : f32 to vector<16x64xf32>
    %270 = arith.mulf %268, %269 : vector<16x64xf32>
    %271 = vector.extract_strided_slice %46 {offsets = [0, 11, 0], sizes = [16, 1, 64], strides = [1, 1, 1]} : vector<16x16x64xf32> to vector<16x1x64xf32>
    %272 = vector.shape_cast %271 : vector<16x1x64xf32> to vector<16x64xf32>
    %cst_96 = arith.constant 7.500000e-01 : f32
    %273 = vector.broadcast %cst_96 : f32 to vector<16x64xf32>
    %274 = arith.mulf %272, %273 : vector<16x64xf32>
    %275 = arith.addf %270, %274 : vector<16x64xf32>
    %276 = vector.shape_cast %275 : vector<16x64xf32> to vector<16x1x64xf32>
    %277 = vector.extract_strided_slice %46 {offsets = [0, 11, 0], sizes = [16, 1, 64], strides = [1, 1, 1]} : vector<16x16x64xf32> to vector<16x1x64xf32>
    %278 = vector.shape_cast %277 : vector<16x1x64xf32> to vector<16x64xf32>
    %cst_97 = arith.constant 7.500000e-01 : f32
    %279 = vector.broadcast %cst_97 : f32 to vector<16x64xf32>
    %280 = arith.mulf %278, %279 : vector<16x64xf32>
    %281 = vector.extract_strided_slice %46 {offsets = [0, 12, 0], sizes = [16, 1, 64], strides = [1, 1, 1]} : vector<16x16x64xf32> to vector<16x1x64xf32>
    %282 = vector.shape_cast %281 : vector<16x1x64xf32> to vector<16x64xf32>
    %cst_98 = arith.constant 2.500000e-01 : f32
    %283 = vector.broadcast %cst_98 : f32 to vector<16x64xf32>
    %284 = arith.mulf %282, %283 : vector<16x64xf32>
    %285 = arith.addf %280, %284 : vector<16x64xf32>
    %286 = vector.shape_cast %285 : vector<16x64xf32> to vector<16x1x64xf32>
    %287 = vector.extract_strided_slice %46 {offsets = [0, 11, 0], sizes = [16, 1, 64], strides = [1, 1, 1]} : vector<16x16x64xf32> to vector<16x1x64xf32>
    %288 = vector.shape_cast %287 : vector<16x1x64xf32> to vector<16x64xf32>
    %cst_99 = arith.constant 2.500000e-01 : f32
    %289 = vector.broadcast %cst_99 : f32 to vector<16x64xf32>
    %290 = arith.mulf %288, %289 : vector<16x64xf32>
    %291 = vector.extract_strided_slice %46 {offsets = [0, 12, 0], sizes = [16, 1, 64], strides = [1, 1, 1]} : vector<16x16x64xf32> to vector<16x1x64xf32>
    %292 = vector.shape_cast %291 : vector<16x1x64xf32> to vector<16x64xf32>
    %cst_100 = arith.constant 7.500000e-01 : f32
    %293 = vector.broadcast %cst_100 : f32 to vector<16x64xf32>
    %294 = arith.mulf %292, %293 : vector<16x64xf32>
    %295 = arith.addf %290, %294 : vector<16x64xf32>
    %296 = vector.shape_cast %295 : vector<16x64xf32> to vector<16x1x64xf32>
    %297 = vector.extract_strided_slice %46 {offsets = [0, 12, 0], sizes = [16, 1, 64], strides = [1, 1, 1]} : vector<16x16x64xf32> to vector<16x1x64xf32>
    %298 = vector.shape_cast %297 : vector<16x1x64xf32> to vector<16x64xf32>
    %cst_101 = arith.constant 7.500000e-01 : f32
    %299 = vector.broadcast %cst_101 : f32 to vector<16x64xf32>
    %300 = arith.mulf %298, %299 : vector<16x64xf32>
    %301 = vector.extract_strided_slice %46 {offsets = [0, 13, 0], sizes = [16, 1, 64], strides = [1, 1, 1]} : vector<16x16x64xf32> to vector<16x1x64xf32>
    %302 = vector.shape_cast %301 : vector<16x1x64xf32> to vector<16x64xf32>
    %cst_102 = arith.constant 2.500000e-01 : f32
    %303 = vector.broadcast %cst_102 : f32 to vector<16x64xf32>
    %304 = arith.mulf %302, %303 : vector<16x64xf32>
    %305 = arith.addf %300, %304 : vector<16x64xf32>
    %306 = vector.shape_cast %305 : vector<16x64xf32> to vector<16x1x64xf32>
    %307 = vector.extract_strided_slice %46 {offsets = [0, 12, 0], sizes = [16, 1, 64], strides = [1, 1, 1]} : vector<16x16x64xf32> to vector<16x1x64xf32>
    %308 = vector.shape_cast %307 : vector<16x1x64xf32> to vector<16x64xf32>
    %cst_103 = arith.constant 2.500000e-01 : f32
    %309 = vector.broadcast %cst_103 : f32 to vector<16x64xf32>
    %310 = arith.mulf %308, %309 : vector<16x64xf32>
    %311 = vector.extract_strided_slice %46 {offsets = [0, 13, 0], sizes = [16, 1, 64], strides = [1, 1, 1]} : vector<16x16x64xf32> to vector<16x1x64xf32>
    %312 = vector.shape_cast %311 : vector<16x1x64xf32> to vector<16x64xf32>
    %cst_104 = arith.constant 7.500000e-01 : f32
    %313 = vector.broadcast %cst_104 : f32 to vector<16x64xf32>
    %314 = arith.mulf %312, %313 : vector<16x64xf32>
    %315 = arith.addf %310, %314 : vector<16x64xf32>
    %316 = vector.shape_cast %315 : vector<16x64xf32> to vector<16x1x64xf32>
    %317 = vector.extract_strided_slice %46 {offsets = [0, 13, 0], sizes = [16, 1, 64], strides = [1, 1, 1]} : vector<16x16x64xf32> to vector<16x1x64xf32>
    %318 = vector.shape_cast %317 : vector<16x1x64xf32> to vector<16x64xf32>
    %cst_105 = arith.constant 7.500000e-01 : f32
    %319 = vector.broadcast %cst_105 : f32 to vector<16x64xf32>
    %320 = arith.mulf %318, %319 : vector<16x64xf32>
    %321 = vector.extract_strided_slice %46 {offsets = [0, 14, 0], sizes = [16, 1, 64], strides = [1, 1, 1]} : vector<16x16x64xf32> to vector<16x1x64xf32>
    %322 = vector.shape_cast %321 : vector<16x1x64xf32> to vector<16x64xf32>
    %cst_106 = arith.constant 2.500000e-01 : f32
    %323 = vector.broadcast %cst_106 : f32 to vector<16x64xf32>
    %324 = arith.mulf %322, %323 : vector<16x64xf32>
    %325 = arith.addf %320, %324 : vector<16x64xf32>
    %326 = vector.shape_cast %325 : vector<16x64xf32> to vector<16x1x64xf32>
    %327 = vector.extract_strided_slice %46 {offsets = [0, 13, 0], sizes = [16, 1, 64], strides = [1, 1, 1]} : vector<16x16x64xf32> to vector<16x1x64xf32>
    %328 = vector.shape_cast %327 : vector<16x1x64xf32> to vector<16x64xf32>
    %cst_107 = arith.constant 2.500000e-01 : f32
    %329 = vector.broadcast %cst_107 : f32 to vector<16x64xf32>
    %330 = arith.mulf %328, %329 : vector<16x64xf32>
    %331 = vector.extract_strided_slice %46 {offsets = [0, 14, 0], sizes = [16, 1, 64], strides = [1, 1, 1]} : vector<16x16x64xf32> to vector<16x1x64xf32>
    %332 = vector.shape_cast %331 : vector<16x1x64xf32> to vector<16x64xf32>
    %cst_108 = arith.constant 7.500000e-01 : f32
    %333 = vector.broadcast %cst_108 : f32 to vector<16x64xf32>
    %334 = arith.mulf %332, %333 : vector<16x64xf32>
    %335 = arith.addf %330, %334 : vector<16x64xf32>
    %336 = vector.shape_cast %335 : vector<16x64xf32> to vector<16x1x64xf32>
    %337 = vector.extract_strided_slice %46 {offsets = [0, 14, 0], sizes = [16, 1, 64], strides = [1, 1, 1]} : vector<16x16x64xf32> to vector<16x1x64xf32>
    %338 = vector.shape_cast %337 : vector<16x1x64xf32> to vector<16x64xf32>
    %cst_109 = arith.constant 7.500000e-01 : f32
    %339 = vector.broadcast %cst_109 : f32 to vector<16x64xf32>
    %340 = arith.mulf %338, %339 : vector<16x64xf32>
    %341 = vector.extract_strided_slice %46 {offsets = [0, 15, 0], sizes = [16, 1, 64], strides = [1, 1, 1]} : vector<16x16x64xf32> to vector<16x1x64xf32>
    %342 = vector.shape_cast %341 : vector<16x1x64xf32> to vector<16x64xf32>
    %cst_110 = arith.constant 2.500000e-01 : f32
    %343 = vector.broadcast %cst_110 : f32 to vector<16x64xf32>
    %344 = arith.mulf %342, %343 : vector<16x64xf32>
    %345 = arith.addf %340, %344 : vector<16x64xf32>
    %346 = vector.shape_cast %345 : vector<16x64xf32> to vector<16x1x64xf32>
    %347 = vector.extract_strided_slice %46 {offsets = [0, 14, 0], sizes = [16, 1, 64], strides = [1, 1, 1]} : vector<16x16x64xf32> to vector<16x1x64xf32>
    %348 = vector.shape_cast %347 : vector<16x1x64xf32> to vector<16x64xf32>
    %cst_111 = arith.constant 2.500000e-01 : f32
    %349 = vector.broadcast %cst_111 : f32 to vector<16x64xf32>
    %350 = arith.mulf %348, %349 : vector<16x64xf32>
    %351 = vector.extract_strided_slice %46 {offsets = [0, 15, 0], sizes = [16, 1, 64], strides = [1, 1, 1]} : vector<16x16x64xf32> to vector<16x1x64xf32>
    %352 = vector.shape_cast %351 : vector<16x1x64xf32> to vector<16x64xf32>
    %cst_112 = arith.constant 7.500000e-01 : f32
    %353 = vector.broadcast %cst_112 : f32 to vector<16x64xf32>
    %354 = arith.mulf %352, %353 : vector<16x64xf32>
    %355 = arith.addf %350, %354 : vector<16x64xf32>
    %356 = vector.shape_cast %355 : vector<16x64xf32> to vector<16x1x64xf32>
    %357 = vector.extract_strided_slice %46 {offsets = [0, 15, 0], sizes = [16, 1, 64], strides = [1, 1, 1]} : vector<16x16x64xf32> to vector<16x1x64xf32>
    %358 = vector.shape_cast %357 : vector<16x1x64xf32> to vector<16x64xf32>
    %cst_113 = arith.constant 7.500000e-01 : f32
    %359 = vector.broadcast %cst_113 : f32 to vector<16x64xf32>
    %360 = arith.mulf %358, %359 : vector<16x64xf32>
    %361 = vector.extract_strided_slice %46 {offsets = [0, 15, 0], sizes = [16, 1, 64], strides = [1, 1, 1]} : vector<16x16x64xf32> to vector<16x1x64xf32>
    %362 = vector.shape_cast %361 : vector<16x1x64xf32> to vector<16x64xf32>
    %cst_114 = arith.constant 2.500000e-01 : f32
    %363 = vector.broadcast %cst_114 : f32 to vector<16x64xf32>
    %364 = arith.mulf %362, %363 : vector<16x64xf32>
    %365 = arith.addf %360, %364 : vector<16x64xf32>
    %366 = vector.shape_cast %365 : vector<16x64xf32> to vector<16x1x64xf32>
    %367 = tpu.concatenate %56, %66, %76, %86, %96, %106, %116, %126, %136, %146, %156, %166, %176, %186, %196, %206 in 1 : vector<16x1x64xf32>, vector<16x1x64xf32>, vector<16x1x64xf32>, vector<16x1x64xf32>, vector<16x1x64xf32>, vector<16x1x64xf32>, vector<16x1x64xf32>, vector<16x1x64xf32>, vector<16x1x64xf32>, vector<16x1x64xf32>, vector<16x1x64xf32>, vector<16x1x64xf32>, vector<16x1x64xf32>, vector<16x1x64xf32>, vector<16x1x64xf32>, vector<16x1x64xf32> -> vector<16x16x64xf32>
    %368 = tpu.concatenate %216, %226, %236, %246, %256, %266, %276, %286, %296, %306, %316, %326, %336, %346, %356, %366 in 1 : vector<16x1x64xf32>, vector<16x1x64xf32>, vector<16x1x64xf32>, vector<16x1x64xf32>, vector<16x1x64xf32>, vector<16x1x64xf32>, vector<16x1x64xf32>, vector<16x1x64xf32>, vector<16x1x64xf32>, vector<16x1x64xf32>, vector<16x1x64xf32>, vector<16x1x64xf32>, vector<16x1x64xf32>, vector<16x1x64xf32>, vector<16x1x64xf32>, vector<16x1x64xf32> -> vector<16x16x64xf32>
    %369 = tpu.concatenate %367, %368 in 1 : vector<16x16x64xf32>, vector<16x16x64xf32> -> vector<16x32x64xf32>
    %370 = vector.extract_strided_slice %369 {offsets = [0, 0, 0], sizes = [1, 32, 64], strides = [1, 1, 1]} : vector<16x32x64xf32> to vector<1x32x64xf32>
    %371 = vector.shape_cast %370 : vector<1x32x64xf32> to vector<32x64xf32>
    %cst_115 = arith.constant 1.000000e+00 : f32
    %372 = vector.broadcast %cst_115 : f32 to vector<32x64xf32>
    %373 = arith.mulf %371, %372 : vector<32x64xf32>
    %374 = vector.extract_strided_slice %369 {offsets = [1, 0, 0], sizes = [1, 32, 64], strides = [1, 1, 1]} : vector<16x32x64xf32> to vector<1x32x64xf32>
    %375 = vector.shape_cast %374 : vector<1x32x64xf32> to vector<32x64xf32>
    %cst_116 = arith.constant 0.000000e+00 : f32
    %376 = vector.broadcast %cst_116 : f32 to vector<32x64xf32>
    %377 = arith.mulf %375, %376 : vector<32x64xf32>
    %378 = arith.addf %373, %377 : vector<32x64xf32>
    %379 = vector.shape_cast %378 : vector<32x64xf32> to vector<1x32x64xf32>
    %380 = vector.extract_strided_slice %369 {offsets = [0, 0, 0], sizes = [1, 32, 64], strides = [1, 1, 1]} : vector<16x32x64xf32> to vector<1x32x64xf32>
    %381 = vector.shape_cast %380 : vector<1x32x64xf32> to vector<32x64xf32>
    %cst_117 = arith.constant 7.500000e-01 : f32
    %382 = vector.broadcast %cst_117 : f32 to vector<32x64xf32>
    %383 = arith.mulf %381, %382 : vector<32x64xf32>
    %384 = vector.extract_strided_slice %369 {offsets = [1, 0, 0], sizes = [1, 32, 64], strides = [1, 1, 1]} : vector<16x32x64xf32> to vector<1x32x64xf32>
    %385 = vector.shape_cast %384 : vector<1x32x64xf32> to vector<32x64xf32>
    %cst_118 = arith.constant 2.500000e-01 : f32
    %386 = vector.broadcast %cst_118 : f32 to vector<32x64xf32>
    %387 = arith.mulf %385, %386 : vector<32x64xf32>
    %388 = arith.addf %383, %387 : vector<32x64xf32>
    %389 = vector.shape_cast %388 : vector<32x64xf32> to vector<1x32x64xf32>
    %390 = vector.extract_strided_slice %369 {offsets = [0, 0, 0], sizes = [1, 32, 64], strides = [1, 1, 1]} : vector<16x32x64xf32> to vector<1x32x64xf32>
    %391 = vector.shape_cast %390 : vector<1x32x64xf32> to vector<32x64xf32>
    %cst_119 = arith.constant 2.500000e-01 : f32
    %392 = vector.broadcast %cst_119 : f32 to vector<32x64xf32>
    %393 = arith.mulf %391, %392 : vector<32x64xf32>
    %394 = vector.extract_strided_slice %369 {offsets = [1, 0, 0], sizes = [1, 32, 64], strides = [1, 1, 1]} : vector<16x32x64xf32> to vector<1x32x64xf32>
    %395 = vector.shape_cast %394 : vector<1x32x64xf32> to vector<32x64xf32>
    %cst_120 = arith.constant 7.500000e-01 : f32
    %396 = vector.broadcast %cst_120 : f32 to vector<32x64xf32>
    %397 = arith.mulf %395, %396 : vector<32x64xf32>
    %398 = arith.addf %393, %397 : vector<32x64xf32>
    %399 = vector.shape_cast %398 : vector<32x64xf32> to vector<1x32x64xf32>
    %400 = vector.extract_strided_slice %369 {offsets = [1, 0, 0], sizes = [1, 32, 64], strides = [1, 1, 1]} : vector<16x32x64xf32> to vector<1x32x64xf32>
    %401 = vector.shape_cast %400 : vector<1x32x64xf32> to vector<32x64xf32>
    %cst_121 = arith.constant 7.500000e-01 : f32
    %402 = vector.broadcast %cst_121 : f32 to vector<32x64xf32>
    %403 = arith.mulf %401, %402 : vector<32x64xf32>
    %404 = vector.extract_strided_slice %369 {offsets = [2, 0, 0], sizes = [1, 32, 64], strides = [1, 1, 1]} : vector<16x32x64xf32> to vector<1x32x64xf32>
    %405 = vector.shape_cast %404 : vector<1x32x64xf32> to vector<32x64xf32>
    %cst_122 = arith.constant 2.500000e-01 : f32
    %406 = vector.broadcast %cst_122 : f32 to vector<32x64xf32>
    %407 = arith.mulf %405, %406 : vector<32x64xf32>
    %408 = arith.addf %403, %407 : vector<32x64xf32>
    %409 = vector.shape_cast %408 : vector<32x64xf32> to vector<1x32x64xf32>
    %410 = vector.extract_strided_slice %369 {offsets = [1, 0, 0], sizes = [1, 32, 64], strides = [1, 1, 1]} : vector<16x32x64xf32> to vector<1x32x64xf32>
    %411 = vector.shape_cast %410 : vector<1x32x64xf32> to vector<32x64xf32>
    %cst_123 = arith.constant 2.500000e-01 : f32
    %412 = vector.broadcast %cst_123 : f32 to vector<32x64xf32>
    %413 = arith.mulf %411, %412 : vector<32x64xf32>
    %414 = vector.extract_strided_slice %369 {offsets = [2, 0, 0], sizes = [1, 32, 64], strides = [1, 1, 1]} : vector<16x32x64xf32> to vector<1x32x64xf32>
    %415 = vector.shape_cast %414 : vector<1x32x64xf32> to vector<32x64xf32>
    %cst_124 = arith.constant 7.500000e-01 : f32
    %416 = vector.broadcast %cst_124 : f32 to vector<32x64xf32>
    %417 = arith.mulf %415, %416 : vector<32x64xf32>
    %418 = arith.addf %413, %417 : vector<32x64xf32>
    %419 = vector.shape_cast %418 : vector<32x64xf32> to vector<1x32x64xf32>
    %420 = vector.extract_strided_slice %369 {offsets = [2, 0, 0], sizes = [1, 32, 64], strides = [1, 1, 1]} : vector<16x32x64xf32> to vector<1x32x64xf32>
    %421 = vector.shape_cast %420 : vector<1x32x64xf32> to vector<32x64xf32>
    %cst_125 = arith.constant 7.500000e-01 : f32
    %422 = vector.broadcast %cst_125 : f32 to vector<32x64xf32>
    %423 = arith.mulf %421, %422 : vector<32x64xf32>
    %424 = vector.extract_strided_slice %369 {offsets = [3, 0, 0], sizes = [1, 32, 64], strides = [1, 1, 1]} : vector<16x32x64xf32> to vector<1x32x64xf32>
    %425 = vector.shape_cast %424 : vector<1x32x64xf32> to vector<32x64xf32>
    %cst_126 = arith.constant 2.500000e-01 : f32
    %426 = vector.broadcast %cst_126 : f32 to vector<32x64xf32>
    %427 = arith.mulf %425, %426 : vector<32x64xf32>
    %428 = arith.addf %423, %427 : vector<32x64xf32>
    %429 = vector.shape_cast %428 : vector<32x64xf32> to vector<1x32x64xf32>
    %430 = vector.extract_strided_slice %369 {offsets = [2, 0, 0], sizes = [1, 32, 64], strides = [1, 1, 1]} : vector<16x32x64xf32> to vector<1x32x64xf32>
    %431 = vector.shape_cast %430 : vector<1x32x64xf32> to vector<32x64xf32>
    %cst_127 = arith.constant 2.500000e-01 : f32
    %432 = vector.broadcast %cst_127 : f32 to vector<32x64xf32>
    %433 = arith.mulf %431, %432 : vector<32x64xf32>
    %434 = vector.extract_strided_slice %369 {offsets = [3, 0, 0], sizes = [1, 32, 64], strides = [1, 1, 1]} : vector<16x32x64xf32> to vector<1x32x64xf32>
    %435 = vector.shape_cast %434 : vector<1x32x64xf32> to vector<32x64xf32>
    %cst_128 = arith.constant 7.500000e-01 : f32
    %436 = vector.broadcast %cst_128 : f32 to vector<32x64xf32>
    %437 = arith.mulf %435, %436 : vector<32x64xf32>
    %438 = arith.addf %433, %437 : vector<32x64xf32>
    %439 = vector.shape_cast %438 : vector<32x64xf32> to vector<1x32x64xf32>
    %440 = vector.extract_strided_slice %369 {offsets = [3, 0, 0], sizes = [1, 32, 64], strides = [1, 1, 1]} : vector<16x32x64xf32> to vector<1x32x64xf32>
    %441 = vector.shape_cast %440 : vector<1x32x64xf32> to vector<32x64xf32>
    %cst_129 = arith.constant 7.500000e-01 : f32
    %442 = vector.broadcast %cst_129 : f32 to vector<32x64xf32>
    %443 = arith.mulf %441, %442 : vector<32x64xf32>
    %444 = vector.extract_strided_slice %369 {offsets = [4, 0, 0], sizes = [1, 32, 64], strides = [1, 1, 1]} : vector<16x32x64xf32> to vector<1x32x64xf32>
    %445 = vector.shape_cast %444 : vector<1x32x64xf32> to vector<32x64xf32>
    %cst_130 = arith.constant 2.500000e-01 : f32
    %446 = vector.broadcast %cst_130 : f32 to vector<32x64xf32>
    %447 = arith.mulf %445, %446 : vector<32x64xf32>
    %448 = arith.addf %443, %447 : vector<32x64xf32>
    %449 = vector.shape_cast %448 : vector<32x64xf32> to vector<1x32x64xf32>
    %450 = vector.extract_strided_slice %369 {offsets = [3, 0, 0], sizes = [1, 32, 64], strides = [1, 1, 1]} : vector<16x32x64xf32> to vector<1x32x64xf32>
    %451 = vector.shape_cast %450 : vector<1x32x64xf32> to vector<32x64xf32>
    %cst_131 = arith.constant 2.500000e-01 : f32
    %452 = vector.broadcast %cst_131 : f32 to vector<32x64xf32>
    %453 = arith.mulf %451, %452 : vector<32x64xf32>
    %454 = vector.extract_strided_slice %369 {offsets = [4, 0, 0], sizes = [1, 32, 64], strides = [1, 1, 1]} : vector<16x32x64xf32> to vector<1x32x64xf32>
    %455 = vector.shape_cast %454 : vector<1x32x64xf32> to vector<32x64xf32>
    %cst_132 = arith.constant 7.500000e-01 : f32
    %456 = vector.broadcast %cst_132 : f32 to vector<32x64xf32>
    %457 = arith.mulf %455, %456 : vector<32x64xf32>
    %458 = arith.addf %453, %457 : vector<32x64xf32>
    %459 = vector.shape_cast %458 : vector<32x64xf32> to vector<1x32x64xf32>
    %460 = vector.extract_strided_slice %369 {offsets = [4, 0, 0], sizes = [1, 32, 64], strides = [1, 1, 1]} : vector<16x32x64xf32> to vector<1x32x64xf32>
    %461 = vector.shape_cast %460 : vector<1x32x64xf32> to vector<32x64xf32>
    %cst_133 = arith.constant 7.500000e-01 : f32
    %462 = vector.broadcast %cst_133 : f32 to vector<32x64xf32>
    %463 = arith.mulf %461, %462 : vector<32x64xf32>
    %464 = vector.extract_strided_slice %369 {offsets = [5, 0, 0], sizes = [1, 32, 64], strides = [1, 1, 1]} : vector<16x32x64xf32> to vector<1x32x64xf32>
    %465 = vector.shape_cast %464 : vector<1x32x64xf32> to vector<32x64xf32>
    %cst_134 = arith.constant 2.500000e-01 : f32
    %466 = vector.broadcast %cst_134 : f32 to vector<32x64xf32>
    %467 = arith.mulf %465, %466 : vector<32x64xf32>
    %468 = arith.addf %463, %467 : vector<32x64xf32>
    %469 = vector.shape_cast %468 : vector<32x64xf32> to vector<1x32x64xf32>
    %470 = vector.extract_strided_slice %369 {offsets = [4, 0, 0], sizes = [1, 32, 64], strides = [1, 1, 1]} : vector<16x32x64xf32> to vector<1x32x64xf32>
    %471 = vector.shape_cast %470 : vector<1x32x64xf32> to vector<32x64xf32>
    %cst_135 = arith.constant 2.500000e-01 : f32
    %472 = vector.broadcast %cst_135 : f32 to vector<32x64xf32>
    %473 = arith.mulf %471, %472 : vector<32x64xf32>
    %474 = vector.extract_strided_slice %369 {offsets = [5, 0, 0], sizes = [1, 32, 64], strides = [1, 1, 1]} : vector<16x32x64xf32> to vector<1x32x64xf32>
    %475 = vector.shape_cast %474 : vector<1x32x64xf32> to vector<32x64xf32>
    %cst_136 = arith.constant 7.500000e-01 : f32
    %476 = vector.broadcast %cst_136 : f32 to vector<32x64xf32>
    %477 = arith.mulf %475, %476 : vector<32x64xf32>
    %478 = arith.addf %473, %477 : vector<32x64xf32>
    %479 = vector.shape_cast %478 : vector<32x64xf32> to vector<1x32x64xf32>
    %480 = vector.extract_strided_slice %369 {offsets = [5, 0, 0], sizes = [1, 32, 64], strides = [1, 1, 1]} : vector<16x32x64xf32> to vector<1x32x64xf32>
    %481 = vector.shape_cast %480 : vector<1x32x64xf32> to vector<32x64xf32>
    %cst_137 = arith.constant 7.500000e-01 : f32
    %482 = vector.broadcast %cst_137 : f32 to vector<32x64xf32>
    %483 = arith.mulf %481, %482 : vector<32x64xf32>
    %484 = vector.extract_strided_slice %369 {offsets = [6, 0, 0], sizes = [1, 32, 64], strides = [1, 1, 1]} : vector<16x32x64xf32> to vector<1x32x64xf32>
    %485 = vector.shape_cast %484 : vector<1x32x64xf32> to vector<32x64xf32>
    %cst_138 = arith.constant 2.500000e-01 : f32
    %486 = vector.broadcast %cst_138 : f32 to vector<32x64xf32>
    %487 = arith.mulf %485, %486 : vector<32x64xf32>
    %488 = arith.addf %483, %487 : vector<32x64xf32>
    %489 = vector.shape_cast %488 : vector<32x64xf32> to vector<1x32x64xf32>
    %490 = vector.extract_strided_slice %369 {offsets = [5, 0, 0], sizes = [1, 32, 64], strides = [1, 1, 1]} : vector<16x32x64xf32> to vector<1x32x64xf32>
    %491 = vector.shape_cast %490 : vector<1x32x64xf32> to vector<32x64xf32>
    %cst_139 = arith.constant 2.500000e-01 : f32
    %492 = vector.broadcast %cst_139 : f32 to vector<32x64xf32>
    %493 = arith.mulf %491, %492 : vector<32x64xf32>
    %494 = vector.extract_strided_slice %369 {offsets = [6, 0, 0], sizes = [1, 32, 64], strides = [1, 1, 1]} : vector<16x32x64xf32> to vector<1x32x64xf32>
    %495 = vector.shape_cast %494 : vector<1x32x64xf32> to vector<32x64xf32>
    %cst_140 = arith.constant 7.500000e-01 : f32
    %496 = vector.broadcast %cst_140 : f32 to vector<32x64xf32>
    %497 = arith.mulf %495, %496 : vector<32x64xf32>
    %498 = arith.addf %493, %497 : vector<32x64xf32>
    %499 = vector.shape_cast %498 : vector<32x64xf32> to vector<1x32x64xf32>
    %500 = vector.extract_strided_slice %369 {offsets = [6, 0, 0], sizes = [1, 32, 64], strides = [1, 1, 1]} : vector<16x32x64xf32> to vector<1x32x64xf32>
    %501 = vector.shape_cast %500 : vector<1x32x64xf32> to vector<32x64xf32>
    %cst_141 = arith.constant 7.500000e-01 : f32
    %502 = vector.broadcast %cst_141 : f32 to vector<32x64xf32>
    %503 = arith.mulf %501, %502 : vector<32x64xf32>
    %504 = vector.extract_strided_slice %369 {offsets = [7, 0, 0], sizes = [1, 32, 64], strides = [1, 1, 1]} : vector<16x32x64xf32> to vector<1x32x64xf32>
    %505 = vector.shape_cast %504 : vector<1x32x64xf32> to vector<32x64xf32>
    %cst_142 = arith.constant 2.500000e-01 : f32
    %506 = vector.broadcast %cst_142 : f32 to vector<32x64xf32>
    %507 = arith.mulf %505, %506 : vector<32x64xf32>
    %508 = arith.addf %503, %507 : vector<32x64xf32>
    %509 = vector.shape_cast %508 : vector<32x64xf32> to vector<1x32x64xf32>
    %510 = vector.extract_strided_slice %369 {offsets = [6, 0, 0], sizes = [1, 32, 64], strides = [1, 1, 1]} : vector<16x32x64xf32> to vector<1x32x64xf32>
    %511 = vector.shape_cast %510 : vector<1x32x64xf32> to vector<32x64xf32>
    %cst_143 = arith.constant 2.500000e-01 : f32
    %512 = vector.broadcast %cst_143 : f32 to vector<32x64xf32>
    %513 = arith.mulf %511, %512 : vector<32x64xf32>
    %514 = vector.extract_strided_slice %369 {offsets = [7, 0, 0], sizes = [1, 32, 64], strides = [1, 1, 1]} : vector<16x32x64xf32> to vector<1x32x64xf32>
    %515 = vector.shape_cast %514 : vector<1x32x64xf32> to vector<32x64xf32>
    %cst_144 = arith.constant 7.500000e-01 : f32
    %516 = vector.broadcast %cst_144 : f32 to vector<32x64xf32>
    %517 = arith.mulf %515, %516 : vector<32x64xf32>
    %518 = arith.addf %513, %517 : vector<32x64xf32>
    %519 = vector.shape_cast %518 : vector<32x64xf32> to vector<1x32x64xf32>
    %520 = vector.extract_strided_slice %369 {offsets = [7, 0, 0], sizes = [1, 32, 64], strides = [1, 1, 1]} : vector<16x32x64xf32> to vector<1x32x64xf32>
    %521 = vector.shape_cast %520 : vector<1x32x64xf32> to vector<32x64xf32>
    %cst_145 = arith.constant 7.500000e-01 : f32
    %522 = vector.broadcast %cst_145 : f32 to vector<32x64xf32>
    %523 = arith.mulf %521, %522 : vector<32x64xf32>
    %524 = vector.extract_strided_slice %369 {offsets = [8, 0, 0], sizes = [1, 32, 64], strides = [1, 1, 1]} : vector<16x32x64xf32> to vector<1x32x64xf32>
    %525 = vector.shape_cast %524 : vector<1x32x64xf32> to vector<32x64xf32>
    %cst_146 = arith.constant 2.500000e-01 : f32
    %526 = vector.broadcast %cst_146 : f32 to vector<32x64xf32>
    %527 = arith.mulf %525, %526 : vector<32x64xf32>
    %528 = arith.addf %523, %527 : vector<32x64xf32>
    %529 = vector.shape_cast %528 : vector<32x64xf32> to vector<1x32x64xf32>
    %530 = vector.extract_strided_slice %369 {offsets = [7, 0, 0], sizes = [1, 32, 64], strides = [1, 1, 1]} : vector<16x32x64xf32> to vector<1x32x64xf32>
    %531 = vector.shape_cast %530 : vector<1x32x64xf32> to vector<32x64xf32>
    %cst_147 = arith.constant 2.500000e-01 : f32
    %532 = vector.broadcast %cst_147 : f32 to vector<32x64xf32>
    %533 = arith.mulf %531, %532 : vector<32x64xf32>
    %534 = vector.extract_strided_slice %369 {offsets = [8, 0, 0], sizes = [1, 32, 64], strides = [1, 1, 1]} : vector<16x32x64xf32> to vector<1x32x64xf32>
    %535 = vector.shape_cast %534 : vector<1x32x64xf32> to vector<32x64xf32>
    %cst_148 = arith.constant 7.500000e-01 : f32
    %536 = vector.broadcast %cst_148 : f32 to vector<32x64xf32>
    %537 = arith.mulf %535, %536 : vector<32x64xf32>
    %538 = arith.addf %533, %537 : vector<32x64xf32>
    %539 = vector.shape_cast %538 : vector<32x64xf32> to vector<1x32x64xf32>
    %540 = vector.extract_strided_slice %369 {offsets = [8, 0, 0], sizes = [1, 32, 64], strides = [1, 1, 1]} : vector<16x32x64xf32> to vector<1x32x64xf32>
    %541 = vector.shape_cast %540 : vector<1x32x64xf32> to vector<32x64xf32>
    %cst_149 = arith.constant 7.500000e-01 : f32
    %542 = vector.broadcast %cst_149 : f32 to vector<32x64xf32>
    %543 = arith.mulf %541, %542 : vector<32x64xf32>
    %544 = vector.extract_strided_slice %369 {offsets = [9, 0, 0], sizes = [1, 32, 64], strides = [1, 1, 1]} : vector<16x32x64xf32> to vector<1x32x64xf32>
    %545 = vector.shape_cast %544 : vector<1x32x64xf32> to vector<32x64xf32>
    %cst_150 = arith.constant 2.500000e-01 : f32
    %546 = vector.broadcast %cst_150 : f32 to vector<32x64xf32>
    %547 = arith.mulf %545, %546 : vector<32x64xf32>
    %548 = arith.addf %543, %547 : vector<32x64xf32>
    %549 = vector.shape_cast %548 : vector<32x64xf32> to vector<1x32x64xf32>
    %550 = vector.extract_strided_slice %369 {offsets = [8, 0, 0], sizes = [1, 32, 64], strides = [1, 1, 1]} : vector<16x32x64xf32> to vector<1x32x64xf32>
    %551 = vector.shape_cast %550 : vector<1x32x64xf32> to vector<32x64xf32>
    %cst_151 = arith.constant 2.500000e-01 : f32
    %552 = vector.broadcast %cst_151 : f32 to vector<32x64xf32>
    %553 = arith.mulf %551, %552 : vector<32x64xf32>
    %554 = vector.extract_strided_slice %369 {offsets = [9, 0, 0], sizes = [1, 32, 64], strides = [1, 1, 1]} : vector<16x32x64xf32> to vector<1x32x64xf32>
    %555 = vector.shape_cast %554 : vector<1x32x64xf32> to vector<32x64xf32>
    %cst_152 = arith.constant 7.500000e-01 : f32
    %556 = vector.broadcast %cst_152 : f32 to vector<32x64xf32>
    %557 = arith.mulf %555, %556 : vector<32x64xf32>
    %558 = arith.addf %553, %557 : vector<32x64xf32>
    %559 = vector.shape_cast %558 : vector<32x64xf32> to vector<1x32x64xf32>
    %560 = vector.extract_strided_slice %369 {offsets = [9, 0, 0], sizes = [1, 32, 64], strides = [1, 1, 1]} : vector<16x32x64xf32> to vector<1x32x64xf32>
    %561 = vector.shape_cast %560 : vector<1x32x64xf32> to vector<32x64xf32>
    %cst_153 = arith.constant 7.500000e-01 : f32
    %562 = vector.broadcast %cst_153 : f32 to vector<32x64xf32>
    %563 = arith.mulf %561, %562 : vector<32x64xf32>
    %564 = vector.extract_strided_slice %369 {offsets = [10, 0, 0], sizes = [1, 32, 64], strides = [1, 1, 1]} : vector<16x32x64xf32> to vector<1x32x64xf32>
    %565 = vector.shape_cast %564 : vector<1x32x64xf32> to vector<32x64xf32>
    %cst_154 = arith.constant 2.500000e-01 : f32
    %566 = vector.broadcast %cst_154 : f32 to vector<32x64xf32>
    %567 = arith.mulf %565, %566 : vector<32x64xf32>
    %568 = arith.addf %563, %567 : vector<32x64xf32>
    %569 = vector.shape_cast %568 : vector<32x64xf32> to vector<1x32x64xf32>
    %570 = vector.extract_strided_slice %369 {offsets = [9, 0, 0], sizes = [1, 32, 64], strides = [1, 1, 1]} : vector<16x32x64xf32> to vector<1x32x64xf32>
    %571 = vector.shape_cast %570 : vector<1x32x64xf32> to vector<32x64xf32>
    %cst_155 = arith.constant 2.500000e-01 : f32
    %572 = vector.broadcast %cst_155 : f32 to vector<32x64xf32>
    %573 = arith.mulf %571, %572 : vector<32x64xf32>
    %574 = vector.extract_strided_slice %369 {offsets = [10, 0, 0], sizes = [1, 32, 64], strides = [1, 1, 1]} : vector<16x32x64xf32> to vector<1x32x64xf32>
    %575 = vector.shape_cast %574 : vector<1x32x64xf32> to vector<32x64xf32>
    %cst_156 = arith.constant 7.500000e-01 : f32
    %576 = vector.broadcast %cst_156 : f32 to vector<32x64xf32>
    %577 = arith.mulf %575, %576 : vector<32x64xf32>
    %578 = arith.addf %573, %577 : vector<32x64xf32>
    %579 = vector.shape_cast %578 : vector<32x64xf32> to vector<1x32x64xf32>
    %580 = vector.extract_strided_slice %369 {offsets = [10, 0, 0], sizes = [1, 32, 64], strides = [1, 1, 1]} : vector<16x32x64xf32> to vector<1x32x64xf32>
    %581 = vector.shape_cast %580 : vector<1x32x64xf32> to vector<32x64xf32>
    %cst_157 = arith.constant 7.500000e-01 : f32
    %582 = vector.broadcast %cst_157 : f32 to vector<32x64xf32>
    %583 = arith.mulf %581, %582 : vector<32x64xf32>
    %584 = vector.extract_strided_slice %369 {offsets = [11, 0, 0], sizes = [1, 32, 64], strides = [1, 1, 1]} : vector<16x32x64xf32> to vector<1x32x64xf32>
    %585 = vector.shape_cast %584 : vector<1x32x64xf32> to vector<32x64xf32>
    %cst_158 = arith.constant 2.500000e-01 : f32
    %586 = vector.broadcast %cst_158 : f32 to vector<32x64xf32>
    %587 = arith.mulf %585, %586 : vector<32x64xf32>
    %588 = arith.addf %583, %587 : vector<32x64xf32>
    %589 = vector.shape_cast %588 : vector<32x64xf32> to vector<1x32x64xf32>
    %590 = vector.extract_strided_slice %369 {offsets = [10, 0, 0], sizes = [1, 32, 64], strides = [1, 1, 1]} : vector<16x32x64xf32> to vector<1x32x64xf32>
    %591 = vector.shape_cast %590 : vector<1x32x64xf32> to vector<32x64xf32>
    %cst_159 = arith.constant 2.500000e-01 : f32
    %592 = vector.broadcast %cst_159 : f32 to vector<32x64xf32>
    %593 = arith.mulf %591, %592 : vector<32x64xf32>
    %594 = vector.extract_strided_slice %369 {offsets = [11, 0, 0], sizes = [1, 32, 64], strides = [1, 1, 1]} : vector<16x32x64xf32> to vector<1x32x64xf32>
    %595 = vector.shape_cast %594 : vector<1x32x64xf32> to vector<32x64xf32>
    %cst_160 = arith.constant 7.500000e-01 : f32
    %596 = vector.broadcast %cst_160 : f32 to vector<32x64xf32>
    %597 = arith.mulf %595, %596 : vector<32x64xf32>
    %598 = arith.addf %593, %597 : vector<32x64xf32>
    %599 = vector.shape_cast %598 : vector<32x64xf32> to vector<1x32x64xf32>
    %600 = vector.extract_strided_slice %369 {offsets = [11, 0, 0], sizes = [1, 32, 64], strides = [1, 1, 1]} : vector<16x32x64xf32> to vector<1x32x64xf32>
    %601 = vector.shape_cast %600 : vector<1x32x64xf32> to vector<32x64xf32>
    %cst_161 = arith.constant 7.500000e-01 : f32
    %602 = vector.broadcast %cst_161 : f32 to vector<32x64xf32>
    %603 = arith.mulf %601, %602 : vector<32x64xf32>
    %604 = vector.extract_strided_slice %369 {offsets = [12, 0, 0], sizes = [1, 32, 64], strides = [1, 1, 1]} : vector<16x32x64xf32> to vector<1x32x64xf32>
    %605 = vector.shape_cast %604 : vector<1x32x64xf32> to vector<32x64xf32>
    %cst_162 = arith.constant 2.500000e-01 : f32
    %606 = vector.broadcast %cst_162 : f32 to vector<32x64xf32>
    %607 = arith.mulf %605, %606 : vector<32x64xf32>
    %608 = arith.addf %603, %607 : vector<32x64xf32>
    %609 = vector.shape_cast %608 : vector<32x64xf32> to vector<1x32x64xf32>
    %610 = vector.extract_strided_slice %369 {offsets = [11, 0, 0], sizes = [1, 32, 64], strides = [1, 1, 1]} : vector<16x32x64xf32> to vector<1x32x64xf32>
    %611 = vector.shape_cast %610 : vector<1x32x64xf32> to vector<32x64xf32>
    %cst_163 = arith.constant 2.500000e-01 : f32
    %612 = vector.broadcast %cst_163 : f32 to vector<32x64xf32>
    %613 = arith.mulf %611, %612 : vector<32x64xf32>
    %614 = vector.extract_strided_slice %369 {offsets = [12, 0, 0], sizes = [1, 32, 64], strides = [1, 1, 1]} : vector<16x32x64xf32> to vector<1x32x64xf32>
    %615 = vector.shape_cast %614 : vector<1x32x64xf32> to vector<32x64xf32>
    %cst_164 = arith.constant 7.500000e-01 : f32
    %616 = vector.broadcast %cst_164 : f32 to vector<32x64xf32>
    %617 = arith.mulf %615, %616 : vector<32x64xf32>
    %618 = arith.addf %613, %617 : vector<32x64xf32>
    %619 = vector.shape_cast %618 : vector<32x64xf32> to vector<1x32x64xf32>
    %620 = vector.extract_strided_slice %369 {offsets = [12, 0, 0], sizes = [1, 32, 64], strides = [1, 1, 1]} : vector<16x32x64xf32> to vector<1x32x64xf32>
    %621 = vector.shape_cast %620 : vector<1x32x64xf32> to vector<32x64xf32>
    %cst_165 = arith.constant 7.500000e-01 : f32
    %622 = vector.broadcast %cst_165 : f32 to vector<32x64xf32>
    %623 = arith.mulf %621, %622 : vector<32x64xf32>
    %624 = vector.extract_strided_slice %369 {offsets = [13, 0, 0], sizes = [1, 32, 64], strides = [1, 1, 1]} : vector<16x32x64xf32> to vector<1x32x64xf32>
    %625 = vector.shape_cast %624 : vector<1x32x64xf32> to vector<32x64xf32>
    %cst_166 = arith.constant 2.500000e-01 : f32
    %626 = vector.broadcast %cst_166 : f32 to vector<32x64xf32>
    %627 = arith.mulf %625, %626 : vector<32x64xf32>
    %628 = arith.addf %623, %627 : vector<32x64xf32>
    %629 = vector.shape_cast %628 : vector<32x64xf32> to vector<1x32x64xf32>
    %630 = vector.extract_strided_slice %369 {offsets = [12, 0, 0], sizes = [1, 32, 64], strides = [1, 1, 1]} : vector<16x32x64xf32> to vector<1x32x64xf32>
    %631 = vector.shape_cast %630 : vector<1x32x64xf32> to vector<32x64xf32>
    %cst_167 = arith.constant 2.500000e-01 : f32
    %632 = vector.broadcast %cst_167 : f32 to vector<32x64xf32>
    %633 = arith.mulf %631, %632 : vector<32x64xf32>
    %634 = vector.extract_strided_slice %369 {offsets = [13, 0, 0], sizes = [1, 32, 64], strides = [1, 1, 1]} : vector<16x32x64xf32> to vector<1x32x64xf32>
    %635 = vector.shape_cast %634 : vector<1x32x64xf32> to vector<32x64xf32>
    %cst_168 = arith.constant 7.500000e-01 : f32
    %636 = vector.broadcast %cst_168 : f32 to vector<32x64xf32>
    %637 = arith.mulf %635, %636 : vector<32x64xf32>
    %638 = arith.addf %633, %637 : vector<32x64xf32>
    %639 = vector.shape_cast %638 : vector<32x64xf32> to vector<1x32x64xf32>
    %640 = vector.extract_strided_slice %369 {offsets = [13, 0, 0], sizes = [1, 32, 64], strides = [1, 1, 1]} : vector<16x32x64xf32> to vector<1x32x64xf32>
    %641 = vector.shape_cast %640 : vector<1x32x64xf32> to vector<32x64xf32>
    %cst_169 = arith.constant 7.500000e-01 : f32
    %642 = vector.broadcast %cst_169 : f32 to vector<32x64xf32>
    %643 = arith.mulf %641, %642 : vector<32x64xf32>
    %644 = vector.extract_strided_slice %369 {offsets = [14, 0, 0], sizes = [1, 32, 64], strides = [1, 1, 1]} : vector<16x32x64xf32> to vector<1x32x64xf32>
    %645 = vector.shape_cast %644 : vector<1x32x64xf32> to vector<32x64xf32>
    %cst_170 = arith.constant 2.500000e-01 : f32
    %646 = vector.broadcast %cst_170 : f32 to vector<32x64xf32>
    %647 = arith.mulf %645, %646 : vector<32x64xf32>
    %648 = arith.addf %643, %647 : vector<32x64xf32>
    %649 = vector.shape_cast %648 : vector<32x64xf32> to vector<1x32x64xf32>
    %650 = vector.extract_strided_slice %369 {offsets = [13, 0, 0], sizes = [1, 32, 64], strides = [1, 1, 1]} : vector<16x32x64xf32> to vector<1x32x64xf32>
    %651 = vector.shape_cast %650 : vector<1x32x64xf32> to vector<32x64xf32>
    %cst_171 = arith.constant 2.500000e-01 : f32
    %652 = vector.broadcast %cst_171 : f32 to vector<32x64xf32>
    %653 = arith.mulf %651, %652 : vector<32x64xf32>
    %654 = vector.extract_strided_slice %369 {offsets = [14, 0, 0], sizes = [1, 32, 64], strides = [1, 1, 1]} : vector<16x32x64xf32> to vector<1x32x64xf32>
    %655 = vector.shape_cast %654 : vector<1x32x64xf32> to vector<32x64xf32>
    %cst_172 = arith.constant 7.500000e-01 : f32
    %656 = vector.broadcast %cst_172 : f32 to vector<32x64xf32>
    %657 = arith.mulf %655, %656 : vector<32x64xf32>
    %658 = arith.addf %653, %657 : vector<32x64xf32>
    %659 = vector.shape_cast %658 : vector<32x64xf32> to vector<1x32x64xf32>
    %660 = vector.extract_strided_slice %369 {offsets = [14, 0, 0], sizes = [1, 32, 64], strides = [1, 1, 1]} : vector<16x32x64xf32> to vector<1x32x64xf32>
    %661 = vector.shape_cast %660 : vector<1x32x64xf32> to vector<32x64xf32>
    %cst_173 = arith.constant 7.500000e-01 : f32
    %662 = vector.broadcast %cst_173 : f32 to vector<32x64xf32>
    %663 = arith.mulf %661, %662 : vector<32x64xf32>
    %664 = vector.extract_strided_slice %369 {offsets = [15, 0, 0], sizes = [1, 32, 64], strides = [1, 1, 1]} : vector<16x32x64xf32> to vector<1x32x64xf32>
    %665 = vector.shape_cast %664 : vector<1x32x64xf32> to vector<32x64xf32>
    %cst_174 = arith.constant 2.500000e-01 : f32
    %666 = vector.broadcast %cst_174 : f32 to vector<32x64xf32>
    %667 = arith.mulf %665, %666 : vector<32x64xf32>
    %668 = arith.addf %663, %667 : vector<32x64xf32>
    %669 = vector.shape_cast %668 : vector<32x64xf32> to vector<1x32x64xf32>
    %670 = vector.extract_strided_slice %369 {offsets = [14, 0, 0], sizes = [1, 32, 64], strides = [1, 1, 1]} : vector<16x32x64xf32> to vector<1x32x64xf32>
    %671 = vector.shape_cast %670 : vector<1x32x64xf32> to vector<32x64xf32>
    %cst_175 = arith.constant 2.500000e-01 : f32
    %672 = vector.broadcast %cst_175 : f32 to vector<32x64xf32>
    %673 = arith.mulf %671, %672 : vector<32x64xf32>
    %674 = vector.extract_strided_slice %369 {offsets = [15, 0, 0], sizes = [1, 32, 64], strides = [1, 1, 1]} : vector<16x32x64xf32> to vector<1x32x64xf32>
    %675 = vector.shape_cast %674 : vector<1x32x64xf32> to vector<32x64xf32>
    %cst_176 = arith.constant 7.500000e-01 : f32
    %676 = vector.broadcast %cst_176 : f32 to vector<32x64xf32>
    %677 = arith.mulf %675, %676 : vector<32x64xf32>
    %678 = arith.addf %673, %677 : vector<32x64xf32>
    %679 = vector.shape_cast %678 : vector<32x64xf32> to vector<1x32x64xf32>
    %680 = vector.extract_strided_slice %369 {offsets = [15, 0, 0], sizes = [1, 32, 64], strides = [1, 1, 1]} : vector<16x32x64xf32> to vector<1x32x64xf32>
    %681 = vector.shape_cast %680 : vector<1x32x64xf32> to vector<32x64xf32>
    %cst_177 = arith.constant 7.500000e-01 : f32
    %682 = vector.broadcast %cst_177 : f32 to vector<32x64xf32>
    %683 = arith.mulf %681, %682 : vector<32x64xf32>
    %684 = vector.extract_strided_slice %369 {offsets = [15, 0, 0], sizes = [1, 32, 64], strides = [1, 1, 1]} : vector<16x32x64xf32> to vector<1x32x64xf32>
    %685 = vector.shape_cast %684 : vector<1x32x64xf32> to vector<32x64xf32>
    %cst_178 = arith.constant 2.500000e-01 : f32
    %686 = vector.broadcast %cst_178 : f32 to vector<32x64xf32>
    %687 = arith.mulf %685, %686 : vector<32x64xf32>
    %688 = arith.addf %683, %687 : vector<32x64xf32>
    %689 = vector.shape_cast %688 : vector<32x64xf32> to vector<1x32x64xf32>
    %690 = tpu.concatenate %379, %389, %399, %409, %419, %429, %439, %449, %459, %469, %479, %489, %499, %509, %519, %529 in 0 : vector<1x32x64xf32>, vector<1x32x64xf32>, vector<1x32x64xf32>, vector<1x32x64xf32>, vector<1x32x64xf32>, vector<1x32x64xf32>, vector<1x32x64xf32>, vector<1x32x64xf32>, vector<1x32x64xf32>, vector<1x32x64xf32>, vector<1x32x64xf32>, vector<1x32x64xf32>, vector<1x32x64xf32>, vector<1x32x64xf32>, vector<1x32x64xf32>, vector<1x32x64xf32> -> vector<16x32x64xf32>
    %691 = tpu.concatenate %539, %549, %559, %569, %579, %589, %599, %609, %619, %629, %639, %649, %659, %669, %679, %689 in 0 : vector<1x32x64xf32>, vector<1x32x64xf32>, vector<1x32x64xf32>, vector<1x32x64xf32>, vector<1x32x64xf32>, vector<1x32x64xf32>, vector<1x32x64xf32>, vector<1x32x64xf32>, vector<1x32x64xf32>, vector<1x32x64xf32>, vector<1x32x64xf32>, vector<1x32x64xf32>, vector<1x32x64xf32>, vector<1x32x64xf32>, vector<1x32x64xf32>, vector<1x32x64xf32> -> vector<16x32x64xf32>
    %692 = tpu.concatenate %690, %691 in 0 : vector<16x32x64xf32>, vector<16x32x64xf32> -> vector<32x32x64xf32>
    %693 = vector.shape_cast %692 : vector<32x32x64xf32> to vector<1024x64xf32>
    %694 = arith.truncf %693 : vector<1024x64xf32> to vector<1024x64xbf16>
    %c0_179 = arith.constant 0 : index
    %c0_180 = arith.constant 0 : index
    %695 = vector.load %arg4[%c0_179, %c0_180] : memref<8x64xbf16, #tpu.memory_space<vmem>>, vector<8x64xbf16>
    %cst_181 = arith.constant dense<0.000000e+00> : vector<8x1024xf32>
    %696 = tpu.matmul %695, %694, %cst_181 {dimension_numbers = #tpu.dot_dimension_numbers<[1], [1], [0], [0], [0, 0, 1, 0], [], []>} : vector<8x64xbf16>, vector<1024x64xbf16>, vector<8x1024xf32> -> vector<8x1024xf32>
    %c0_182 = arith.constant 0 : index
    %c0_183 = arith.constant 0 : index
    %c0_184 = arith.constant 0 : index
    %697 = vector.load %arg5[%c0_182, %c0_183, %c0_184] : memref<1x8x1024xf32, #tpu.memory_space<vmem>>, vector<1x8x1024xf32>
    %698 = vector.shape_cast %697 : vector<1x8x1024xf32> to vector<8x1024xf32>
    %699 = vector.shape_cast %696 : vector<8x1024xf32> to vector<1x8x1024xf32>
    tpu.vector_store %arg5[%c0_182, %c0_183, %c0_184], %699 {strides = array<i32>} : memref<1x8x1024xf32, #tpu.memory_space<vmem>>, vector<1x8x1024xf32>,
    return
  }
  func.func @transform_0(%arg0: i32) -> (i32, i32, i32, i32) {
    %c0_i32 = arith.constant 0 : i32
    %c0_i32_0 = arith.constant 0 : i32
    %c0_i32_1 = arith.constant 0 : i32
    %c0_i32_2 = arith.constant 0 : i32
    return %arg0, %c0_i32, %c0_i32_0, %c0_i32_1 : i32, i32, i32, i32
  }
  func.func @transform_1(%arg0: i32) -> (i32, i32, i32) {
    %c0_i32 = arith.constant 0 : i32
    %c0_i32_0 = arith.constant 0 : i32
    %c0_i32_1 = arith.constant 0 : i32
    %c0_i32_2 = arith.constant 0 : i32
    return %c0_i32, %c0_i32_0, %c0_i32_1 : i32, i32, i32
  }
  func.func @transform_2(%arg0: i32) -> (i32, i32) {
    %c0_i32 = arith.constant 0 : i32
    %c0_i32_0 = arith.constant 0 : i32
    %c0_i32_1 = arith.constant 0 : i32
    return %c0_i32, %c0_i32_0 : i32, i32
  }
  func.func @transform_3(%arg0: i32) -> (i32, i32) {
    %c0_i32 = arith.constant 0 : i32
    %c0_i32_0 = arith.constant 0 : i32
    %c0_i32_1 = arith.constant 0 : i32
    return %c0_i32, %c0_i32_0 : i32, i32
  }
  func.func @transform_4(%arg0: i32) -> (i32, i32, i32) {
    %c0_i32 = arith.constant 0 : i32
    %c0_i32_0 = arith.constant 0 : i32
    %c0_i32_1 = arith.constant 0 : i32
    return %arg0, %c0_i32, %c0_i32_0 : i32, i32, i32
  }
}

</mosaic_0001>

<bundles_post_ra>
// kernel: tpu_custom_call.1
= control target key start
LH: loop header
LB: loop body
LE: loop exit
PB: predicated region body
PF: predicated region fallthrough
CT: control target
= control target key end

     0   :  { %9 = vsyncpa [#allocation4], 0  ;;  %s11399_s0 = inlined_call_operand.vmem [shape: bf16[2,16,16,64], index: 0, kind: input, shape index: {}]   ;;  %s11400_s1 = inlined_call_operand.vmem [shape: bf16[3,192,64], index: 1, kind: input, shape index: {}]   ;;  %s11401_s2 = inlined_call_operand.vmem [shape: f32[1,64], index: 2, kind: input, shape index: {}]   ;;  %s11402_s3 = inlined_call_operand.vmem [shape: bf16[8,64], index: 3, kind: input, shape index: {}]   ;;  %s11403_s4 = inlined_call_operand.hbm [shape: f32[2,8,1024], index: 4, kind: output, shape index: {}]  }
   0x1   :  { %11 = vsyncpa [#allocation4 + $0x1], 0  ;;  %s7735_s15 = smov 0   ;;  %s7737_s16 = smov 0  }
   0x2   :  { %s7739_s17 = smov 0   ;;  %s7741_s18 = smov 0  }
   0x3 LB: > { %s7756_s19 = sadd.s32 4294967295, %s7705_s18   ;;  %s6991_s20 = sadd.s32 4294967294, %s7705_s18   ;;  %s7705_s18 = sphi %s7741_s18, %s11833_s18   ;;  %s7701_s17 = sphi %s7739_s17, %s11832_s17   ;;  %s7697_s16 = sphi %s7737_s16, %s11831_s16   ;;  %s7693_s15 = sphi %s7735_s15, %s11830_s15  }
   0x4   : > { %s7760_s21 = sadd.s32 1, %s7705_s18   ;;  %s113_s22 = sadd.s32 1, %s7701_s17 }
   0x5   : > { %s110_s23 = ssub.s32 %s7705_s18, %s7760_s21  ;;  %p123_p0 = scmp.ne.s32.totalorder %s7701_s17, %s7697_s16 }
   0x6   : > { %p111_p1 = scmp.eq.s32.totalorder %s110_s23, 0  ;;  %p124_p2 = scmp.eq.s32.totalorder %s7756_s19, 1 }
   0x7   : > { %p129_p3 = scmp.ne.s32.totalorder %s7697_s16, %s7693_s15  ;;  %p130_p4 = scmp.eq.s32.totalorder %s6991_s20, 1 }
   0x8   : > { %s7771_s24 = scalar_select %p111_p1, %s7701_s17, %s113_s22  }
   0x9   : > { %p7773_p5 = por %p124_p2, %p123_p0  ;;  %p7777_p6 = por %p130_p4, %p129_p3 }
   0xa   : > { %p6994_p7 = scmp.ge.s32.totalorder %s7705_s18, 1  ;;  %p165_p8 = scmp.lt.s32.totalorder %s7705_s18, 3 }
   0xc   : > { %p166_p9 = pnand %p6994_p7, %p165_p8 }
   0xe   : > { %169 = sbr.rel (%p166_p9) target bundleno = 1244 (0x4dc), region = 36 }
  0x13   : > { %p191_p10 = scmp.lt.s32.totalorder %s7756_s19, 1  ;;  %vm197_vm0 = vcmask 519168   ;;  %vm200_vm1 = vcmask 516096   ;;  %v7707_v0 = vmov 0   ;;  %vm285_vm2 = vsmask.f32 256 }
  0x14   : > { %202 = vst.msk [vmem:[#allocation2 + $0xc] sm:$0xf] %vm197_vm0, %v7707_v0  ;;  %203 = vst.msk [vmem:[#allocation2 + $0x10] sm:$0xf] %vm197_vm0, %v7707_v0  ;;  %2630 = vmatprep.subr.bf16.mxu0 %v7707_v0  ;;  %2911 = vmatprep.subr.bf16.mxu1 %v7707_v0  ;;  %vm286_vm3 = vsmask.f32 4368 }
  0x15   : > { %204 = vst.msk [vmem:[#allocation2 + $0x14] sm:$0x1] %vm200_vm1, %v7707_v0  ;;  %201 = vst.msk [vmem:[#allocation2 + $0x8] sm:$0x1] %vm200_vm1, %v7707_v0  ;;  %s192_s27 = scalar_select %p191_p10, %s7756_s19, 1  ;;  %v7479_v1 = vld [vmem:[%s11400_s1 + $0x98] sm:$0xff]  }
  0x16   : > { %198 = vst.msk [vmem:[#allocation2] sm:$0xf] %vm197_vm0, %v7707_v0  ;;  %199 = vst.msk [vmem:[#allocation2 + $0x4] sm:$0xf] %vm197_vm0, %v7707_v0  ;;  %vm610_vm4 = vsmask.f32 7938  ;;  %2631 = vmatpush1.bf16.msra.mxu0 %v7479_v1 }
  0x17   : > { %205 = vst.msk [vmem:[#allocation2 + $0x18] sm:$0xf] %vm197_vm0, %v7707_v0  ;;  %206 = vst.msk [vmem:[#allocation2 + $0x1c] sm:$0xf] %vm197_vm0, %v7707_v0  ;;  %s7332_s30 = sshll.u32 %s192_s27, 7  ;;  %2632 = vmatprep.subr.bf16.mxu0 %v7707_v0  ;;  %s7708_s14 = smov 64  }
  0x18   : > { %207 = vst.msk [vmem:[#allocation2 + $0x20] sm:$0x1] %vm200_vm1, %v7707_v0  ;;  %210 = vst.msk [vmem:[#allocation2 + $0x2c] sm:$0x1] %vm200_vm1, %v7707_v0  ;;  %s7903_s7 = scalar_lea.vmem %s11399_s0, %s7332_s30  ;;  %vm774_vm8 = vsmask.f32 3328 }
  0x19   : > { %208 = vst.msk [vmem:[#allocation2 + $0x24] sm:$0xf] %vm197_vm0, %v7707_v0  ;;  %209 = vst.msk [vmem:[#allocation2 + $0x28] sm:$0xf] %vm197_vm0, %v7707_v0  ;;  %v253_v2 = vld [vmem:[%s7903_s7] sm:$0xf] }
  0x1a   : > { %211 = vst.msk [vmem:[#allocation2 + $0x30] sm:$0xf] %vm197_vm0, %v7707_v0  ;;  %212 = vst.msk [vmem:[#allocation2 + $0x34] sm:$0xf] %vm197_vm0, %v7707_v0  ;;  %v254_v3 = vld [vmem:[%s7903_s7 + $0x4] sm:$0xf] }
  0x1b   : > { %213 = vst.msk [vmem:[#allocation2 + $0x38] sm:$0x1] %vm200_vm1, %v7707_v0  ;;  %216 = vst.msk [vmem:[#allocation2 + $0x44] sm:$0x1] %vm200_vm1, %v7707_v0  ;;  %v255_v4 = vld [vmem:[%s7903_s7 + $0x8] sm:$0xf] }
  0x1c   : > { %214 = vst.msk [vmem:[#allocation2 + $0x3c] sm:$0xf] %vm197_vm0, %v7707_v0  ;;  %215 = vst.msk [vmem:[#allocation2 + $0x40] sm:$0xf] %vm197_vm0, %v7707_v0  ;;  %v289_v5 = vshrl.u32 %v253_v2, 16  ;;  %v292_v6 = vshll.u32 %v253_v2, 16 }
  0x1d   : > { %217 = vst.msk [vmem:[#allocation2 + $0x48] sm:$0xf] %vm197_vm0, %v7707_v0  ;;  %218 = vst.msk [vmem:[#allocation2 + $0x4c] sm:$0xf] %vm197_vm0, %v7707_v0  ;;  %v297_v7 = vshrl.u32 %v254_v3, 16  ;;  %v300_v8 = vshll.u32 %v254_v3, 16 }
  0x1e   : > { %219 = vst.msk [vmem:[#allocation2 + $0x50] sm:$0x1] %vm200_vm1, %v7707_v0  ;;  %222 = vst.msk [vmem:[#allocation2 + $0x5c] sm:$0x1] %vm200_vm1, %v7707_v0  ;;  %v256_v9 = vld [vmem:[%s7903_s7 + $0xc] sm:$0xf] }
  0x1f   : > { %220 = vst.msk [vmem:[#allocation2 + $0x54] sm:$0xf] %vm197_vm0, %v7707_v0  ;;  %221 = vst.msk [vmem:[#allocation2 + $0x58] sm:$0xf] %vm197_vm0, %v7707_v0  ;;  %v306_v11 = vshrl.u32 %v255_v4, 16  ;;  %v309_v12 = vshll.u32 %v255_v4, 16 }
  0x20   : > { %223 = vst.msk [vmem:[#allocation2 + $0x60] sm:$0xf] %vm197_vm0, %v7707_v0  ;;  %224 = vst.msk [vmem:[#allocation2 + $0x64] sm:$0xf] %vm197_vm0, %v7707_v0  ;;  %v291_v14 = vrot.slane %v289_v5, 7  ;;  %v299_v15 = vrot.slane %v297_v7, 7 }
  0x21   : > { %225 = vst.msk [vmem:[#allocation2 + $0x68] sm:$0x1] %vm200_vm1, %v7707_v0  ;;  %228 = vst.msk [vmem:[#allocation2 + $0x74] sm:$0x1] %vm200_vm1, %v7707_v0  ;;  %v612_v16 = vld [vmem:[#allocation2 + $0xc] sm:$0xf] }
  0x22   : > { %226 = vst.msk [vmem:[#allocation2 + $0x6c] sm:$0xf] %vm197_vm0, %v7707_v0  ;;  %227 = vst.msk [vmem:[#allocation2 + $0x70] sm:$0xf] %vm197_vm0, %v7707_v0  ;;  %v314_v17 = vshrl.u32 %v256_v9, 16  ;;  %v308_v20 = vrot.slane %v306_v11, 7  ;;  %v294_v23 = vor.u32 %v292_v6, %v291_v14  ;;  %v302_v25 = vor.u32 %v300_v8, %v299_v15 }
  0x23   : > { %229 = vst.msk [vmem:[#allocation2 + $0x78] sm:$0xf] %vm197_vm0, %v7707_v0  ;;  %230 = vst.msk [vmem:[#allocation2 + $0x7c] sm:$0xf] %vm197_vm0, %v7707_v0  ;;  %v618_v19 = vld [vmem:[#allocation2 + $0x14] sm:$0x1] }
  0x24   : > { %231 = vst.msk [vmem:[#allocation2 + $0x80] sm:$0x1] %vm200_vm1, %v7707_v0  ;;  %234 = vst.msk [vmem:[#allocation2 + $0x8c] sm:$0x1] %vm200_vm1, %v7707_v0  ;;  %v317_v21 = vshll.u32 %v256_v9, 16  ;;  %v295_v24 = vrot.slane %v291_v14, 4  ;;  %v311_v28 = vor.u32 %v309_v12, %v308_v20 }
  0x25   : > { %232 = vst.msk [vmem:[#allocation2 + $0x84] sm:$0xf] %vm197_vm0, %v7707_v0  ;;  %233 = vst.msk [vmem:[#allocation2 + $0x88] sm:$0xf] %vm197_vm0, %v7707_v0  ;;  %v261_v22 = vld [vmem:[%s7903_s7 + $0x20] sm:$0xf] }
  0x26   : > { %235 = vst.msk [vmem:[#allocation2 + $0x90] sm:$0xf] %vm197_vm0, %v7707_v0  ;;  %236 = vst.msk [vmem:[#allocation2 + $0x94] sm:$0xf] %vm197_vm0, %v7707_v0  ;;  %v304_v26 = vrot.slane %v299_v15, 4  ;;  %v312_v29 = vrot.slane %v308_v20, 4 }
  0x27   : > { %237 = vst.msk [vmem:[#allocation2 + $0x98] sm:$0x1] %vm200_vm1, %v7707_v0  ;;  %240 = vst.msk [vmem:[#allocation2 + $0xa4] sm:$0x1] %vm200_vm1, %v7707_v0  ;;  %v621_v27 = vld [vmem:[#allocation2 + $0x18] sm:$0xf] }
  0x28   : > { %238 = vst.msk [vmem:[#allocation2 + $0x9c] sm:$0xf] %vm197_vm0, %v7707_v0  ;;  %239 = vst.msk [vmem:[#allocation2 + $0xa0] sm:$0xf] %vm197_vm0, %v7707_v0  ;;  %v316_v30 = vrot.slane %v314_v17, 7  ;;  %v357_v32 = vshrl.u32 %v261_v22, 16 }
  0x29   : > { %241 = vst.msk [vmem:[#allocation2 + $0xa8] sm:$0xf] %vm197_vm0, %v7707_v0  ;;  %242 = vst.msk [vmem:[#allocation2 + $0xac] sm:$0xf] %vm197_vm0, %v7707_v0  ;;  %v262_v31 = vld [vmem:[%s7903_s7 + $0x24] sm:$0xf] }
  0x2a   : > { %243 = vst.msk [vmem:[#allocation2 + $0xb0] sm:$0x1] %vm200_vm1, %v7707_v0  ;;  %246 = vst.msk [vmem:[#allocation2 + $0xbc] sm:$0x1] %vm200_vm1, %v7707_v0  ;;  %v625_v36 = vld [vmem:[#allocation2 + $0x20] sm:$0x1]  ;;  %v319_v39 = vor.u32 %v317_v21, %v316_v30 }
  0x2b   : > { %244 = vst.msk [vmem:[#allocation2 + $0xb4] sm:$0xf] %vm197_vm0, %v7707_v0  ;;  %245 = vst.msk [vmem:[#allocation2 + $0xb8] sm:$0xf] %vm197_vm0, %v7707_v0  ;;  %v360_v37 = vshll.u32 %v261_v22, 16  ;;  %v321_v40 = vrot.slane %v316_v30, 4 }
  0x2c   : > { %247 = vst.msk [vmem:[#allocation2 + $0xc0] sm:$0xf] %vm197_vm0, %v7707_v0  ;;  %248 = vst.msk [vmem:[#allocation2 + $0xc4] sm:$0xf] %vm197_vm0, %v7707_v0  ;;  %v265_v38 = vld [vmem:[%s7903_s7 + $0x30] sm:$0xf] }
  0x2d   : > { %249 = vst.msk [vmem:[#allocation2 + $0xc8] sm:$0x1] %vm200_vm1, %v7707_v0  ;;  %252 = vst.msk [vmem:[#allocation2 + $0xd4] sm:$0x1] %vm200_vm1, %v7707_v0  ;;  %v359_v42 = vrot.slane %v357_v32, 7  ;;  %v365_v45 = vshrl.u32 %v262_v31, 16 }
  0x2e   : > { %250 = vst.msk [vmem:[#allocation2 + $0xcc] sm:$0xf] %vm197_vm0, %v7707_v0  ;;  %251 = vst.msk [vmem:[#allocation2 + $0xd0] sm:$0xf] %vm197_vm0, %v7707_v0  ;;  %v642_v43 = vld [vmem:[#allocation2 + $0x3c] sm:$0xf] }
  0x2f   : > { %vm7912_vm5 = vmand %vm200_vm1, %vm285_vm2  ;;  %v266_v44 = vld [vmem:[%s7903_s7 + $0x34] sm:$0xf]  ;;  %v368_v46 = vshll.u32 %v262_v31, 16  ;;  %v391_v47 = vshrl.u32 %v265_v38, 16  ;;  %v394_v48 = vshll.u32 %v265_v38, 16  ;;  %v362_v52 = vor.u32 %v360_v37, %v359_v42  ;;  %s188_s8 = sand.u32 1, %s7697_s16  }
  0x30   : > { %vm7918_vm6 = vmor %vm285_vm2, %vm286_vm3  ;;  %v619_v35 = vsel %vm7912_vm5, %v304_v26, %v618_v19  ;;  %v7942_v49 = vld [vmem:[%s7903_s7 + $0x10] sm:$0xf]  ;;  %vm775_vm9 = vsmask.f32 7440  ;;  %v626_v51 = vsel %vm7912_vm5, %v321_v40, %v625_v36  ;;  %v7949_v53 = vld [vmem:[%s7903_s7 + $0x14] sm:$0xf] }
  0x31   : > { %vm7924_vm7 = vmand %vm197_vm0, %vm610_vm4  ;;  %v303_v33 = vsel %vm7918_vm6, %v295_v24, %v302_v25  ;;  %620 = vst [vmem:[#allocation2 + $0x14] sm:$0x1] %v619_v35  ;;  %v320_v50 = vsel %vm7918_vm6, %v312_v29, %v319_v39  ;;  %v363_v54 = vrot.slane %v359_v42, 4  ;;  %v367_v55 = vrot.slane %v365_v45, 7  ;;  %v646_v56 = vld [vmem:[#allocation2 + $0x44] sm:$0x1] }
  0x32   : > { %v613_v34 = vsel %vm7924_vm7, %v294_v23, %v612_v16  ;;  %615 = vst.msk [vmem:[#allocation2 + $0x10] sm:$0xf] %vm197_vm0, %v303_v33  ;;  %v622_v41 = vsel %vm7924_vm7, %v311_v28, %v621_v27  ;;  %624 = vst.msk [vmem:[#allocation2 + $0x1c] sm:$0xf] %vm197_vm0, %v320_v50  ;;  %v7952_v57 = vrot.slane %v391_v47, 7  ;;  %v399_v58 = vshrl.u32 %v266_v44, 16 }
  0x33   : > { %614 = vst [vmem:[#allocation2 + $0xc] sm:$0xf] %v613_v34  ;;  %623 = vst [vmem:[#allocation2 + $0x18] sm:$0xf] %v622_v41  ;;  %v643_v59 = vsel %vm7924_vm7, %v362_v52, %v642_v43  ;;  %v402_v60 = vshll.u32 %v266_v44, 16  ;;  %v323_v62 = vshrl.u32 %v7942_v49, 16  ;;  %v370_v1 = vor.u32 %v368_v46, %v367_v55 }
  0x34   : > { %627 = vst [vmem:[#allocation2 + $0x20] sm:$0x1] %v626_v51  ;;  %v656_v61 = vld [vmem:[#allocation2 + $0x54] sm:$0xf]  ;;  %v331_v63 = vshrl.u32 %v7949_v53, 16  ;;  %v372_v2 = vrot.slane %v367_v55, 4  ;;  %v396_v3 = vor.u32 %v394_v48, %v7952_v57  ;;  %vm7984_vm10 = vmor %vm774_vm8, %vm775_vm9 }
  0x35   : > { %644 = vst [vmem:[#allocation2 + $0x3c] sm:$0xf] %v643_v59  ;;  %v326_v4 = vshll.u32 %v7942_v49, 16  ;;  %v397_v5 = vrot.slane %v7952_v57, 4  ;;  %v7961_v6 = vrot.slane %v399_v58, 7  ;;  %v7963_v7 = vrot.slane %v323_v62, 7 }
  0x36   : > { %v7965_v8 = vrot.slane %v331_v63, 7  ;;  %v371_v14 = vsel %vm7918_vm6, %v363_v54, %v370_v1  ;;  %v647_v15 = vsel %vm7912_vm5, %v372_v2, %v646_v56  ;;  %v657_v16 = vsel %vm7924_vm7, %v396_v3, %v656_v61  ;;  %v7480_v27 = vld [vmem:[%s11400_s1 + $0x90] sm:$0xff]   ;;  %v7481_v48 = vld [vmem:[%s11400_s1 + $0x88] sm:$0xff]   ;;  %v7482_v1 = vld [vmem:[%s11400_s1 + $0x80] sm:$0xff]   ;;  %s7333_s10 = sshll.u32 %s7756_s19, 10  ;;  %s6918_s22 = scalar_lea.sflag [#allocation4], %s188_s8 }
  0x37   : > { %645 = vst.msk [vmem:[#allocation2 + $0x40] sm:$0xf] %vm197_vm0, %v371_v14  ;;  %648 = vst [vmem:[#allocation2 + $0x44] sm:$0x1] %v647_v15  ;;  %v404_v26 = vor.u32 %v402_v60, %v7961_v6  ;;  %2633 = vmatpush1.bf16.msra.mxu0 %v7480_v27  ;;  %v334_v47 = vshll.u32 %v7949_v53, 16  ;;  %vm1225_vm11 = vcmask 1042432   ;;  %s11355_s20 = scalar_lea.hbm %s11403_s4, %s7333_s10 }
  0x38   : > { %v1653_v12 = vld [vmem:[#allocation2 + $0x14] sm:$0x1]  ;;  %658 = vst [vmem:[#allocation2 + $0x54] sm:$0xf] %v657_v16  ;;  %2634 = vmatprep.subr.bf16.mxu0 %v7707_v0  ;;  %v660_v16 = vld [vmem:[#allocation2 + $0x5c] sm:$0x1] }
  0x39   : > { %v1622_v11 = vld [vmem:[#allocation2 + $0x10] sm:$0xf]  ;;  %v1689_v23 = vshll.u32 %v1653_v12, 16  ;;  %v1624_v32 = vld [vmem:[#allocation2 + $0x1c] sm:$0xf]  ;;  %v405_v59 = vsel %vm7918_vm6, %v397_v5, %v404_v26  ;;  %vm1226_vm12 = vcmask 1046532  }
  0x3a   : > { %v1621_v9 = vld [vmem:[#allocation2 + $0xc] sm:$0xf]  ;;  %v1679_v20 = vshll.u32 %v1622_v11, 16  ;;  %v1683_v21 = vshrl.u32 %v1622_v11, 16  ;;  %v1623_v22 = vld [vmem:[#allocation2 + $0x18] sm:$0xf]  ;;  %vm8410_vm14 = vmor %vm1225_vm11, %vm1226_vm12 }
  0x3b   : > { %v1670_v17 = vshrl.u32 %v1621_v9, 16  ;;  %v1673_v19 = vshll.u32 %v1621_v9, 16  ;;  %v1694_v24 = vshrl.u32 %v1623_v22, 16  ;;  %v1697_v25 = vshll.u32 %v1623_v22, 16  ;;  %v7978_v34 = vld [vmem:[#allocation2 + $0x20] sm:$0x1]  ;;  %2635 = vmatpush1.bf16.msra.mxu0 %v7481_v48 }
  0x3c   : > { %v1681_v30 = vrot.slane %v1679_v20, 5  ;;  %v1685_v31 = vrot.slane %v1683_v21, 4  ;;  %v1691_v33 = vrot.slane %v1689_v23, 5  ;;  %v1703_v37 = vshll.u32 %v1624_v32, 16  ;;  %v1629_v42 = vld [vmem:[#allocation2 + $0x3c] sm:$0xf]  ;;  %2636 = vmatprep.subr.bf16.mxu0 %v7707_v0 }
  0x3d   : > { %v1672_v28 = vrot.slane %v1670_v17, 4  ;;  %v1675_v29 = vrot.slane %v1673_v19, 5  ;;  %v1696_v35 = vrot.slane %v1694_v24, 4  ;;  %v1699_v36 = vrot.slane %v1697_v25, 5  ;;  %659 = vst.msk [vmem:[#allocation2 + $0x58] sm:$0xf] %vm197_vm0, %v405_v59 }
  0x3e   : > { %v1686_v39 = vor.u32 %v1685_v31, %v1681_v30  ;;  %v1707_v40 = vshrl.u32 %v1624_v32, 16  ;;  %v1713_v41 = vshll.u32 %v7978_v34, 16  ;;  %v1705_v45 = vrot.slane %v1703_v37, 5  ;;  %v1630_v56 = vld [vmem:[#allocation2 + $0x40] sm:$0xf]  ;;  %s7709_s19 = smov [#allocation3]  }
  0x3f   : > { %v1676_v38 = vor.u32 %v1675_v29, %v1672_v28  ;;  %v1700_v44 = vor.u32 %v1699_v36, %v1696_v35  ;;  %v1766_v46 = vshrl.u32 %v1629_v42, 16  ;;  %v7992_v57 = vld [vmem:[#allocation2 + $0x44] sm:$0x1]  ;;  %v1769_v62 = vshll.u32 %v1629_v42, 16  ;;  %v1633_v63 = vld [vmem:[#allocation2 + $0x54] sm:$0xf]  ;;  %2637 = vmatpush1.bf16.msra.mxu0 %v7482_v1 }
  0x40   : > { %v1687_v51 = vrot.slane %v1686_v39, 4  ;;  %v1709_v52 = vrot.slane %v1707_v40, 4  ;;  %v1715_v54 = vrot.slane %v1713_v41, 5  ;;  %v1775_v3 = vshll.u32 %v1630_v56, 16  ;;  %v628_v24 = vld [vmem:[#allocation2 + $0x24] sm:$0xf]  ;;  %2638 = vmatprep.subr.bf16.mxu0 %v7707_v0 }
  0x41   : > { %v1677_v50 = vrot.slane %v1676_v38, 4  ;;  %v1701_v55 = vrot.slane %v1700_v44, 4  ;;  %v1768_v58 = vrot.slane %v1766_v46, 4  ;;  %v1779_v5 = vshrl.u32 %v1630_v56, 16  ;;  %v269_v25 = vld [vmem:[%s7903_s7 + $0x40] sm:$0xf] }
  0x42   : > { %v1692_v60 = vsel %vm7984_vm10, %v1687_v51, %v1691_v33  ;;  %v1710_v61 = vor.u32 %v1709_v52, %v1705_v45  ;;  %v328_v9 = vor.u32 %v326_v4, %v7963_v7  ;;  %v1771_v14 = vrot.slane %v1769_v62, 5  ;;  %v632_v35 = vld [vmem:[#allocation2 + $0x2c] sm:$0x1]  ;;  %v270_v46 = vld [vmem:[%s7903_s7 + $0x44] sm:$0xf]  ;;  %s7649_s23 = sshll.u32 %s7709_s19, 4  ;;  %s7650_s23 = int_to_ptr.vmem [resolvable:$false] %s7649_s23 }
  0x43   : > { %v1682_v53 = vsel %vm7984_vm10, %v1677_v50, %v1681_v30  ;;  %v1706_v11 = vsel %vm7984_vm10, %v1701_v55, %v1705_v45  ;;  %v1785_v15 = vshll.u32 %v7992_v57, 16  ;;  %v1777_v17 = vrot.slane %v1775_v3, 5  ;;  %v273_v51 = vld [vmem:[%s7903_s7 + $0x50] sm:$0xf]  ;;  %v670_v1 = vld [vmem:[#allocation2 + $0x6c] sm:$0xf] }
  0x44   : > { %v7094_v2 = vcombine.low %v1682_v53, %v1692_v60  ;;  %v1711_v12 = vrot.slane %v1710_v61, 4  ;;  %v1781_v19 = vrot.slane %v1779_v5, 4  ;;  %v406_v20 = vrot.slane %v7961_v6, 4  ;;  %v7483_v6 = vld [vmem:[%s11400_s1 + $0x78] sm:$0xff]   ;;  %v7485_v61 = vld [vmem:[%s11400_s1 + $0x68] sm:$0xff]   ;;  %s7651_s27 = scalar_lea.vmem %s7650_s23, 2048 }
  0x45   : > { %v1814_v21 = vshrl.u32 %v1633_v63, 16  ;;  %v1772_v4 = vor.u32 %v1771_v14, %v1768_v58  ;;  %v1787_v22 = vrot.slane %v1785_v15, 5  ;;  %v1817_v23 = vshll.u32 %v1633_v63, 16  ;;  %v1634_v37 = vld [vmem:[#allocation2 + $0x58] sm:$0xf]  ;;  %2639 = vmatpush1.bf16.msra.mxu0 %v7483_v6 }
  0x46   : > { %2341 = vrot.lane.b32.xlu0 %v7094_v2, %s7708_s14  ;;  %v1716_v49 = vsel %vm7984_vm10, %v1711_v12, %v1715_v54  ;;  %v1782_v27 = vor.u32 %v1781_v19, %v1777_v17  ;;  %v661_v28 = vsel %vm7912_vm5, %v406_v20, %v660_v16  ;;  %v329_v32 = vrot.slane %v7963_v7, 4  ;;  %v7484_v7 = vld [vmem:[%s11400_s1 + $0x70] sm:$0xff]   ;;  %2640 = vmatprep.subr.bf16.mxu0 %v7707_v0  ;;  %v7488_v6 = vld [vmem:[%s11400_s1 + $0x38] sm:$0xff]  }
  0x47   : > { %v7095_v26 = vcombine.low %v1706_v11, %v1716_v49  ;;  %v1816_v29 = vrot.slane %v1814_v21, 4  ;;  %v1773_v30 = vrot.slane %v1772_v4, 4  ;;  %662 = vst [vmem:[#allocation2 + $0x5c] sm:$0x1] %v661_v28  ;;  %v1819_v31 = vrot.slane %v1817_v23, 5  ;;  %2912 = vmatpush1.bf16.msra.mxu1 %v7488_v6 }
  0x48   : > { %v336_v33 = vor.u32 %v334_v47, %v7965_v8  ;;  %v1783_v36 = vrot.slane %v1782_v27, 4  ;;  %v338_v38 = vrot.slane %v7965_v8, 4  ;;  %v629_v39 = vsel %vm7924_vm7, %v328_v9, %v628_v24  ;;  %v274_v58 = vld [vmem:[%s7903_s7 + $0x54] sm:$0xf]  ;;  %v7486_v24 = vld [vmem:[%s11400_s1 + $0x60] sm:$0xff]   ;;  %2913 = vmatprep.subr.bf16.mxu1 %v7707_v0 }
  0x49   : > { %v425_v40 = vshrl.u32 %v269_v25, 16  ;;  %v1778_v41 = vsel %vm7984_vm10, %v1773_v30, %v1777_v17  ;;  %v1820_v42 = vor.u32 %v1819_v31, %v1816_v29  ;;  %v1823_v44 = vshll.u32 %v1634_v37, 16  ;;  %630 = vst [vmem:[#allocation2 + $0x24] sm:$0xf] %v629_v39  ;;  %2641 = vmatpush1.bf16.msra.mxu0 %v7484_v7  ;;  %v674_v19 = vld [vmem:[#allocation2 + $0x74] sm:$0x1] }
  0x4a   : > { %2343 = vrot.lane.b32.xlu0 %v7095_v26, %s7708_s14  ;;  %v1827_v45 = vshrl.u32 %v1634_v37, 16  ;;  %v1788_v8 = vsel %vm7984_vm10, %v1783_v36, %v1787_v22  ;;  %v337_v47 = vsel %vm7918_vm6, %v329_v32, %v336_v33  ;;  %v633_v48 = vsel %vm7912_vm5, %v338_v38, %v632_v35  ;;  %2642 = vmatprep.subr.bf16.mxu0 %v7707_v0  ;;  %v684_v29 = vld [vmem:[#allocation2 + $0x84] sm:$0xf]  ;;  %v688_v37 = vld [vmem:[#allocation2 + $0x8c] sm:$0x1] }
  0x4b   : > { %v427_v50 = vrot.slane %v425_v40, 7  ;;  %v7098_v52 = vcombine.low %v1778_v41, %v1788_v8  ;;  %v1821_v54 = vrot.slane %v1820_v42, 4  ;;  %v1825_v55 = vrot.slane %v1823_v44, 5  ;;  %631 = vst.msk [vmem:[#allocation2 + $0x28] sm:$0xf] %vm197_vm0, %v337_v47  ;;  %v7487_v8 = vld [vmem:[%s11400_s1 + $0xb8] sm:$0xff]  }
  0x4c   : > { %v1829_v56 = vrot.slane %v1827_v45, 4  ;;  %634 = vst [vmem:[#allocation2 + $0x2c] sm:$0x1] %v633_v48  ;;  %v428_v59 = vshll.u32 %v269_v25, 16  ;;  %v433_v53 = vshrl.u32 %v270_v46, 16  ;;  %v436_v60 = vshll.u32 %v270_v46, 16 }
  0x4d   : > { %v431_v63 = vrot.slane %v427_v50, 4  ;;  %v459_v2 = vshrl.u32 %v273_v51, 16  ;;  %v462_v3 = vshll.u32 %v273_v51, 16  ;;  %v467_v12 = vshrl.u32 %v274_v58, 16  ;;  %2643 = vmatpush1.bf16.msra.mxu0 %v7485_v61  ;;  %v259_v41 = vld [vmem:[%s7903_s7 + $0x18] sm:$0xf] }
  0x4e   : > { %2349 = vrot.lane.b32.xlu0 %v7098_v52, %s7708_s14  ;;  %v1830_v62 = vor.u32 %v1829_v56, %v1825_v55  ;;  %v8049_v5 = vld [vmem:[#allocation2 + $0x5c] sm:$0x1]  ;;  %v430_v9 = vor.u32 %v428_v59, %v427_v50  ;;  %v435_v11 = vrot.slane %v433_v53, 7  ;;  %v470_v14 = vshll.u32 %v274_v58, 16  ;;  %2644 = vmatprep.subr.bf16.mxu0 %v7707_v0  ;;  %v8087_v56 = vld [vmem:[%s7903_s7 + $0x60] sm:$0xf] }
  0x4f   : > { %v1826_v15 = vsel %vm7984_vm10, %v1821_v54, %v1825_v55  ;;  %v1833_v17 = vshll.u32 %v8049_v5, 16  ;;  %v461_v20 = vrot.slane %v459_v2, 7  ;;  %v469_v23 = vrot.slane %v467_v12, 7  ;;  %v260_v46 = vld [vmem:[%s7903_s7 + $0x1c] sm:$0xf] }
  0x50   : > { %v1831_v16 = vrot.slane %v1830_v62, 4  ;;  %v1625_v21 = vld [vmem:[#allocation2 + $0x24] sm:$0xf]  ;;  %v438_v49 = vor.u32 %v436_v60, %v435_v11  ;;  %v440_v4 = vrot.slane %v435_v11, 4  ;;  %v671_v22 = vsel %vm7924_vm7, %v430_v9, %v670_v1 }
  0x51   : > { %v1835_v25 = vrot.slane %v1833_v17, 5  ;;  %v1718_v26 = vshrl.u32 %v1625_v21, 16  ;;  %v1721_v27 = vshll.u32 %v1625_v21, 16  ;;  %672 = vst [vmem:[#allocation2 + $0x6c] sm:$0xf] %v671_v22  ;;  %v464_v28 = vor.u32 %v462_v3, %v461_v20  ;;  %2645 = vmatpush1.bf16.msra.mxu0 %v7486_v24 }
  0x52   : > { %v1626_v30 = vld [vmem:[#allocation2 + $0x28] sm:$0xf]  ;;  %v439_v32 = vsel %vm7918_vm6, %v431_v63, %v438_v49  ;;  %v675_v33 = vsel %vm7912_vm5, %v440_v4, %v674_v19  ;;  %v465_v35 = vrot.slane %v461_v20, 4  ;;  %v472_v36 = vor.u32 %v470_v14, %v469_v23  ;;  %2654 = vmatprep.subr.bf16.mxu0 %v7707_v0  ;;  %v7489_v14 = vld [vmem:[%s11400_s1 + $0xb0] sm:$0xff]  }
  0x53   : > { %v8063_v31 = vld [vmem:[#allocation2 + $0x2c] sm:$0x1]  ;;  %v1836_v38 = vsel %vm7984_vm10, %v1831_v16, %v1835_v25  ;;  %v1720_v39 = vrot.slane %v1718_v26, 4  ;;  %v1723_v40 = vrot.slane %v1721_v27, 5  ;;  %v1727_v7 = vshll.u32 %v1626_v30, 16 }
  0x54   : > { %673 = vst.msk [vmem:[#allocation2 + $0x70] sm:$0xf] %vm197_vm0, %v439_v32  ;;  %676 = vst [vmem:[#allocation2 + $0x74] sm:$0x1] %v675_v33  ;;  %v7100_v42 = vcombine.low %v1826_v15, %v1836_v38  ;;  %v1731_v44 = vshrl.u32 %v1626_v30, 16  ;;  %v1737_v45 = vshll.u32 %v8063_v31, 16  ;;  %v473_v50 = vsel %vm7918_vm6, %v465_v35, %v472_v36 }
  0x55   : > { %v1724_v47 = vor.u32 %v1723_v40, %v1720_v39  ;;  %v1729_v48 = vrot.slane %v1727_v7, 5  ;;  %v474_v51 = vrot.slane %v469_v23, 4  ;;  %v685_v54 = vsel %vm7924_vm7, %v464_v28, %v684_v29  ;;  %687 = vst.msk [vmem:[#allocation2 + $0x88] sm:$0xf] %vm197_vm0, %v473_v50  ;;  %2655 = vmatpush2.bf16.msra.mxu0 %v7487_v8  ;;  %v635_v32 = vld [vmem:[#allocation2 + $0x30] sm:$0xf] }
  0x56   : > { %2353 = vrot.lane.b32.xlu0 %v7100_v42, %s7708_s14  ;;  %v1733_v52 = vrot.slane %v1731_v44, 4  ;;  %v340_v55 = vshrl.u32 %v259_v41, 16  ;;  %v1739_v59 = vrot.slane %v1737_v45, 5  ;;  %686 = vst [vmem:[#allocation2 + $0x84] sm:$0xf] %v685_v54  ;;  %v348_v60 = vshrl.u32 %v260_v46, 16  ;;  %2656 = vmatprep.subr.bf16.mxu0 %v7707_v0 }
  0x57   : > { %v1725_v58 = vrot.slane %v1724_v47, 4  ;;  %v689_v53 = vsel %vm7912_vm5, %v474_v51, %v688_v37  ;;  %v343_v1 = vshll.u32 %v259_v41, 16  ;;  %v351_v2 = vshll.u32 %v260_v46, 16  ;;  %v7490_v39 = vld [vmem:[%s11400_s1 + $0x30] sm:$0xff]   ;;  %v7491_v45 = vld [vmem:[%s11400_s1 + $0xa8] sm:$0xff]  }
  0x58   : > { %v1734_v61 = vor.u32 %v1733_v52, %v1729_v48  ;;  %v1637_v62 = vld [vmem:[#allocation2 + $0x6c] sm:$0xf]  ;;  %690 = vst [vmem:[#allocation2 + $0x8c] sm:$0x1] %v689_v53  ;;  %v342_v63 = vrot.slane %v340_v55, 7  ;;  %v8091_v11 = vrot.slane %v348_v60, 7  ;;  %2914 = vmatpush1.bf16.msra.mxu1 %v7490_v39 }
  0x59   : > { %v1862_v3 = vshrl.u32 %v1637_v62, 16  ;;  %v1865_v9 = vshll.u32 %v1637_v62, 16  ;;  %v493_v12 = vshrl.u32 %v8087_v56, 16  ;;  %v1730_v15 = vsel %vm7984_vm10, %v1725_v58, %v1729_v48  ;;  %2657 = vmatpush2.bf16.msra.mxu0 %v7489_v14  ;;  %v639_v48 = vld [vmem:[#allocation2 + $0x38] sm:$0x1]  ;;  %2915 = vmatprep.subr.bf16.mxu1 %v7707_v0  ;;  %v7492_v58 = vld [vmem:[%s11400_s1 + $0x28] sm:$0xff]  }
  0x5a   : > { %v1735_v16 = vrot.slane %v1734_v61, 4  ;;  %v346_v20 = vrot.slane %v342_v63, 4  ;;  %v345_v25 = vor.u32 %v343_v1, %v342_v63  ;;  %v353_v26 = vor.u32 %v351_v2, %v8091_v11  ;;  %2658 = vmatprep.subr.bf16.mxu0 %v7707_v0  ;;  %v278_v55 = vld [vmem:[%s7903_s7 + $0x64] sm:$0xf] }
  0x5b   : > { %v1638_v17 = vld [vmem:[#allocation2 + $0x70] sm:$0xf]  ;;  %v8100_v19 = vld [vmem:[#allocation2 + $0x74] sm:$0x1]  ;;  %v1864_v21 = vrot.slane %v1862_v3, 4  ;;  %v1867_v49 = vrot.slane %v1865_v9, 5 }
  0x5c   : > { %v1871_v4 = vshll.u32 %v1638_v17, 16  ;;  %v1875_v22 = vshrl.u32 %v1638_v17, 16  ;;  %v1740_v23 = vsel %vm7984_vm10, %v1735_v16, %v1739_v59  ;;  %v1881_v24 = vshll.u32 %v8100_v19, 16  ;;  %v1642_v30 = vld [vmem:[#allocation2 + $0x88] sm:$0xf]  ;;  %2916 = vmatpush1.bf16.msra.mxu1 %v7492_v58 }
  0x5d   : > { %v7096_v27 = vcombine.low %v1730_v15, %v1740_v23  ;;  %v1868_v28 = vor.u32 %v1867_v49, %v1864_v21  ;;  %v1641_v35 = vld [vmem:[#allocation2 + $0x84] sm:$0xf]  ;;  %v1919_v36 = vshll.u32 %v1642_v30, 16  ;;  %v1923_v37 = vshrl.u32 %v1642_v30, 16  ;;  %2659 = vmatpush2.bf16.msra.mxu0 %v7491_v45  ;;  %v698_v3 = vld [vmem:[#allocation2 + $0x9c] sm:$0xf]  ;;  %2917 = vmatprep.subr.bf16.mxu1 %v7707_v0 }
  0x5e   : > { %v1873_v29 = vrot.slane %v1871_v4, 5  ;;  %v1877_v6 = vrot.slane %v1875_v22, 4  ;;  %v1883_v33 = vrot.slane %v1881_v24, 5  ;;  %v354_v38 = vsel %vm7918_vm6, %v346_v20, %v353_v26  ;;  %2660 = vmatprep.subr.bf16.mxu0 %v7707_v0  ;;  %v281_v9 = vld [vmem:[%s7903_s7 + $0x70] sm:$0xf]  ;;  %v7494_v26 = vld [vmem:[%s11400_s1 + $0x20] sm:$0xff]  }
  0x5f   : > { %2345 = vrot.lane.b32.xlu1 %v7096_v27, %s7708_s14  ;;  %v1869_v40 = vrot.slane %v1868_v28, 4  ;;  %v8113_v41 = vld [vmem:[#allocation2 + $0x8c] sm:$0x1]  ;;  %v1910_v42 = vshrl.u32 %v1641_v35, 16  ;;  %v1913_v44 = vshll.u32 %v1641_v35, 16  ;;  %v1921_v46 = vrot.slane %v1919_v36, 5 }
  0x60   : > { %v1878_v7 = vor.u32 %v1877_v6, %v1873_v29  ;;  %638 = vst.msk [vmem:[#allocation2 + $0x34] sm:$0xf] %vm197_vm0, %v354_v38  ;;  %v1925_v8 = vrot.slane %v1923_v37, 4  ;;  %v1929_v47 = vshll.u32 %v8113_v41, 16  ;;  %v355_v60 = vrot.slane %v8091_v11, 4  ;;  %2918 = vmatpush1.bf16.msra.mxu1 %v7494_v26 }
  0x61   : > { %v1874_v50 = vsel %vm7984_vm10, %v1869_v40, %v1873_v29  ;;  %v1912_v52 = vrot.slane %v1910_v42, 4  ;;  %v1915_v54 = vrot.slane %v1913_v44, 5  ;;  %v636_v61 = vsel %vm7924_vm7, %v345_v25, %v635_v32  ;;  %v8138_v17 = vld [vmem:[%s7903_s7 + $0x74] sm:$0xf]  ;;  %v702_v30 = vld [vmem:[#allocation2 + $0xa4] sm:$0x1]  ;;  %2919 = vmatprep.subr.bf16.mxu1 %v7707_v0 }
  0x62   : > { %v1879_v51 = vrot.slane %v1878_v7, 4  ;;  %v1926_v59 = vor.u32 %v1925_v8, %v1921_v46  ;;  %v1931_v53 = vrot.slane %v1929_v47, 5  ;;  %637 = vst [vmem:[#allocation2 + $0x30] sm:$0xf] %v636_v61  ;;  %v495_v1 = vrot.slane %v493_v12, 7  ;;  %v7495_v47 = vld [vmem:[%s11400_s1 + $0x18] sm:$0xff]  }
  0x63   : > { %v1916_v63 = vor.u32 %v1915_v54, %v1912_v52  ;;  %v496_v2 = vshll.u32 %v8087_v56, 16  ;;  %v640_v11 = vsel %vm7912_vm5, %v355_v60, %v639_v48  ;;  %v501_v16 = vshrl.u32 %v278_v55, 16  ;;  %v7493_v56 = vld [vmem:[%s11400_s1 + $0xa0] sm:$0xff]   ;;  %v712_v37 = vld [vmem:[#allocation2 + $0xb4] sm:$0xf] }
  0x64   : > { %v1884_v62 = vsel %vm7984_vm10, %v1879_v51, %v1883_v33  ;;  %v1927_v15 = vrot.slane %v1926_v59, 4  ;;  %641 = vst [vmem:[#allocation2 + $0x38] sm:$0x1] %v640_v11  ;;  %v499_v49 = vrot.slane %v495_v1, 4  ;;  %v504_v4 = vshll.u32 %v278_v55, 16  ;;  %2661 = vmatpush2.bf16.msra.mxu0 %v7493_v56  ;;  %2920 = vmatpush1.bf16.msra.mxu1 %v7495_v47 }
  0x65   : > { %v7102_v14 = vcombine.low %v1874_v50, %v1884_v62  ;;  %v1917_v20 = vrot.slane %v1916_v63, 4  ;;  %v498_v21 = vor.u32 %v496_v2, %v495_v1  ;;  %v503_v23 = vrot.slane %v501_v16, 7  ;;  %4082 = vmatprep.subr.bf16.mxu0 %v7707_v0  ;;  %v726_v7 = vld [vmem:[#allocation2] sm:$0xf]  ;;  %v727_v54 = vld [vmem:[#allocation2 + $0x4] sm:$0xf]  ;;  %2921 = vmatprep.subr.bf16.mxu1 %v7707_v0 }
  0x66   : > { %v1932_v12 = vsel %vm7984_vm10, %v1927_v15, %v1931_v53  ;;  %v527_v24 = vshrl.u32 %v281_v9, 16  ;;  %v530_v25 = vshll.u32 %v281_v9, 16  ;;  %v535_v40 = vshrl.u32 %v8138_v17, 16  ;;  %v716_v2 = vld [vmem:[#allocation2 + $0xbc] sm:$0x1]  ;;  %v7496_v15 = vld [vmem:[%s11400_s1 + $0x10] sm:$0xff]  }
  0x67   : > { %2357 = vrot.lane.b32.xlu0 %v7102_v14, %s7708_s14  ;;  %v1628_v22 = vld [vmem:[#allocation2 + $0x34] sm:$0xf]  ;;  %v1922_v27 = vsel %vm7984_vm10, %v1917_v20, %v1921_v46  ;;  %v699_v6 = vsel %vm7924_vm7, %v498_v21, %v698_v3  ;;  %v506_v33 = vor.u32 %v504_v4, %v503_v23  ;;  %v508_v35 = vrot.slane %v503_v23, 4 }
  0x68   : > { %v1751_v28 = vshll.u32 %v1628_v22, 16  ;;  %v1755_v29 = vshrl.u32 %v1628_v22, 16  ;;  %v7104_v32 = vcombine.low %v1922_v27, %v1932_v12  ;;  %700 = vst [vmem:[#allocation2 + $0x9c] sm:$0xf] %v699_v6  ;;  %v529_v36 = vrot.slane %v527_v24, 7  ;;  %2922 = vmatpush1.bf16.msra.mxu1 %v7496_v15  ;;  %v7497_v22 = vld [vmem:[%s11400_s1 + $0x8] sm:$0xff]  }
  0x69   : > { %v1627_v42 = vld [vmem:[#allocation2 + $0x30] sm:$0xf]  ;;  %v507_v44 = vsel %vm7918_vm6, %v499_v49, %v506_v33  ;;  %v703_v45 = vsel %vm7912_vm5, %v508_v35, %v702_v30  ;;  %v538_v8 = vshll.u32 %v8138_v17, 16  ;;  %v537_v52 = vrot.slane %v535_v40, 7  ;;  %2923 = vmatprep.subr.bf16.mxu1 %v7707_v0  ;;  %v758_v6 = vld [vmem:[#allocation2 + $0x8] sm:$0x1] }
  0x6a   : > { %v8155_v38 = vrot.slane %v1751_v28, 5  ;;  %v1757_v39 = vrot.slane %v1755_v29, 4  ;;  %v532_v46 = vor.u32 %v530_v25, %v529_v36  ;;  %v1742_v48 = vshrl.u32 %v1627_v42, 16  ;;  %701 = vst.msk [vmem:[#allocation2 + $0xa0] sm:$0xf] %vm197_vm0, %v507_v44  ;;  %v7498_v44 = vld [vmem:[%s11400_s1] sm:$0xff]  }
  0x6b   : > { %2361 = vrot.lane.b32.xlu0 %v7104_v32, %s7708_s14  ;;  %v1745_v50 = vshll.u32 %v1627_v42, 16  ;;  %704 = vst [vmem:[#allocation2 + $0xa4] sm:$0x1] %v703_v45  ;;  %v8170_v55 = vld [vmem:[#allocation2 + $0x38] sm:$0x1]  ;;  %v533_v58 = vrot.slane %v529_v36, 4  ;;  %v540_v3 = vor.u32 %v538_v8, %v537_v52 }
  0x6c   : > { %v1758_v51 = vor.u32 %v1757_v39, %v8155_v38  ;;  %v713_v59 = vsel %vm7924_vm7, %v532_v46, %v712_v37  ;;  %v778_v53 = vshrl.u32 %v726_v7, 16  ;;  %v781_v60 = vshll.u32 %v726_v7, 16  ;;  %v263_v37 = vld [vmem:[%s7903_s7 + $0x28] sm:$0xf]  ;;  %2924 = vmatpush1.bf16.msra.mxu1 %v7497_v22  ;;  %v728_v22 = vld [vmem:[#allocation2 + $0xc] sm:$0xf] }
  0x6d   : > { %v1744_v61 = vrot.slane %v1742_v48, 4  ;;  %v1747_v62 = vrot.slane %v1745_v50, 5  ;;  %v1761_v1 = vshll.u32 %v8170_v55, 16  ;;  %714 = vst [vmem:[#allocation2 + $0xb4] sm:$0xf] %v713_v59  ;;  %v542_v9 = vrot.slane %v537_v52, 4  ;;  %2925 = vmatprep.subr.bf16.mxu1 %v7707_v0 }
  0x6e   : > { %v1759_v63 = vrot.slane %v1758_v51, 4  ;;  %v780_v14 = vrot.slane %v778_v53, 4  ;;  %v783_v20 = vrot.slane %v781_v60, 5  ;;  %v787_v21 = vshll.u32 %v727_v54, 16  ;;  %v7499_v53 = vld [vmem:[%s11400_s1 + $0x58] sm:$0xff]  }
  0x6f   : > { %v1748_v11 = vor.u32 %v1747_v62, %v1744_v61  ;;  %v1763_v16 = vrot.slane %v1761_v1, 5  ;;  %v1645_v17 = vld [vmem:[#allocation2 + $0x9c] sm:$0xf]  ;;  %v541_v56 = vsel %vm7918_vm6, %v533_v58, %v540_v3  ;;  %v717_v12 = vsel %vm7912_vm5, %v542_v9, %v716_v2  ;;  %v264_v2 = vld [vmem:[%s7903_s7 + $0x2c] sm:$0xf] }
  0x70   : > { %v1958_v49 = vshrl.u32 %v1645_v17, 16  ;;  %v1961_v4 = vshll.u32 %v1645_v17, 16  ;;  %715 = vst.msk [vmem:[#allocation2 + $0xb8] sm:$0xf] %vm197_vm0, %v541_v56  ;;  %718 = vst [vmem:[#allocation2 + $0xbc] sm:$0x1] %v717_v12  ;;  %v784_v30 = vor.u32 %v783_v20, %v780_v14  ;;  %2926 = vmatpush1.bf16.msra.mxu1 %v7498_v44 }
  0x71   : > { %v1749_v23 = vrot.slane %v1748_v11, 4  ;;  %v1764_v24 = vsel %vm7984_vm10, %v1759_v63, %v1763_v16  ;;  %v791_v25 = vshrl.u32 %v727_v54, 16  ;;  %v1646_v26 = vld [vmem:[#allocation2 + $0xa0] sm:$0xf]  ;;  %v8197_v42 = vrot.slane %v787_v21, 5  ;;  %2935 = vmatprep.subr.bf16.mxu1 %v7707_v0 }
  0x72   : > { %v8190_v27 = vld [vmem:[#allocation2 + $0xa4] sm:$0x1]  ;;  %v1960_v28 = vrot.slane %v1958_v49, 4  ;;  %v1963_v29 = vrot.slane %v1961_v4, 5  ;;  %v1967_v33 = vshll.u32 %v1646_v26, 16  ;;  %v1971_v35 = vshrl.u32 %v1646_v26, 16 }
  0x73   : > { %v1754_v32 = vsel %vm7984_vm10, %v1749_v23, %v8155_v38  ;;  %v1977_v36 = vshll.u32 %v8190_v27, 16  ;;  %v2129_v45 = vrot.slane %v7978_v34, 5  ;;  %v8205_v50 = vrot.slane %v784_v30, 4 }
  0x74   : > { %v7097_v39 = vcombine.low %v1754_v32, %v1764_v24  ;;  %v1964_v40 = vor.u32 %v1963_v29, %v1960_v28  ;;  %v1649_v7 = vld [vmem:[#allocation2 + $0xb4] sm:$0xf]  ;;  %v1969_v46 = vrot.slane %v1967_v33, 5  ;;  %v1973_v8 = vrot.slane %v1971_v35, 4  ;;  %v729_v28 = vld [vmem:[#allocation2 + $0x10] sm:$0xf]  ;;  %2936 = vmatpush2.bf16.msra.mxu1 %v7499_v53 }
  0x75   : > { %v2006_v38 = vshrl.u32 %v1649_v7, 16  ;;  %v2009_v48 = vshll.u32 %v1649_v7, 16  ;;  %v793_v51 = vrot.slane %v791_v25, 4  ;;  %v1979_v54 = vrot.slane %v1977_v36, 5  ;;  %v649_v33 = vld [vmem:[#allocation2 + $0x48] sm:$0xf]  ;;  %2937 = vmatprep.subr.bf16.mxu1 %v7707_v0 }
  0x76   : > { %2347 = vrot.lane.b32.xlu1 %v7097_v39, %s7708_s14  ;;  %v1965_v47 = vrot.slane %v1964_v40, 4  ;;  %v1974_v52 = vor.u32 %v1973_v8, %v1969_v46  ;;  %v797_v59 = vshll.u32 %v758_v6, 16  ;;  %v374_v3 = vshrl.u32 %v263_v37, 16  ;;  %v8226_v35 = vld [vmem:[#allocation2 + $0x14] sm:$0x1] }
  0x77   : > { %v2008_v58 = vrot.slane %v2006_v38, 4  ;;  %v1650_v61 = vld [vmem:[#allocation2 + $0xb8] sm:$0xf]  ;;  %v8212_v62 = vld [vmem:[#allocation2 + $0xbc] sm:$0x1]  ;;  %v2011_v63 = vrot.slane %v2009_v48, 5  ;;  %v794_v1 = vor.u32 %v793_v51, %v8197_v42  ;;  %v790_v12 = vsel %vm7984_vm10, %v8205_v50, %v8197_v42 }
  0x78   : > { %v1970_v60 = vsel %vm7984_vm10, %v1965_v47, %v1969_v46  ;;  %v1975_v9 = vrot.slane %v1974_v52, 4  ;;  %v2015_v14 = vshll.u32 %v1650_v61, 16  ;;  %v2019_v15 = vshrl.u32 %v1650_v61, 16  ;;  %v653_v40 = vld [vmem:[#allocation2 + $0x50] sm:$0x1] }
  0x79   : > { %v2025_v11 = vshll.u32 %v8212_v62, 16  ;;  %v2012_v16 = vor.u32 %v2011_v63, %v2008_v58  ;;  %v795_v17 = vrot.slane %v794_v1, 4  ;;  %v799_v20 = vrot.slane %v797_v59, 5  ;;  %v730_v38 = vld [vmem:[#allocation2 + $0x18] sm:$0xf]  ;;  %v7500_v58 = vld [vmem:[%s11400_s1 + $0x50] sm:$0xff]  }
  0x7a   : > { %v377_v21 = vshll.u32 %v263_v37, 16  ;;  %v1980_v49 = vsel %vm7984_vm10, %v1975_v9, %v1979_v54  ;;  %v2017_v4 = vrot.slane %v2015_v14, 5  ;;  %v2021_v56 = vrot.slane %v2019_v15, 4  ;;  %v731_v47 = vld [vmem:[#allocation2 + $0x1c] sm:$0xf]  ;;  %2938 = vmatpush2.bf16.msra.mxu1 %v7500_v58  ;;  %v7501_v14 = vld [vmem:[%s11400_s1 + $0x48] sm:$0xff]  }
  0x7b   : > { %v7106_v23 = vcombine.low %v1970_v60, %v1980_v49  ;;  %v2013_v24 = vrot.slane %v2012_v16, 4  ;;  %v2027_v25 = vrot.slane %v2025_v11, 5  ;;  %v376_v26 = vrot.slane %v374_v3, 7  ;;  %v8235_v54 = vld [vmem:[#allocation2 + $0x20] sm:$0x1]  ;;  %2939 = vmatprep.subr.bf16.mxu1 %v7707_v0 }
  0x7c   : > { %v2022_v29 = vor.u32 %v2021_v56, %v2017_v4  ;;  %v800_v6 = vsel %vm7984_vm10, %v795_v17, %v799_v20  ;;  %v382_v30 = vshrl.u32 %v264_v2, 16  ;;  %v385_v32 = vshll.u32 %v264_v2, 16  ;;  %v267_v9 = vld [vmem:[%s7903_s7 + $0x38] sm:$0xf]  ;;  %v268_v20 = vld [vmem:[%s7903_s7 + $0x3c] sm:$0xf] }
  0x7d   : > { %2365 = vrot.lane.b32.xlu0 %v7106_v23, %s7708_s14  ;;  %v2018_v36 = vsel %vm7984_vm10, %v2013_v24, %v2017_v4  ;;  %v379_v37 = vor.u32 %v377_v21, %v376_v26  ;;  %v380_v39 = vrot.slane %v376_v26, 4  ;;  %v802_v7 = vshrl.u32 %v728_v22, 16 }
  0x7e   : > { %v2023_v42 = vrot.slane %v2022_v29, 4  ;;  %v384_v44 = vrot.slane %v382_v30, 7  ;;  %v805_v46 = vshll.u32 %v728_v22, 16  ;;  %v811_v8 = vshll.u32 %v729_v28, 16  ;;  %2940 = vmatpush2.bf16.msra.mxu1 %v7501_v14 }
  0x7f   : > { %v650_v48 = vsel %vm7924_vm7, %v379_v37, %v649_v33  ;;  %v804_v50 = vrot.slane %v802_v7, 4  ;;  %v815_v51 = vshrl.u32 %v729_v28, 16  ;;  %v821_v52 = vshll.u32 %v8226_v35, 16  ;;  %2941 = vmatprep.subr.bf16.mxu1 %v7707_v0 }
  0x80   : > { %v2028_v59 = vsel %vm7984_vm10, %v2023_v42, %v2027_v25  ;;  %v387_v53 = vor.u32 %v385_v32, %v384_v44  ;;  %v389_v60 = vrot.slane %v384_v44, 4  ;;  %651 = vst [vmem:[#allocation2 + $0x48] sm:$0xf] %v650_v48  ;;  %v807_v61 = vrot.slane %v805_v46, 5 }
  0x81   : > { %v7108_v63 = vcombine.low %v2018_v36, %v2028_v59  ;;  %v7030_v1 = vcombine.low %v790_v12, %v800_v6  ;;  %v813_v2 = vrot.slane %v811_v8, 5  ;;  %v817_v3 = vrot.slane %v815_v51, 4  ;;  %v7502_v36 = vld [vmem:[%s11400_s1 + $0x40] sm:$0xff]  }
  0x82   : > { %v388_v15 = vsel %vm7918_vm6, %v380_v39, %v387_v53  ;;  %v654_v11 = vsel %vm7912_vm5, %v389_v60, %v653_v40  ;;  %v808_v16 = vor.u32 %v807_v61, %v804_v50  ;;  %v823_v17 = vrot.slane %v821_v52, 5  ;;  %2942 = vmatpush2.bf16.msra.mxu1 %v7502_v36 }
  0x83   : > { %2369 = vrot.lane.b32.xlu0 %v7108_v63, %s7708_s14  ;;  %652 = vst.msk [vmem:[#allocation2 + $0x4c] sm:$0xf] %vm197_vm0, %v388_v15  ;;  %655 = vst [vmem:[#allocation2 + $0x50] sm:$0x1] %v654_v11  ;;  %v818_v21 = vor.u32 %v817_v3, %v813_v2  ;;  %v826_v49 = vshrl.u32 %v730_v38, 16  ;;  %v829_v4 = vshll.u32 %v730_v38, 16 }
  0x84   : > { %v835_v56 = vshll.u32 %v731_v47, 16  ;;  %v809_v22 = vrot.slane %v808_v16, 4  ;;  %v839_v23 = vshrl.u32 %v731_v47, 16  ;;  %v845_v24 = vshll.u32 %v8235_v54, 16  ;;  %v732_v11 = vld [vmem:[#allocation2 + $0x24] sm:$0xf] }
  0x85   : > { %v819_v25 = vrot.slane %v818_v21, 4  ;;  %v828_v26 = vrot.slane %v826_v49, 4  ;;  %v831_v28 = vrot.slane %v829_v4, 5  ;;  %v408_v33 = vshrl.u32 %v267_v9, 16  ;;  %v667_v49 = vld [vmem:[#allocation2 + $0x68] sm:$0x1] }
  0x86   : > { %v837_v29 = vrot.slane %v835_v56, 5  ;;  %v814_v6 = vsel %vm7984_vm10, %v809_v22, %v813_v2  ;;  %v841_v30 = vrot.slane %v839_v23, 4  ;;  %v847_v32 = vrot.slane %v845_v24, 5  ;;  %v663_v2 = vld [vmem:[#allocation2 + $0x60] sm:$0xf] }
  0x87   : > { %1452 = vrot.lane.b32.xlu0 %v7030_v1, %s7708_s14  ;;  %v1631_v37 = vld [vmem:[#allocation2 + $0x48] sm:$0xf]  ;;  %v824_v39 = vsel %vm7984_vm10, %v819_v25, %v823_v17  ;;  %v832_v40 = vor.u32 %v831_v28, %v828_v26  ;;  %v411_v7 = vshll.u32 %v267_v9, 16  ;;  %v416_v42 = vshrl.u32 %v268_v20, 16 }
  0x88   : > { %v1790_v44 = vshrl.u32 %v1631_v37, 16  ;;  %v1793_v46 = vshll.u32 %v1631_v37, 16  ;;  %v7031_v8 = vcombine.low %v814_v6, %v824_v39  ;;  %v842_v38 = vor.u32 %v841_v30, %v837_v29  ;;  %v733_v24 = vld [vmem:[#allocation2 + $0x28] sm:$0xf]  ;;  %v734_v30 = vld [vmem:[#allocation2 + $0x30] sm:$0xf] }
  0x89   : > { %v833_v47 = vrot.slane %v832_v40, 4  ;;  %v410_v48 = vrot.slane %v408_v33, 7  ;;  %v418_v50 = vrot.slane %v416_v42, 7  ;;  %v419_v51 = vshll.u32 %v268_v20, 16  ;;  %v735_v39 = vld [vmem:[#allocation2 + $0x34] sm:$0xf] }
  0x8a   : > { %v1632_v52 = vld [vmem:[#allocation2 + $0x4c] sm:$0xf]  ;;  %v8265_v58 = vld [vmem:[#allocation2 + $0x50] sm:$0x1]  ;;  %v1792_v59 = vrot.slane %v1790_v44, 4  ;;  %v1795_v53 = vrot.slane %v1793_v46, 5 }
  0x8b   : > { %v1799_v61 = vshll.u32 %v1632_v52, 16  ;;  %v1803_v63 = vshrl.u32 %v1632_v52, 16  ;;  %v1809_v1 = vshll.u32 %v8265_v58, 16  ;;  %1454 = vrot.lane.b32.xlu0 %v7031_v8, %s7708_s14  ;;  %v838_v9 = vsel %vm7984_vm10, %v833_v47, %v837_v29  ;;  %v8276_v29 = vld [vmem:[#allocation2 + $0x2c] sm:$0x1] }
  0x8c   : > { %v1796_v3 = vor.u32 %v1795_v53, %v1792_v59  ;;  %v843_v14 = vrot.slane %v842_v38, 4  ;;  %v413_v15 = vor.u32 %v411_v7, %v410_v48  ;;  %v414_v21 = vrot.slane %v410_v48, 4  ;;  %v8290_v52 = vld [vmem:[#allocation2 + $0x38] sm:$0x1] }
  0x8d   : > { %v1801_v16 = vrot.slane %v1799_v61, 5  ;;  %v1805_v17 = vrot.slane %v1803_v63, 4  ;;  %v1811_v20 = vrot.slane %v1809_v1, 5  ;;  %v421_v22 = vor.u32 %v419_v51, %v418_v50 }
  0x8e   : > { %v1797_v4 = vrot.slane %v1796_v3, 4  ;;  %v848_v56 = vsel %vm7984_vm10, %v843_v14, %v847_v32  ;;  %v423_v23 = vrot.slane %v418_v50, 4  ;;  %v664_v28 = vsel %vm7924_vm7, %v413_v15, %v663_v2 }
  0x8f   : > { %v1806_v25 = vor.u32 %v1805_v17, %v1801_v16  ;;  %v7032_v26 = vcombine.low %v838_v9, %v848_v56  ;;  %v850_v6 = vshrl.u32 %v732_v11, 16  ;;  %v422_v36 = vsel %vm7918_vm6, %v414_v21, %v421_v22  ;;  %665 = vst [vmem:[#allocation2 + $0x60] sm:$0xf] %v664_v28 }
  0x90   : > { %v1802_v33 = vsel %vm7984_vm10, %v1797_v4, %v1801_v16  ;;  %v668_v32 = vsel %vm7912_vm5, %v423_v23, %v667_v49  ;;  %v853_v37 = vshll.u32 %v732_v11, 16  ;;  %666 = vst.msk [vmem:[#allocation2 + $0x64] sm:$0xf] %vm197_vm0, %v422_v36  ;;  %v859_v42 = vshll.u32 %v733_v24, 16 }
  0x91   : > { %v1807_v40 = vrot.slane %v1806_v25, 4  ;;  %1456 = vrot.lane.b32.xlu0 %v7032_v26, %s7708_s14  ;;  %669 = vst [vmem:[#allocation2 + $0x68] sm:$0x1] %v668_v32  ;;  %v852_v7 = vrot.slane %v850_v6, 4  ;;  %v863_v44 = vshrl.u32 %v733_v24, 16  ;;  %v2136_v46 = vrot.slane %v8063_v31, 5 }
  0x92   : > { %v855_v8 = vrot.slane %v853_v37, 5  ;;  %v869_v38 = vshll.u32 %v8276_v29, 16  ;;  %v874_v47 = vshrl.u32 %v734_v30, 16  ;;  %v861_v50 = vrot.slane %v859_v42, 5  ;;  %v7509_v31 = vld [vmem:[%s11400_s1 + $0xc8] sm:$0xff]  }
  0x93   : > { %v1812_v48 = vsel %vm7984_vm10, %v1807_v40, %v1811_v20  ;;  %v865_v51 = vrot.slane %v863_v44, 4  ;;  %v877_v59 = vshll.u32 %v734_v30, 16  ;;  %v883_v9 = vshll.u32 %v735_v39, 16  ;;  %v271_v20 = vld [vmem:[%s7903_s7 + $0x48] sm:$0xf] }
  0x94   : > { %v7099_v61 = vcombine.low %v1802_v33, %v1812_v48  ;;  %v856_v63 = vor.u32 %v855_v8, %v852_v7  ;;  %v876_v1 = vrot.slane %v874_v47, 4  ;;  %v887_v14 = vshrl.u32 %v735_v39, 16  ;;  %v272_v7 = vld [vmem:[%s7903_s7 + $0x4c] sm:$0xf]  ;;  %v736_v47 = vld [vmem:[#allocation2 + $0x3c] sm:$0xf] }
  0x95   : > { %v866_v2 = vor.u32 %v865_v51, %v861_v50  ;;  %v879_v3 = vrot.slane %v877_v59, 5  ;;  %v871_v16 = vrot.slane %v869_v38, 5  ;;  %v893_v17 = vshll.u32 %v8290_v52, 16 }
  0x96   : > { %2351 = vrot.lane.b32.xlu1 %v7099_v61, %s7708_s14  ;;  %v857_v11 = vrot.slane %v856_v63, 4  ;;  %v1635_v21 = vld [vmem:[#allocation2 + $0x60] sm:$0xf]  ;;  %v885_v56 = vrot.slane %v883_v9, 5  ;;  %v889_v22 = vrot.slane %v887_v14, 4  ;;  %v442_v36 = vshrl.u32 %v271_v20, 16 }
  0x97   : > { %v867_v49 = vrot.slane %v866_v2, 4  ;;  %v880_v4 = vor.u32 %v879_v3, %v876_v1  ;;  %v1636_v23 = vld [vmem:[#allocation2 + $0x64] sm:$0xf]  ;;  %v1838_v25 = vshrl.u32 %v1635_v21, 16  ;;  %v1841_v26 = vshll.u32 %v1635_v21, 16 }
  0x98   : > { %v8297_v24 = vld [vmem:[#allocation2 + $0x68] sm:$0x1]  ;;  %v862_v28 = vsel %vm7984_vm10, %v857_v11, %v861_v50  ;;  %v1847_v6 = vshll.u32 %v1636_v23, 16  ;;  %v1851_v30 = vshrl.u32 %v1636_v23, 16  ;;  %v890_v51 = vor.u32 %v889_v22, %v885_v56  ;;  %v677_v3 = vld [vmem:[#allocation2 + $0x78] sm:$0xf] }
  0x99   : > { %v1857_v33 = vshll.u32 %v8297_v24, 16  ;;  %v1840_v32 = vrot.slane %v1838_v25, 4  ;;  %v1843_v37 = vrot.slane %v1841_v26, 5  ;;  %v872_v39 = vsel %vm7984_vm10, %v867_v49, %v871_v16  ;;  %v681_v16 = vld [vmem:[#allocation2 + $0x80] sm:$0x1] }
  0x9a   : > { %v881_v40 = vrot.slane %v880_v4, 4  ;;  %v1849_v42 = vrot.slane %v1847_v6, 5  ;;  %v1853_v44 = vrot.slane %v1851_v30, 4  ;;  %v7033_v38 = vcombine.low %v862_v28, %v872_v39  ;;  %v737_v21 = vld [vmem:[#allocation2 + $0x40] sm:$0xf] }
  0x9b   : > { %v1859_v8 = vrot.slane %v1857_v33, 5  ;;  %v1844_v48 = vor.u32 %v1843_v37, %v1840_v32  ;;  %v895_v59 = vrot.slane %v893_v17, 5  ;;  %v444_v63 = vrot.slane %v442_v36, 7  ;;  %v8312_v22 = vld [vmem:[#allocation2 + $0x44] sm:$0x1] }
  0x9c   : > { %v886_v50 = vsel %vm7984_vm10, %v881_v40, %v885_v56  ;;  %v1854_v61 = vor.u32 %v1853_v44, %v1849_v42  ;;  %1458 = vrot.lane.b32.xlu0 %v7033_v38, %s7708_s14  ;;  %v445_v1 = vshll.u32 %v271_v20, 16  ;;  %v450_v2 = vshrl.u32 %v272_v7, 16  ;;  %v738_v32 = vld [vmem:[#allocation2 + $0x48] sm:$0xf] }
  0x9d   : > { %v1845_v9 = vrot.slane %v1844_v48, 4  ;;  %v891_v14 = vrot.slane %v890_v51, 4  ;;  %v453_v11 = vshll.u32 %v272_v7, 16  ;;  %v898_v49 = vshrl.u32 %v736_v47, 16  ;;  %v8324_v48 = vld [vmem:[#allocation2 + $0x50] sm:$0x1] }
  0x9e   : > { %v1855_v4 = vrot.slane %v1854_v61, 4  ;;  %v447_v23 = vor.u32 %v445_v1, %v444_v63  ;;  %v448_v25 = vrot.slane %v444_v63, 4  ;;  %v452_v26 = vrot.slane %v450_v2, 7  ;;  %v275_v61 = vld [vmem:[%s7903_s7 + $0x58] sm:$0xf] }
  0x9f   : > { %v1850_v17 = vsel %vm7984_vm10, %v1845_v9, %v1849_v42  ;;  %v896_v56 = vsel %vm7984_vm10, %v891_v14, %v895_v59  ;;  %v900_v20 = vrot.slane %v898_v49, 4  ;;  %v901_v28 = vshll.u32 %v736_v47, 16  ;;  %v739_v42 = vld [vmem:[#allocation2 + $0x4c] sm:$0xf]  ;;  %v276_v9 = vld [vmem:[%s7903_s7 + $0x5c] sm:$0xf] }
  0xa0   : > { %v1860_v6 = vsel %vm7984_vm10, %v1855_v4, %v1859_v8  ;;  %v7034_v30 = vcombine.low %v886_v50, %v896_v56  ;;  %v455_v33 = vor.u32 %v453_v11, %v452_v26  ;;  %v457_v36 = vrot.slane %v452_v26, 4  ;;  %v741_v26 = vld [vmem:[#allocation2 + $0x58] sm:$0xf] }
  0xa1   : > { %v7101_v37 = vcombine.low %v1850_v17, %v1860_v6  ;;  %v678_v39 = vsel %vm7924_vm7, %v447_v23, %v677_v3  ;;  %v903_v40 = vrot.slane %v901_v28, 5  ;;  %v907_v7 = vshll.u32 %v737_v21, 16 }
  0xa2   : > { %1460 = vrot.lane.b32.xlu0 %v7034_v30, %s7708_s14  ;;  %v456_v44 = vsel %vm7918_vm6, %v448_v25, %v455_v33  ;;  %679 = vst [vmem:[#allocation2 + $0x78] sm:$0xf] %v678_v39  ;;  %v682_v8 = vsel %vm7912_vm5, %v457_v36, %v681_v16  ;;  %v911_v38 = vshrl.u32 %v737_v21, 16  ;;  %v917_v47 = vshll.u32 %v8312_v22, 16  ;;  %v740_v36 = vld [vmem:[#allocation2 + $0x54] sm:$0xf] }
  0xa3   : > { %2355 = vrot.lane.b32.xlu1 %v7101_v37, %s7708_s14  ;;  %680 = vst.msk [vmem:[#allocation2 + $0x7c] sm:$0xf] %vm197_vm0, %v456_v44  ;;  %683 = vst [vmem:[#allocation2 + $0x80] sm:$0x1] %v682_v8  ;;  %v904_v50 = vor.u32 %v903_v40, %v900_v20  ;;  %v909_v51 = vrot.slane %v907_v7, 5  ;;  %v922_v59 = vshrl.u32 %v738_v32, 16 }
  0xa4   : > { %v2143_v63 = vrot.slane %v8170_v55, 5  ;;  %v913_v1 = vrot.slane %v911_v38, 4  ;;  %v925_v2 = vshll.u32 %v738_v32, 16  ;;  %v931_v3 = vshll.u32 %v739_v42, 16  ;;  %v7549_v55 = vld [vmem:[#allocation2 + $0x4] sm:$0xf] }
  0xa5   : > { %v905_v14 = vrot.slane %v904_v50, 4  ;;  %v924_v11 = vrot.slane %v922_v59, 4  ;;  %v935_v16 = vshrl.u32 %v739_v42, 16  ;;  %v941_v21 = vshll.u32 %v8324_v48, 16  ;;  %v8339_v50 = vld [vmem:[#allocation2 + $0xc] sm:$0xf] }
  0xa6   : > { %v914_v49 = vor.u32 %v913_v1, %v909_v51  ;;  %v919_v4 = vrot.slane %v917_v47, 5  ;;  %v927_v23 = vrot.slane %v925_v2, 5  ;;  %v933_v25 = vrot.slane %v931_v3, 5 }
  0xa7   : > { %v910_v17 = vsel %vm7984_vm10, %v905_v14, %v909_v51  ;;  %v937_v56 = vrot.slane %v935_v16, 4  ;;  %v476_v20 = vshrl.u32 %v275_v61, 16  ;;  %v943_v30 = vrot.slane %v941_v21, 5  ;;  %v8341_v51 = vld [vmem:[#allocation2 + $0x10] sm:$0xf] }
  0xa8   : > { %v915_v28 = vrot.slane %v914_v49, 4  ;;  %v928_v6 = vor.u32 %v927_v23, %v924_v11  ;;  %v479_v33 = vshll.u32 %v275_v61, 16  ;;  %v484_v40 = vshrl.u32 %v276_v9, 16 }
  0xa9   : > { %v1639_v32 = vld [vmem:[#allocation2 + $0x78] sm:$0xf]  ;;  %v938_v37 = vor.u32 %v937_v56, %v933_v25  ;;  %v478_v39 = vrot.slane %v476_v20, 7  ;;  %v487_v7 = vshll.u32 %v276_v9, 16  ;;  %v7078_v59 = vcombine.low %v8339_v50, %v8341_v51  ;;  %v691_v56 = vld [vmem:[#allocation2 + $0x90] sm:$0xf] }
  0xaa   : > { %v1640_v42 = vld [vmem:[#allocation2 + $0x7c] sm:$0xf]  ;;  %v8335_v44 = vld [vmem:[#allocation2 + $0x80] sm:$0x1]  ;;  %v1886_v8 = vshrl.u32 %v1639_v32, 16  ;;  %v1889_v38 = vshll.u32 %v1639_v32, 16  ;;  %v920_v47 = vsel %vm7984_vm10, %v915_v28, %v919_v4 }
  0xab   : > { %v1895_v61 = vshll.u32 %v1640_v42, 16  ;;  %v1899_v1 = vshrl.u32 %v1640_v42, 16  ;;  %v1905_v2 = vshll.u32 %v8335_v44, 16  ;;  %v946_v3 = vshrl.u32 %v740_v36, 16 }
  0xac   : > { %v1888_v9 = vrot.slane %v1886_v8, 4  ;;  %v1891_v14 = vrot.slane %v1889_v38, 5  ;;  %v7035_v11 = vcombine.low %v910_v17, %v920_v47  ;;  %v929_v16 = vrot.slane %v928_v6, 4  ;;  %v8351_v6 = vld [vmem:[#allocation2 + $0x5c] sm:$0x1] }
  0xad   : > { %v1897_v21 = vrot.slane %v1895_v61, 5  ;;  %v1901_v49 = vrot.slane %v1899_v1, 4  ;;  %v1907_v23 = vrot.slane %v1905_v2, 5  ;;  %v939_v4 = vrot.slane %v938_v37, 4  ;;  %v695_v1 = vld [vmem:[#allocation2 + $0x98] sm:$0x1] }
  0xae   : > { %v1892_v20 = vor.u32 %v1891_v14, %v1888_v9  ;;  %1462 = vrot.lane.b32.xlu0 %v7035_v11, %s7708_s14  ;;  %v934_v28 = vsel %vm7984_vm10, %v929_v16, %v933_v25  ;;  %v481_v32 = vor.u32 %v479_v33, %v478_v39  ;;  %v482_v42 = vrot.slane %v478_v39, 4  ;;  %v742_v14 = vld [vmem:[#allocation2 + $0x60] sm:$0xf]  ;;  %v743_v16 = vld [vmem:[#allocation2 + $0x64] sm:$0xf] }
  0xaf   : > { %v1902_v15 = vor.u32 %v1901_v49, %v1897_v21  ;;  %v944_v8 = vsel %vm7984_vm10, %v939_v4, %v943_v30  ;;  %v486_v17 = vrot.slane %v484_v40, 7  ;;  %v948_v38 = vrot.slane %v946_v3, 4  ;;  %v766_v4 = vld [vmem:[#allocation2 + $0x68] sm:$0x1] }
  0xb0   : > { %v1893_v47 = vrot.slane %v1892_v20, 4  ;;  %v7036_v37 = vcombine.low %v934_v28, %v944_v8  ;;  %v692_v61 = vsel %vm7924_vm7, %v481_v32, %v691_v56  ;;  %v949_v2 = vshll.u32 %v740_v36, 16 }
  0xb1   : > { %v1903_v9 = vrot.slane %v1902_v15, 4  ;;  %v489_v25 = vor.u32 %v487_v7, %v486_v17  ;;  %v491_v33 = vrot.slane %v486_v17, 4  ;;  %693 = vst [vmem:[#allocation2 + $0x90] sm:$0xf] %v692_v61  ;;  %v955_v39 = vshll.u32 %v741_v26, 16 }
  0xb2   : > { %v1898_v30 = vsel %vm7984_vm10, %v1893_v47, %v1897_v21  ;;  %1464 = vrot.lane.b32.xlu0 %v7036_v37, %s7708_s14  ;;  %v951_v40 = vrot.slane %v949_v2, 5  ;;  %v959_v3 = vshrl.u32 %v741_v26, 16  ;;  %v965_v11 = vshll.u32 %v8351_v6, 16  ;;  %v279_v61 = vld [vmem:[%s7903_s7 + $0x68] sm:$0xf] }
  0xb3   : > { %v1908_v49 = vsel %vm7984_vm10, %v1903_v9, %v1907_v23  ;;  %v490_v15 = vsel %vm7918_vm6, %v482_v42, %v489_v25  ;;  %v696_v36 = vsel %vm7912_vm5, %v491_v33, %v695_v1  ;;  %v957_v7 = vrot.slane %v955_v39, 5  ;;  %v280_v33 = vld [vmem:[%s7903_s7 + $0x6c] sm:$0xf]  ;;  %v8375_v21 = vld [vmem:[#allocation2 + $0x18] sm:$0xf] }
  0xb4   : > { %v7103_v56 = vcombine.low %v1898_v30, %v1908_v49  ;;  %694 = vst.msk [vmem:[#allocation2 + $0x94] sm:$0xf] %vm197_vm0, %v490_v15  ;;  %697 = vst [vmem:[#allocation2 + $0x98] sm:$0x1] %v696_v36  ;;  %v952_v26 = vor.u32 %v951_v40, %v948_v38  ;;  %v961_v20 = vrot.slane %v959_v3, 4  ;;  %v967_v28 = vrot.slane %v965_v11, 5 }
  0xb5   : > { %v970_v23 = vshrl.u32 %v742_v14, 16  ;;  %v973_v32 = vshll.u32 %v742_v14, 16  ;;  %v979_v8 = vshll.u32 %v743_v16, 16  ;;  %v983_v47 = vshrl.u32 %v743_v16, 16 }
  0xb6   : > { %2359 = vrot.lane.b32.xlu1 %v7103_v56, %s7708_s14  ;;  %v953_v42 = vrot.slane %v952_v26, 4  ;;  %v962_v17 = vor.u32 %v961_v20, %v957_v7  ;;  %v989_v37 = vshll.u32 %v766_v4, 16  ;;  %v510_v15 = vshrl.u32 %v279_v61, 16 }
  0xb7   : > { %v972_v2 = vrot.slane %v970_v23, 4  ;;  %v975_v9 = vrot.slane %v973_v32, 5  ;;  %v981_v25 = vrot.slane %v979_v8, 5  ;;  %v985_v14 = vrot.slane %v983_v47, 4 }
  0xb8   : > { %v1643_v38 = vld [vmem:[#allocation2 + $0x90] sm:$0xf]  ;;  %v958_v39 = vsel %vm7984_vm10, %v953_v42, %v957_v7  ;;  %v963_v30 = vrot.slane %v962_v17, 4  ;;  %v991_v40 = vrot.slane %v989_v37, 5  ;;  %v513_v4 = vshll.u32 %v279_v61, 16 }
  0xb9   : > { %v1934_v3 = vshrl.u32 %v1643_v38, 16  ;;  %v1937_v11 = vshll.u32 %v1643_v38, 16  ;;  %v976_v49 = vor.u32 %v975_v9, %v972_v2  ;;  %v986_v36 = vor.u32 %v985_v14, %v981_v25  ;;  %v8377_v7 = vld [vmem:[#allocation2 + $0x1c] sm:$0xf]  ;;  %v767_v17 = vld [vmem:[#allocation2 + $0x74] sm:$0x1] }
  0xba   : > { %v968_v16 = vsel %vm7984_vm10, %v963_v30, %v967_v28  ;;  %v518_v56 = vshrl.u32 %v280_v33, 16  ;;  %v7079_v42 = vcombine.low %v8375_v21, %v8377_v7  ;;  %v512_v38 = vrot.slane %v510_v15, 7  ;;  %v705_v30 = vld [vmem:[#allocation2 + $0xa8] sm:$0xf]  ;;  %v709_v15 = vld [vmem:[#allocation2 + $0xb0] sm:$0x1] }
  0xbb   : > { %v1644_v26 = vld [vmem:[#allocation2 + $0x94] sm:$0xf]  ;;  %v1664_v20 = vld [vmem:[#allocation2 + $0x98] sm:$0x1]  ;;  %v1936_v23 = vrot.slane %v1934_v3, 4  ;;  %v1939_v32 = vrot.slane %v1937_v11, 5  ;;  %v7037_v8 = vcombine.low %v958_v39, %v968_v16 }
  0xbc   : > { %v1943_v47 = vshll.u32 %v1644_v26, 16  ;;  %v1947_v37 = vshrl.u32 %v1644_v26, 16  ;;  %v1953_v28 = vshll.u32 %v1664_v20, 16  ;;  %v977_v61 = vrot.slane %v976_v49, 4  ;;  %v744_v16 = vld [vmem:[#allocation2 + $0x6c] sm:$0xf] }
  0xbd   : > { %v1940_v2 = vor.u32 %v1939_v32, %v1936_v23  ;;  %1466 = vrot.lane.b32.xlu0 %v7037_v8, %s7708_s14  ;;  %v987_v9 = vrot.slane %v986_v36, 4  ;;  %v520_v11 = vrot.slane %v518_v56, 7  ;;  %v515_v20 = vor.u32 %v513_v4, %v512_v38  ;;  %v745_v23 = vld [vmem:[#allocation2 + $0x70] sm:$0xf]  ;;  %v8484_v21 = vld [vmem:[#allocation2 + $0x28] sm:$0xf] }
  0xbe   : > { %v1945_v39 = vrot.slane %v1943_v47, 5  ;;  %v1949_v14 = vrot.slane %v1947_v37, 4  ;;  %v1955_v3 = vrot.slane %v1953_v28, 5  ;;  %v982_v60 = vsel %vm7984_vm10, %v977_v61, %v981_v25 }
  0xbf   : > { %v1941_v53 = vrot.slane %v1940_v2, 4  ;;  %v992_v26 = vsel %vm7984_vm10, %v987_v9, %v991_v40  ;;  %v516_v49 = vrot.slane %v512_v38, 4  ;;  %v521_v36 = vshll.u32 %v280_v33, 16 }
  0xc0   : > { %v1950_v32 = vor.u32 %v1949_v14, %v1945_v39  ;;  %v7038_v8 = vcombine.low %v982_v60, %v992_v26  ;;  %v525_v56 = vrot.slane %v520_v11, 4  ;;  %v706_v37 = vsel %vm7924_vm7, %v515_v20, %v705_v30  ;;  %v746_v60 = vld [vmem:[#allocation2 + $0x78] sm:$0xf]  ;;  %v768_v26 = vld [vmem:[#allocation2 + $0x80] sm:$0x1] }
  0xc1   : > { %v1946_v47 = vsel %vm7984_vm10, %v1941_v53, %v1945_v39  ;;  %v994_v28 = vshrl.u32 %v744_v16, 16  ;;  %v523_v40 = vor.u32 %v521_v36, %v520_v11  ;;  %707 = vst [vmem:[#allocation2 + $0xa8] sm:$0xf] %v706_v37  ;;  %v997_v4 = vshll.u32 %v744_v16, 16  ;;  %v747_v53 = vld [vmem:[#allocation2 + $0x7c] sm:$0xf] }
  0xc2   : > { %v1951_v25 = vrot.slane %v1950_v32, 4  ;;  %1468 = vrot.lane.b32.xlu0 %v7038_v8, %s7708_s14  ;;  %v1003_v2 = vshll.u32 %v745_v23, 16  ;;  %v710_v33 = vsel %vm7912_vm5, %v525_v56, %v709_v15  ;;  %v1007_v9 = vshrl.u32 %v745_v23, 16 }
  0xc3   : > { %v996_v61 = vrot.slane %v994_v28, 4  ;;  %v1013_v38 = vshll.u32 %v767_v17, 16  ;;  %v524_v30 = vsel %vm7918_vm6, %v516_v49, %v523_v40  ;;  %711 = vst [vmem:[#allocation2 + $0xb0] sm:$0x1] %v710_v33  ;;  %v999_v14 = vrot.slane %v997_v4, 5 }
  0xc4   : > { %v1956_v39 = vsel %vm7984_vm10, %v1951_v25, %v1955_v3  ;;  %v1005_v11 = vrot.slane %v1003_v2, 5  ;;  %708 = vst.msk [vmem:[#allocation2 + $0xac] sm:$0xf] %vm197_vm0, %v524_v30  ;;  %v1009_v23 = vrot.slane %v1007_v9, 4  ;;  %v1018_v8 = vshrl.u32 %v746_v60, 16 }
  0xc5   : > { %v7105_v32 = vcombine.low %v1946_v47, %v1956_v39  ;;  %v1000_v17 = vor.u32 %v999_v14, %v996_v61  ;;  %v1021_v36 = vshll.u32 %v746_v60, 16  ;;  %v1027_v15 = vshll.u32 %v747_v53, 16  ;;  %v3074_v2 = vld [vmem:[#allocation2 + $0x1c] sm:$0xf] }
  0xc6   : > { %v1010_v3 = vor.u32 %v1009_v23, %v1005_v11  ;;  %v1015_v49 = vrot.slane %v1013_v38, 5  ;;  %v1031_v56 = vshrl.u32 %v747_v53, 16  ;;  %v1037_v37 = vshll.u32 %v768_v26, 16  ;;  %v2053_v26 = vld [vmem:[#allocation2 + $0xc] sm:$0xe] }
  0xc7   : > { %2363 = vrot.lane.b32.xlu1 %v7105_v32, %s7708_s14  ;;  %v1001_v28 = vrot.slane %v1000_v17, 4  ;;  %v1020_v25 = vrot.slane %v1018_v8, 4  ;;  %v1023_v40 = vrot.slane %v1021_v36, 5  ;;  %v1029_v4 = vrot.slane %v1027_v15, 5 }
  0xc8   : > { %v1647_v47 = vld [vmem:[#allocation2 + $0xa8] sm:$0xf]  ;;  %v1011_v33 = vrot.slane %v1010_v3, 4  ;;  %v1033_v39 = vrot.slane %v1031_v56, 4  ;;  %v1039_v9 = vrot.slane %v1037_v37, 5  ;;  %vm1532_vm13 = vcmask 523264   ;;  %v2342_v37 = vpop.permute.xlu0 %2341 }
  0xc9   : > { %v1982_v61 = vshrl.u32 %v1647_v47, 16  ;;  %v1985_v30 = vshll.u32 %v1647_v47, 16  ;;  %v1006_v60 = vsel %vm7984_vm10, %v1001_v28, %v1005_v11  ;;  %v1024_v14 = vor.u32 %v1023_v40, %v1020_v25  ;;  %v283_v28 = vld [vmem:[%s7903_s7 + $0x78] sm:$0xf] }
  0xca   : > { %v1666_v32 = vld [vmem:[#allocation2 + $0xb0] sm:$0x1]  ;;  %v1016_v38 = vsel %vm7984_vm10, %v1011_v33, %v1015_v49  ;;  %v1034_v53 = vor.u32 %v1033_v39, %v1029_v4  ;;  %v7062_v33 = vrot.slane %v2053_v26, 9  ;;  %v284_v39 = vld [vmem:[%s7903_s7 + $0x7c] sm:$0xf]  ;;  %v2423_v26 = vsel %vm1532_vm13, %v7078_v59, %v2342_v37  ;;  %s6995_s7 = sshll.u32 %s188_s8, 6 }
  0xcb   : > { %v1648_v23 = vld [vmem:[#allocation2 + $0xac] sm:$0xf]  ;;  %v1984_v17 = vrot.slane %v1982_v61, 4  ;;  %v1987_v8 = vrot.slane %v1985_v30, 5  ;;  %v2001_v36 = vshll.u32 %v1666_v32, 16  ;;  %v7039_v56 = vcombine.low %v1006_v60, %v1016_v38  ;;  %s11326_s9 = scalar_lea.vmem [#allocation3], %s6995_s7 }
  0xcc   : > { %v1991_v15 = vshll.u32 %v1648_v23, 16  ;;  %v1995_v3 = vshrl.u32 %v1648_v23, 16  ;;  %v1025_v11 = vrot.slane %v1024_v14, 4  ;;  %v1035_v47 = vrot.slane %v1034_v53, 4  ;;  %v748_v32 = vld [vmem:[#allocation2 + $0x84] sm:$0xf] }
  0xcd   : > { %v1988_v25 = vor.u32 %v1987_v8, %v1984_v17  ;;  %v2003_v40 = vrot.slane %v2001_v36, 5  ;;  %1470 = vrot.lane.b32.xlu0 %v7039_v56, %s7708_s14  ;;  %v2119_v14 = vrot.slane %v8341_v51, 5  ;;  %v7541_v23 = vld [vmem:[#allocation2 + $0x14] sm:$0x1]  ;;  %v544_v56 = vshrl.u32 %v283_v28, 16  ;;  %s6932_s11 = sshll.u32 %s11326_s9, 4  ;;  %s11357_s11 = int_to_ptr.vmem [resolvable:$true] %s6932_s11 }
  0xce   : > { %v1993_v61 = vrot.slane %v1991_v15, 5  ;;  %v1997_v30 = vrot.slane %v1995_v3, 4  ;;  %v1030_v60 = vsel %vm7984_vm10, %v1025_v11, %v1029_v4  ;;  %v1040_v53 = vsel %vm7984_vm10, %v1035_v47, %v1039_v9  ;;  %v749_v9 = vld [vmem:[#allocation2 + $0x88] sm:$0xf]  ;;  %v719_v59 = vld [vmem:[#allocation2 + $0xc0] sm:$0xf]  ;;  %p7652_p0 = scmp.lt.s32.totalorder %s11357_s11, %s7650_s23 }
  0xcf   : > { %v1989_v38 = vrot.slane %v1988_v25, 4  ;;  %v2122_v17 = vrot.slane %v7541_v23, 5  ;;  %v7040_v36 = vcombine.low %v1030_v60, %v1040_v53  ;;  %v2120_v15 = vsel %vm8410_vm14, %v7062_v33, %v2119_v14  ;;  %v8432_v60 = vpop.permute.xlu0 %2343  ;;  %v723_v53 = vld [vmem:[#allocation2 + $0xc8] sm:$0x1] }
  0xd0   : > { %v1998_v8 = vor.u32 %v1997_v30, %v1993_v61  ;;  %v2121_v4 = vrot.slane %v2119_v14, 4  ;;  %v547_v11 = vshll.u32 %v283_v28, 16  ;;  %v552_v25 = vshrl.u32 %v284_v39, 16  ;;  %v7503_v28 = vld [vmem:[%s11400_s1 + $0xf8] sm:$0xff]  }
  0xd1   : > { %v1994_v3 = vsel %vm7984_vm10, %v1989_v38, %v1993_v61  ;;  %1472 = vrot.lane.b32.xlu0 %v7040_v36, %s7708_s14  ;;  %v555_v51 = vshll.u32 %v284_v39, 16  ;;  %v1042_v37 = vshrl.u32 %v748_v32, 16  ;;  %v546_v33 = vrot.slane %v544_v56, 7  ;;  %v769_v61 = vld [vmem:[#allocation2 + $0x8c] sm:$0x1] }
  0xd2   : > { %v1999_v47 = vrot.slane %v1998_v8, 4  ;;  %v2123_v50 = vsel %vm8410_vm14, %v2121_v4, %v2122_v17  ;;  %v554_v14 = vrot.slane %v552_v25, 7  ;;  %v1045_v38 = vshll.u32 %v748_v32, 16  ;;  %v2054_v36 = vld [vmem:[#allocation2 + $0x18] sm:$0xe] }
  0xd3   : > { %v7110_v30 = vcombine.low %v2120_v15, %v2123_v50  ;;  %v1044_v8 = vrot.slane %v1042_v37, 4  ;;  %v1051_v17 = vshll.u32 %v749_v9, 16  ;;  %v1055_v39 = vshrl.u32 %v749_v9, 16  ;;  %v3073_v50 = vld [vmem:[#allocation2 + $0x18] sm:$0xf] }
  0xd4   : > { %v2004_v23 = vsel %vm7984_vm10, %v1999_v47, %v2003_v40  ;;  %v549_v15 = vor.u32 %v547_v11, %v546_v33  ;;  %v550_v56 = vrot.slane %v546_v33, 4  ;;  %v557_v25 = vor.u32 %v555_v51, %v554_v14  ;;  %v3105_v33 = vld [vmem:[#allocation2 + $0x20] sm:$0x1] }
  0xd5   : > { %v7107_v4 = vcombine.low %v1994_v3, %v2004_v23  ;;  %7162 = vmatprep.mubr.msk.bf16.mxu0 %vm1532_vm13, %v7110_v30  ;;  %v559_v32 = vrot.slane %v554_v14, 4  ;;  %v1047_v20 = vrot.slane %v1045_v38, 5  ;;  %v1053_v1 = vrot.slane %v1051_v17, 5  ;;  %v7505_v17 = vld [vmem:[%s11400_s1 + $0xe8] sm:$0xff]  }
  0xd6   : > { %2663 = vmatmul.mubr.bf16.vlgmr.msra.gmra.mxu0 %v2423_v26  ;;  %v1057_v16 = vrot.slane %v1055_v39, 4  ;;  %v2171_v12 = vrot.slane %v8297_v24, 5  ;;  %v558_v40 = vsel %vm7918_vm6, %v550_v56, %v557_v25  ;;  %v720_v3 = vsel %vm7924_vm7, %v549_v15, %v719_v59  ;;  %v7504_v26 = vld [vmem:[%s11400_s1 + $0xf0] sm:$0xff]   ;;  %v8454_v59 = vpop.permute.xlu0 %2349  ;;  %v2061_v24 = vld [vmem:[#allocation2 + $0x6c] sm:$0xe] }
  0xd7   : > { %2367 = vrot.lane.b32.xlu1 %v7107_v4, %s7708_s14  ;;  %v1061_v11 = vshll.u32 %v769_v61, 16  ;;  %4083 = vmatpush1.bf16.msra.mxu0 %v7503_v28  ;;  %721 = vst [vmem:[#allocation2 + $0xc0] sm:$0xf] %v720_v3  ;;  %722 = vst.msk [vmem:[#allocation2 + $0xc4] sm:$0xf] %vm197_vm0, %v558_v40  ;;  %v724_v9 = vsel %vm7912_vm5, %v559_v32, %v723_v53  ;;  %v1048_v47 = vor.u32 %v1047_v20, %v1044_v8  ;;  %vm5274_vm15 = vcmask 1040384  }
  0xd8   : > { %v1058_v51 = vor.u32 %v1057_v16, %v1053_v1  ;;  %v7063_v37 = vrot.slane %v2054_v36, 9  ;;  %4084 = vmatprep.subr.bf16.mxu0 %v7707_v0  ;;  %v1268_v13 = vrot.slane %v8312_v22, 5  ;;  %725 = vst [vmem:[#allocation2 + $0xc8] sm:$0x1] %v724_v9  ;;  %v2126_v30 = vrot.slane %v8377_v7, 5 }
  0xd9   : > { %v1063_v18 = vrot.slane %v1061_v11, 5  ;;  %v3122_v14 = vshrl.u32 %v3073_v50, 16  ;;  %v1049_v61 = vrot.slane %v1048_v47, 4  ;;  %v3125_v28 = vshll.u32 %v3073_v50, 16  ;;  %v750_v53 = vld [vmem:[#allocation2 + $0x90] sm:$0xf] }
  0xda   : > { %v1059_v38 = vrot.slane %v1058_v51, 4  ;;  %v3131_v10 = vshll.u32 %v3074_v2, 16  ;;  %v2127_v16 = vsel %vm8410_vm14, %v7063_v37, %v2126_v30  ;;  %v2128_v20 = vrot.slane %v2126_v30, 4  ;;  %v7506_v11 = vld [vmem:[%s11400_s1 + $0xe0] sm:$0xff]   ;;  %v8745_v22 = vld [vmem:[#allocation2 + $0xb0] sm:$0x1] }
  0xdb   : > { %v3124_v23 = vrot.slane %v3122_v14, 4  ;;  %v3135_v8 = vshrl.u32 %v3074_v2, 16  ;;  %4085 = vmatpush1.bf16.msra.mxu0 %v7504_v26  ;;  %v1054_v39 = vsel %vm7984_vm10, %v1049_v61, %v1053_v1  ;;  %v3127_v4 = vrot.slane %v3125_v28, 5  ;;  %v8482_v37 = vld [vmem:[#allocation2 + $0x24] sm:$0xf] }
  0xdc   : > { %v1064_v36 = vsel %vm7984_vm10, %v1059_v38, %v1063_v18  ;;  %v3133_v15 = vrot.slane %v3131_v10, 5  ;;  %4086 = vmatprep.subr.bf16.mxu0 %v7707_v0  ;;  %v2130_v2 = vsel %vm8410_vm14, %v2128_v20, %v2129_v45  ;;  %v3141_v50 = vshll.u32 %v3105_v33, 16  ;;  %v8480_v45 = vpop.permute.xlu0 %2353  ;;  %v751_v10 = vld [vmem:[#allocation2 + $0x94] sm:$0xf] }
  0xdd   : > { %v7041_v56 = vcombine.low %v1054_v39, %v1064_v36  ;;  %v3137_v25 = vrot.slane %v3135_v8, 4  ;;  %v7111_v32 = vcombine.low %v2127_v16, %v2130_v2  ;;  %v2427_v1 = vsel %vm1532_vm13, %v7079_v42, %v8432_v60  ;;  %v8497_v2 = vld [vmem:[#allocation2 + $0x30] sm:$0xf] }
  0xde   : > { %v3128_v40 = vor.u32 %v3127_v4, %v3124_v23  ;;  %v1066_v3 = vshrl.u32 %v750_v53, 16  ;;  %v1651_v26 = vld [vmem:[#allocation2 + $0xc0] sm:$0xf]  ;;  %v1652_v34 = vld [vmem:[#allocation2 + $0xc4] sm:$0xf]  ;;  %v3143_v47 = vrot.slane %v3141_v50, 5  ;;  %v7080_v7 = vcombine.low %v8482_v37, %v8484_v21 }
  0xdf   : > { %1474 = vrot.lane.b32.xlu0 %v7041_v56, %s7708_s14  ;;  %v3138_v9 = vor.u32 %v3137_v25, %v3133_v15  ;;  %v1069_v51 = vshll.u32 %v750_v53, 16  ;;  %4087 = vmatpush1.bf16.msra.mxu0 %v7505_v17  ;;  %v1668_v42 = vld [vmem:[#allocation2 + $0xc8] sm:$0x1]  ;;  %v2030_v60 = vshrl.u32 %v1651_v26, 16  ;;  %v2033_v18 = vshll.u32 %v1651_v26, 16  ;;  %v7507_v50 = vld [vmem:[%s11400_s1 + $0xd8] sm:$0xff]  }
  0xe0   : > { %v2039_v30 = vshll.u32 %v1652_v34, 16  ;;  %v2043_v33 = vshrl.u32 %v1652_v34, 16  ;;  %7163 = vmatprep.mubr.msk.bf16.mxu0 %vm1532_vm13, %v7111_v32  ;;  %4088 = vmatprep.subr.bf16.mxu0 %v7707_v0  ;;  %v1275_v14 = vrot.slane %v8324_v48, 5  ;;  %v2049_v61 = vshll.u32 %v1668_v42, 16  ;;  %v2055_v53 = vld [vmem:[#allocation2 + $0x24] sm:$0xe]  ;;  %v8505_v42 = vpop.permute.xlu0 %2357 }
  0xe1   : > { %2671 = vmatmul.mubr.bf16.gmra.mxu0 %v2427_v1  ;;  %v3129_v38 = vrot.slane %v3128_v40, 4  ;;  %v3139_v28 = vrot.slane %v3138_v9, 4  ;;  %v2032_v16 = vrot.slane %v2030_v60, 4  ;;  %v2035_v20 = vrot.slane %v2033_v18, 5  ;;  %v770_v17 = vld [vmem:[#allocation2 + $0x98] sm:$0x1] }
  0xe2   : > { %v2041_v23 = vrot.slane %v2039_v30, 5  ;;  %v2045_v8 = vrot.slane %v2043_v33, 4  ;;  %v1068_v4 = vrot.slane %v1066_v3, 4  ;;  %v8495_v56 = vld [vmem:[#allocation2 + $0x34] sm:$0xf]  ;;  %v2051_v40 = vrot.slane %v2049_v61, 5 }
  0xe3   : > { %v3134_v39 = vsel %vm7984_vm10, %v3129_v38, %v3133_v15  ;;  %v3144_v36 = vsel %vm7984_vm10, %v3139_v28, %v3143_v47  ;;  %v7081_v25 = vcombine.low %v8497_v2, %v8495_v56  ;;  %4089 = vmatpush1.bf16.msra.mxu0 %v7506_v11  ;;  %v2036_v32 = vor.u32 %v2035_v20, %v2032_v16  ;;  %v3075_v26 = vld [vmem:[#allocation2 + $0x24] sm:$0xf]  ;;  %v3076_v60 = vld [vmem:[#allocation2 + $0x28] sm:$0xf] }
  0xe4   : > { %v2046_v1 = vor.u32 %v2045_v8, %v2041_v23  ;;  %v1071_v15 = vrot.slane %v1069_v51, 5  ;;  %4090 = vmatprep.subr.bf16.mxu0 %v7707_v0  ;;  %v7238_v3 = vcombine.low %v3134_v39, %v3144_v36  ;;  %v1075_v34 = vshll.u32 %v751_v10, 16  ;;  %v7508_v51 = vld [vmem:[%s11400_s1 + $0xd0] sm:$0xff]  }
  0xe5   : > { %v1079_v9 = vshrl.u32 %v751_v10, 16  ;;  %v1085_v47 = vshll.u32 %v770_v17, 16  ;;  %v2037_v18 = vrot.slane %v2036_v32, 4  ;;  %v7064_v33 = vrot.slane %v2055_v53, 9  ;;  %v3106_v17 = vld [vmem:[#allocation2 + $0x2c] sm:$0x1]  ;;  %v2346_v32 = vpop.permute.xlu1 %2345 }
  0xe6   : > { %v2047_v11 = vrot.slane %v2046_v1, 4  ;;  %v1072_v30 = vor.u32 %v1071_v15, %v1068_v4  ;;  %v1077_v38 = vrot.slane %v1075_v34, 5  ;;  %v2133_v61 = vrot.slane %v8484_v21, 5  ;;  %v752_v53 = vld [vmem:[#allocation2 + $0x9c] sm:$0xf] }
  0xe7   : > { %v1081_v28 = vrot.slane %v1079_v9, 4  ;;  %v1087_v16 = vrot.slane %v1085_v47, 5  ;;  %4091 = vmatpush1.bf16.msra.mxu0 %v7507_v50  ;;  %v2042_v10 = vsel %vm7984_vm10, %v2037_v18, %v2041_v23  ;;  %v3146_v39 = vshrl.u32 %v3075_v26, 16 }
  0xe8   : > { %v2052_v20 = vsel %vm7984_vm10, %v2047_v11, %v2051_v40  ;;  %v1073_v8 = vrot.slane %v1072_v30, 4  ;;  %4092 = vmatprep.subr.bf16.mxu0 %v7707_v0  ;;  %v2134_v50 = vsel %vm8410_vm14, %v7064_v33, %v2133_v61  ;;  %v2135_v1 = vrot.slane %v2133_v61, 4  ;;  %v753_v40 = vld [vmem:[#allocation2 + $0xa0] sm:$0xf]  ;;  %v8525_v11 = vpop.permute.xlu0 %2361 }
  0xe9   : > { %v7109_v36 = vcombine.low %v2042_v10, %v2052_v20  ;;  %v1082_v4 = vor.u32 %v1081_v28, %v1077_v38  ;;  %v3148_v23 = vrot.slane %v3146_v39, 4  ;;  %v3149_v34 = vshll.u32 %v3075_v26, 16  ;;  %v771_v28 = vld [vmem:[#allocation2 + $0xa4] sm:$0x1] }
  0xea   : > { %v1078_v15 = vsel %vm7984_vm10, %v1073_v8, %v1077_v38  ;;  %v3155_v9 = vshll.u32 %v3076_v60, 16  ;;  %v2137_v18 = vsel %vm8410_vm14, %v2135_v1, %v2136_v46  ;;  %v3159_v30 = vshrl.u32 %v3076_v60, 16  ;;  %v3077_v1 = vld [vmem:[#allocation2 + $0x30] sm:$0xf] }
  0xeb   : > { %2371 = vrot.lane.b32.xlu1 %v7109_v36, %s7708_s14  ;;  %v1083_v47 = vrot.slane %v1082_v4, 4  ;;  %v3165_v33 = vshll.u32 %v3106_v17, 16  ;;  %4093 = vmatpush1.bf16.msra.mxu0 %v7508_v51  ;;  %v7112_v61 = vcombine.low %v2134_v50, %v2137_v18  ;;  %v2431_v26 = vsel %vm1532_vm13, %v7080_v7, %v2346_v32  ;;  %v2056_v17 = vld [vmem:[#allocation2 + $0x30] sm:$0xe]  ;;  %v2348_v50 = vpop.permute.xlu1 %2347 }
  0xec   : > { %v3151_v38 = vrot.slane %v3149_v34, 5  ;;  %v3157_v10 = vrot.slane %v3155_v9, 5  ;;  %4094 = vmatprep.subr.bf16.mxu0 %v7707_v0  ;;  %v3161_v60 = vrot.slane %v3159_v30, 4  ;;  %v1090_v51 = vshrl.u32 %v752_v53, 16  ;;  %v8540_v9 = vld [vmem:[#allocation2 + $0x3c] sm:$0xf] }
  0xed   : > { %v1088_v46 = vsel %vm7984_vm10, %v1083_v47, %v1087_v16  ;;  %v3167_v20 = vrot.slane %v3165_v33, 5  ;;  %7164 = vmatprep.mubr.msk.bf16.mxu0 %vm1532_vm13, %v7112_v61  ;;  %v1093_v21 = vshll.u32 %v752_v53, 16  ;;  %v1099_v7 = vshll.u32 %v753_v40, 16 }
  0xee   : > { %v7042_v8 = vcombine.low %v1078_v15, %v1088_v46  ;;  %v3152_v37 = vor.u32 %v3151_v38, %v3148_v23  ;;  %2679 = vmatmul.mubr.bf16.gmra.mxu0 %v2431_v26  ;;  %v3162_v39 = vor.u32 %v3161_v60, %v3157_v10  ;;  %v1092_v36 = vrot.slane %v1090_v51, 4  ;;  %v8542_v23 = vld [vmem:[#allocation2 + $0x40] sm:$0xf]  ;;  %v3107_v46 = vld [vmem:[#allocation2 + $0x38] sm:$0x1] }
  0xef   : > { %3793 = vrot.lane.b32.xlu1 %v7238_v3, %s7708_s14  ;;  %v1103_v4 = vshrl.u32 %v753_v40, 16  ;;  %v1109_v32 = vshll.u32 %v771_v28, 16  ;;  %v1095_v34 = vrot.slane %v1093_v21, 5  ;;  %v1101_v15 = vrot.slane %v1099_v7, 5  ;;  %4095 = vmatpush1.bf16.msra.mxu0 %v7509_v31  ;;  %v7510_v3 = vld [vmem:[%s11400_s1 + $0xc0] sm:$0xff]   ;;  %v8549_v30 = vpop.permute.xlu0 %2365 }
  0xf0   : > { %1476 = vrot.lane.b32.xlu0 %v7042_v8, %s7708_s14  ;;  %v3153_v16 = vrot.slane %v3152_v37, 4  ;;  %v7082_v53 = vcombine.low %v8540_v9, %v8542_v23  ;;  %v3163_v40 = vrot.slane %v3162_v39, 4  ;;  %v7065_v33 = vrot.slane %v2056_v17, 9  ;;  %4096 = vmatprep.subr.bf16.mxu0 %v7707_v0  ;;  %v3078_v31 = vld [vmem:[#allocation2 + $0x34] sm:$0xf] }
  0xf1   : > { %v1105_v47 = vrot.slane %v1103_v4, 4  ;;  %v1111_v18 = vrot.slane %v1109_v32, 5  ;;  %v1096_v61 = vor.u32 %v1095_v34, %v1092_v36  ;;  %v2140_v26 = vrot.slane %v8495_v56, 5  ;;  %v754_v39 = vld [vmem:[#allocation2 + $0xa8] sm:$0xf]  ;;  %v7511_v56 = vld [vmem:[%s11400_s1 + $0x118] sm:$0xff]  }
  0xf2   : > { %v3158_v28 = vsel %vm7984_vm10, %v3153_v16, %v3157_v10  ;;  %v2435_v38 = vsel %vm1532_vm13, %v7081_v25, %v2348_v50  ;;  %v3168_v60 = vsel %vm7984_vm10, %v3163_v40, %v3167_v20  ;;  %v3170_v8 = vshrl.u32 %v3077_v1, 16  ;;  %v755_v20 = vld [vmem:[#allocation2 + $0xac] sm:$0xf] }
  0xf3   : > { %v1106_v51 = vor.u32 %v1105_v47, %v1101_v15  ;;  %v3173_v37 = vshll.u32 %v3077_v1, 16  ;;  %v7239_v21 = vcombine.low %v3158_v28, %v3168_v60  ;;  %v1097_v7 = vrot.slane %v1096_v61, 4  ;;  %4097 = vmatpush1.bf16.msra.mxu0 %v7510_v3  ;;  %v772_v28 = vld [vmem:[#allocation2 + $0xb0] sm:$0x1]  ;;  %v7548_v60 = vld [vmem:[#allocation2] sm:$0xf] }
  0xf4   : > { %v2141_v10 = vsel %vm8410_vm14, %v7065_v33, %v2140_v26  ;;  %v2142_v17 = vrot.slane %v2140_v26, 4  ;;  %v3172_v25 = vrot.slane %v3170_v8, 4  ;;  %v3179_v4 = vshll.u32 %v3078_v31, 16  ;;  %4106 = vmatprep.subr.bf16.mxu0 %v7707_v0 }
  0xf5   : > { %v1107_v2 = vrot.slane %v1106_v51, 4  ;;  %v3175_v36 = vrot.slane %v3173_v37, 5  ;;  %3795 = vrot.lane.b32.xlu1 %v7239_v21, %s7708_s14  ;;  %v1102_v32 = vsel %vm7984_vm10, %v1097_v7, %v1101_v15  ;;  %v3183_v1 = vshrl.u32 %v3078_v31, 16  ;;  %v8576_v40 = vpop.permute.xlu0 %2369  ;;  %v2057_v37 = vld [vmem:[#allocation2 + $0x3c] sm:$0xe] }
  0xf6   : > { %v2144_v50 = vsel %vm8410_vm14, %v2142_v17, %v2143_v63  ;;  %v3189_v16 = vshll.u32 %v3107_v46, 16  ;;  %v3181_v33 = vrot.slane %v3179_v4, 5  ;;  %v2185_v61 = vrot.slane %v8335_v44, 5  ;;  %v7512_v63 = vld [vmem:[%s11400_s1 + $0x110] sm:$0xff]   ;;  %v2063_v44 = vld [vmem:[#allocation2 + $0x84] sm:$0xe] }
  0xf7   : > { %v1112_v34 = vsel %vm7984_vm10, %v1107_v2, %v1111_v18  ;;  %v7113_v3 = vcombine.low %v2141_v10, %v2144_v50  ;;  %v3176_v47 = vor.u32 %v3175_v36, %v3172_v25  ;;  %v3185_v15 = vrot.slane %v3183_v1, 4  ;;  %4107 = vmatpush2.bf16.msra.mxu0 %v7511_v56  ;;  %v1161_v56 = vld [vmem:[#allocation2] sm:$0xe] }
  0xf8   : > { %v7043_v26 = vcombine.low %v1102_v32, %v1112_v34  ;;  %v7014_v51 = vcombine.low %v7548_v60, %v7549_v55  ;;  %v1114_v31 = vshrl.u32 %v754_v39, 16  ;;  %v1117_v46 = vshll.u32 %v754_v39, 16  ;;  %4108 = vmatprep.subr.bf16.mxu0 %v7707_v0 }
  0xf9   : > { %7165 = vmatprep.mubr.msk.bf16.mxu0 %vm1532_vm13, %v7113_v3  ;;  %v3177_v18 = vrot.slane %v3176_v47, 4  ;;  %v1123_v8 = vshll.u32 %v755_v20, 16  ;;  %v3186_v21 = vor.u32 %v3185_v15, %v3181_v33  ;;  %v3191_v7 = vrot.slane %v3189_v16, 5  ;;  %v1453_v16 = vpop.permute.xlu0 %1452 }
  0xfa   : > { %1478 = vrot.lane.b32.xlu0 %v7043_v26, %s7708_s14  ;;  %2687 = vmatmul.mubr.bf16.gmra.mxu0 %v2435_v38  ;;  %v1127_v10 = vshrl.u32 %v755_v20, 16  ;;  %v1133_v17 = vshll.u32 %v772_v28, 16  ;;  %v1116_v25 = vrot.slane %v1114_v31, 4  ;;  %v1119_v36 = vrot.slane %v1117_v46, 5  ;;  %v7515_v38 = vld [vmem:[%s11400_s1 + $0x108] sm:$0xff]  }
  0xfb   : > { %v3182_v2 = vsel %vm7984_vm10, %v3177_v18, %v3181_v33  ;;  %v1125_v4 = vrot.slane %v1123_v8, 5  ;;  %v3187_v32 = vrot.slane %v3186_v21, 4  ;;  %v7066_v1 = vrot.slane %v2057_v37, 9  ;;  %4109 = vmatpush2.bf16.msra.mxu0 %v7512_v63  ;;  %v7550_v26 = vld [vmem:[#allocation2 + $0x8] sm:$0x1] }
  0xfc   : > { %v1129_v39 = vrot.slane %v1127_v10, 4  ;;  %v1135_v50 = vrot.slane %v1133_v17, 5  ;;  %v1120_v34 = vor.u32 %v1119_v36, %v1116_v25  ;;  %v2147_v20 = vrot.slane %v8542_v23, 5  ;;  %4110 = vmatprep.subr.bf16.mxu0 %v7707_v0  ;;  %v3079_v63 = vld [vmem:[#allocation2 + $0x3c] sm:$0xf] }
  0xfd   : > { %v6998_v3 = vrot.slane %v1161_v56, 9  ;;  %v1230_v47 = vrot.slane %v7549_v55, 5  ;;  %v3192_v33 = vsel %vm7984_vm10, %v3187_v32, %v3191_v7  ;;  %v1233_v15 = vrot.slane %v7550_v26, 5  ;;  %v3080_v8 = vld [vmem:[#allocation2 + $0x40] sm:$0xf] }
  0xfe   : > { %v1130_v28 = vor.u32 %v1129_v39, %v1125_v4  ;;  %v2439_v60 = vsel %vm1532_vm13, %v7082_v53, %v8454_v59  ;;  %v7240_v18 = vcombine.low %v3182_v2, %v3192_v33  ;;  %v1121_v31 = vrot.slane %v1120_v34, 4  ;;  %v7516_v59 = vld [vmem:[%s11400_s1 + $0x100] sm:$0xff]   ;;  %v756_v39 = vld [vmem:[#allocation2 + $0xb4] sm:$0xf] }
  0xff   : > { %v2148_v55 = vsel %vm8410_vm14, %v7066_v1, %v2147_v20  ;;  %v2149_v46 = vrot.slane %v2147_v20, 4  ;;  %v1231_v21 = vsel %vm8410_vm14, %v6998_v3, %v1230_v47  ;;  %v1232_v7 = vrot.slane %v1230_v47, 4  ;;  %4111 = vmatpush2.bf16.msra.mxu0 %v7515_v38  ;;  %v3108_v17 = vld [vmem:[#allocation2 + $0x44] sm:$0x1] }
 0x100   : > { %v1131_v37 = vrot.slane %v1130_v28, 4  ;;  %v1535_v10 = vsel %vm1532_vm13, %v7014_v51, %v1453_v16  ;;  %3797 = vrot.lane.b32.xlu1 %v7240_v18, %s7708_s14  ;;  %v1126_v9 = vsel %vm7984_vm10, %v1121_v31, %v1125_v4  ;;  %v11534_v23 = vrot.slane %v7992_v57, 5  ;;  %4112 = vmatprep.subr.bf16.mxu0 %v7707_v0  ;;  %v757_v4 = vld [vmem:[#allocation2 + $0xb8] sm:$0xf]  ;;  %v773_v16 = vld [vmem:[#allocation2 + $0xbc] sm:$0x1] }
 0x101   : > { %v3194_v56 = vshrl.u32 %v3079_v63, 16  ;;  %v3197_v2 = vshll.u32 %v3079_v63, 16  ;;  %v1234_v36 = vsel %vm8410_vm14, %v1232_v7, %v1233_v15  ;;  %v3203_v32 = vshll.u32 %v3080_v8, 16  ;;  %v2058_v31 = vld [vmem:[#allocation2 + $0x48] sm:$0xe] }
 0x102   : > { %v2151_v53 = vsel %vm8410_vm14, %v2149_v46, %v11534_v23  ;;  %v1136_v51 = vsel %vm7984_vm10, %v1131_v37, %v1135_v50  ;;  %v7046_v57 = vcombine.low %v1231_v21, %v1234_v36  ;;  %v1282_v20 = vrot.slane %v8351_v6, 5  ;;  %v7552_v46 = vld [vmem:[#allocation2 + $0x4c] sm:$0xf] }
 0x103   : > { %v7114_v25 = vcombine.low %v2148_v55, %v2151_v53  ;;  %v7044_v1 = vcombine.low %v1126_v9, %v1136_v51  ;;  %v3196_v38 = vrot.slane %v3194_v56, 4  ;;  %v3199_v34 = vrot.slane %v3197_v2, 5  ;;  %4113 = vmatpush2.bf16.msra.mxu0 %v7516_v59  ;;  %v7551_v55 = vld [vmem:[#allocation2 + $0x48] sm:$0xf]  ;;  %v1162_v9 = vld [vmem:[#allocation2 + $0xc] sm:$0xe] }
 0x104   : > { %v3205_v0 = vrot.slane %v3203_v32, 5  ;;  %v3207_v3 = vshrl.u32 %v3080_v8, 16  ;;  %v3213_v47 = vshll.u32 %v3108_v17, 16  ;;  %7190 = vmatprep.mubr.msk.bf16.mxu1 %vm1532_vm13, %v7046_v57  ;;  %v1138_v33 = vshrl.u32 %v756_v39, 16 }
 0x105   : > { %7166 = vmatprep.mubr.msk.bf16.mxu0 %vm1532_vm13, %v7114_v25  ;;  %1480 = vrot.lane.b32.xlu0 %v7044_v1, %s7708_s14  ;;  %v3200_v50 = vor.u32 %v3199_v34, %v3196_v38  ;;  %v1141_v28 = vshll.u32 %v756_v39, 16  ;;  %v1147_v26 = vshll.u32 %v757_v4, 16  ;;  %v1151_v63 = vshrl.u32 %v757_v4, 16  ;;  %v7553_v4 = vld [vmem:[#allocation2 + $0x10] sm:$0xf] }
 0x106   : > { %2695 = vmatmul.mubr.bf16.gmra.mxu0 %v2439_v60  ;;  %2944 = vmatmul.mubr.bf16.vlgmr.msra.gmra.mxu1 %v1535_v10  ;;  %v3209_v15 = vrot.slane %v3207_v3, 4  ;;  %v1157_v18 = vshll.u32 %v773_v16, 16  ;;  %v7083_v37 = vcombine.low %v7551_v55, %v7552_v46  ;;  %v1140_v21 = vrot.slane %v1138_v33, 4  ;;  %v3081_v3 = vld [vmem:[#allocation2 + $0x48] sm:$0xf] }
 0x107   : > { %v3201_v8 = vrot.slane %v3200_v50, 4  ;;  %v1143_v7 = vrot.slane %v1141_v28, 5  ;;  %v1149_v59 = vrot.slane %v1147_v26, 5  ;;  %v3215_v53 = vrot.slane %v3213_v47, 5  ;;  %v1455_v50 = vpop.permute.xlu0 %1454 }
 0x108   : > { %v3210_v23 = vor.u32 %v3209_v15, %v3205_v0  ;;  %v1153_v17 = vrot.slane %v1151_v63, 4  ;;  %v1159_v56 = vrot.slane %v1157_v18, 5  ;;  %v2352_v2 = vpop.permute.xlu1 %2351  ;;  %v7067_v51 = vrot.slane %v2058_v31, 9  ;;  %v7554_v31 = vld [vmem:[#allocation2 + $0xc] sm:$0xf] }
 0x109   : > { %v3206_v60 = vsel %vm7984_vm10, %v3201_v8, %v3205_v0  ;;  %v1144_v10 = vor.u32 %v1143_v7, %v1140_v21  ;;  %v2154_v25 = vrot.slane %v7552_v46, 5  ;;  %v6999_v39 = vrot.slane %v1162_v9, 9  ;;  %v3082_v46 = vld [vmem:[#allocation2 + $0x4c] sm:$0xf] }
 0x10a   : > { %v3211_v36 = vrot.slane %v3210_v23, 4  ;;  %v1154_v32 = vor.u32 %v1153_v17, %v1149_v59  ;;  %v1237_v1 = vrot.slane %v7553_v4, 5  ;;  %v2443_v16 = vsel %vm1532_vm13, %v7083_v37, %v2352_v2  ;;  %v3109_v37 = vld [vmem:[#allocation2 + $0x50] sm:$0x1] }
 0x10b   : > { %v1145_v57 = vrot.slane %v1144_v10, 4  ;;  %v2155_v38 = vsel %vm8410_vm14, %v7067_v51, %v2154_v25  ;;  %v2156_v34 = vrot.slane %v2154_v25, 4  ;;  %v11535_v63 = vrot.slane %v8265_v58, 5 }
 0x10c   : > { %v3216_v47 = vsel %vm7984_vm10, %v3211_v36, %v3215_v53  ;;  %v1155_v0 = vrot.slane %v1154_v32, 4  ;;  %v1238_v33 = vsel %vm8410_vm14, %v6999_v39, %v1237_v1  ;;  %v1239_v28 = vrot.slane %v1237_v1, 4 }
 0x10d   : > { %v7241_v26 = vcombine.low %v3206_v60, %v3216_v47  ;;  %v1150_v15 = vsel %vm7984_vm10, %v1145_v57, %v1149_v59  ;;  %v2158_v18 = vsel %vm8410_vm14, %v2156_v34, %v11535_v63  ;;  %v7015_v55 = vcombine.low %v7554_v31, %v7553_v4  ;;  %v2059_v59 = vld [vmem:[#allocation2 + $0x54] sm:$0xe]  ;;  %v1163_v60 = vld [vmem:[#allocation2 + $0x18] sm:$0xe] }
 0x10e   : > { %v1160_v8 = vsel %vm7984_vm10, %v1155_v0, %v1159_v56  ;;  %v7115_v21 = vcombine.low %v2155_v38, %v2158_v18  ;;  %v11536_v7 = vrot.slane %v8226_v35, 5  ;;  %v3218_v23 = vshrl.u32 %v3081_v3, 16  ;;  %v8647_v35 = vld [vmem:[#allocation2 + $0x68] sm:$0x1]  ;;  %v7556_v4 = vld [vmem:[#allocation2 + $0x58] sm:$0xf] }
 0x10f   : > { %3799 = vrot.lane.b32.xlu1 %v7241_v26, %s7708_s14  ;;  %v7045_v58 = vcombine.low %v1150_v15, %v1160_v8  ;;  %v1539_v17 = vsel %vm1532_vm13, %v7015_v55, %v1455_v50  ;;  %v3221_v2 = vshll.u32 %v3081_v3, 16  ;;  %v3227_v56 = vshll.u32 %v3082_v46, 16  ;;  %v3083_v57 = vld [vmem:[#allocation2 + $0x54] sm:$0xf]  ;;  %v1457_v50 = vpop.permute.xlu0 %1456  ;;  %v7557_v26 = vld [vmem:[#allocation2 + $0x1c] sm:$0xf] }
 0x110   : > { %v1241_v9 = vsel %vm8410_vm14, %v1239_v28, %v11536_v7  ;;  %7167 = vmatprep.mubr.msk.bf16.mxu0 %vm1532_vm13, %v7115_v21  ;;  %v3220_v10 = vrot.slane %v3218_v23, 4  ;;  %v3231_v51 = vshrl.u32 %v3082_v46, 16  ;;  %v3237_v25 = vshll.u32 %v3109_v37, 16  ;;  %v7558_v18 = vld [vmem:[#allocation2 + $0x54] sm:$0xf] }
 0x111   : > { %v7047_v53 = vcombine.low %v1238_v33, %v1241_v9  ;;  %v1289_v36 = vrot.slane %v8647_v35, 5  ;;  %1482 = vrot.lane.b32.xlu0 %v7045_v58, %s7708_s14  ;;  %v3223_v32 = vrot.slane %v3221_v2, 5  ;;  %v7068_v39 = vrot.slane %v2059_v59, 9  ;;  %2703 = vmatmul.mubr.bf16.gmra.mxu0 %v2443_v16  ;;  %v7559_v55 = vld [vmem:[#allocation2 + $0x18] sm:$0xf] }
 0x112   : > { %v2161_v1 = vrot.slane %v7556_v4, 5  ;;  %v3229_v38 = vrot.slane %v3227_v56, 5  ;;  %v3233_v34 = vrot.slane %v3231_v51, 4  ;;  %v3239_v3 = vrot.slane %v3237_v25, 5  ;;  %v3084_v23 = vld [vmem:[#allocation2 + $0x58] sm:$0xf] }
 0x113   : > { %7191 = vmatprep.mubr.msk.bf16.mxu1 %vm1532_vm13, %v7047_v53  ;;  %v7000_v47 = vrot.slane %v1163_v60, 9  ;;  %v3224_v0 = vor.u32 %v3223_v32, %v3220_v10  ;;  %v1244_v15 = vrot.slane %v7557_v26, 5  ;;  %v7084_v31 = vcombine.low %v7558_v18, %v7556_v4  ;;  %v3110_v2 = vld [vmem:[#allocation2 + $0x5c] sm:$0x1]  ;;  %v2060_v25 = vld [vmem:[#allocation2 + $0x60] sm:$0xe] }
 0x114   : > { %2952 = vmatmul.mubr.bf16.gmra.mxu1 %v1539_v17  ;;  %v2162_v33 = vsel %vm8410_vm14, %v7068_v39, %v2161_v1  ;;  %v2163_v28 = vrot.slane %v2161_v1, 4  ;;  %v3234_v63 = vor.u32 %v3233_v34, %v3229_v38  ;;  %v7016_v46 = vcombine.low %v7559_v55, %v7557_v26  ;;  %v1164_v1 = vld [vmem:[#allocation2 + $0x24] sm:$0xe]  ;;  %v8672_v34 = vld [vmem:[#allocation2 + $0x98] sm:$0x1] }
 0x115   : > { %v3242_v37 = vshrl.u32 %v3083_v57, 16  ;;  %v3225_v16 = vrot.slane %v3224_v0, 4  ;;  %v11537_v8 = vrot.slane %v8049_v5, 5  ;;  %v1245_v7 = vsel %vm8410_vm14, %v7000_v47, %v1244_v15 }
 0x116   : > { %v1246_v9 = vrot.slane %v1244_v15, 4  ;;  %v3235_v59 = vrot.slane %v3234_v63, 4  ;;  %v2447_v53 = vsel %vm1532_vm13, %v7084_v31, %v8480_v45  ;;  %v1543_v17 = vsel %vm1532_vm13, %v7016_v46, %v1457_v50  ;;  %v2356_v63 = vpop.permute.xlu1 %2355  ;;  %v7562_v31 = vld [vmem:[#allocation2 + $0x28] sm:$0xf]  ;;  %v3085_v46 = vld [vmem:[#allocation2 + $0x60] sm:$0xf] }
 0x117   : > { %v2165_v21 = vsel %vm8410_vm14, %v2163_v28, %v11537_v8  ;;  %v3230_v60 = vsel %vm7984_vm10, %v3225_v16, %v3229_v38  ;;  %v11538_v5 = vrot.slane %v8235_v54, 5  ;;  %v3244_v56 = vrot.slane %v3242_v37, 4  ;;  %v1459_v16 = vpop.permute.xlu0 %1458 }
 0x118   : > { %v7116_v58 = vcombine.low %v2162_v33, %v2165_v21  ;;  %v3245_v51 = vshll.u32 %v3083_v57, 16  ;;  %v3240_v32 = vsel %vm7984_vm10, %v3235_v59, %v3239_v3  ;;  %v3251_v39 = vshll.u32 %v3084_v23, 16  ;;  %v7561_v3 = vld [vmem:[#allocation2 + $0x64] sm:$0xf] }
 0x119   : > { %v1248_v10 = vsel %vm8410_vm14, %v1246_v9, %v11538_v5  ;;  %v3255_v4 = vshrl.u32 %v3084_v23, 16  ;;  %v2199_v38 = vrot.slane %v8672_v34, 5  ;;  %v7242_v54 = vcombine.low %v3230_v60, %v3240_v32 }
 0x11a   : > { %7168 = vmatprep.mubr.msk.bf16.mxu0 %vm1532_vm13, %v7116_v58  ;;  %v7048_v45 = vcombine.low %v1245_v7, %v1248_v10  ;;  %v3247_v47 = vrot.slane %v3245_v51, 5  ;;  %v3261_v0 = vshll.u32 %v3110_v2, 16  ;;  %v3253_v57 = vrot.slane %v3251_v39, 5  ;;  %v7563_v7 = vld [vmem:[#allocation2 + $0x60] sm:$0xf] }
 0x11b   : > { %2711 = vmatmul.mubr.bf16.gmra.mxu0 %v2447_v53  ;;  %v3257_v50 = vrot.slane %v3255_v4, 4  ;;  %v7069_v33 = vrot.slane %v2060_v25, 9  ;;  %v2168_v28 = vrot.slane %v7561_v3, 5  ;;  %3801 = vrot.lane.b32.xlu1 %v7242_v54, %s7708_s14  ;;  %v7001_v18 = vrot.slane %v1164_v1, 9  ;;  %v7564_v53 = vld [vmem:[#allocation2 + $0x24] sm:$0xf] }
 0x11c   : > { %7192 = vmatprep.mubr.msk.bf16.mxu1 %vm1532_vm13, %v7048_v45  ;;  %v3248_v26 = vor.u32 %v3247_v47, %v3244_v56  ;;  %v3263_v15 = vrot.slane %v3261_v0, 5  ;;  %v1251_v55 = vrot.slane %v7562_v31, 5  ;;  %v7085_v9 = vcombine.low %v7563_v7, %v7561_v3  ;;  %v3086_v10 = vld [vmem:[#allocation2 + $0x64] sm:$0xf]  ;;  %v3111_v56 = vld [vmem:[#allocation2 + $0x68] sm:$0x1] }
 0x11d   : > { %2960 = vmatmul.mubr.bf16.gmra.mxu1 %v1543_v17  ;;  %v3258_v37 = vor.u32 %v3257_v50, %v3253_v57  ;;  %v2169_v8 = vsel %vm8410_vm14, %v7069_v33, %v2168_v28  ;;  %v2170_v21 = vrot.slane %v2168_v28, 4  ;;  %v7017_v17 = vcombine.low %v7564_v53, %v7562_v31  ;;  %v1165_v0 = vld [vmem:[#allocation2 + $0x30] sm:$0xe]  ;;  %v3087_v31 = vld [vmem:[#allocation2 + $0x6c] sm:$0xf] }
 0x11e   : > { %v3249_v23 = vrot.slane %v3248_v26, 4  ;;  %v1252_v59 = vsel %vm8410_vm14, %v7001_v18, %v1251_v55  ;;  %v1253_v58 = vrot.slane %v1251_v55, 4  ;;  %v2451_v5 = vsel %vm1532_vm13, %v7085_v9, %v2356_v63  ;;  %v7568_v53 = vld [vmem:[#allocation2 + $0x6c] sm:$0xf] }
 0x11f   : > { %v3259_v2 = vrot.slane %v3258_v37, 4  ;;  %v2172_v60 = vsel %vm8410_vm14, %v2170_v21, %v2171_v12  ;;  %v3266_v51 = vshrl.u32 %v3085_v46, 16  ;;  %v11539_v45 = vrot.slane %v8276_v29, 5  ;;  %v8696_v29 = vld [vmem:[#allocation2 + $0x74] sm:$0x1]  ;;  %v1461_v21 = vpop.permute.xlu0 %1460 }
 0x120   : > { %v3254_v25 = vsel %vm7984_vm10, %v3249_v23, %v3253_v57  ;;  %v7117_v32 = vcombine.low %v2169_v8, %v2172_v60  ;;  %v1547_v4 = vsel %vm1532_vm13, %v7017_v17, %v1459_v16  ;;  %v3269_v47 = vshll.u32 %v3085_v46, 16  ;;  %v7567_v23 = vld [vmem:[#allocation2 + $0x34] sm:$0xf] }
 0x121   : > { %v1255_v39 = vsel %vm8410_vm14, %v1253_v58, %v11539_v45  ;;  %v3264_v12 = vsel %vm7984_vm10, %v3259_v2, %v3263_v15  ;;  %v3268_v54 = vrot.slane %v3266_v51, 4  ;;  %v3275_v57 = vshll.u32 %v3086_v10, 16  ;;  %v7566_v15 = vld [vmem:[#allocation2 + $0x70] sm:$0xf] }
 0x122   : > { %v7049_v1 = vcombine.low %v1252_v59, %v1255_v39  ;;  %v7243_v50 = vcombine.low %v3254_v25, %v3264_v12  ;;  %7169 = vmatprep.mubr.msk.bf16.mxu0 %vm1532_vm13, %v7117_v32  ;;  %v3279_v33 = vshrl.u32 %v3086_v10, 16  ;;  %v3285_v3 = vshll.u32 %v3111_v56, 16  ;;  %v7569_v2 = vld [vmem:[#allocation2 + $0x30] sm:$0xf] }
 0x123   : > { %v1296_v28 = vrot.slane %v8696_v29, 5  ;;  %2719 = vmatmul.mubr.bf16.gmra.mxu0 %v2451_v5  ;;  %v3271_v26 = vrot.slane %v3269_v47, 5  ;;  %v7070_v63 = vrot.slane %v2061_v24, 9  ;;  %v2175_v18 = vrot.slane %v7566_v15, 5  ;;  %v3088_v45 = vld [vmem:[#allocation2 + $0x70] sm:$0xf] }
 0x124   : > { %7193 = vmatprep.mubr.msk.bf16.mxu1 %vm1532_vm13, %v7049_v1  ;;  %3803 = vrot.lane.b32.xlu1 %v7243_v50, %s7708_s14  ;;  %v3277_v55 = vrot.slane %v3275_v57, 5  ;;  %v3281_v46 = vrot.slane %v3279_v33, 4  ;;  %v3287_v37 = vrot.slane %v3285_v3, 5  ;;  %v7002_v16 = vrot.slane %v1165_v0, 9  ;;  %v3112_v1 = vld [vmem:[#allocation2 + $0x74] sm:$0x1] }
 0x125   : > { %2968 = vmatmul.mubr.bf16.gmra.mxu1 %v1547_v4  ;;  %v3272_v8 = vor.u32 %v3271_v26, %v3268_v54  ;;  %v2176_v7 = vsel %vm8410_vm14, %v7070_v63, %v2175_v18  ;;  %v2177_v9 = vrot.slane %v2175_v18, 4  ;;  %v1258_v59 = vrot.slane %v7567_v23, 5  ;;  %v2062_v57 = vld [vmem:[#allocation2 + $0x78] sm:$0xe]  ;;  %v1166_v63 = vld [vmem:[#allocation2 + $0x3c] sm:$0xe] }
 0x126   : > { %v3282_v58 = vor.u32 %v3281_v46, %v3277_v55  ;;  %v7086_v17 = vcombine.low %v7568_v53, %v7566_v15  ;;  %v7018_v60 = vcombine.low %v7569_v2, %v7567_v23  ;;  %v3290_v5 = vshrl.u32 %v3087_v31, 16  ;;  %v8721_v15 = vld [vmem:[#allocation2 + $0x80] sm:$0x1] }
 0x127   : > { %v3273_v10 = vrot.slane %v3272_v8, 4  ;;  %v11540_v56 = vrot.slane %v8100_v19, 5  ;;  %v1259_v25 = vsel %vm8410_vm14, %v7002_v16, %v1258_v59  ;;  %v1260_v32 = vrot.slane %v1258_v59, 4 }
 0x128   : > { %v3283_v39 = vrot.slane %v3282_v58, 4  ;;  %v2455_v24 = vsel %vm1532_vm13, %v7086_v17, %v8505_v42  ;;  %v1551_v12 = vsel %vm1532_vm13, %v7018_v60, %v1461_v21  ;;  %v11541_v19 = vrot.slane %v8290_v52, 5  ;;  %v2360_v23 = vpop.permute.xlu1 %2359  ;;  %v7572_v58 = vld [vmem:[#allocation2 + $0x40] sm:$0xf]  ;;  %v3089_v17 = vld [vmem:[#allocation2 + $0x78] sm:$0xf]  ;;  %v1463_v60 = vpop.permute.xlu0 %1462 }
 0x129   : > { %v2179_v51 = vsel %vm8410_vm14, %v2177_v9, %v11540_v56  ;;  %v3278_v54 = vsel %vm7984_vm10, %v3273_v10, %v3277_v55  ;;  %v3292_v0 = vrot.slane %v3290_v5, 4  ;;  %v3293_v50 = vshll.u32 %v3087_v31, 16  ;;  %v7573_v56 = vld [vmem:[#allocation2 + $0x78] sm:$0xf] }
 0x12a   : > { %v7118_v4 = vcombine.low %v2176_v7, %v2179_v51  ;;  %v1262_v47 = vsel %vm8410_vm14, %v1260_v32, %v11541_v19  ;;  %v3288_v33 = vsel %vm7984_vm10, %v3283_v39, %v3287_v37  ;;  %v3299_v3 = vshll.u32 %v3088_v45, 16  ;;  %v7571_v37 = vld [vmem:[#allocation2 + $0x7c] sm:$0xf]  ;;  %v3113_v19 = vld [vmem:[#allocation2 + $0x80] sm:$0x1] }
 0x12b   : > { %v7050_v42 = vcombine.low %v1259_v25, %v1262_v47  ;;  %v3303_v26 = vshrl.u32 %v3088_v45, 16  ;;  %v1303_v18 = vrot.slane %v8721_v15, 5  ;;  %v7244_v52 = vcombine.low %v3278_v54, %v3288_v33  ;;  %v7574_v39 = vld [vmem:[#allocation2 + $0x3c] sm:$0xf] }
 0x12c   : > { %7170 = vmatprep.mubr.msk.bf16.mxu0 %vm1532_vm13, %v7118_v4  ;;  %v3295_v55 = vrot.slane %v3293_v50, 5  ;;  %v3309_v46 = vshll.u32 %v3112_v1, 16  ;;  %v3301_v31 = vrot.slane %v3299_v3, 5  ;;  %v7071_v8 = vrot.slane %v2062_v57, 9  ;;  %v3090_v54 = vld [vmem:[#allocation2 + $0x7c] sm:$0xf] }
 0x12d   : > { %2727 = vmatmul.mubr.bf16.gmra.mxu0 %v2455_v24  ;;  %7194 = vmatprep.mubr.msk.bf16.mxu1 %vm1532_vm13, %v7050_v42  ;;  %v3305_v16 = vrot.slane %v3303_v26, 4  ;;  %v2182_v21 = vrot.slane %v7571_v37, 5  ;;  %v7003_v59 = vrot.slane %v1166_v63, 9  ;;  %v1265_v53 = vrot.slane %v7572_v58, 5  ;;  %v1167_v63 = vld [vmem:[#allocation2 + $0x48] sm:$0xe] }
 0x12e   : > { %3805 = vrot.lane.b32.xlu1 %v7244_v52, %s7708_s14  ;;  %2976 = vmatmul.mubr.bf16.gmra.mxu1 %v1551_v12  ;;  %v3296_v7 = vor.u32 %v3295_v55, %v3292_v0  ;;  %v3311_v9 = vrot.slane %v3309_v46, 5  ;;  %v7087_v51 = vcombine.low %v7573_v56, %v7571_v37  ;;  %v7019_v4 = vcombine.low %v7574_v39, %v7572_v58  ;;  %v7576_v37 = vld [vmem:[#allocation2 + $0x88] sm:$0xf] }
 0x12f   : > { %v3306_v2 = vor.u32 %v3305_v16, %v3301_v31  ;;  %v2183_v5 = vsel %vm8410_vm14, %v7071_v8, %v2182_v21  ;;  %v2184_v10 = vrot.slane %v2182_v21, 4  ;;  %v1266_v32 = vsel %vm8410_vm14, %v7003_v59, %v1265_v53 }
 0x130   : > { %v3297_v25 = vrot.slane %v3296_v7, 4  ;;  %v1267_v45 = vrot.slane %v1265_v53, 4  ;;  %v2459_v1 = vsel %vm1532_vm13, %v7087_v51, %v2360_v23  ;;  %v3314_v47 = vshrl.u32 %v3089_v17, 16  ;;  %v3091_v7 = vld [vmem:[#allocation2 + $0x84] sm:$0xf] }
 0x131   : > { %v3307_v24 = vrot.slane %v3306_v2, 4  ;;  %v2186_v12 = vsel %vm8410_vm14, %v2184_v10, %v2185_v61  ;;  %v1555_v33 = vsel %vm1532_vm13, %v7019_v4, %v1463_v60  ;;  %v3317_v26 = vshll.u32 %v3089_v17, 16  ;;  %v1465_v17 = vpop.permute.xlu0 %1464  ;;  %v7578_v51 = vld [vmem:[#allocation2 + $0x84] sm:$0xf] }
 0x132   : > { %v3302_v0 = vsel %vm7984_vm10, %v3297_v25, %v3301_v31  ;;  %v7119_v50 = vcombine.low %v2183_v5, %v2186_v12  ;;  %v1269_v57 = vsel %vm8410_vm14, %v1267_v45, %v1268_v13  ;;  %v3316_v3 = vrot.slane %v3314_v47, 4  ;;  %v7577_v5 = vld [vmem:[#allocation2 + $0x4c] sm:$0xf] }
 0x133   : > { %v3312_v61 = vsel %vm7984_vm10, %v3307_v24, %v3311_v9  ;;  %v7051_v42 = vcombine.low %v1266_v32, %v1269_v57  ;;  %v3323_v55 = vshll.u32 %v3090_v54, 16  ;;  %v3327_v46 = vshrl.u32 %v3090_v54, 16  ;;  %v7579_v32 = vld [vmem:[#allocation2 + $0x48] sm:$0xf] }
 0x134   : > { %v7245_v52 = vcombine.low %v3302_v0, %v3312_v61  ;;  %7171 = vmatprep.mubr.msk.bf16.mxu0 %vm1532_vm13, %v7119_v50  ;;  %v3333_v31 = vshll.u32 %v3113_v19, 16  ;;  %v2213_v13 = vrot.slane %v8745_v22, 5  ;;  %v3319_v16 = vrot.slane %v3317_v26, 5  ;;  %v8758_v19 = vld [vmem:[#allocation2 + $0x88] sm:$0xf] }
 0x135   : > { %7195 = vmatprep.mubr.msk.bf16.mxu1 %vm1532_vm13, %v7051_v42  ;;  %2735 = vmatmul.mubr.bf16.gmra.mxu0 %v2459_v1  ;;  %v7072_v8 = vrot.slane %v2063_v44, 9  ;;  %v2189_v21 = vrot.slane %v7576_v37, 5  ;;  %v3325_v9 = vrot.slane %v3323_v55, 5  ;;  %v3329_v23 = vrot.slane %v3327_v46, 4  ;;  %v1168_v55 = vld [vmem:[#allocation2 + $0x54] sm:$0xe] }
 0x136   : > { %3807 = vrot.lane.b32.xlu1 %v7245_v52, %s7708_s14  ;;  %2984 = vmatmul.mubr.bf16.gmra.mxu1 %v1555_v33  ;;  %v3335_v59 = vrot.slane %v3333_v31, 5  ;;  %v7004_v58 = vrot.slane %v1167_v63, 9  ;;  %v3320_v53 = vor.u32 %v3319_v16, %v3316_v3  ;;  %v1272_v10 = vrot.slane %v7577_v5, 5  ;;  %v8763_v33 = vld [vmem:[#allocation2 + $0x8c] sm:$0x1] }
 0x137   : > { %v2190_v2 = vsel %vm8410_vm14, %v7072_v8, %v2189_v21  ;;  %v2191_v60 = vrot.slane %v2189_v21, 4  ;;  %v3330_v56 = vor.u32 %v3329_v23, %v3325_v9  ;;  %v7088_v25 = vcombine.low %v7578_v51, %v7576_v37  ;;  %v2064_v3 = vld [vmem:[#allocation2 + $0x90] sm:$0xe]  ;;  %v8776_v46 = vld [vmem:[#allocation2 + $0x8c] sm:$0x1] }
 0x138   : > { %v7020_v45 = vcombine.low %v7579_v32, %v7577_v5  ;;  %v3338_v39 = vshrl.u32 %v3091_v7, 16  ;;  %v3321_v4 = vrot.slane %v3320_v53, 4  ;;  %v11542_v24 = vrot.slane %v8113_v41, 5 }
 0x139   : > { %v1273_v1 = vsel %vm8410_vm14, %v7004_v58, %v1272_v10  ;;  %v1274_v54 = vrot.slane %v1272_v10, 4  ;;  %v3331_v47 = vrot.slane %v3330_v56, 4  ;;  %v2463_v50 = vsel %vm1532_vm13, %v7088_v25, %v8525_v11  ;;  %v2364_v58 = vpop.permute.xlu1 %2363  ;;  %v1467_v10 = vpop.permute.xlu0 %1466  ;;  %v7583_v25 = vld [vmem:[#allocation2 + $0x90] sm:$0xf] }
 0x13a   : > { %v2193_v12 = vsel %vm8410_vm14, %v2191_v60, %v11542_v24  ;;  %v1559_v57 = vsel %vm1532_vm13, %v7020_v45, %v1465_v17  ;;  %v3326_v41 = vsel %vm7984_vm10, %v3321_v4, %v3325_v9  ;;  %v3340_v61 = vrot.slane %v3338_v39, 4  ;;  %v7582_v17 = vld [vmem:[#allocation2 + $0x58] sm:$0xf]  ;;  %v8782_v60 = vld [vmem:[#allocation2 + $0x90] sm:$0xf] }
 0x13b   : > { %v7120_v0 = vcombine.low %v2190_v2, %v2193_v12  ;;  %v1276_v44 = vsel %vm8410_vm14, %v1274_v54, %v1275_v14  ;;  %v3341_v42 = vshll.u32 %v3091_v7, 16  ;;  %v3336_v26 = vsel %vm7984_vm10, %v3331_v47, %v3335_v59  ;;  %v7581_v7 = vld [vmem:[#allocation2 + $0x94] sm:$0xf] }
 0x13c   : > { %v7052_v11 = vcombine.low %v1273_v1, %v1276_v44  ;;  %v3347_v63 = vshll.u32 %v8758_v19, 16  ;;  %v3351_v52 = vshrl.u32 %v8758_v19, 16  ;;  %v1310_v48 = vrot.slane %v8776_v46, 5  ;;  %v7584_v24 = vld [vmem:[#allocation2 + $0x54] sm:$0xf] }
 0x13d   : > { %7172 = vmatprep.mubr.msk.bf16.mxu0 %vm1532_vm13, %v7120_v0  ;;  %v7246_v31 = vcombine.low %v3326_v41, %v3336_v26  ;;  %v3343_v14 = vrot.slane %v3341_v42, 5  ;;  %v3357_v16 = vshll.u32 %v8763_v33, 16  ;;  %v7073_v21 = vrot.slane %v2064_v3, 9  ;;  %v8793_v0 = vld [vmem:[#allocation2 + $0x94] sm:$0xf] }
 0x13e   : > { %2743 = vmatmul.mubr.bf16.gmra.mxu0 %v2463_v50  ;;  %7196 = vmatprep.mubr.msk.bf16.mxu1 %vm1532_vm13, %v7052_v11  ;;  %v3349_v8 = vrot.slane %v3347_v63, 5  ;;  %v3353_v37 = vrot.slane %v3351_v52, 4  ;;  %v2196_v9 = vrot.slane %v7581_v7, 5  ;;  %v7005_v53 = vrot.slane %v1168_v55, 9  ;;  %v8795_v50 = vld [vmem:[#allocation2 + $0x98] sm:$0x1] }
 0x13f   : > { %3809 = vrot.lane.b32.xlu1 %v7246_v31, %s7708_s14  ;;  %2992 = vmatmul.mubr.bf16.gmra.mxu1 %v1559_v57  ;;  %v3344_v23 = vor.u32 %v3343_v14, %v3340_v61  ;;  %v3359_v59 = vrot.slane %v3357_v16, 5  ;;  %v1279_v2 = vrot.slane %v7582_v17, 5  ;;  %v7089_v32 = vcombine.low %v7583_v25, %v7581_v7  ;;  %v1169_v63 = vld [vmem:[#allocation2 + $0x60] sm:$0xe]  ;;  %v8812_v31 = vld [vmem:[#allocation2 + $0x20] sm:$0x1] }
 0x140   : > { %v3354_v5 = vor.u32 %v3353_v37, %v3349_v8  ;;  %v2197_v56 = vsel %vm8410_vm14, %v7073_v21, %v2196_v9  ;;  %v2198_v51 = vrot.slane %v2196_v9, 4  ;;  %v7021_v12 = vcombine.low %v7584_v24, %v7582_v17  ;;  %v7586_v37 = vld [vmem:[#allocation2 + $0xa0] sm:$0xf]  ;;  %v8816_v7 = vld [vmem:[#allocation2 + $0x9c] sm:$0xf]  ;;  %v1469_v17 = vpop.permute.xlu0 %1468 }
 0x141   : > { %v3345_v45 = vrot.slane %v3344_v23, 4  ;;  %v1280_v39 = vsel %vm8410_vm14, %v7005_v53, %v1279_v2  ;;  %v1281_v4 = vrot.slane %v1279_v2, 4  ;;  %v2467_v47 = vsel %vm1532_vm13, %v7089_v32, %v2364_v58  ;;  %v7588_v25 = vld [vmem:[#allocation2 + $0x9c] sm:$0xf] }
 0x142   : > { %v3355_v1 = vrot.slane %v3354_v5, 4  ;;  %v2200_v54 = vsel %vm8410_vm14, %v2198_v51, %v2199_v38  ;;  %v3362_v57 = vshrl.u32 %v8782_v60, 16  ;;  %v1563_v61 = vsel %vm1532_vm13, %v7021_v12, %v1467_v10  ;;  %v2065_v38 = vld [vmem:[#allocation2 + $0x9c] sm:$0xe]  ;;  %v7587_v10 = vld [vmem:[#allocation2 + $0x64] sm:$0xf] }
 0x143   : > { %v3350_v41 = vsel %vm7984_vm10, %v3345_v45, %v3349_v8  ;;  %v7121_v44 = vcombine.low %v2197_v56, %v2200_v54  ;;  %v1283_v34 = vsel %vm8410_vm14, %v1281_v4, %v1282_v20  ;;  %v3365_v11 = vshll.u32 %v8782_v60, 16  ;;  %v7589_v45 = vld [vmem:[#allocation2 + $0x60] sm:$0xf] }
 0x144   : > { %v3360_v42 = vsel %vm7984_vm10, %v3355_v1, %v3359_v59  ;;  %v7053_v3 = vcombine.low %v1280_v39, %v1283_v34  ;;  %v3364_v26 = vrot.slane %v3362_v57, 4  ;;  %v3371_v55 = vshll.u32 %v8793_v0, 16  ;;  %v8828_v57 = vld [vmem:[#allocation2 + $0xa0] sm:$0xf] }
 0x145   : > { %v7247_v52 = vcombine.low %v3350_v41, %v3360_v42  ;;  %7173 = vmatprep.mubr.msk.bf16.mxu0 %vm1532_vm13, %v7121_v44  ;;  %v3375_v6 = vshrl.u32 %v8793_v0, 16  ;;  %v3381_v20 = vshll.u32 %v8795_v50, 16  ;;  %v3574_v14 = vrot.slane %v8812_v31, 5 }
 0x146   : > { %7197 = vmatprep.mubr.msk.bf16.mxu1 %vm1532_vm13, %v7053_v3  ;;  %2751 = vmatmul.mubr.bf16.gmra.mxu0 %v2467_v47  ;;  %v3367_v16 = vrot.slane %v3365_v11, 5  ;;  %v7074_v8 = vrot.slane %v2065_v38, 9  ;;  %v2203_v21 = vrot.slane %v7586_v37, 5  ;;  %v3373_v9 = vrot.slane %v3371_v55, 5  ;;  %v8833_v38 = vld [vmem:[#allocation2 + $0xa4] sm:$0x1] }
 0x147   : > { %3811 = vrot.lane.b32.xlu1 %v7247_v52, %s7708_s14  ;;  %3000 = vmatmul.mubr.bf16.gmra.mxu1 %v1563_v61  ;;  %v3377_v23 = vrot.slane %v3375_v6, 4  ;;  %v3383_v59 = vrot.slane %v3381_v20, 5  ;;  %v7006_v58 = vrot.slane %v1169_v63, 9  ;;  %v1286_v56 = vrot.slane %v7587_v10, 5  ;;  %v2066_v11 = vld [vmem:[#allocation2 + $0xa8] sm:$0xe] }
 0x148   : > { %v3368_v53 = vor.u32 %v3367_v16, %v3364_v26  ;;  %v2204_v2 = vsel %vm8410_vm14, %v7074_v8, %v2203_v21  ;;  %v2205_v5 = vrot.slane %v2203_v21, 4  ;;  %v7090_v32 = vcombine.low %v7588_v25, %v7586_v37  ;;  %v1170_v6 = vld [vmem:[#allocation2 + $0x6c] sm:$0xe]  ;;  %v8847_v20 = vld [vmem:[#allocation2 + $0xc8] sm:$0x1]  ;;  %v1471_v25 = vpop.permute.xlu0 %1470 }
 0x149   : > { %v3378_v51 = vor.u32 %v3377_v23, %v3373_v9  ;;  %v7022_v39 = vcombine.low %v7589_v45, %v7587_v10  ;;  %v3386_v4 = vshrl.u32 %v8816_v7, 16  ;;  %v11543_v12 = vrot.slane %v8190_v27, 5  ;;  %v7591_v23 = vld [vmem:[#allocation2 + $0xac] sm:$0xf] }
 0x14a   : > { %v3369_v24 = vrot.slane %v3368_v53, 4  ;;  %v1287_v54 = vsel %vm8410_vm14, %v7006_v58, %v1286_v56  ;;  %v1288_v47 = vrot.slane %v1286_v56, 4  ;;  %v2471_v34 = vsel %vm1532_vm13, %v7090_v32, %v8549_v30  ;;  %v8853_v56 = vld [vmem:[#allocation2 + $0xa8] sm:$0xf] }
 0x14b   : > { %v2207_v1 = vsel %vm8410_vm14, %v2205_v5, %v11543_v12  ;;  %v3379_v41 = vrot.slane %v3378_v51, 4  ;;  %v1567_v61 = vsel %vm1532_vm13, %v7022_v39, %v1469_v17  ;;  %v3388_v3 = vrot.slane %v3386_v4, 4  ;;  %v2368_v17 = vpop.permute.xlu1 %2367  ;;  %v7592_v5 = vld [vmem:[#allocation2 + $0x70] sm:$0xf]  ;;  %v7593_v39 = vld [vmem:[#allocation2 + $0xa8] sm:$0xf] }
 0x14c   : > { %v7122_v44 = vcombine.low %v2204_v2, %v2207_v1  ;;  %v3374_v27 = vsel %vm7984_vm10, %v3369_v24, %v3373_v9  ;;  %v1290_v42 = vsel %vm8410_vm14, %v1288_v47, %v1289_v36  ;;  %v3389_v26 = vshll.u32 %v8816_v7, 16 }
 0x14d   : > { %v3384_v63 = vsel %vm7984_vm10, %v3379_v41, %v3383_v59  ;;  %v7054_v30 = vcombine.low %v1287_v54, %v1290_v42  ;;  %v3395_v52 = vshll.u32 %v8828_v57, 16  ;;  %v3399_v55 = vshrl.u32 %v8828_v57, 16  ;;  %v7594_v54 = vld [vmem:[#allocation2 + $0x6c] sm:$0xf] }
 0x14e   : > { %7174 = vmatprep.mubr.msk.bf16.mxu0 %vm1532_vm13, %v7122_v44  ;;  %v2227_v35 = vrot.slane %v8847_v20, 5  ;;  %v7248_v36 = vcombine.low %v3374_v27, %v3384_v63  ;;  %v3391_v16 = vrot.slane %v3389_v26, 5  ;;  %v3405_v8 = vshll.u32 %v8833_v38, 16  ;;  %v8866_v27 = vld [vmem:[#allocation2 + $0xb0] sm:$0x1] }
 0x14f   : > { %2759 = vmatmul.mubr.bf16.gmra.mxu0 %v2471_v34  ;;  %7198 = vmatprep.mubr.msk.bf16.mxu1 %vm1532_vm13, %v7054_v30  ;;  %v3397_v37 = vrot.slane %v3395_v52, 5  ;;  %v3401_v21 = vrot.slane %v3399_v55, 4  ;;  %v7075_v9 = vrot.slane %v2066_v11, 9  ;;  %v2210_v59 = vrot.slane %v7591_v23, 5 }
 0x150   : > { %3813 = vrot.lane.b32.xlu1 %v7248_v36, %s7708_s14  ;;  %3008 = vmatmul.mubr.bf16.gmra.mxu1 %v1567_v61  ;;  %v3392_v58 = vor.u32 %v3391_v16, %v3388_v3  ;;  %v3407_v53 = vrot.slane %v3405_v8, 5  ;;  %v7007_v2 = vrot.slane %v1170_v6, 9  ;;  %v1293_v10 = vrot.slane %v7592_v5, 5  ;;  %v8864_v61 = vld [vmem:[#allocation2 + $0xac] sm:$0xf] }
 0x151   : > { %v3402_v51 = vor.u32 %v3401_v21, %v3397_v37  ;;  %v2211_v32 = vsel %vm8410_vm14, %v7075_v9, %v2210_v59  ;;  %v2212_v45 = vrot.slane %v2210_v59, 4  ;;  %v7091_v4 = vcombine.low %v7593_v39, %v7591_v23  ;;  %v1171_v6 = vld [vmem:[#allocation2 + $0x78] sm:$0xe]  ;;  %v8883_v8 = vld [vmem:[#allocation2 + $0x98] sm:$0x1] }
 0x152   : > { %v3393_v24 = vrot.slane %v3392_v58, 4  ;;  %v1294_v12 = vsel %vm8410_vm14, %v7007_v2, %v1293_v10  ;;  %v1295_v1 = vrot.slane %v1293_v10, 4  ;;  %v7023_v47 = vcombine.low %v7594_v54, %v7592_v5  ;;  %v7596_v23 = vld [vmem:[#allocation2 + $0xb8] sm:$0xf]  ;;  %v8887_v58 = vld [vmem:[#allocation2 + $0xb4] sm:$0xf] }
 0x153   : > { %v3403_v41 = vrot.slane %v3402_v51, 4  ;;  %v2214_v44 = vsel %vm8410_vm14, %v2212_v45, %v2213_v13  ;;  %v2475_v34 = vsel %vm1532_vm13, %v7091_v4, %v2368_v17  ;;  %v3410_v42 = vshrl.u32 %v8853_v56, 16  ;;  %v2067_v13 = vld [vmem:[#allocation2 + $0xb4] sm:$0xe]  ;;  %v1473_v51 = vpop.permute.xlu0 %1472  ;;  %v7597_v45 = vld [vmem:[#allocation2 + $0x7c] sm:$0xf] }
 0x154   : > { %v3398_v3 = vsel %vm7984_vm10, %v3393_v24, %v3397_v37  ;;  %v7123_v26 = vcombine.low %v2211_v32, %v2214_v44  ;;  %v1297_v22 = vsel %vm8410_vm14, %v1295_v1, %v1296_v28  ;;  %v1571_v11 = vsel %vm1532_vm13, %v7023_v47, %v1471_v25  ;;  %v7598_v24 = vld [vmem:[#allocation2 + $0xb4] sm:$0xf]  ;;  %v7599_v1 = vld [vmem:[#allocation2 + $0x78] sm:$0xf] }
 0x155   : > { %v3408_v63 = vsel %vm7984_vm10, %v3403_v41, %v3407_v53  ;;  %v7055_v30 = vcombine.low %v1294_v12, %v1297_v22  ;;  %v3412_v52 = vrot.slane %v3410_v42, 4  ;;  %v3413_v55 = vshll.u32 %v8853_v56, 16 }
 0x156   : > { %v7249_v36 = vcombine.low %v3398_v3, %v3408_v63  ;;  %7175 = vmatprep.mubr.msk.bf16.mxu0 %vm1532_vm13, %v7123_v26  ;;  %v3419_v16 = vshll.u32 %v8864_v61, 16  ;;  %v3423_v29 = vshrl.u32 %v8864_v61, 16  ;;  %v3429_v28 = vshll.u32 %v8866_v27, 16  ;;  %v8899_v26 = vld [vmem:[#allocation2 + $0xb8] sm:$0xf] }
 0x157   : > { %v1317_v37 = vrot.slane %v8883_v8, 5  ;;  %7199 = vmatprep.mubr.msk.bf16.mxu1 %vm1532_vm13, %v7055_v30  ;;  %2767 = vmatmul.mubr.bf16.gmra.mxu0 %v2475_v34  ;;  %v3415_v21 = vrot.slane %v3413_v55, 5  ;;  %v7076_v9 = vrot.slane %v2067_v13, 9  ;;  %v2217_v59 = vrot.slane %v7596_v23, 5  ;;  %v8904_v30 = vld [vmem:[#allocation2 + $0xbc] sm:$0x1] }
 0x158   : > { %3815 = vrot.lane.b32.xlu1 %v7249_v36, %s7708_s14  ;;  %3016 = vmatmul.mubr.bf16.gmra.mxu1 %v1571_v11  ;;  %v3421_v53 = vrot.slane %v3419_v16, 5  ;;  %v3425_v17 = vrot.slane %v3423_v29, 4  ;;  %v3431_v2 = vrot.slane %v3429_v28, 5  ;;  %v7008_v5 = vrot.slane %v1171_v6, 9  ;;  %v2068_v36 = vld [vmem:[#allocation2 + $0xc0] sm:$0xe] }
 0x159   : > { %v3416_v10 = vor.u32 %v3415_v21, %v3412_v52  ;;  %v2218_v25 = vsel %vm8410_vm14, %v7076_v9, %v2217_v59  ;;  %v2219_v32 = vrot.slane %v2217_v59, 4  ;;  %v1300_v39 = vrot.slane %v7597_v45, 5  ;;  %v1172_v21 = vld [vmem:[#allocation2 + $0x84] sm:$0xe]  ;;  %v8918_v9 = vld [vmem:[#allocation2 + $0x2c] sm:$0x1] }
 0x15a   : > { %v3426_v4 = vor.u32 %v3425_v17, %v3421_v53  ;;  %v7092_v12 = vcombine.low %v7598_v24, %v7596_v23  ;;  %v7024_v54 = vcombine.low %v7599_v1, %v7597_v45  ;;  %v3434_v47 = vshrl.u32 %v8887_v58, 16  ;;  %v8924_v24 = vld [vmem:[#allocation2 + $0xc0] sm:$0xf]  ;;  %v1475_v1 = vpop.permute.xlu0 %1474  ;;  %v1174_v8 = vld [vmem:[#allocation2 + $0x9c] sm:$0xe] }
 0x15b   : > { %v3417_v41 = vrot.slane %v3416_v10, 4  ;;  %v11544_v44 = vrot.slane %v8212_v62, 5  ;;  %v1301_v42 = vsel %vm8410_vm14, %v7008_v5, %v1300_v39  ;;  %v1302_v3 = vrot.slane %v1300_v39, 4  ;;  %v7601_v5 = vld [vmem:[#allocation2 + $0xc4] sm:$0xf] }
 0x15c   : > { %v3427_v22 = vrot.slane %v3426_v4, 4  ;;  %v2479_v13 = vsel %vm1532_vm13, %v7092_v12, %v8576_v40  ;;  %v1575_v63 = vsel %vm1532_vm13, %v7024_v54, %v1473_v51  ;;  %v3436_v55 = vrot.slane %v3434_v47, 4  ;;  %v7602_v39 = vld [vmem:[#allocation2 + $0x88] sm:$0xf] }
 0x15d   : > { %v2221_v34 = vsel %vm8410_vm14, %v2219_v32, %v11544_v44  ;;  %v3422_v62 = vsel %vm7984_vm10, %v3417_v41, %v3421_v53  ;;  %v1304_v52 = vsel %vm8410_vm14, %v1302_v3, %v1303_v18  ;;  %v3437_v6 = vshll.u32 %v8887_v58, 16  ;;  %v2372_v32 = vpop.permute.xlu1 %2371  ;;  %v7603_v41 = vld [vmem:[#allocation2 + $0xc0] sm:$0xf] }
 0x15e   : > { %v7124_v11 = vcombine.low %v2218_v25, %v2221_v34  ;;  %v3432_v16 = vsel %vm7984_vm10, %v3427_v22, %v3431_v2  ;;  %v7056_v40 = vcombine.low %v1301_v42, %v1304_v52  ;;  %v3443_v29 = vshll.u32 %v8899_v26, 16  ;;  %v7604_v22 = vld [vmem:[#allocation2 + $0x84] sm:$0xf] }
 0x15f   : > { %v3447_v28 = vshrl.u32 %v8899_v26, 16  ;;  %v3581_v15 = vrot.slane %v8918_v9, 5  ;;  %v7250_v18 = vcombine.low %v3422_v62, %v3432_v16  ;;  %v3439_v23 = vrot.slane %v3437_v6, 5  ;;  %v8935_v52 = vld [vmem:[#allocation2 + $0xc4] sm:$0xf] }
 0x160   : > { %7176 = vmatprep.mubr.msk.bf16.mxu0 %vm1532_vm13, %v7124_v11  ;;  %v3453_v59 = vshll.u32 %v8904_v30, 16  ;;  %7200 = vmatprep.mubr.msk.bf16.mxu1 %vm1532_vm13, %v7056_v40  ;;  %v3445_v53 = vrot.slane %v3443_v29, 5  ;;  %v7077_v2 = vrot.slane %v2068_v36, 9  ;;  %v2224_v10 = vrot.slane %v7601_v5, 5 }
 0x161   : > { %2775 = vmatmul.mubr.bf16.gmra.mxu0 %v2479_v13  ;;  %v3449_v17 = vrot.slane %v3447_v28, 4  ;;  %3817 = vrot.lane.b32.xlu1 %v7250_v18, %s7708_s14  ;;  %v3440_v51 = vor.u32 %v3439_v23, %v3436_v55  ;;  %v7009_v45 = vrot.slane %v1172_v21, 9  ;;  %v1307_v4 = vrot.slane %v7602_v39, 5  ;;  %v8937_v55 = vld [vmem:[#allocation2 + $0xc8] sm:$0x1] }
 0x162   : > { %3024 = vmatmul.mubr.bf16.gmra.mxu1 %v1575_v63  ;;  %v3455_v25 = vrot.slane %v3453_v59, 5  ;;  %v2225_v54 = vsel %vm8410_vm14, %v7077_v2, %v2224_v10  ;;  %v2226_v47 = vrot.slane %v2224_v10, 4  ;;  %v7093_v44 = vcombine.low %v7603_v41, %v7601_v5  ;;  %v8954_v2 = vld [vmem:[#allocation2 + $0xa4] sm:$0x1] }
 0x163   : > { %v3450_v12 = vor.u32 %v3449_v17, %v3445_v53  ;;  %v3441_v34 = vrot.slane %v3440_v51, 4  ;;  %v1308_v42 = vsel %vm8410_vm14, %v7009_v45, %v1307_v4  ;;  %v1309_v3 = vrot.slane %v1307_v4, 4  ;;  %v3505_v17 = vld [vmem:[#allocation2 + $0x18] sm:$0xe] }
 0x164   : > { %v7025_v11 = vcombine.low %v7604_v22, %v7602_v39  ;;  %v2228_v63 = vsel %vm8410_vm14, %v2226_v47, %v2227_v35  ;;  %v2483_v62 = vsel %vm1532_vm13, %v7093_v44, %v2372_v32  ;;  %v3458_v6 = vshrl.u32 %v8924_v24, 16  ;;  %v1173_v35 = vld [vmem:[#allocation2 + $0x90] sm:$0xe]  ;;  %v7606_v51 = vld [vmem:[#allocation2 + $0x18] sm:$0xf] }
 0x165   : > { %v3451_v13 = vrot.slane %v3450_v12, 4  ;;  %v3446_v36 = vsel %vm7984_vm10, %v3441_v34, %v3445_v53  ;;  %v7125_v16 = vcombine.low %v2225_v54, %v2228_v63  ;;  %v1311_v20 = vsel %vm8410_vm14, %v1309_v3, %v1310_v48  ;;  %v3794_v48 = vpop.permute.xlu1 %3793  ;;  %v8959_v47 = vld [vmem:[#allocation2 + $0xcc] sm:$0xf]  ;;  %v1477_v34 = vpop.permute.xlu0 %1476  ;;  %v7609_v63 = vld [vmem:[#allocation2 + $0x90] sm:$0xf] }
 0x166   : > { %v1579_v40 = vsel %vm1532_vm13, %v7025_v11, %v1475_v1  ;;  %v7057_v28 = vcombine.low %v1308_v42, %v1311_v20  ;;  %v3460_v21 = vrot.slane %v3458_v6, 4  ;;  %v3461_v18 = vshll.u32 %v8924_v24, 16  ;;  %v7608_v1 = vld [vmem:[#allocation2 + $0x94] sm:$0xf]  ;;  %v8966_v20 = vld [vmem:[#allocation2 + $0xd0] sm:$0xf] }
 0x167   : > { %v3456_v29 = vsel %vm7984_vm10, %v3451_v13, %v3455_v25  ;;  %7177 = vmatprep.mubr.msk.bf16.mxu0 %vm1532_vm13, %v7125_v16  ;;  %v3467_v59 = vshll.u32 %v8935_v52, 16  ;;  %v3471_v46 = vshrl.u32 %v8935_v52, 16  ;;  %v3477_v53 = vshll.u32 %v8937_v55, 16  ;;  %v7607_v25 = vld [vmem:[#allocation2 + $0x1c] sm:$0xf] }
 0x168   : > { %v7251_v23 = vcombine.low %v3446_v36, %v3456_v29  ;;  %v1324_v5 = vrot.slane %v8954_v2, 5  ;;  %7201 = vmatprep.mubr.msk.bf16.mxu1 %vm1532_vm13, %v7057_v28  ;;  %v3463_v10 = vrot.slane %v3461_v18, 5  ;;  %v7222_v32 = vcombine.low %v7606_v51, %v7607_v25  ;;  %v3506_v51 = vld [vmem:[#allocation2 + $0x24] sm:$0xe] }
 0x169   : > { %2783 = vmatmul.mubr.bf16.gmra.mxu0 %v2483_v62  ;;  %v7010_v45 = vrot.slane %v1173_v35, 9  ;;  %v3469_v39 = vrot.slane %v3467_v59, 5  ;;  %v3473_v4 = vrot.slane %v3471_v46, 4  ;;  %v3479_v12 = vrot.slane %v3477_v53, 5 }
 0x16a   : > { %3819 = vrot.lane.b32.xlu1 %v7251_v23, %s7708_s14  ;;  %3032 = vmatmul.mubr.bf16.gmra.mxu1 %v1579_v40  ;;  %v1314_v54 = vrot.slane %v7608_v1, 5  ;;  %v3464_v41 = vor.u32 %v3463_v10, %v3460_v21  ;;  %v3875_v44 = vsel %vm1532_vm13, %v7222_v32, %v3794_v48  ;;  %v7206_v42 = vrot.slane %v3505_v17, 9  ;;  %v8974_v21 = vld [vmem:[#allocation2 + $0xd4] sm:$0x1] }
 0x16b   : > { %v3571_v3 = vrot.slane %v7607_v25, 5  ;;  %v3474_v22 = vor.u32 %v3473_v4, %v3469_v39  ;;  %v7026_v62 = vcombine.low %v7609_v63, %v7608_v1  ;;  %v3482_v40 = vshrl.u32 %v8959_v47, 16  ;;  %v8986_v25 = vld [vmem:[#allocation2 + $0xb0] sm:$0x1]  ;;  %v7611_v1 = vld [vmem:[#allocation2 + $0xa0] sm:$0xf] }
 0x16c   : > { %v1315_v11 = vsel %vm8410_vm14, %v7010_v45, %v1314_v54  ;;  %v1316_v13 = vrot.slane %v1314_v54, 4  ;;  %v3465_v6 = vrot.slane %v3464_v41, 4  ;;  %v3485_v18 = vshll.u32 %v8959_v47, 16 }
 0x16d   : > { %v3572_v36 = vsel %vm8410_vm14, %v7206_v42, %v3571_v3  ;;  %v3573_v16 = vrot.slane %v3571_v3, 4  ;;  %v3475_v35 = vrot.slane %v3474_v22, 4  ;;  %v1583_v28 = vsel %vm1532_vm13, %v7026_v62, %v1477_v34  ;;  %v1479_v42 = vpop.permute.xlu0 %1478  ;;  %v7612_v22 = vld [vmem:[#allocation2 + $0x28] sm:$0xf]  ;;  %v3796_v62 = vpop.permute.xlu1 %3795 }
 0x16e   : > { %v1318_v29 = vsel %vm8410_vm14, %v1316_v13, %v1317_v37  ;;  %v3470_v23 = vsel %vm7984_vm10, %v3465_v6, %v3469_v39  ;;  %v3484_v53 = vrot.slane %v3482_v40, 4  ;;  %v3487_v17 = vrot.slane %v3485_v18, 5  ;;  %v1175_v13 = vld [vmem:[#allocation2 + $0xa8] sm:$0xe] }
 0x16f   : > { %v7058_v59 = vcombine.low %v1315_v11, %v1318_v29  ;;  %v3575_v46 = vsel %vm8410_vm14, %v3573_v16, %v3574_v14  ;;  %v3480_v37 = vsel %vm7984_vm10, %v3475_v35, %v3479_v12  ;;  %v3491_v10 = vshll.u32 %v8966_v20, 16  ;;  %v7613_v16 = vld [vmem:[#allocation2 + $0x9c] sm:$0xf] }
 0x170   : > { %v7254_v48 = vcombine.low %v3572_v36, %v3575_v46  ;;  %v1331_v32 = vrot.slane %v8986_v25, 5  ;;  %v7252_v45 = vcombine.low %v3470_v23, %v3480_v37  ;;  %v3495_v31 = vshrl.u32 %v8966_v20, 16  ;;  %v3507_v23 = vld [vmem:[#allocation2 + $0x30] sm:$0xe]  ;;  %v1176_v37 = vld [vmem:[#allocation2 + $0xb4] sm:$0xe] }
 0x171   : > { %7202 = vmatprep.mubr.msk.bf16.mxu1 %vm1532_vm13, %v7058_v59  ;;  %v3501_v14 = vshll.u32 %v8974_v21, 16  ;;  %v3488_v39 = vor.u32 %v3487_v17, %v3484_v53  ;;  %v3493_v4 = vrot.slane %v3491_v10, 5  ;;  %v7011_v12 = vrot.slane %v1174_v8, 9 }
 0x172   : > { %7306 = vmatprep.mubr.msk.bf16.mxu0 %vm1532_vm13, %v7254_v48  ;;  %3040 = vmatmul.mubr.bf16.gmra.mxu1 %v1583_v28  ;;  %v1321_v54 = vrot.slane %v7611_v1, 5  ;;  %v3497_v41 = vrot.slane %v3495_v31, 4  ;;  %v7207_v3 = vrot.slane %v3506_v51, 9  ;;  %v3578_v11 = vrot.slane %v7612_v22, 5  ;;  %v7614_v28 = vld [vmem:[#allocation2 + $0x24] sm:$0xf] }
 0x173   : > { %3821 = vrot.lane.b32.xlu1 %v7252_v45, %s7708_s14  ;;  %4115 = vmatmul.mubr.bf16.vlgmr.msra.gmra.mxu0 %v3875_v44  ;;  %v3503_v34 = vrot.slane %v3501_v14, 5  ;;  %v3489_v63 = vrot.slane %v3488_v39, 4  ;;  %v7027_v40 = vcombine.low %v7613_v16, %v7611_v1  ;;  %v7223_v18 = vcombine.low %v7614_v28, %v7612_v22  ;;  %v7615_v31 = vld [vmem:[#allocation2 + $0xac] sm:$0xf]  ;;  %v7616_v39 = vld [vmem:[#allocation2 + $0x34] sm:$0xf] }
 0x174   : > { %v1322_v6 = vsel %vm8410_vm14, %v7011_v12, %v1321_v54  ;;  %v1323_v36 = vrot.slane %v1321_v54, 4  ;;  %v3498_v35 = vor.u32 %v3497_v41, %v3493_v4  ;;  %v3579_v29 = vsel %vm8410_vm14, %v7207_v3, %v3578_v11  ;;  %v7618_v1 = vld [vmem:[#allocation2 + $0x44] sm:$0x1]  ;;  %v7623_v28 = vld [vmem:[#allocation2 + $0x40] sm:$0xf] }
 0x175   : > { %v3580_v44 = vrot.slane %v3578_v11, 4  ;;  %v3494_v59 = vsel %vm7984_vm10, %v3489_v63, %v3493_v4  ;;  %v1587_v53 = vsel %vm1532_vm13, %v7027_v40, %v1479_v42  ;;  %v7012_v8 = vrot.slane %v1175_v13, 9  ;;  %v3508_v42 = vld [vmem:[#allocation2 + $0x3c] sm:$0xe] }
 0x176   : > { %v1325_v46 = vsel %vm8410_vm14, %v1323_v36, %v1324_v5  ;;  %v3499_v48 = vrot.slane %v3498_v35, 4  ;;  %v3879_v51 = vsel %vm1532_vm13, %v7223_v18, %v3796_v62  ;;  %v1328_v14 = vrot.slane %v7615_v31, 5  ;;  %v7617_v5 = vld [vmem:[#allocation2 + $0x38] sm:$0x1]  ;;  %v7622_v35 = vld [vmem:[#allocation2 + $0x30] sm:$0xf] }
 0x177   : > { %v7059_v17 = vcombine.low %v1322_v6, %v1325_v46  ;;  %v3582_v10 = vsel %vm8410_vm14, %v3580_v44, %v3581_v15  ;;  %v7208_v2 = vrot.slane %v3507_v23, 9  ;;  %v3585_v4 = vrot.slane %v7616_v39, 5  ;;  %v7619_v15 = vld [vmem:[#allocation2 + $0xbc] sm:$0x1]  ;;  %v7621_v6 = vld [vmem:[#allocation2 + $0xb8] sm:$0xf]  ;;  %v1481_v16 = vpop.permute.xlu0 %1480  ;;  %v3798_v23 = vpop.permute.xlu1 %3797 }
 0x178   : > { %v7255_v45 = vcombine.low %v3579_v29, %v3582_v10  ;;  %v3588_v12 = vrot.slane %v7617_v5, 5  ;;  %v3595_v54 = vrot.slane %v7618_v1, 5  ;;  %v3504_v41 = vsel %vm7984_vm10, %v3499_v48, %v3503_v34  ;;  %v7620_v34 = vld [vmem:[#allocation2 + $0xa8] sm:$0xf] }
 0x179   : > { %7203 = vmatprep.mubr.msk.bf16.mxu1 %vm1532_vm13, %v7059_v17  ;;  %v7013_v9 = vrot.slane %v1176_v37, 9  ;;  %v1338_v3 = vrot.slane %v7619_v15, 5  ;;  %v7253_v22 = vcombine.low %v3494_v59, %v3504_v41  ;;  %v1329_v11 = vsel %vm8410_vm14, %v7012_v8, %v1328_v14  ;;  %v7626_v41 = vld [vmem:[#allocation2 + $0xb4] sm:$0xf] }
 0x17a   : > { %7307 = vmatprep.mubr.msk.bf16.mxu0 %vm1532_vm13, %v7255_v45  ;;  %3048 = vmatmul.mubr.bf16.gmra.mxu1 %v1587_v53  ;;  %v1330_v13 = vrot.slane %v1328_v14, 4  ;;  %v3586_v63 = vsel %vm8410_vm14, %v7208_v2, %v3585_v4  ;;  %v3587_v43 = vrot.slane %v3585_v4, 4  ;;  %v7028_v62 = vcombine.low %v7620_v34, %v7615_v31  ;;  %v7629_v34 = vld [vmem:[#allocation2 + $0x5c] sm:$0x1] }
 0x17b   : > { %4123 = vmatmul.mubr.bf16.gmra.mxu0 %v3879_v51  ;;  %v1335_v36 = vrot.slane %v7621_v6, 5  ;;  %3823 = vrot.lane.b32.xlu1 %v7253_v22, %s7708_s14  ;;  %v7224_v29 = vcombine.low %v7622_v35, %v7616_v39  ;;  %v7209_v44 = vrot.slane %v3508_v42, 9  ;;  %v3592_v18 = vrot.slane %v7623_v28, 5  ;;  %v9033_v51 = vld [vmem:[#allocation2 + $0x4c] sm:$0xf]  ;;  %s7645_s14 = scalar_lea.vmem %s11357_s11, 1024 }
 0x17c   : > { %v1332_v40 = vsel %vm8410_vm14, %v1330_v13, %v1331_v32  ;;  %v3589_v46 = vsel %vm8410_vm14, %v3587_v43, %v3588_v12  ;;  %v3509_v32 = vld [vmem:[#allocation2 + $0x48] sm:$0xe]  ;;  %v1591_v17 = vsel %vm1532_vm13, %v7028_v62, %v1481_v16  ;;  %v3599_v45 = vrot.slane %v9033_v51, 5  ;;  %v7625_v39 = vld [vmem:[#allocation2 + $0x50] sm:$0x1]  ;;  %p7646_p11 = scmp.ne.s32.totalorder %s11357_s11, %s7645_s14  ;;  %p7653_p1 = scmp.lt.s32.totalorder %s7651_s27, %s7645_s14 }
 0x17d   : > { %v7060_v59 = vcombine.low %v1329_v11, %v1332_v40  ;;  %v1336_v53 = vsel %vm8410_vm14, %v7013_v9, %v1335_v36  ;;  %v1337_v8 = vrot.slane %v1335_v36, 4  ;;  %v7256_v37 = vcombine.low %v3586_v63, %v3589_v46  ;;  %v7627_v42 = vld [vmem:[#allocation2 + $0x3c] sm:$0xf]  ;;  %v3510_v63 = vld [vmem:[#allocation2 + $0x54] sm:$0xe] }
 0x17e   : > { %v3593_v25 = vsel %vm8410_vm14, %v7209_v44, %v3592_v18  ;;  %v3594_v48 = vrot.slane %v3592_v18, 4  ;;  %v3883_v31 = vsel %vm1532_vm13, %v7224_v29, %v3798_v23  ;;  %v3602_v4 = vrot.slane %v7625_v39, 5  ;;  %v3516_v36 = vld [vmem:[#allocation2 + $0x9c] sm:$0xe]  ;;  %v7630_v44 = vld [vmem:[#allocation2 + $0x68] sm:$0x1]  ;;  %p7647_p12 = pnand %p7646_p11, %p7773_p5  ;;  %p7654_p2 = por %p7653_p1, %p7652_p0 }
 0x17f   : > { %7204 = vmatprep.mubr.msk.bf16.mxu1 %vm1532_vm13, %v7060_v59  ;;  %v1339_v10 = vsel %vm8410_vm14, %v1337_v8, %v1338_v3  ;;  %7308 = vmatprep.mubr.msk.bf16.mxu0 %vm1532_vm13, %v7256_v37  ;;  %v7210_v12 = vrot.slane %v3509_v32, 9  ;;  %v3601_v1 = vrot.slane %v3599_v45, 4  ;;  %v7029_v9 = vcombine.low %v7626_v41, %v7621_v6  ;;  %v9042_v3 = vld [vmem:[#allocation2 + $0x58] sm:$0xf]  ;;  %v9052_v23 = vld [vmem:[#allocation2 + $0x64] sm:$0xf] }
 0x180   : > { %v7061_v14 = vcombine.low %v1336_v53, %v1339_v10  ;;  %v3596_v2 = vsel %vm8410_vm14, %v3594_v48, %v3595_v54  ;;  %v7225_v15 = vcombine.low %v7627_v42, %v7623_v28  ;;  %v3606_v22 = vrot.slane %v9042_v3, 5  ;;  %v3517_v8 = vld [vmem:[#allocation2 + $0xa8] sm:$0xe]  ;;  %v3519_v39 = vld [vmem:[#allocation2 + $0xc0] sm:$0xe]  ;;  %p7648_p13 = pneg %p7647_p12 }
 0x181   : > { %v7257_v5 = vcombine.low %v3593_v25, %v3596_v2  ;;  %v3800_v54 = vpop.permute.xlu1 %3799  ;;  %v3600_v11 = vsel %vm8410_vm14, %v7210_v12, %v3599_v45  ;;  %v3603_v13 = vsel %vm8410_vm14, %v3601_v1, %v3602_v4  ;;  %v3609_v62 = vrot.slane %v7629_v34, 5  ;;  %v3518_v2 = vld [vmem:[#allocation2 + $0xb4] sm:$0xe] }
 0x182   : > { %3056 = vmatmul.mubr.bf16.gmra.mxu1 %v1591_v17  ;;  %v3887_v16 = vsel %vm1532_vm13, %v7225_v15, %v3800_v54  ;;  %v7258_v40 = vcombine.low %v3600_v11, %v3603_v13  ;;  %v7211_v35 = vrot.slane %v3510_v63, 9  ;;  %v3608_v29 = vrot.slane %v3606_v22, 4  ;;  %v3511_v17 = vld [vmem:[#allocation2 + $0x60] sm:$0xe]  ;;  %v3520_v15 = vld [vmem:[#allocation2 + $0xcc] sm:$0xe]  ;;  %p7655_p3 = pnand %p7654_p2, %p7648_p13 }
 0x183   : > { %4131 = vmatmul.mubr.bf16.gmra.mxu0 %v3883_v31  ;;  %7205 = vmatprep.mubr.msk.bf16.mxu1 %vm1532_vm13, %v7061_v14  ;;  %v1483_v43 = vpop.permute.xlu0 %1482  ;;  %v3616_v28 = vrot.slane %v7630_v44, 5  ;;  %v3651_v18 = vrot.slane %v8833_v38, 5  ;;  %v3613_v59 = vrot.slane %v9052_v23, 5  ;;  %v7217_v46 = vrot.slane %v3516_v36, 9 }
 0x184   : > { %7309 = vmatprep.mubr.msk.bf16.mxu0 %vm1532_vm13, %v7257_v5  ;;  %v1595_v6 = vsel %vm1532_vm13, %v7029_v9, %v1483_v43  ;;  %v3648_v53 = vrot.slane %v8828_v57, 5  ;;  %v3658_v37 = vrot.slane %v8866_v27, 5  ;;  %v3665_v25 = vrot.slane %v8904_v30, 5  ;;  %v7632_v30 = vld [vmem:[#allocation2 + $0x48] sm:$0xf] }
 0x185   : > { %v3672_v48 = vrot.slane %v8937_v55, 5  ;;  %v3679_v32 = vrot.slane %v8974_v21, 5  ;;  %v3607_v38 = vsel %vm8410_vm14, %v7211_v35, %v3606_v22  ;;  %v3610_v10 = vsel %vm8410_vm14, %v3608_v29, %v3609_v62  ;;  %v7633_v29 = vld [vmem:[#allocation2 + $0x54] sm:$0xf] }
 0x186   : > { %v9067_v45 = vsel %vm8410_vm14, %v7217_v46, %v3648_v53  ;;  %v3650_v27 = vrot.slane %v3648_v53, 4  ;;  %v7226_v55 = vcombine.low %v7632_v30, %v9033_v51  ;;  %v7234_v21 = vcombine.low %v8853_v56, %v8864_v61 }
 0x187   : > { %v7218_v31 = vrot.slane %v3517_v8, 9  ;;  %v3655_v14 = vrot.slane %v8864_v61, 5  ;;  %v7212_v4 = vrot.slane %v3511_v17, 9  ;;  %v3615_v5 = vrot.slane %v3613_v59, 4  ;;  %v7634_v17 = vld [vmem:[#allocation2 + $0x70] sm:$0xf] }
 0x188   : > { %v9075_v12 = vsel %vm8410_vm14, %v3650_v27, %v3651_v18  ;;  %v7235_v1 = vcombine.low %v8887_v58, %v8899_v26  ;;  %v7259_v41 = vcombine.low %v3607_v38, %v3610_v10  ;;  %v7219_v54 = vrot.slane %v3518_v2, 9 }
 0x189   : > { %v7265_v51 = vcombine.low %v9067_v45, %v9075_v12  ;;  %v9083_v9 = vsel %vm8410_vm14, %v7218_v31, %v3655_v14  ;;  %v3657_v42 = vrot.slane %v3655_v14, 4  ;;  %v3662_v11 = vrot.slane %v8899_v26, 5 }
 0x18a   : > { %3064 = vmatmul.mubr.bf16.gmra.mxu1 %v1595_v6  ;;  %v7236_v13 = vcombine.low %v8924_v24, %v8935_v52  ;;  %v7220_v63 = vrot.slane %v3519_v39, 9  ;;  %v3669_v62 = vrot.slane %v8935_v52, 5  ;;  %v7237_v6 = vcombine.low %v8959_v47, %v8966_v20 }
 0x18b   : > { %4139 = vmatmul.mubr.bf16.gmra.mxu0 %v3887_v16  ;;  %v9091_v34 = vsel %vm8410_vm14, %v3657_v42, %v3658_v37  ;;  %v9100_v16 = vsel %vm8410_vm14, %v7219_v54, %v3662_v11  ;;  %v7221_v35 = vrot.slane %v3520_v15, 9  ;;  %v7227_v44 = vcombine.low %v7633_v29, %v9042_v3  ;;  %v7636_v54 = vld [vmem:[#allocation2 + $0x7c] sm:$0xf] }
 0x18c   : > { %7310 = vmatprep.mubr.msk.bf16.mxu0 %vm1532_vm13, %v7258_v40  ;;  %v7266_v36 = vcombine.low %v9083_v9, %v9091_v34  ;;  %v3664_v40 = vrot.slane %v3662_v11, 4  ;;  %v9105_v18 = vsel %vm8410_vm14, %v7220_v63, %v3669_v62  ;;  %v3671_v46 = vrot.slane %v3669_v62, 4 }
 0x18d   : > { %v3802_v22 = vpop.permute.xlu1 %3801  ;;  %v3676_v53 = vrot.slane %v8966_v20, 5  ;;  %v3614_v8 = vsel %vm8410_vm14, %v7212_v4, %v3613_v59  ;;  %v3617_v37 = vsel %vm8410_vm14, %v3615_v5, %v3616_v28  ;;  %v3620_v38 = vrot.slane %v7634_v17, 5 }
 0x18e   : > { %v3891_v43 = vsel %vm1532_vm13, %v7226_v55, %v3802_v22  ;;  %v9115_v3 = vsel %vm8410_vm14, %v3664_v40, %v3665_v25  ;;  %v9121_v27 = vsel %vm8410_vm14, %v3671_v46, %v3672_v48  ;;  %v3512_v55 = vld [vmem:[#allocation2 + $0x6c] sm:$0xe]  ;;  %v7260_v14 = vcombine.low %v3614_v8, %v3617_v37  ;;  %v7635_v48 = vld [vmem:[#allocation2 + $0x74] sm:$0x1]  ;;  %v3513_v40 = vld [vmem:[#allocation2 + $0x78] sm:$0xe] }
 0x18f   : > { %v7267_v10 = vcombine.low %v9100_v16, %v9115_v3  ;;  %v9125_v30 = vsel %vm8410_vm14, %v7221_v35, %v3676_v53  ;;  %v3678_v59 = vrot.slane %v3676_v53, 4  ;;  %v7268_v28 = vcombine.low %v9105_v18, %v9121_v27 }
 0x190   : > { %v3623_v39 = vrot.slane %v7635_v48, 5  ;;  %v7213_v5 = vrot.slane %v3512_v55, 9  ;;  %v3627_v11 = vrot.slane %v7636_v54, 5  ;;  %v7214_v8 = vrot.slane %v3513_v40, 9 }
 0x191   : > { %v9131_v25 = vsel %vm8410_vm14, %v3678_v59, %v3679_v32  ;;  %v3634_v48 = vrot.slane %v8758_v19, 5  ;;  %v3641_v40 = vrot.slane %v8793_v0, 5  ;;  %vm5291_vm0 = vcmask 1041408  }
 0x192   : > { %v7269_v2 = vcombine.low %v9125_v30, %v9131_v25  ;;  %v3621_v32 = vsel %vm8410_vm14, %v7213_v5, %v3620_v38  ;;  %v3629_v37 = vrot.slane %v3627_v11, 4  ;;  %v3628_v55 = vsel %vm8410_vm14, %v7214_v8, %v3627_v11 }
 0x193   : > { %4147 = vmatmul.mubr.bf16.gmra.mxu0 %v3891_v43  ;;  %v7637_v43 = vld [vmem:[#allocation2 + $0x60] sm:$0xf]  ;;  %vm5325_vm1 = vcmask 1043456   ;;  %vm5342_vm2 = vcmask 1044480   ;;  %vm5359_vm3 = vcmask 1045504   ;;  %vm5376_vm4 = vcmask 1046528  }
 0x194   : > { %7311 = vmatprep.mubr.msk.bf16.mxu0 %vm1532_vm13, %v7259_v41  ;;  %v3622_v41 = vrot.slane %v3620_v38, 4  ;;  %v7228_v62 = vcombine.low %v7637_v43, %v9052_v23 }
 0x196   : > { %v3804_v31 = vpop.permute.xlu1 %3803  ;;  %v9136_v42 = vpop.f32.mrf.mxu0  ;;  %v3624_v22 = vsel %vm8410_vm14, %v3622_v41, %v3623_v39 }
 0x197   : > { %v3895_v4 = vsel %vm1532_vm13, %v7227_v44, %v3804_v31  ;;  %v7261_v29 = vcombine.low %v3621_v32, %v3624_v22  ;;  %v7638_v44 = vld [vmem:[#allocation2 + $0x80] sm:$0x1]  ;;  %v7639_v31 = vld [vmem:[#allocation2 + $0x6c] sm:$0xf]  ;;  %v3637_v32 = vrot.slane %v8763_v33, 5 }
 0x198   : > { %v2666_v15 = vpop.f32.mrf.mxu0  ;;  %v3630_v46 = vrot.slane %v7638_v44, 5  ;;  %v3515_v44 = vld [vmem:[#allocation2 + $0x90] sm:$0xe] }
 0x199   : > { %v7216_v8 = vrot.slane %v3515_v44, 9 }
 0x19a   : > { %v9143_v63 = vpop.f32.mrf.mxu0  ;;  %v3631_v23 = vsel %vm8410_vm14, %v3629_v37, %v3630_v46  ;;  %v3644_v46 = vrot.slane %v8795_v50, 5  ;;  %v3643_v37 = vrot.slane %v3641_v40, 4 }
 0x19b   : > { %4155 = vmatmul.mubr.bf16.gmra.mxu0 %v3895_v4  ;;  %v3514_v4 = vld [vmem:[#allocation2 + $0x84] sm:$0xe]  ;;  %v7262_v5 = vcombine.low %v3628_v55, %v3631_v23 }
 0x19c   : > { %7312 = vmatprep.mubr.msk.bf16.mxu0 %vm1532_vm13, %v7260_v14  ;;  %v2669_v35 = vpop.f32.mrf.mxu0  ;;  %v7229_v14 = vcombine.low %v7639_v31, %v7634_v17  ;;  %v7215_v43 = vrot.slane %v3514_v4, 9  ;;  %v3642_v31 = vsel %vm8410_vm14, %v7216_v8, %v3641_v40  ;;  %v7233_v40 = vcombine.low %v8816_v7, %v8828_v57 }
 0x19d   : > { %v7640_v35 = vld [vmem:[#allocation2 + $0x78] sm:$0xf] }
 0x19e   : > { %v3635_v17 = vsel %vm8410_vm14, %v7215_v43, %v3634_v48 }
 0x1a0   : > { %v3806_v53 = vpop.permute.xlu1 %3805 }
 0x1a1   : > { %v3899_v38 = vsel %vm1532_vm13, %v7228_v62, %v3806_v53  ;;  %v9148_v59 = vpop.f32.mrf.mxu0  ;;  %v3636_v62 = vrot.slane %v3634_v48, 4  ;;  %v7641_v48 = vld [vmem:[#allocation2 + $0x84] sm:$0xf] }
 0x1a3   : > { %4163 = vmatmul.mubr.bf16.gmra.mxu0 %v3899_v38  ;;  %v2674_v39 = vpop.f32.mrf.mxu0  ;;  %v3638_v19 = vsel %vm8410_vm14, %v3636_v62, %v3637_v32  ;;  %v7232_v62 = vcombine.low %v8782_v60, %v8793_v0 }
 0x1a4   : > { %7313 = vmatprep.mubr.msk.bf16.mxu0 %vm1532_vm13, %v7261_v29  ;;  %v7230_v29 = vcombine.low %v7640_v35, %v7636_v54  ;;  %v7263_v33 = vcombine.low %v3635_v17, %v3638_v19  ;;  %v3645_v54 = vsel %vm8410_vm14, %v3643_v37, %v3644_v46  ;;  %v7642_v39 = vld [vmem:[#allocation2 + $0x88] sm:$0xf] }
 0x1a5   : > { %v9155_v41 = vpop.f32.mrf.mxu0  ;;  %v7231_v50 = vcombine.low %v7641_v48, %v7642_v39 }
 0x1a7   : > { %v2677_v11 = vpop.f32.mrf.mxu0 }
 0x1a8   : > { %v3808_v15 = vpop.permute.xlu1 %3807 }
 0x1a9   : > { %v3903_v22 = vsel %vm1532_vm13, %v7229_v14, %v3808_v15 }
 0x1ab   : > { %4171 = vmatmul.mubr.bf16.gmra.mxu0 %v3903_v22 }
 0x1ac   : > { %7314 = vmatprep.mubr.msk.bf16.mxu0 %vm1532_vm13, %v7262_v5  ;;  %v7264_v5 = vcombine.low %v3642_v31, %v3645_v54 }
 0x1ae   : > { %v2680_v38 = vpop.f32.mrf.mxu0 }
 0x1b0   : > { %v2682_v23 = vpop.f32.mrf.mxu0 }
 0x1b1   : > { %v3810_v53 = vpop.permute.xlu1 %3809 }
 0x1b2   : > { %v3907_v55 = vsel %vm1532_vm13, %v7230_v29, %v3810_v53  ;;  %v2683_v14 = vpop.f32.mrf.mxu0 }
 0x1b3   : > { %4179 = vmatmul.mubr.bf16.gmra.mxu0 %v3907_v55 }
 0x1b4   : > { %7315 = vmatprep.mubr.msk.bf16.mxu0 %vm1532_vm13, %v7263_v33  ;;  %v2685_v4 = vpop.f32.mrf.mxu0 }
 0x1b9   : > { %v3812_v15 = vpop.permute.xlu1 %3811 }
 0x1ba   : > { %v3911_v32 = vsel %vm1532_vm13, %v7231_v50, %v3812_v15  ;;  %v2688_v22 = vpop.f32.mrf.mxu0 }
 0x1bb   : > { %4187 = vmatmul.mubr.bf16.gmra.mxu0 %v3911_v32 }
 0x1bc   : > { %7316 = vmatprep.mubr.msk.bf16.mxu0 %vm1532_vm13, %v7264_v5  ;;  %v2690_v43 = vpop.f32.mrf.mxu0 }
 0x1be   : > { %v2691_v11 = vpop.f32.mrf.mxu0 }
 0x1c0   : > { %v2693_v17 = vpop.f32.mrf.mxu0 }
 0x1c2   : > { %v3814_v49 = vpop.permute.xlu1 %3813 }
 0x1c3   : > { %v3915_v19 = vsel %vm1532_vm13, %v7232_v62, %v3814_v49 }
 0x1c4   : > { %4195 = vmatmul.mubr.bf16.gmra.mxu0 %v3915_v19 }
 0x1c5   : > { %7317 = vmatprep.mubr.msk.bf16.mxu0 %vm1532_vm13, %v7265_v51 }
 0x1c6   : > { %v2696_v35 = vpop.f32.mrf.mxu0  ;;  %v2945_v29 = vpop.f32.mrf.mxu1 }
 0x1c7   : > { %v9184_v44 = vadd.f32 %v2945_v29, %v9136_v42 }
 0x1c8   : > { %v2698_v0 = vpop.f32.mrf.mxu0  ;;  %v2947_v46 = vpop.f32.mrf.mxu1 }
 0x1ca   : > { %v3816_v60 = vpop.permute.xlu1 %3815  ;;  %v2699_v53 = vpop.f32.mrf.mxu0 }
 0x1cb   : > { %v3919_v33 = vsel %vm1532_vm13, %v7233_v40, %v3816_v60  ;;  %v2948_v45 = vpop.f32.mrf.mxu1 }
 0x1cc   : > { %4203 = vmatmul.mubr.bf16.gmra.mxu0 %v3919_v33  ;;  %v9192_v7 = vadd.f32 %v2948_v45, %v9143_v63  ;;  %v2701_v57 = vpop.f32.mrf.mxu0 }
 0x1cd   : > { %7318 = vmatprep.mubr.msk.bf16.mxu0 %vm1532_vm13, %v7266_v36  ;;  %v2950_v12 = vpop.f32.mrf.mxu1 }
 0x1d1   : > { %v2704_v8 = vpop.f32.mrf.mxu0 }
 0x1d3   : > { %v3818_v51 = vpop.permute.xlu1 %3817  ;;  %v2706_v9 = vpop.f32.mrf.mxu0 }
 0x1d4   : > { %v3923_v42 = vsel %vm1532_vm13, %v7234_v21, %v3818_v51  ;;  %v2953_v37 = vpop.f32.mrf.mxu1 }
 0x1d5   : > { %4211 = vmatmul.mubr.bf16.gmra.mxu0 %v3923_v42  ;;  %v9199_v55 = vadd.f32 %v2953_v37, %v9148_v59  ;;  %v2707_v36 = vpop.f32.mrf.mxu0 }
 0x1d6   : > { %7319 = vmatprep.mubr.msk.bf16.mxu0 %vm1532_vm13, %v7267_v10  ;;  %v2955_v34 = vpop.f32.mrf.mxu1 }
 0x1d7   : > { %v2709_v56 = vpop.f32.mrf.mxu0 }
 0x1d8   : > { %v2956_v63 = vpop.f32.mrf.mxu1 }
 0x1d9   : > { %v9206_v23 = vadd.f32 %v2956_v63, %v9155_v41 }
 0x1da   : > { %v2958_v61 = vpop.f32.mrf.mxu1 }
 0x1db   : > { %v2712_v31 = vpop.f32.mrf.mxu0 }
 0x1dc   : > { %v3820_v21 = vpop.permute.xlu1 %3819 }
 0x1dd   : > { %v3927_v59 = vsel %vm1532_vm13, %v7235_v1, %v3820_v21  ;;  %v2961_v16 = vpop.f32.mrf.mxu1  ;;  %v2714_v10 = vpop.f32.mrf.mxu0 }
 0x1de   : > { %4219 = vmatmul.mubr.bf16.gmra.mxu0 %v3927_v59  ;;  %v9216_v3 = vadd.f32 %v2961_v16, %v2680_v38 }
 0x1df   : > { %7320 = vmatprep.mubr.msk.bf16.mxu0 %vm1532_vm13, %v7268_v28  ;;  %v2963_v41 = vpop.f32.mrf.mxu1  ;;  %v2715_v54 = vpop.f32.mrf.mxu0 }
 0x1e1   : > { %v2964_v48 = vpop.f32.mrf.mxu1  ;;  %v2717_v50 = vpop.f32.mrf.mxu0 }
 0x1e2   : > { %v9218_v39 = vadd.f32 %v2964_v48, %v2683_v14 }
 0x1e3   : > { %v2966_v58 = vpop.f32.mrf.mxu1  ;;  %v2720_v1 = vpop.f32.mrf.mxu0 }
 0x1e5   : > { %v3822_v26 = vpop.permute.xlu1 %3821  ;;  %v2969_v18 = vpop.f32.mrf.mxu1 }
 0x1e6   : > { %v3931_v4 = vsel %vm1532_vm13, %v7236_v13, %v3822_v26  ;;  %v9224_v27 = vadd.f32 %v2969_v18, %v2688_v22  ;;  %v2722_v28 = vpop.f32.mrf.mxu0 }
 0x1e7   : > { %4227 = vmatmul.mubr.bf16.gmra.mxu0 %v3931_v4  ;;  %v2971_v38 = vpop.f32.mrf.mxu1 }
 0x1e8   : > { %7321 = vmatprep.mubr.msk.bf16.mxu0 %vm1532_vm13, %v7269_v2  ;;  %v2723_v14 = vpop.f32.mrf.mxu0 }
 0x1e9   : > { %v2972_v5 = vpop.f32.mrf.mxu1 }
 0x1ea   : > { %v9230_v15 = vadd.f32 %v2972_v5, %v2691_v11  ;;  %v2725_v32 = vpop.f32.mrf.mxu0 }
 0x1eb   : > { %v2974_v43 = vpop.f32.mrf.mxu1 }
 0x1ed   : > { %v2728_v24 = vpop.f32.mrf.mxu0  ;;  %v3824_v52 = vpop.permute.xlu1 %3823 }
 0x1ee   : > { %v3935_v13 = vsel %vm1532_vm13, %v7237_v6, %v3824_v52  ;;  %v2977_v22 = vpop.f32.mrf.mxu1 }
 0x1ef   : > { %v2730_v62 = vpop.f32.mrf.mxu0  ;;  %4235 = vmatmul.mubr.bf16.gmra.mxu0 %v3935_v13  ;;  %v9236_v30 = vadd.f32 %v2977_v22, %v2696_v35 }
 0x1f0   : > { %v2979_v25 = vpop.f32.mrf.mxu1 }
 0x1f1   : > { %v2731_v2 = vpop.f32.mrf.mxu0 }
 0x1f2   : > { %v2980_v49 = vpop.f32.mrf.mxu1 }
 0x1f3   : > { %v2733_v17 = vpop.f32.mrf.mxu0  ;;  %v9238_v11 = vadd.f32 %v2980_v49, %v2699_v53 }
 0x1f4   : > { %v2982_v19 = vpop.f32.mrf.mxu1 }
 0x1f5   : > { %v2736_v40 = vpop.f32.mrf.mxu0 }
 0x1f6   : > { %v2985_v29 = vpop.f32.mrf.mxu1 }
 0x1f7   : > { %v9240_v60 = vadd.f32 %v2985_v29, %v2704_v8  ;;  %v2738_v0 = vpop.f32.mrf.mxu0 }
 0x1f8   : > { %v2987_v47 = vpop.f32.mrf.mxu1 }
 0x1f9   : > { %v2739_v20 = vpop.f32.mrf.mxu0 }
 0x1fa   : > { %v2988_v6 = vpop.f32.mrf.mxu1 }
 0x1fb   : > { %v9242_v33 = vadd.f32 %v2988_v6, %v2707_v36  ;;  %v2741_v46 = vpop.f32.mrf.mxu0 }
 0x1fc   : > { %v2990_v35 = vpop.f32.mrf.mxu1 }
 0x1fe   : > { %v2744_v45 = vpop.f32.mrf.mxu0 }
 0x1ff   : > { %v2993_v57 = vpop.f32.mrf.mxu1 }
 0x200   : > { %v2746_v12 = vpop.f32.mrf.mxu0  ;;  %v9244_v51 = vadd.f32 %v2993_v57, %v2712_v31 }
 0x201   : > { %v2995_v53 = vpop.f32.mrf.mxu1 }
 0x202   : > { %v2747_v42 = vpop.f32.mrf.mxu0 }
 0x203   : > { %v2996_v37 = vpop.f32.mrf.mxu1 }
 0x204   : > { %v2749_v9 = vpop.f32.mrf.mxu0  ;;  %v9246_v34 = vadd.f32 %v2996_v37, %v2715_v54 }
 0x205   : > { %v2998_v8 = vpop.f32.mrf.mxu1 }
 0x206   : > { %v2752_v63 = vpop.f32.mrf.mxu0 }
 0x207   : > { %v3001_v56 = vpop.f32.mrf.mxu1 }
 0x208   : > { %v9248_v61 = vadd.f32 %v3001_v56, %v2720_v1  ;;  %v2754_v36 = vpop.f32.mrf.mxu0 }
 0x209   : > { %v3003_v21 = vpop.f32.mrf.mxu1 }
 0x20a   : > { %v2755_v59 = vpop.f32.mrf.mxu0 }
 0x20b   : > { %v3004_v16 = vpop.f32.mrf.mxu1 }
 0x20c   : > { %v9250_v10 = vadd.f32 %v3004_v16, %v2723_v14  ;;  %v2757_v41 = vpop.f32.mrf.mxu0  ;;  %v9281_v16 = vld [vmem:[%s11401_s2] ss:$0 sm:$0xff] }
 0x20d   : > { %v3006_v31 = vpop.f32.mrf.mxu1 }
 0x20f   : > { %v2760_v48 = vpop.f32.mrf.mxu0 }
 0x210   : > { %v3009_v50 = vpop.f32.mrf.mxu1 }
 0x211   : > { %v2762_v58 = vpop.f32.mrf.mxu0  ;;  %v9252_v26 = vadd.f32 %v3009_v50, %v2728_v24 }
 0x212   : > { %v3011_v54 = vpop.f32.mrf.mxu1 }
 0x213   : > { %v2763_v4 = vpop.f32.mrf.mxu0 }
 0x214   : > { %v3012_v18 = vpop.f32.mrf.mxu1 }
 0x215   : > { %v2765_v28 = vpop.f32.mrf.mxu0  ;;  %v9254_v38 = vadd.f32 %v3012_v18, %v2731_v2 }
 0x216   : > { %v3014_v1 = vpop.f32.mrf.mxu1 }
 0x217   : > { %v2768_v5 = vpop.f32.mrf.mxu0 }
 0x218   : > { %v3017_v32 = vpop.f32.mrf.mxu1 }
 0x219   : > { %v9256_v43 = vadd.f32 %v3017_v32, %v2736_v40  ;;  %v2770_v14 = vpop.f32.mrf.mxu0 }
 0x21a   : > { %v3019_v52 = vpop.f32.mrf.mxu1 }
 0x21b   : > { %v2771_v13 = vpop.f32.mrf.mxu0 }
 0x21c   : > { %v3020_v22 = vpop.f32.mrf.mxu1 }
 0x21d   : > { %v9258_v62 = vadd.f32 %v3020_v22, %v2739_v20  ;;  %v2773_v25 = vpop.f32.mrf.mxu0 }
 0x21e   : > { %v3022_v24 = vpop.f32.mrf.mxu1 }
 0x21f   : > { %11545 = vst [vmem:[#allocation6_spill] sm:$0xff] %v9258_v62 }
 0x221   : > { %v9260_v49 = vpop.f32.mrf.mxu0 }
 0x222   : > { %v3025_v17 = vpop.f32.mrf.mxu1 }
 0x223   : > { %v2778_v19 = vpop.f32.mrf.mxu0  ;;  %v9262_v29 = vadd.f32 %v3025_v17, %v2744_v45 }
 0x224   : > { %v3027_v2 = vpop.f32.mrf.mxu1 }
 0x225   : > { %11546 = vst [vmem:[#allocation7_spill] sm:$0xff] %v9262_v29  ;;  %v9264_v0 = vpop.f32.mrf.mxu0 }
 0x226   : > { %v3028_v47 = vpop.f32.mrf.mxu1 }
 0x227   : > { %v2781_v40 = vpop.f32.mrf.mxu0  ;;  %v9266_v6 = vadd.f32 %v3028_v47, %v2747_v42 }
 0x228   : > { %v3030_v46 = vpop.f32.mrf.mxu1 }
 0x229   : > { %11547 = vst [vmem:[#allocation8_spill] sm:$0xff] %v9266_v6  ;;  %v9268_v35 = vpop.f32.mrf.mxu0 }
 0x22a   : > { %v3033_v20 = vpop.f32.mrf.mxu1 }
 0x22b   : > { %v9270_v57 = vadd.f32 %v3033_v20, %v2752_v63  ;;  %v2786_v12 = vpop.f32.mrf.mxu0 }
 0x22c   : > { %v3035_v53 = vpop.f32.mrf.mxu1 }
 0x22d   : > { %11548 = vst [vmem:[#allocation9_spill] sm:$0xff] %v9270_v57  ;;  %v9272_v37 = vpop.f32.mrf.mxu0 }
 0x22e   : > { %v3036_v9 = vpop.f32.mrf.mxu1 }
 0x22f   : > { %v9274_v45 = vadd.f32 %v3036_v9, %v2755_v59  ;;  %v2789_v8 = vpop.f32.mrf.mxu0 }
 0x230   : > { %v3038_v56 = vpop.f32.mrf.mxu1 }
 0x231   : > { %11549 = vst [vmem:[#allocation10_spill] sm:$0xff] %v9274_v45 }
 0x232   : > { %v3041_v36 = vpop.f32.mrf.mxu1 }
 0x233   : > { %v9276_v21 = vadd.f32 %v3041_v36, %v2760_v48  ;;  %v4116_v42 = vpop.f32.mrf.mxu0 }
 0x234   : > { %v4243_v63 = vadd.f32 %v4116_v42, %v9184_v44  ;;  %v3043_v41 = vpop.f32.mrf.mxu1 }
 0x235   : > { %11550 = vst [vmem:[#allocation11_spill] sm:$0xff] %v9276_v21  ;;  %v4118_v31 = vpop.f32.mrf.mxu0 }
 0x236   : > { %v4282_v50 = vadd.f32 %v9281_v16, %v4243_v63  ;;  %v3044_v58 = vpop.f32.mrf.mxu1 }
 0x237   : > { %v9285_v59 = vadd.f32 %v3044_v58, %v2763_v4  ;;  %v4119_v54 = vpop.f32.mrf.mxu0 }
 0x238   : > { %v4314_v18 = vmax.f32 %v4282_v50, 0.0  ;;  %v4244_v48 = vadd.f32 %v4119_v54, %v9192_v7  ;;  %v3046_v28 = vpop.f32.mrf.mxu1 }
 0x239   : > { %11551 = vst [vmem:[#allocation12_spill] sm:$0xff] %v9285_v59  ;;  %v4121_v1 = vpop.f32.mrf.mxu0 }
 0x23a   : > { %v4346_v32 = vmin.f32 %v4314_v18, 6.0  ;;  %v4283_v14 = vadd.f32 %v9281_v16, %v4244_v48  ;;  %v3049_v52 = vpop.f32.mrf.mxu1 }
 0x23b   : > { %v9289_v22 = vadd.f32 %v3049_v52, %v2768_v5  ;;  %v4124_v44 = vpop.f32.mrf.mxu0 }
 0x23c   : > { %v4378_v25 = vmul.f32 0.0, %v4346_v32  ;;  %v4458_v24 = vmul.f32 0.75, %v4346_v32  ;;  %v4474_v17 = vmul.f32 0.25, %v4346_v32  ;;  %v4315_v19 = vmax.f32 %v4283_v14, 0.0  ;;  %v3051_v2 = vpop.f32.mrf.mxu1 }
 0x23d   : > { %11552 = vst [vmem:[#allocation13_spill] sm:$0xff] %v9289_v22  ;;  %v4245_v4 = vadd.f32 %v4124_v44, %v9199_v55  ;;  %v4126_v47 = vpop.f32.mrf.mxu0 }
 0x23e   : > { %v4410_v40 = vrot.slane %v4378_v25, 1  ;;  %v4506_v46 = vrot.slane %v4474_v17, 1  ;;  %v4570_v7 = vrot.slane %v4458_v24, 1  ;;  %v4347_v20 = vmin.f32 %v4315_v19, 6.0  ;;  %v3052_v12 = vpop.f32.mrf.mxu1 }
 0x23f   : > { %v4284_v53 = vadd.f32 %v9281_v16, %v4245_v4  ;;  %v9293_v9 = vadd.f32 %v3052_v12, %v2771_v13  ;;  %v4127_v5 = vpop.f32.mrf.mxu0 }
 0x240   : > { %v9295_v8 = vadd.f32 %v4506_v46, %v4458_v24  ;;  %v9297_v56 = vadd.f32 %v4570_v7, %v4474_v17  ;;  %v4618_v36 = vmul.f32 0.25, %v4347_v20  ;;  %v3054_v42 = vpop.f32.mrf.mxu1  ;;  %v4442_v55 = vadd.f32 %v4410_v40, %v4346_v32 }
 0x241   : > { %11553 = vst [vmem:[#allocation14_spill] sm:$0xff] %v9293_v9  ;;  %v4698_v63 = vmul.f32 0.75, %v4347_v20  ;;  %v4316_v41 = vmax.f32 %v4284_v53, 0.0  ;;  %v4246_v31 = vadd.f32 %v4127_v5, %v9206_v23  ;;  %v4129_v50 = vpop.f32.mrf.mxu0 }
 0x242   : > { %11554 = vst [vmem:[#allocation15_spill] sm:$0xff] %v9295_v8  ;;  %11555 = vst [vmem:[#allocation16_spill] sm:$0xff] %v9297_v56  ;;  %v4842_v58 = vrot.slane %v9295_v8, 7  ;;  %v4890_v54 = vrot.slane %v9297_v56, 6  ;;  %v4922_v13 = vrot.slane %v9295_v8, 6  ;;  %v4650_v18 = vrot.slane %v4618_v36, 1  ;;  %v3057_v48 = vpop.f32.mrf.mxu1 }
 0x243   : > { %v4730_v28 = vrot.slane %v4698_v63, 1  ;;  %v9303_v1 = vadd.f32 %v4698_v63, %v4618_v36  ;;  %v4348_v14 = vmin.f32 %v4316_v41, 6.0  ;;  %v4285_v52 = vadd.f32 %v9281_v16, %v4246_v31  ;;  %v4132_v32 = vpop.f32.mrf.mxu0 }
 0x244   : > { %v5275_v44 = vsel %vm5274_vm15, %v4442_v55, %v4842_v58  ;;  %v9307_v25 = vadd.f32 %v4650_v18, %v4458_v24  ;;  %v9309_v23 = vadd.f32 %v4698_v63, %v4650_v18  ;;  %v9312_v19 = vadd.f32 %v3057_v48, %v9260_v49  ;;  %v3059_v2 = vpop.f32.mrf.mxu1 }
 0x245   : > { %11556 = vst [vmem:[#allocation17_spill] sm:$0xff] %v9303_v1  ;;  %v5292_v4 = vsel %vm5291_vm0, %v5275_v44, %v4890_v54  ;;  %v4762_v47 = vadd.f32 %v4730_v28, %v4474_v17  ;;  %v9315_v40 = vadd.f32 %v4730_v28, %v4618_v36  ;;  %v4379_v46 = vmul.f32 0.0, %v4348_v14  ;;  %v4134_v7 = vpop.f32.mrf.mxu0 }
 0x246   : > { %11557 = vst [vmem:[#allocation18_spill] sm:$0xff] %v9307_v25  ;;  %11558 = vst [vmem:[#allocation19_spill] sm:$0xff] %v9309_v23  ;;  %v9318_v20 = vsel %vm1225_vm11, %v5292_v4, %v4922_v13  ;;  %v5569_v12 = vrot.slane %v9309_v23, 7  ;;  %v4459_v24 = vmul.f32 0.75, %v4348_v14  ;;  %v4475_v53 = vmul.f32 0.25, %v4348_v14  ;;  %v3060_v5 = vpop.f32.mrf.mxu1 }
 0x247   : > { %11559 = vst [vmem:[#allocation20_spill] sm:$0xff] %v9312_v19  ;;  %11560 = vst [vmem:[#allocation21_spill] sm:$0xff] %v9315_v40  ;;  %v5521_v42 = vrot.slane %v4762_v47, 7  ;;  %v5617_v49 = vrot.slane %v9315_v40, 6  ;;  %v4411_v55 = vrot.slane %v4379_v46, 1  ;;  %v4317_v63 = vmax.f32 %v4285_v52, 0.0  ;;  %v4135_v41 = vpop.f32.mrf.mxu0 }
 0x248   : > { %11561 = vst [vmem:[#allocation22_spill] sm:$0xff] %v9318_v20  ;;  %v4507_v31 = vrot.slane %v4475_v53, 1  ;;  %v4571_v17 = vrot.slane %v4459_v24, 1  ;;  %v4247_v36 = vadd.f32 %v4132_v32, %v9216_v3  ;;  %v9324_v50 = vadd.f32 %v3060_v5, %v9264_v0  ;;  %v3062_v58 = vpop.f32.mrf.mxu1 }
 0x249   : > { %v6001_v54 = vsel %vm5274_vm15, %v5521_v42, %v5569_v12  ;;  %v4443_v13 = vadd.f32 %v4411_v55, %v4348_v14  ;;  %v4349_v18 = vmin.f32 %v4317_v63, 6.0  ;;  %v4248_v48 = vadd.f32 %v4135_v41, %v9218_v39  ;;  %v4137_v28 = vpop.f32.mrf.mxu0 }
 0x24a   : > { %11562 = vst [vmem:[#allocation23_spill] sm:$0xff] %v9324_v50  ;;  %v9329_v44 = vsel %vm5291_vm0, %v6001_v54, %v5617_v49  ;;  %v9331_v52 = vadd.f32 %v4507_v31, %v4459_v24  ;;  %v9333_v2 = vadd.f32 %v4571_v17, %v4475_v53  ;;  %v4286_v3 = vadd.f32 %v9281_v16, %v4247_v36  ;;  %v3065_v32 = vpop.f32.mrf.mxu1 }
 0x24b   : > { %11563 = vst [vmem:[#allocation24_spill] sm:$0xff] %v9329_v44  ;;  %v4619_v0 = vmul.f32 0.25, %v4349_v18  ;;  %v4699_v4 = vmul.f32 0.75, %v4349_v18  ;;  %v4287_v47 = vadd.f32 %v9281_v16, %v4248_v48  ;;  %v9338_v14 = vadd.f32 %v3065_v32, %v9268_v35  ;;  %v4140_v46 = vpop.f32.mrf.mxu0 }
 0x24c   : > { %11564 = vst [vmem:[#allocation25_spill] sm:$0xff] %v9331_v52  ;;  %11565 = vst [vmem:[#allocation26_spill] sm:$0xff] %v9333_v2  ;;  %v4843_v39 = vrot.slane %v9331_v52, 7  ;;  %v4891_v7 = vrot.slane %v9333_v2, 6  ;;  %v4923_v12 = vrot.slane %v9331_v52, 6  ;;  %v4318_v5 = vmax.f32 %v4286_v3, 0.0  ;;  %v3067_v42 = vpop.f32.mrf.mxu1 }
 0x24d   : > { %11566 = vst [vmem:[#allocation27_spill] sm:$0xff] %v9338_v14  ;;  %v4651_v49 = vrot.slane %v4619_v0, 1  ;;  %v4731_v55 = vrot.slane %v4699_v4, 1  ;;  %v9343_v63 = vadd.f32 %v4699_v4, %v4619_v0  ;;  %v4319_v41 = vmax.f32 %v4287_v47, 0.0  ;;  %v4142_v31 = vpop.f32.mrf.mxu0 }
 0x24e   : > { %v5276_v17 = vsel %vm5274_vm15, %v4443_v13, %v4843_v39  ;;  %v4350_v36 = vmin.f32 %v4318_v5, 6.0  ;;  %v4249_v35 = vadd.f32 %v4140_v46, %v9224_v27  ;;  %v3068_v58 = vpop.f32.mrf.mxu1 }
 0x24f   : > { %v5293_v18 = vsel %vm5291_vm0, %v5276_v17, %v4891_v7  ;;  %v9349_v48 = vadd.f32 %v4651_v49, %v4459_v24  ;;  %v4763_v28 = vadd.f32 %v4731_v55, %v4475_v53  ;;  %v9351_v3 = vadd.f32 %v4699_v4, %v4651_v49  ;;  %v4143_v32 = vpop.f32.mrf.mxu0 }
 0x250   : > { %v9354_v42 = vsel %vm1225_vm11, %v5293_v18, %v4923_v12  ;;  %v9356_v47 = vadd.f32 %v4731_v55, %v4619_v0  ;;  %v4380_v13 = vmul.f32 0.0, %v4350_v36  ;;  %v4460_v39 = vmul.f32 0.75, %v4350_v36  ;;  %v3070_v5 = vpop.f32.mrf.mxu1 }
 0x251   : > { %11567 = vst [vmem:[#allocation28_spill] sm:$0xff] %v9349_v48  ;;  %11568 = vst [vmem:[#allocation29_spill] sm:$0xff] %v9354_v42  ;;  %v5522_v27 = vrot.slane %v4763_v28, 7  ;;  %v5570_v46 = vrot.slane %v9351_v3, 7  ;;  %v4476_v31 = vmul.f32 0.25, %v4350_v36  ;;  %v4351_v54 = vmin.f32 %v4319_v41, 6.0  ;;  %v4145_v7 = vpop.f32.mrf.mxu0 }
 0x252   : > { %v5618_v24 = vrot.slane %v9356_v47, 6  ;;  %v4412_v53 = vrot.slane %v4380_v13, 1  ;;  %v4572_v4 = vrot.slane %v4460_v39, 1  ;;  %v4288_v49 = vadd.f32 %v9281_v16, %v4249_v35 }
 0x253   : > { %v6002_v12 = vsel %vm5274_vm15, %v5522_v27, %v5570_v46  ;;  %v4508_v17 = vrot.slane %v4476_v31, 1  ;;  %v4620_v0 = vmul.f32 0.25, %v4351_v54  ;;  %v4700_v55 = vmul.f32 0.75, %v4351_v54  ;;  %v4148_v18 = vpop.f32.mrf.mxu0 }
 0x254   : > { %v9363_v5 = vsel %vm5291_vm0, %v6002_v12, %v5618_v24  ;;  %v4444_v28 = vadd.f32 %v4412_v53, %v4350_v36  ;;  %v9365_v14 = vadd.f32 %v4572_v4, %v4476_v31  ;;  %v4320_v41 = vmax.f32 %v4288_v49, 0.0 }
 0x255   : > { %v9367_v7 = vadd.f32 %v4508_v17, %v4460_v39  ;;  %v4652_v50 = vrot.slane %v4620_v0, 1  ;;  %v4732_v13 = vrot.slane %v4700_v55, 1  ;;  %v9369_v19 = vadd.f32 %v4700_v55, %v4620_v0  ;;  %v4150_v35 = vpop.f32.mrf.mxu0 }
 0x256   : > { %v4892_v27 = vrot.slane %v9365_v14, 6  ;;  %v4352_v46 = vmin.f32 %v4320_v41, 6.0  ;;  %v9373_v54 = vadd.f32 %v3068_v58, %v9272_v37  ;;  %v4250_v24 = vadd.f32 %v4143_v32, %v9230_v15 }
 0x257   : > { %v4844_v36 = vrot.slane %v9367_v7, 7  ;;  %v9377_v53 = vadd.f32 %v4652_v50, %v4460_v39  ;;  %v4764_v4 = vadd.f32 %v4732_v13, %v4476_v31  ;;  %v9379_v49 = vadd.f32 %v4700_v55, %v4652_v50  ;;  %v4151_v12 = vpop.f32.mrf.mxu0 }
 0x258   : > { %11569 = vst [vmem:[#allocation30_spill] sm:$0xff] %v9373_v54  ;;  %v9381_v17 = vadd.f32 %v4732_v13, %v4620_v0  ;;  %v4381_v9 = vmul.f32 0.0, %v4352_v46  ;;  %v4461_v35 = vmul.f32 0.75, %v4352_v46  ;;  %v4477_v22 = vmul.f32 0.25, %v4352_v46 }
 0x259   : > { %11570 = vst [vmem:[#allocation31_spill] sm:$0xff] %v9377_v53  ;;  %v5277_v41 = vsel %vm5274_vm15, %v4444_v28, %v4844_v36  ;;  %v5523_v59 = vrot.slane %v4764_v4, 7  ;;  %v5571_v37 = vrot.slane %v9379_v49, 7  ;;  %v4289_v15 = vadd.f32 %v9281_v16, %v4250_v24  ;;  %v4153_v58 = vpop.f32.mrf.mxu0 }
 0x25a   : > { %v9387_v32 = vsel %vm5291_vm0, %v5277_v41, %v4892_v27  ;;  %v5619_v50 = vrot.slane %v9381_v17, 6  ;;  %v4413_v39 = vrot.slane %v4381_v9, 1  ;;  %v4509_v31 = vrot.slane %v4477_v22, 1 }
 0x25b   : > { %11571 = vst [vmem:[#allocation32_spill] sm:$0xff] %v9387_v32  ;;  %v6003_v0 = vsel %vm5274_vm15, %v5523_v59, %v5571_v37  ;;  %v4573_v55 = vrot.slane %v4461_v35, 1  ;;  %v4321_v13 = vmax.f32 %v4289_v15, 0.0  ;;  %v4251_v54 = vadd.f32 %v4148_v18, %v9236_v30  ;;  %v4156_v28 = vpop.f32.mrf.mxu0 }
 0x25c   : > { %v9393_v36 = vsel %vm5291_vm0, %v6003_v0, %v5619_v50  ;;  %v4445_v4 = vadd.f32 %v4413_v39, %v4352_v46  ;;  %v9395_v24 = vadd.f32 %v4509_v31, %v4461_v35  ;;  %v4252_v27 = vadd.f32 %v4151_v12, %v9238_v11 }
 0x25d   : > { %v9398_v41 = vadd.f32 %v4573_v55, %v4477_v22  ;;  %v4353_v58 = vmin.f32 %v4321_v13, 6.0  ;;  %v4290_v9 = vadd.f32 %v9281_v16, %v4251_v54  ;;  %v4253_v59 = vadd.f32 %v4156_v28, %v9240_v60  ;;  %v4158_v37 = vpop.f32.mrf.mxu0 }
 0x25e   : > { %v4845_v15 = vrot.slane %v9395_v24, 7  ;;  %v4925_v30 = vrot.slane %v9395_v24, 6  ;;  %v4291_v18 = vadd.f32 %v9281_v16, %v4252_v27 }
 0x25f   : > { %v4893_v50 = vrot.slane %v9398_v41, 6  ;;  %v4621_v39 = vmul.f32 0.25, %v4353_v58  ;;  %v4701_v11 = vmul.f32 0.75, %v4353_v58  ;;  %v4322_v12 = vmax.f32 %v4290_v9, 0.0  ;;  %v4159_v31 = vpop.f32.mrf.mxu0 }
 0x260   : > { %v5278_v0 = vsel %vm5274_vm15, %v4445_v4, %v4845_v15  ;;  %v4323_v54 = vmax.f32 %v4291_v18, 0.0  ;;  %v4292_v60 = vadd.f32 %v9281_v16, %v4253_v59  ;;  %v4254_v55 = vadd.f32 %v4159_v31, %v9242_v33 }
 0x261   : > { %v5295_v13 = vsel %vm5291_vm0, %v5278_v0, %v4893_v50  ;;  %v4653_v28 = vrot.slane %v4621_v39, 1  ;;  %v4733_v37 = vrot.slane %v4701_v11, 1  ;;  %v9411_v27 = vadd.f32 %v4701_v11, %v4621_v39  ;;  %v4161_v46 = vpop.f32.mrf.mxu0 }
 0x262   : > { %v9414_v21 = vsel %vm1225_vm11, %v5295_v13, %v4925_v30  ;;  %v4354_v58 = vmin.f32 %v4322_v12, 6.0  ;;  %v4355_v9 = vmin.f32 %v4323_v54, 6.0  ;;  %v4324_v25 = vmax.f32 %v4292_v60, 0.0 }
 0x263   : > { %v9416_v45 = vadd.f32 %v4653_v28, %v4461_v35  ;;  %v4765_v4 = vadd.f32 %v4733_v37, %v4477_v22  ;;  %v9418_v15 = vadd.f32 %v4701_v11, %v4653_v28  ;;  %v9420_v59 = vadd.f32 %v4733_v37, %v4621_v39  ;;  %v4164_v33 = vpop.f32.mrf.mxu0 }
 0x264   : > { %v4382_v18 = vmul.f32 0.0, %v4354_v58  ;;  %v4462_v50 = vmul.f32 0.75, %v4354_v58  ;;  %v4478_v31 = vmul.f32 0.25, %v4354_v58  ;;  %v4622_v0 = vmul.f32 0.25, %v4355_v9 }
 0x265   : > { %v5524_v20 = vrot.slane %v4765_v4, 7  ;;  %v5572_v46 = vrot.slane %v9418_v15, 7  ;;  %v5620_v30 = vrot.slane %v9420_v59, 6  ;;  %v4702_v12 = vmul.f32 0.75, %v4355_v9  ;;  %v4166_v54 = vpop.f32.mrf.mxu0 }
 0x266   : > { %v4414_v60 = vrot.slane %v4382_v18, 1  ;;  %v4510_v35 = vrot.slane %v4478_v31, 1  ;;  %v4574_v13 = vrot.slane %v4462_v50, 1  ;;  %v4654_v22 = vrot.slane %v4622_v0, 1 }
 0x267   : > { %v6004_v11 = vsel %vm5274_vm15, %v5524_v20, %v5572_v46  ;;  %v4734_v39 = vrot.slane %v4702_v12, 1  ;;  %v9425_v28 = vadd.f32 %v4702_v12, %v4622_v0  ;;  %v4356_v37 = vmin.f32 %v4324_v25, 6.0  ;;  %v4167_v8 = vpop.f32.mrf.mxu0 }
 0x268   : > { %v9428_v56 = vsel %vm5291_vm0, %v6004_v11, %v5620_v30  ;;  %v4446_v4 = vadd.f32 %v4414_v60, %v4354_v58  ;;  %v9430_v57 = vadd.f32 %v4510_v35, %v4462_v50  ;;  %v9432_v1 = vadd.f32 %v4574_v13, %v4478_v31 }
 0x269   : > { %v9434_v9 = vadd.f32 %v4654_v22, %v4462_v50  ;;  %v4766_v18 = vadd.f32 %v4734_v39, %v4478_v31  ;;  %v9436_v54 = vadd.f32 %v4702_v12, %v4654_v22  ;;  %v9438_v6 = vadd.f32 %v4734_v39, %v4622_v0  ;;  %v4169_v20 = vpop.f32.mrf.mxu0 }
 0x26a   : > { %v4846_v46 = vrot.slane %v9430_v57, 7  ;;  %v4894_v25 = vrot.slane %v9432_v1, 6  ;;  %v4926_v30 = vrot.slane %v9430_v57, 6  ;;  %v4383_v11 = vmul.f32 0.0, %v4356_v37 }
 0x26b   : > { %v5525_v58 = vrot.slane %v4766_v18, 7  ;;  %v5573_v60 = vrot.slane %v9436_v54, 7  ;;  %v5621_v35 = vrot.slane %v9438_v6, 6  ;;  %v4463_v50 = vmul.f32 0.75, %v4356_v37  ;;  %v4172_v13 = vpop.f32.mrf.mxu0 }
 0x26c   : > { %v5279_v31 = vsel %vm5274_vm15, %v4446_v4, %v4846_v46  ;;  %v4415_v12 = vrot.slane %v4383_v11, 1  ;;  %v4479_v0 = vmul.f32 0.25, %v4356_v37  ;;  %v4293_v22 = vadd.f32 %v9281_v16, %v4254_v55 }
 0x26d   : > { %v5296_v39 = vsel %vm5291_vm0, %v5279_v31, %v4894_v25  ;;  %v6005_v20 = vsel %vm5274_vm15, %v5525_v58, %v5573_v60  ;;  %v4575_v44 = vrot.slane %v4463_v50, 1  ;;  %v4255_v40 = vadd.f32 %v4164_v33, %v9244_v51  ;;  %v4174_v18 = vpop.f32.mrf.mxu0 }
 0x26e   : > { %v9451_v23 = vsel %vm1225_vm11, %v5296_v39, %v4926_v30  ;;  %v9454_v29 = vsel %vm5291_vm0, %v6005_v20, %v5621_v35  ;;  %v4447_v53 = vadd.f32 %v4415_v12, %v4356_v37  ;;  %v4511_v4 = vrot.slane %v4479_v0, 1 }
 0x26f   : > { %v9456_v46 = vadd.f32 %v4575_v44, %v4479_v0  ;;  %v4325_v11 = vmax.f32 %v4293_v22, 0.0  ;;  %v4294_v55 = vadd.f32 %v9281_v16, %v4255_v40  ;;  %v4256_v25 = vadd.f32 %v4167_v8, %v9246_v34  ;;  %v4175_v58 = vpop.f32.mrf.mxu0 }
 0x270   : > { %v9460_v60 = vadd.f32 %v4511_v4, %v4463_v50  ;;  %v4257_v51 = vadd.f32 %v4172_v13, %v9248_v61  ;;  %v4258_v33 = vadd.f32 %v4175_v58, %v9250_v10  ;;  %v11602_v62 = vrot.slane %v9418_v15, 6 }
 0x271   : > { %11572 = vst [vmem:[#allocation33_spill] sm:$0xff] %v9456_v46  ;;  %v4895_v35 = vrot.slane %v9456_v46, 6  ;;  %v4357_v37 = vmin.f32 %v4325_v11, 6.0  ;;  %v4326_v31 = vmax.f32 %v4294_v55, 0.0  ;;  %v4295_v44 = vadd.f32 %v9281_v16, %v4256_v25  ;;  %v4177_v12 = vpop.f32.mrf.mxu0 }
 0x272   : > { %11573 = vst [vmem:[#allocation34_spill] sm:$0xff] %v9460_v60  ;;  %v4847_v40 = vrot.slane %v9460_v60, 7  ;;  %v4296_v34 = vadd.f32 %v9281_v16, %v4257_v51  ;;  %v4297_v8 = vadd.f32 %v9281_v16, %v4258_v33  ;;  %v6036_v42 = vsel %vm1225_vm11, %v9428_v56, %v11602_v62 }
 0x273   : > { %v4623_v61 = vmul.f32 0.25, %v4357_v37  ;;  %v4703_v13 = vmul.f32 0.75, %v4357_v37  ;;  %v4358_v10 = vmin.f32 %v4326_v31, 6.0  ;;  %v4327_v39 = vmax.f32 %v4295_v44, 0.0  ;;  %v4180_v11 = vpop.f32.mrf.mxu0 }
 0x274   : > { %v5280_v20 = vsel %vm5274_vm15, %v4447_v53, %v4847_v40  ;;  %v4328_v18 = vmax.f32 %v4296_v34, 0.0  ;;  %v4329_v4 = vmax.f32 %v4297_v8, 0.0  ;;  %v11603_v32 = vrot.slane %v9436_v54, 6 }
 0x275   : > { %v9474_v25 = vsel %vm5291_vm0, %v5280_v20, %v4895_v35  ;;  %v4655_v58 = vrot.slane %v4623_v61, 1  ;;  %v4735_v51 = vrot.slane %v4703_v13, 1  ;;  %v9476_v12 = vadd.f32 %v4703_v13, %v4623_v61  ;;  %v4182_v31 = vpop.f32.mrf.mxu0 }
 0x276   : > { %11574 = vst [vmem:[#allocation35_spill] sm:$0xff] %v9474_v25  ;;  %v4384_v33 = vmul.f32 0.0, %v4358_v10  ;;  %v4464_v22 = vmul.f32 0.75, %v4358_v10  ;;  %v4480_v30 = vmul.f32 0.25, %v4358_v10  ;;  %v4359_v37 = vmin.f32 %v4327_v39, 6.0 }
 0x277   : > { %11575 = vst [vmem:[#allocation36_spill] sm:$0xff] %v9476_v12  ;;  %v9478_v44 = vadd.f32 %v4655_v58, %v4463_v50  ;;  %v4767_v53 = vadd.f32 %v4735_v51, %v4479_v0  ;;  %v9480_v40 = vadd.f32 %v4703_v13, %v4655_v58  ;;  %v9482_v34 = vadd.f32 %v4735_v51, %v4623_v61  ;;  %v9484_v25 = vpop.f32.mrf.mxu0 }
 0x278   : > { %v4416_v8 = vrot.slane %v4384_v33, 1  ;;  %v4512_v55 = vrot.slane %v4480_v30, 1  ;;  %v4576_v35 = vrot.slane %v4464_v22, 1  ;;  %v4624_v20 = vmul.f32 0.25, %v4359_v37 }
 0x279   : > { %11576 = vst [vmem:[#allocation37_spill] sm:$0xff] %v9478_v44  ;;  %11577 = vst [vmem:[#allocation38_spill] sm:$0xff] %v9480_v40  ;;  %v5526_v46 = vrot.slane %v4767_v53, 7  ;;  %v5574_v60 = vrot.slane %v9480_v40, 7  ;;  %v5622_v12 = vrot.slane %v9482_v34, 6  ;;  %v4704_v39 = vmul.f32 0.75, %v4359_v37  ;;  %v4185_v61 = vpop.f32.mrf.mxu0 }
 0x27a   : > { %11578 = vst [vmem:[#allocation39_spill] sm:$0xff] %v9482_v34  ;;  %v4448_v31 = vadd.f32 %v4416_v8, %v4358_v10  ;;  %v9488_v50 = vadd.f32 %v4512_v55, %v4464_v22  ;;  %v9490_v0 = vadd.f32 %v4576_v35, %v4480_v30  ;;  %v4656_v13 = vrot.slane %v4624_v20, 1 }
 0x27b   : > { %v6006_v58 = vsel %vm5274_vm15, %v5526_v46, %v5574_v60  ;;  %v4736_v51 = vrot.slane %v4704_v39, 1  ;;  %v9493_v33 = vadd.f32 %v4704_v39, %v4624_v20  ;;  %v4360_v44 = vmin.f32 %v4328_v18, 6.0  ;;  %v9502_v55 = vpop.f32.mrf.mxu0 }
 0x27c   : > { %11579 = vst [vmem:[#allocation40_spill] sm:$0xff] %v9488_v50  ;;  %11580 = vst [vmem:[#allocation41_spill] sm:$0xff] %v9490_v0  ;;  %v9496_v53 = vsel %vm5291_vm0, %v6006_v58, %v5622_v12  ;;  %v4848_v40 = vrot.slane %v9488_v50, 7  ;;  %v4896_v37 = vrot.slane %v9490_v0, 6  ;;  %v9500_v10 = vadd.f32 %v4656_v13, %v4464_v22 }
 0x27d   : > { %11581 = vst [vmem:[#allocation42_spill] sm:$0xff] %v9493_v33  ;;  %11582 = vst [vmem:[#allocation43_spill] sm:$0xff] %v9496_v53  ;;  %v4768_v8 = vadd.f32 %v4736_v51, %v4480_v30  ;;  %v9504_v35 = vadd.f32 %v4704_v39, %v4656_v13  ;;  %v9506_v61 = vadd.f32 %v4736_v51, %v4624_v20  ;;  %v4385_v46 = vmul.f32 0.0, %v4360_v44  ;;  %v4190_v58 = vpop.f32.mrf.mxu0 }
 0x27e   : > { %11583 = vst [vmem:[#allocation44_spill] sm:$0xff] %v9500_v10  ;;  %v5281_v60 = vsel %vm5274_vm15, %v4448_v31, %v4848_v40  ;;  %v4465_v18 = vmul.f32 0.75, %v4360_v44  ;;  %v4481_v33 = vmul.f32 0.25, %v4360_v44  ;;  %v4361_v12 = vmin.f32 %v4329_v4, 6.0 }
 0x27f   : > { %11584 = vst [vmem:[#allocation45_spill] sm:$0xff] %v9504_v35  ;;  %11585 = vst [vmem:[#allocation46_spill] sm:$0xff] %v9506_v61  ;;  %v9510_v50 = vsel %vm5291_vm0, %v5281_v60, %v4896_v37  ;;  %v5527_v0 = vrot.slane %v4768_v8, 7  ;;  %v5575_v22 = vrot.slane %v9504_v35, 7  ;;  %v5623_v10 = vrot.slane %v9506_v61, 6  ;;  %v9514_v51 = vpop.f32.mrf.mxu0 }
 0x280   : > { %11586 = vst [vmem:[#allocation47_spill] sm:$0xff] %v9510_v50  ;;  %v4417_v30 = vrot.slane %v4385_v46, 1  ;;  %v4513_v39 = vrot.slane %v4481_v33, 1  ;;  %v4577_v13 = vrot.slane %v4465_v18, 1  ;;  %v4625_v20 = vmul.f32 0.25, %v4361_v12  ;;  %11587 = vst [vmem:[#allocation48_spill] sm:$0xff] %v9514_v51 }
 0x281   : > { %v6007_v40 = vsel %vm5274_vm15, %v5527_v0, %v5575_v22  ;;  %v4705_v31 = vmul.f32 0.75, %v4361_v12  ;;  %v4259_v4 = vadd.f32 %v4180_v11, %v9252_v26  ;;  %v4193_v46 = vpop.f32.mrf.mxu0  ;;  %v5748_v58 = vrot.slane %v9420_v59, 4 }
 0x282   : > { %v9520_v37 = vsel %vm5291_vm0, %v6007_v40, %v5623_v10  ;;  %v4449_v8 = vadd.f32 %v4417_v30, %v4360_v44  ;;  %v9522_v60 = vadd.f32 %v4513_v39, %v4465_v18  ;;  %v9524_v50 = vadd.f32 %v4577_v13, %v4481_v33 }
 0x283   : > { %11588 = vst [vmem:[#allocation49_spill] sm:$0xff] %v9520_v37  ;;  %v4657_v53 = vrot.slane %v4625_v20, 1  ;;  %v4737_v61 = vrot.slane %v4705_v31, 1  ;;  %v9526_v34 = vadd.f32 %v4705_v31, %v4625_v20  ;;  %v4298_v0 = vadd.f32 %v9281_v16, %v4259_v4 }
 0x284   : > { %11589 = vst [vmem:[#allocation50_spill] sm:$0xff] %v9522_v60  ;;  %11590 = vst [vmem:[#allocation51_spill] sm:$0xff] %v9524_v50  ;;  %v4849_v12 = vrot.slane %v9522_v60, 7  ;;  %v4897_v26 = vrot.slane %v9524_v50, 6  ;;  %v4929_v11 = vrot.slane %v9522_v60, 6  ;;  %v5716_v10 = vrot.slane %v9418_v15, 5  ;;  %v9539_v13 = vpop.f32.mrf.mxu0 }
 0x285   : > { %11591 = vst [vmem:[#allocation52_spill] sm:$0xff] %v9526_v34  ;;  %v9533_v44 = vadd.f32 %v4657_v53, %v4465_v18  ;;  %v4769_v22 = vadd.f32 %v4737_v61, %v4481_v33  ;;  %v9535_v30 = vadd.f32 %v4705_v31, %v4657_v53  ;;  %v9537_v39 = vadd.f32 %v4737_v61, %v4625_v20 }
 0x286   : > { %11595 = vst [vmem:[#allocation56_spill] sm:$0xff] %v9539_v13  ;;  %v5282_v40 = vsel %vm5274_vm15, %v4449_v8, %v4849_v12  ;;  %v4330_v4 = vmax.f32 %v4298_v0, 0.0  ;;  %v5717_v46 = vrot.slane %v9436_v54, 5  ;;  %v4198_v53 = vpop.f32.mrf.mxu0  ;;  %v5749_v31 = vrot.slane %v9438_v6, 4 }
 0x287   : > { %11592 = vst [vmem:[#allocation53_spill] sm:$0xff] %v9533_v44  ;;  %11593 = vst [vmem:[#allocation54_spill] sm:$0xff] %v9535_v30  ;;  %v5299_v60 = vsel %vm5291_vm0, %v5282_v40, %v4897_v26  ;;  %v5528_v50 = vrot.slane %v4769_v22, 7  ;;  %v5576_v18 = vrot.slane %v9535_v30, 7  ;;  %v5624_v33 = vrot.slane %v9537_v39, 6 }
 0x288   : > { %11594 = vst [vmem:[#allocation55_spill] sm:$0xff] %v9537_v39  ;;  %v9548_v61 = vsel %vm1225_vm11, %v5299_v60, %v4929_v11  ;;  %v4362_v20 = vmin.f32 %v4330_v4, 6.0  ;;  %v5780_v8 = vrot.slane %v9418_v15, 4  ;;  %v5781_v12 = vrot.slane %v9436_v54, 4  ;;  %v9556_v40 = vpop.f32.mrf.mxu0 }
 0x289   : > { %11596 = vst [vmem:[#allocation57_spill] sm:$0xff] %v9548_v61  ;;  %v6008_v0 = vsel %vm5274_vm15, %v5528_v50, %v5576_v18  ;;  %v5812_v26 = vrot.slane %v9420_v59, 3  ;;  %v5813_v22 = vrot.slane %v9438_v6, 3  ;;  %11597 = vst [vmem:[#allocation58_spill] sm:$0xff] %v9556_v40  ;;  %v5844_v50 = vrot.slane %v9418_v15, 3 }
 0x28a   : > { %v9559_v60 = vsel %vm5291_vm0, %v6008_v0, %v5624_v33  ;;  %v4386_v11 = vmul.f32 0.0, %v4362_v20  ;;  %v9561_v4 = vmul.f32 0.75, %v4362_v20  ;;  %v9563_v53 = vmul.f32 0.25, %v4362_v20  ;;  %v4201_v37 = vpop.f32.mrf.mxu0 }
 0x28b   : > { %11598 = vst [vmem:[#allocation59_spill] sm:$0xff] %v9559_v60  ;;  %v5845_v18 = vrot.slane %v9436_v54, 3  ;;  %v5876_v44 = vrot.slane %v9420_v59, 2  ;;  %v5877_v61 = vrot.slane %v9438_v6, 2  ;;  %v5908_v0 = vrot.slane %v9418_v15, 2 }
 0x28c   : > { %v4418_v35 = vrot.slane %v4386_v11, 1  ;;  %v4514_v34 = vrot.slane %v9563_v53, 1  ;;  %v4578_v33 = vrot.slane %v9561_v4, 1  ;;  %v5909_v60 = vrot.slane %v9436_v54, 2  ;;  %v9576_v13 = vpop.f32.mrf.mxu0 }
 0x28d   : > { %v5940_v39 = vrot.slane %v9420_v59, 1  ;;  %v5941_v30 = vrot.slane %v9438_v6, 1  ;;  %v5972_v40 = vrot.slane %v9418_v15, 1  ;;  %11599 = vst [vmem:[#allocation60_spill] sm:$0xff] %v9576_v13  ;;  %v5973_v51 = vrot.slane %v9436_v54, 1 }
 0x28e   : > { %v4450_v48 = vadd.f32 %v4418_v35, %v4362_v20  ;;  %v9579_v37 = vadd.f32 %v4514_v34, %v9561_v4  ;;  %v9582_v11 = vadd.f32 %v4578_v33, %v9563_v53  ;;  %v6037_v2 = vsel %vm1225_vm11, %v9454_v29, %v11603_v32  ;;  %v4206_v20 = vpop.f32.mrf.mxu0 }
 0x28f   : > { %v6116_v35 = vsel %vm5274_vm15, %v5812_v26, %v5844_v50  ;;  %v6117_v34 = vsel %vm5274_vm15, %v5813_v22, %v5845_v18  ;;  %v11604_v15 = vrot.slane %v9420_v59, 5  ;;  %v11605_v56 = vrot.slane %v9438_v6, 5 }
 0x290   : > { %11600 = vst [vmem:[#allocation61_spill] sm:$0xff] %v9579_v37  ;;  %11601 = vst [vmem:[#allocation62_spill] sm:$0xff] %v9582_v11  ;;  %v4850_v33 = vrot.slane %v9579_v37, 7  ;;  %v4898_v13 = vrot.slane %v9582_v11, 6  ;;  %v4930_v52 = vrot.slane %v9579_v37, 6  ;;  %v6132_v32 = vsel %vm5291_vm0, %v6116_v35, %v5876_v44  ;;  %v9607_v22 = vpop.f32.mrf.mxu0 }
 0x291   : > { %v6052_v62 = vsel %vm5325_vm1, %v6036_v42, %v11604_v15  ;;  %v6053_v54 = vsel %vm5325_vm1, %v6037_v2, %v11605_v56  ;;  %v6133_v26 = vsel %vm5291_vm0, %v6117_v34, %v5877_v61  ;;  %v6148_v42 = vsel %vm1225_vm11, %v6132_v32, %v5908_v0 }
 0x292   : > { %v6068_v29 = vsel %vm5342_vm2, %v6052_v62, %v5716_v10  ;;  %v5283_v50 = vsel %vm5274_vm15, %v4450_v48, %v4850_v33  ;;  %v6069_v18 = vsel %vm5342_vm2, %v6053_v54, %v5717_v46  ;;  %v6149_v44 = vsel %vm1225_vm11, %v6133_v26, %v5909_v60  ;;  %v4209_v61 = vpop.f32.mrf.mxu0 }
 0x293   : > { %v6084_v20 = vsel %vm5359_vm3, %v6068_v29, %v5748_v58  ;;  %v5300_v15 = vsel %vm5291_vm0, %v5283_v50, %v4898_v13  ;;  %v6085_v2 = vsel %vm5359_vm3, %v6069_v18, %v5749_v31  ;;  %v6164_v58 = vsel %vm5325_vm1, %v6148_v42, %v5940_v39 }
 0x294   : > { %v9616_v10 = vsel %vm5376_vm4, %v6084_v20, %v5780_v8  ;;  %v9620_v35 = vsel %vm1225_vm11, %v5300_v15, %v4930_v52  ;;  %v9623_v48 = vsel %vm5376_vm4, %v6085_v2, %v5781_v12  ;;  %v6165_v46 = vsel %vm5325_vm1, %v6149_v44, %v5941_v30 }
 0x295   : > { %11606 = vst [vmem:[#allocation63_spill] sm:$0xff] %v9620_v35  ;;  %11607 = vst [vmem:[#allocation64_spill] sm:$0xff] %v9623_v48  ;;  %v6180_v13 = vsel %vm5342_vm2, %v6164_v58, %v5972_v40  ;;  %v6181_v31 = vsel %vm5342_vm2, %v6165_v46, %v5973_v51  ;;  %v9630_v8 = vmul.f32 0.75, %v9616_v10  ;;  %v9633_v60 = vmul.f32 0.25, %v9623_v48  ;;  %v9641_v0 = vpop.f32.mrf.mxu0 }
 0x296   : > { %v6196_v52 = vsel %vm5359_vm3, %v6180_v13, %v9420_v59  ;;  %v6197_v12 = vsel %vm5359_vm3, %v6181_v31, %v9438_v6  ;;  %v5651_v39 = vrot.slane %v9379_v49, 6  ;;  %v5682_v30 = vrot.slane %v9356_v47, 5 }
 0x297   : > { %11608 = vst [vmem:[#allocation65_spill] sm:$0xff] %v9633_v60  ;;  %v9645_v51 = vsel %vm5376_vm4, %v6196_v52, %v9411_v27  ;;  %v9649_v40 = vsel %vm5376_vm4, %v6197_v12, %v9425_v28  ;;  %v6295_v59 = vadd.f32 %v9633_v60, %v9630_v8  ;;  %v5683_v34 = vrot.slane %v9381_v17, 5  ;;  %v4214_v56 = vpop.f32.mrf.mxu0 }
 0x298   : > { %11609 = vst [vmem:[#allocation66_spill] sm:$0xff] %v9649_v40  ;;  %v9655_v6 = vmul.f32 0.75, %v9645_v51  ;;  %v9658_v33 = vmul.f32 0.25, %v9649_v40  ;;  %v5714_v62 = vrot.slane %v9351_v3, 5  ;;  %v5715_v27 = vrot.slane %v9379_v49, 5 }
 0x299   : > { %v5746_v54 = vrot.slane %v9356_v47, 4  ;;  %v5747_v28 = vrot.slane %v9381_v17, 4  ;;  %v5778_v29 = vrot.slane %v9351_v3, 4  ;;  %v5779_v32 = vrot.slane %v9379_v49, 4  ;;  %v9671_v42 = vpop.f32.mrf.mxu0 }
 0x29a   : > { %11610 = vst [vmem:[#allocation67_spill] sm:$0xff] %v9658_v33  ;;  %v6296_v26 = vadd.f32 %v9658_v33, %v9655_v6  ;;  %v5810_v50 = vrot.slane %v9356_v47, 3  ;;  %v5811_v18 = vrot.slane %v9381_v17, 3  ;;  %v5842_v20 = vrot.slane %v9351_v3, 3 }
 0x29b   : > { %v5843_v15 = vrot.slane %v9379_v49, 3  ;;  %v5874_v2 = vrot.slane %v9356_v47, 2  ;;  %v5875_v44 = vrot.slane %v9381_v17, 2  ;;  %v5906_v61 = vrot.slane %v9351_v3, 2  ;;  %v4217_v52 = vpop.f32.mrf.mxu0 }
 0x29c   : > { %v6500_v58 = vpack.c.bf16 %v6296_v26, %v6295_v59  ;;  %v5907_v46 = vrot.slane %v9379_v49, 2  ;;  %v5938_v13 = vrot.slane %v9356_v47, 1  ;;  %v5939_v31 = vrot.slane %v9381_v17, 1 }
 0x29d   : > { %v5970_v12 = vrot.slane %v9351_v3, 1  ;;  %v5971_v56 = vrot.slane %v9379_v49, 1  ;;  %v11611_v40 = vrot.slane %v9351_v3, 6  ;;  %v6035_v33 = vsel %vm1225_vm11, %v9393_v36, %v5651_v39 }
 0x29e   : > { %7406 = vmatprep.subr.msk.bf16.mxu1 %vm1532_vm13, %v6500_v58  ;;  %v6051_v26 = vsel %vm5325_vm1, %v6035_v33, %v5683_v34  ;;  %v6114_v52 = vsel %vm5274_vm15, %v5810_v50, %v5842_v20  ;;  %v6115_v60 = vsel %vm5274_vm15, %v5811_v18, %v5843_v15  ;;  %v9693_v35 = vpop.f32.mrf.mxu0  ;;  %v4260_v15 = vadd.f32 %v9484_v25, %v9254_v38 }
 0x29f   : > { %v6034_v48 = vsel %vm1225_vm11, %v9363_v5, %v11611_v40  ;;  %v6067_v49 = vsel %vm5342_vm2, %v6051_v26, %v5715_v27  ;;  %v6130_v5 = vsel %vm5291_vm0, %v6114_v52, %v5874_v2  ;;  %v6131_v36 = vsel %vm5291_vm0, %v6115_v60, %v5875_v44 }
 0x2a0   : > { %v6050_v59 = vsel %vm5325_vm1, %v6034_v48, %v5682_v30  ;;  %v6083_v48 = vsel %vm5359_vm3, %v6067_v49, %v5747_v28  ;;  %v6146_v30 = vsel %vm1225_vm11, %v6130_v5, %v5906_v61  ;;  %v6147_v40 = vsel %vm1225_vm11, %v6131_v36, %v5907_v46  ;;  %v4222_v34 = vpop.f32.mrf.mxu0 }
 0x2a1   : > { %v6066_v3 = vsel %vm5342_vm2, %v6050_v59, %v5714_v62  ;;  %v9707_v62 = vsel %vm5376_vm4, %v6083_v48, %v5779_v32  ;;  %v6162_v27 = vsel %vm5325_vm1, %v6146_v30, %v5938_v13  ;;  %v6163_v50 = vsel %vm5325_vm1, %v6147_v40, %v5939_v31 }
 0x2a2   : > { %v6082_v39 = vsel %vm5359_vm3, %v6066_v3, %v5746_v54  ;;  %v6178_v60 = vsel %vm5342_vm2, %v6162_v27, %v5970_v12  ;;  %v6179_v54 = vsel %vm5342_vm2, %v6163_v50, %v5971_v56  ;;  %v9717_v18 = vmul.f32 0.25, %v9707_v62  ;;  %v9719_v20 = vpop.f32.mrf.mxu0 }
 0x2a3   : > { %v9704_v33 = vsel %vm5376_vm4, %v6082_v39, %v5778_v29  ;;  %v6194_v29 = vsel %vm5359_vm3, %v6178_v60, %v9356_v47  ;;  %v6195_v32 = vsel %vm5359_vm3, %v6179_v54, %v9381_v17  ;;  %v4957_v2 = vrot.slane %v9398_v41, 5 }
 0x2a4   : > { %v9714_v28 = vmul.f32 0.75, %v9704_v33  ;;  %v9730_v44 = vsel %vm5376_vm4, %v6194_v29, %v9343_v63  ;;  %v9734_v61 = vsel %vm5376_vm4, %v6195_v32, %v9369_v19  ;;  %v4958_v47 = vrot.slane %v9432_v1, 5  ;;  %v4225_v46 = vpop.f32.mrf.mxu0 }
 0x2a5   : > { %v9740_v17 = vmul.f32 0.75, %v9730_v44  ;;  %v9743_v38 = vmul.f32 0.25, %v9734_v61  ;;  %v4299_v25 = vadd.f32 %v9281_v16, %v4260_v15  ;;  %v4989_v63 = vrot.slane %v9395_v24, 5 }
 0x2a6   : > { %v6263_v58 = vadd.f32 %v9717_v18, %v9714_v28  ;;  %v4990_v13 = vrot.slane %v9430_v57, 5  ;;  %v5021_v19 = vrot.slane %v9398_v41, 4  ;;  %v5022_v31 = vrot.slane %v9432_v1, 4 }
 0x2a7   : > { %v5053_v12 = vrot.slane %v9395_v24, 4  ;;  %v6264_v56 = vadd.f32 %v9743_v38, %v9740_v17  ;;  %v4331_v59 = vmax.f32 %v4299_v25, 0.0  ;;  %v5054_v26 = vrot.slane %v9430_v57, 4  ;;  %v9755_v3 = vpop.f32.mrf.mxu0 }
 0x2a8   : > { %v5085_v52 = vrot.slane %v9398_v41, 3  ;;  %v5086_v16 = vrot.slane %v9432_v1, 3  ;;  %v5117_v49 = vrot.slane %v9395_v24, 3  ;;  %v5118_v5 = vrot.slane %v9430_v57, 3 }
 0x2a9   : > { %v5149_v36 = vrot.slane %v9398_v41, 2  ;;  %v6492_v39 = vpack.c.bf16 %v6264_v56, %v6263_v58  ;;  %v4363_v48 = vmin.f32 %v4331_v59, 6.0  ;;  %v5150_v30 = vrot.slane %v9432_v1, 2  ;;  %v4230_v34 = vpop.f32.mrf.mxu0 }
 0x2aa   : > { %v5181_v40 = vrot.slane %v9395_v24, 2  ;;  %v5182_v27 = vrot.slane %v9430_v57, 2  ;;  %v5213_v50 = vrot.slane %v9398_v41, 1  ;;  %v5214_v60 = vrot.slane %v9432_v1, 1 }
 0x2ab   : > { %v5245_v54 = vrot.slane %v9395_v24, 1  ;;  %v6575_v29 = vsel %vm1532_vm13, %v6492_v39, 0  ;;  %v4626_v32 = vmul.f32 0.25, %v4363_v48  ;;  %v4706_v15 = vmul.f32 0.75, %v4363_v48  ;;  %v9769_v46 = vpop.f32.mrf.mxu0 }
 0x2ac   : > { %v5246_v58 = vrot.slane %v9430_v57, 1  ;;  %7335 = vmatpush3.bf16.xpose.msra.mxu1 %v6575_v29  ;;  %v5329_v25 = vsel %vm5325_vm1, %v9414_v21, %v4957_v2  ;;  %v5330_v56 = vsel %vm5325_vm1, %v9451_v23, %v4958_v47  ;;  %v5396_v59 = vsel %vm5274_vm15, %v5085_v52, %v5117_v49 }
 0x2ad   : > { %v5397_v34 = vsel %vm5274_vm15, %v5086_v16, %v5118_v5  ;;  %v4658_v24 = vrot.slane %v4626_v32, 1  ;;  %v4738_v37 = vrot.slane %v4706_v15, 1  ;;  %v9777_v39 = vadd.f32 %v4706_v15, %v4626_v32  ;;  %v4233_v57 = vpop.f32.mrf.mxu0 }
 0x2ae   : > { %v5346_v48 = vsel %vm5342_vm2, %v5329_v25, %v4989_v63  ;;  %v5347_v11 = vsel %vm5342_vm2, %v5330_v56, %v4990_v13  ;;  %v5412_v21 = vsel %vm5291_vm0, %v5396_v59, %v5149_v36  ;;  %v5413_v2 = vsel %vm5291_vm0, %v5397_v34, %v5150_v30 }
 0x2af   : > { %11612 = vst [vmem:[#allocation68_spill] sm:$0xff] %v9777_v39  ;;  %v5363_v29 = vsel %vm5359_vm3, %v5346_v48, %v5021_v19  ;;  %v9785_v23 = vadd.f32 %v4658_v24, %v9561_v4  ;;  %v4770_v47 = vadd.f32 %v4738_v37, %v9563_v53  ;;  %v9788_v52 = vadd.f32 %v4706_v15, %v4658_v24  ;;  %v9798_v5 = vpop.f32.mrf.mxu0  ;;  %v11624_v48 = vld [vmem:[#allocation25_spill] sm:$0xff] }
 0x2b0   : > { %v9790_v16 = vadd.f32 %v4738_v37, %v4626_v32  ;;  %v5364_v63 = vsel %vm5359_vm3, %v5347_v11, %v5022_v31  ;;  %v9794_v49 = vsel %vm5376_vm4, %v5363_v29, %v5053_v12  ;;  %v5428_v13 = vsel %vm1225_vm11, %v5412_v21, %v5181_v40  ;;  %11616 = vst [vmem:[#allocation72_spill] sm:$0xff] %v9798_v5  ;;  %v9808_v37 = vld [vmem:[%s11402_s3] sm:$0xf] }
 0x2b1   : > { %11613 = vst [vmem:[#allocation69_spill] sm:$0xff] %v9785_v23  ;;  %11614 = vst [vmem:[#allocation70_spill] sm:$0xff] %v9788_v52  ;;  %v5429_v19 = vsel %vm1225_vm11, %v5413_v2, %v5182_v27  ;;  %v5529_v36 = vrot.slane %v4770_v47, 7  ;;  %v5577_v4 = vrot.slane %v9788_v52, 7  ;;  %v9803_v30 = vsel %vm5376_vm4, %v5364_v63, %v5054_v26  ;;  %v4238_v27 = vpop.f32.mrf.mxu0  ;;  %7350 = vmatprep.mubr.msk.bf16.mxu1 %vm1532_vm13, %v9808_v37  ;;  %v11625_v2 = vld [vmem:[#allocation26_spill] sm:$0xff]  ;;  %v11626_v23 = vld [vmem:[#allocation32_spill] sm:$0xff] }
 0x2b2   : > { %11615 = vst [vmem:[#allocation71_spill] sm:$0xff] %v9790_v16  ;;  %v5625_v53 = vrot.slane %v9790_v16, 6  ;;  %11617 = vst [vmem:[#allocation73_spill] sm:$0xff] %v9803_v30  ;;  %v5444_v11 = vsel %vm5325_vm1, %v5428_v13, %v5213_v50  ;;  %v5445_v31 = vsel %vm5325_vm1, %v5429_v19, %v5214_v60  ;;  %v9813_v12 = vmul.f32 0.75, %v9794_v49  ;;  %7386 = vmatprep.mubr.msk.bf16.mxu0 %vm1532_vm13, %v9808_v37 }
 0x2b3   : > { %11618 = vst [vmem:[#allocation74_spill] sm:$0xff] %v9808_v37  ;;  %v9816_v40 = vmul.f32 0.25, %v9803_v30  ;;  %v6009_v26 = vsel %vm5274_vm15, %v5529_v36, %v5577_v4  ;;  %v5460_v32 = vsel %vm5342_vm2, %v5444_v11, %v5245_v54  ;;  %v5461_v50 = vsel %vm5342_vm2, %v5445_v31, %v5246_v58  ;;  %v9836_v34 = vpop.f32.mrf.mxu0  ;;  %v11628_v37 = vld [vmem:[#allocation29_spill] sm:$0xff] }
 0x2b4   : > { %v4261_v60 = vadd.f32 %v9502_v55, %v9256_v43  ;;  %v9828_v15 = vsel %vm5291_vm0, %v6009_v26, %v5625_v53  ;;  %v5476_v25 = vsel %vm5359_vm3, %v5460_v32, %v9398_v41  ;;  %v5477_v56 = vsel %vm5359_vm3, %v5461_v50, %v9432_v1  ;;  %11621 = vst [vmem:[#allocation77_spill] sm:$0xff] %v9836_v34  ;;  %v9849_v41 = vld [vmem:[%s11401_s2] ss:$0 sm:$0xff] }
 0x2b5   : > { %11619 = vst [vmem:[#allocation75_spill] sm:$0xff] %v9816_v40  ;;  %11620 = vst [vmem:[#allocation76_spill] sm:$0xff] %v9828_v15  ;;  %v6293_v59 = vadd.f32 %v9816_v40, %v9813_v12  ;;  %v9840_v54 = vsel %vm5376_vm4, %v5476_v25, %v9416_v45  ;;  %v9844_v43 = vsel %vm5376_vm4, %v5477_v56, %v9434_v9  ;;  %v4924_v55 = vrot.slane %v9367_v7, 6  ;;  %v4241_v57 = vpop.f32.mrf.mxu0 }
 0x2b6   : > { %11622 = vst [vmem:[#allocation78_spill] sm:$0xff] %v9844_v43  ;;  %v4300_v1 = vadd.f32 %v9849_v41, %v4261_v60  ;;  %v9854_v58 = vmul.f32 0.75, %v9840_v54  ;;  %v9857_v24 = vmul.f32 0.25, %v9844_v43  ;;  %v4956_v45 = vrot.slane %v9365_v14, 5 }
 0x2b7   : > { %v4987_v9 = vrot.slane %v11624_v48, 5  ;;  %v4988_v21 = vrot.slane %v9367_v7, 5  ;;  %v5019_v47 = vrot.slane %v11625_v2, 4  ;;  %v5020_v63 = vrot.slane %v9365_v14, 4 }
 0x2b8   : > { %11623 = vst [vmem:[#allocation79_spill] sm:$0xff] %v9857_v24  ;;  %v4332_v29 = vmax.f32 %v4300_v1, 0.0  ;;  %v6294_v13 = vadd.f32 %v9857_v24, %v9854_v58  ;;  %v5051_v19 = vrot.slane %v11624_v48, 4  ;;  %v5052_v36 = vrot.slane %v9367_v7, 4 }
 0x2b9   : > { %v5083_v4 = vrot.slane %v11625_v2, 3  ;;  %v5084_v11 = vrot.slane %v9365_v14, 3  ;;  %v5115_v31 = vrot.slane %v11624_v48, 3  ;;  %v5116_v27 = vrot.slane %v9367_v7, 3 }
 0x2ba   : > { %v4364_v53 = vmin.f32 %v4332_v29, 6.0  ;;  %v6499_v26 = vpack.c.bf16 %v6294_v13, %v6293_v59  ;;  %v5147_v32 = vrot.slane %v11625_v2, 2  ;;  %v5148_v50 = vrot.slane %v9365_v14, 2 }
 0x2bb   : > { %v5179_v60 = vrot.slane %v11624_v48, 2  ;;  %v5180_v57 = vrot.slane %v9367_v7, 2  ;;  %v5211_v29 = vrot.slane %v11625_v2, 1  ;;  %v5212_v43 = vrot.slane %v9365_v14, 1 }
 0x2bc   : > { %v4387_v25 = vmul.f32 0.0, %v4364_v53  ;;  %v9875_v56 = vmul.f32 0.75, %v4364_v53  ;;  %v9877_v1 = vmul.f32 0.25, %v4364_v53  ;;  %7407 = vmatprep.subr.msk.bf16.mxu1 %vm1532_vm13, %v6499_v26  ;;  %v5243_v59 = vrot.slane %v11624_v48, 1 }
 0x2bd   : > { %v5244_v13 = vrot.slane %v9367_v7, 1  ;;  %v5311_v39 = vsel %vm1225_vm11, %v11626_v23, %v4924_v55  ;;  %v11627_v15 = vrot.slane %v11625_v2, 5  ;;  %v5394_v52 = vsel %vm5274_vm15, %v5083_v4, %v5115_v31 }
 0x2be   : > { %v4419_v30 = vrot.slane %v4387_v25, 1  ;;  %v4515_v24 = vrot.slane %v9877_v1, 1  ;;  %v4579_v40 = vrot.slane %v9875_v56, 1  ;;  %v5328_v16 = vsel %vm5325_vm1, %v5311_v39, %v4956_v45 }
 0x2bf   : > { %v5327_v26 = vsel %vm5325_vm1, %v11628_v37, %v11627_v15  ;;  %v5395_v48 = vsel %vm5274_vm15, %v5084_v11, %v5116_v27  ;;  %v5345_v55 = vsel %vm5342_vm2, %v5328_v16, %v4988_v21  ;;  %v5410_v37 = vsel %vm5291_vm0, %v5394_v52, %v5147_v32  ;;  %v11633_v11 = vld [vmem:[#allocation48_spill] sm:$0xff] }
 0x2c0   : > { %v4451_v7 = vadd.f32 %v4419_v30, %v4364_v53  ;;  %v9897_v25 = vadd.f32 %v4515_v24, %v9875_v56  ;;  %v9900_v34 = vadd.f32 %v4579_v40, %v9877_v1  ;;  %v5344_v23 = vsel %vm5342_vm2, %v5327_v26, %v4987_v9  ;;  %v11632_v53 = vld [vmem:[#allocation6_spill] sm:$0xff] }
 0x2c1   : > { %v5361_v5 = vsel %vm5359_vm3, %v5344_v23, %v5019_v47  ;;  %v5411_v39 = vsel %vm5291_vm0, %v5395_v48, %v5148_v50  ;;  %v5362_v24 = vsel %vm5359_vm3, %v5345_v55, %v5020_v63  ;;  %v5426_v16 = vsel %vm1225_vm11, %v5410_v37, %v5179_v60  ;;  %v11634_v60 = vld [vmem:[#allocation28_spill] sm:$0xff] }
 0x2c2   : > { %11629 = vst [vmem:[#allocation25_spill] sm:$0xff] %v9897_v25  ;;  %11630 = vst [vmem:[#allocation26_spill] sm:$0xff] %v9900_v34  ;;  %v4851_v15 = vrot.slane %v9897_v25, 7  ;;  %v4899_v30 = vrot.slane %v9900_v34, 6  ;;  %v9911_v45 = vsel %vm5376_vm4, %v5361_v5, %v5051_v19  ;;  %v9914_v40 = vsel %vm5376_vm4, %v5362_v24, %v5052_v36  ;;  %v11701_v25 = vld [vmem:[#allocation76_spill] sm:$0xff] }
 0x2c3   : > { %v5427_v9 = vsel %vm1225_vm11, %v5411_v39, %v5180_v57  ;;  %v9919_v52 = vmul.f32 0.75, %v9911_v45  ;;  %v5442_v47 = vsel %vm5325_vm1, %v5426_v16, %v5211_v29  ;;  %v9925_v63 = vmul.f32 0.25, %v9914_v40  ;;  %v11635_v29 = vld [vmem:[#allocation31_spill] sm:$0xff]  ;;  %v11639_v39 = vld [vmem:[#allocation21_spill] sm:$0xff] }
 0x2c4   : > { %v5284_v21 = vsel %vm5274_vm15, %v4451_v7, %v4851_v15  ;;  %v5443_v4 = vsel %vm5325_vm1, %v5427_v9, %v5212_v43  ;;  %v5458_v19 = vsel %vm5342_vm2, %v5442_v47, %v5243_v59  ;;  %v4262_v31 = vadd.f32 %v11633_v11, %v11632_v53  ;;  %v11638_v7 = vld [vmem:[#allocation19_spill] sm:$0xff] }
 0x2c5   : > { %v9928_v5 = vsel %vm5291_vm0, %v5284_v21, %v4899_v30  ;;  %v5459_v36 = vsel %vm5342_vm2, %v5443_v4, %v5244_v13  ;;  %v5474_v27 = vsel %vm5359_vm3, %v5458_v19, %v11625_v2  ;;  %v6261_v43 = vadd.f32 %v9925_v63, %v9919_v52 }
 0x2c6   : > { %11631 = vst [vmem:[#allocation32_spill] sm:$0xff] %v9928_v5  ;;  %v5475_v32 = vsel %vm5359_vm3, %v5459_v36, %v9365_v14  ;;  %v6287_v50 = vadd.f32 %v9630_v8, %v9717_v18  ;;  %v9944_v57 = vsel %vm5376_vm4, %v5474_v27, %v11634_v60  ;;  %v4301_v13 = vadd.f32 %v9849_v41, %v4262_v31  ;;  %v11636_v8 = vld [vmem:[#allocation7_spill] sm:$0xff]  ;;  %v11637_v18 = vld [vmem:[#allocation56_spill] sm:$0xff] }
 0x2c7   : > { %v9948_v59 = vsel %vm5376_vm4, %v5475_v32, %v11635_v29  ;;  %v6288_v2 = vadd.f32 %v9655_v6, %v9743_v38  ;;  %v9954_v14 = vmul.f32 0.75, %v9944_v57  ;;  %v4263_v48 = vadd.f32 %v11637_v18, %v11636_v8 }
 0x2c8   : > { %v9957_v26 = vmul.f32 0.25, %v9948_v59  ;;  %v5649_v23 = vrot.slane %v11638_v7, 6  ;;  %v4333_v55 = vmax.f32 %v4301_v13, 0.0  ;;  %v5681_v15 = vrot.slane %v11639_v39, 5 }
 0x2c9   : > { %v6498_v37 = vpack.c.bf16 %v6288_v2, %v6287_v50  ;;  %v5713_v30 = vrot.slane %v11638_v7, 5  ;;  %v4302_v38 = vadd.f32 %v9849_v41, %v4263_v48  ;;  %v5745_v24 = vrot.slane %v11639_v39, 4  ;;  %v11640_v50 = vld [vmem:[#allocation24_spill] sm:$0xff] }
 0x2ca   : > { %v6262_v6 = vadd.f32 %v9957_v26, %v9954_v14  ;;  %v5777_v16 = vrot.slane %v11638_v7, 4  ;;  %v4365_v9 = vmin.f32 %v4333_v55, 6.0  ;;  %v5809_v21 = vrot.slane %v11639_v39, 3 }
 0x2cb   : > { %v5841_v47 = vrot.slane %v11638_v7, 3  ;;  %v5873_v4 = vrot.slane %v11639_v39, 2  ;;  %v4334_v36 = vmax.f32 %v4302_v38, 0.0  ;;  %v5905_v53 = vrot.slane %v11638_v7, 2 }
 0x2cc   : > { %v6491_v19 = vpack.c.bf16 %v6262_v6, %v6261_v43  ;;  %v5937_v11 = vrot.slane %v11639_v39, 1  ;;  %v4627_v31 = vmul.f32 0.25, %v4365_v9  ;;  %v4707_v27 = vmul.f32 0.75, %v4365_v9 }
 0x2cd   : > { %v5969_v32 = vrot.slane %v11638_v7, 1  ;;  %v6033_v60 = vsel %vm1225_vm11, %v11640_v50, %v5649_v23  ;;  %v4366_v13 = vmin.f32 %v4334_v36, 6.0  ;;  %v6113_v8 = vsel %vm5274_vm15, %v5809_v21, %v5841_v47 }
 0x2ce   : > { %v6572_v29 = vsel %vm1532_vm13, %v6491_v19, 0  ;;  %v6049_v2 = vsel %vm5325_vm1, %v6033_v60, %v5681_v15  ;;  %v4659_v43 = vrot.slane %v4627_v31, 1  ;;  %v4739_v18 = vrot.slane %v4707_v27, 1 }
 0x2cf   : > { %7337 = vmatpush3.bf16.xpose.msra.mxu1 %v6572_v29  ;;  %v9980_v48 = vadd.f32 %v4707_v27, %v4627_v31  ;;  %v6065_v55 = vsel %vm5342_vm2, %v6049_v2, %v5713_v30  ;;  %v4388_v7 = vmul.f32 0.0, %v4366_v13  ;;  %v9984_v6 = vmul.f32 0.75, %v4366_v13 }
 0x2d0   : > { %7408 = vmatprep.subr.msk.bf16.mxu1 %vm1532_vm13, %v6498_v37  ;;  %v9986_v23 = vmul.f32 0.25, %v4366_v13  ;;  %v6081_v38 = vsel %vm5359_vm3, %v6065_v55, %v5745_v24  ;;  %v9990_v15 = vadd.f32 %v4659_v43, %v9875_v56  ;;  %v4771_v9 = vadd.f32 %v4739_v18, %v9877_v1  ;;  %v11645_v55 = vld [vmem:[#allocation58_spill] sm:$0xff] }
 0x2d1   : > { %v9993_v21 = vadd.f32 %v4707_v27, %v4659_v43  ;;  %v9995_v47 = vadd.f32 %v4739_v18, %v4627_v31  ;;  %v4420_v19 = vrot.slane %v4388_v7, 1  ;;  %v4580_v37 = vrot.slane %v9984_v6, 1  ;;  %v11644_v18 = vld [vmem:[#allocation8_spill] sm:$0xff] }
 0x2d2   : > { %11641 = vst [vmem:[#allocation29_spill] sm:$0xff] %v9990_v15  ;;  %v4516_v30 = vrot.slane %v9986_v23, 1  ;;  %v10000_v36 = vsel %vm5376_vm4, %v6081_v38, %v5777_v16  ;;  %v5530_v50 = vrot.slane %v4771_v9, 7  ;;  %v6129_v60 = vsel %vm5291_vm0, %v6113_v8, %v5873_v4 }
 0x2d3   : > { %v5578_v24 = vrot.slane %v9993_v21, 7  ;;  %v5626_v56 = vrot.slane %v9995_v47, 6  ;;  %v4452_v1 = vadd.f32 %v4420_v19, %v4366_v13  ;;  %v10009_v31 = vadd.f32 %v4580_v37, %v9986_v23  ;;  %v11646_v37 = vld [vmem:[#allocation17_spill] sm:$0xff] }
 0x2d4   : > { %v10006_v27 = vadd.f32 %v4516_v30, %v9984_v6  ;;  %v6145_v29 = vsel %vm1225_vm11, %v6129_v60, %v5905_v53  ;;  %v6247_v43 = vmul.f32 0.25, %v10000_v36  ;;  %v4264_v7 = vadd.f32 %v11645_v55, %v11644_v18 }
 0x2d5   : > { %11643 = vst [vmem:[#allocation48_spill] sm:$0xff] %v10009_v31  ;;  %v6010_v2 = vsel %vm5274_vm15, %v5530_v50, %v5578_v24  ;;  %v6161_v16 = vsel %vm5325_vm1, %v6145_v29, %v5937_v11  ;;  %v4900_v8 = vrot.slane %v10009_v31, 6  ;;  %v6285_v19 = vadd.f32 %v9813_v12, %v9925_v63 }
 0x2d6   : > { %11642 = vst [vmem:[#allocation6_spill] sm:$0xff] %v10006_v27  ;;  %v10018_v4 = vsel %vm5291_vm0, %v6010_v2, %v5626_v56  ;;  %v4852_v13 = vrot.slane %v10006_v27, 7  ;;  %v6177_v38 = vsel %vm5342_vm2, %v6161_v16, %v5969_v32  ;;  %v6255_v9 = vadd.f32 %v9714_v28, %v6247_v43  ;;  %v11647_v32 = vld [vmem:[#allocation9_spill] sm:$0xff]  ;;  %v11648_v56 = vld [vmem:[#allocation60_spill] sm:$0xff]  ;;  %v11651_v16 = vld [vmem:[#allocation15_spill] sm:$0xff] }
 0x2d7   : > { %v6193_v53 = vsel %vm5359_vm3, %v6177_v38, %v11639_v39  ;;  %v4303_v11 = vadd.f32 %v9849_v41, %v4264_v7  ;;  %v6286_v24 = vadd.f32 %v9854_v58, %v9957_v26  ;;  %v4265_v60 = vadd.f32 %v11648_v56, %v11647_v32  ;;  %v11650_v2 = vld [vmem:[#allocation16_spill] sm:$0xff]  ;;  %v11652_v32 = vld [vmem:[#allocation22_spill] sm:$0xff] }
 0x2d8   : > { %v5285_v30 = vsel %vm5274_vm15, %v4452_v1, %v4852_v13  ;;  %v10032_v50 = vsel %vm5376_vm4, %v6193_v53, %v11646_v37  ;;  %v4954_v12 = vrot.slane %v11650_v2, 5  ;;  %v4986_v43 = vrot.slane %v11651_v16, 5 }
 0x2d9   : > { %v10039_v39 = vsel %vm5291_vm0, %v5285_v30, %v4900_v8  ;;  %v6248_v28 = vmul.f32 0.25, %v10032_v50  ;;  %v4335_v29 = vmax.f32 %v4303_v11, 0.0  ;;  %v6497_v63 = vpack.c.bf16 %v6286_v24, %v6285_v19 }
 0x2da   : > { %11649 = vst [vmem:[#allocation28_spill] sm:$0xff] %v10039_v39  ;;  %v4304_v1 = vadd.f32 %v9849_v41, %v4265_v60  ;;  %v5018_v18 = vrot.slane %v11650_v2, 4  ;;  %v5050_v55 = vrot.slane %v11651_v16, 4  ;;  %v5082_v7 = vrot.slane %v11650_v2, 3 }
 0x2db   : > { %v6256_v58 = vadd.f32 %v9740_v17, %v6248_v28  ;;  %v4367_v26 = vmin.f32 %v4335_v29, 6.0  ;;  %v5114_v8 = vrot.slane %v11651_v16, 3  ;;  %v5146_v38 = vrot.slane %v11650_v2, 2 }
 0x2dc   : > { %v4336_v13 = vmax.f32 %v4304_v1, 0.0  ;;  %v5178_v53 = vrot.slane %v11651_v16, 2  ;;  %v5210_v37 = vrot.slane %v11650_v2, 1  ;;  %v5242_v17 = vrot.slane %v11651_v16, 1 }
 0x2dd   : > { %v6490_v11 = vpack.c.bf16 %v6256_v58, %v6255_v9  ;;  %v4628_v19 = vmul.f32 0.25, %v4367_v26  ;;  %v4708_v30 = vmul.f32 0.75, %v4367_v26  ;;  %v5326_v56 = vsel %vm5325_vm1, %v11652_v32, %v4954_v12 }
 0x2de   : > { %v4368_v24 = vmin.f32 %v4336_v13, 6.0  ;;  %v5393_v60 = vsel %vm5274_vm15, %v5082_v7, %v5114_v8  ;;  %v5343_v13 = vsel %vm5342_vm2, %v5326_v56, %v4986_v43  ;;  %v6237_v34 = vmul.f32 0.25, %v9911_v45 }
 0x2df   : > { %v6569_v28 = vsel %vm1532_vm13, %v6490_v11, 0  ;;  %v4660_v29 = vrot.slane %v4628_v19, 1  ;;  %v4740_v1 = vrot.slane %v4708_v30, 1  ;;  %v10058_v15 = vadd.f32 %v4708_v30, %v4628_v19 }
 0x2e0   : > { %7339 = vmatpush3.bf16.xpose.msra.mxu1 %v6569_v28  ;;  %v4389_v9 = vmul.f32 0.0, %v4368_v24  ;;  %v10060_v58 = vmul.f32 0.75, %v4368_v24  ;;  %v10062_v26 = vmul.f32 0.25, %v4368_v24  ;;  %v5360_v39 = vsel %vm5359_vm3, %v5343_v13, %v5018_v18 }
 0x2e1   : > { %v10066_v16 = vadd.f32 %v4660_v29, %v9984_v6  ;;  %v4772_v12 = vadd.f32 %v4740_v1, %v9986_v23  ;;  %v10069_v7 = vadd.f32 %v4708_v30, %v4660_v29  ;;  %v10071_v8 = vadd.f32 %v4740_v1, %v4628_v19  ;;  %7409 = vmatprep.subr.msk.bf16.mxu1 %vm1532_vm13, %v6497_v63 }
 0x2e2   : > { %v4421_v11 = vrot.slane %v4389_v9, 1  ;;  %v4517_v32 = vrot.slane %v10062_v26, 1  ;;  %v4581_v28 = vrot.slane %v10060_v58, 1  ;;  %v10080_v23 = vsel %vm5376_vm4, %v5360_v39, %v5050_v55  ;;  %v11654_v9 = vld [vmem:[#allocation10_spill] sm:$0xff] }
 0x2e3   : > { %11653 = vst [vmem:[#allocation31_spill] sm:$0xff] %v10066_v16  ;;  %v5531_v5 = vrot.slane %v4772_v12, 7  ;;  %v5579_v43 = vrot.slane %v10069_v7, 7  ;;  %v5627_v6 = vrot.slane %v10071_v8, 6  ;;  %v5409_v56 = vsel %vm5291_vm0, %v5393_v60, %v5146_v38 }
 0x2e4   : > { %v4453_v30 = vadd.f32 %v4421_v11, %v4368_v24  ;;  %v10083_v19 = vadd.f32 %v4517_v32, %v10060_v58  ;;  %v10086_v63 = vadd.f32 %v4581_v28, %v10062_v26  ;;  %v5425_v18 = vsel %vm1225_vm11, %v5409_v56, %v5178_v53 }
 0x2e5   : > { %v6011_v29 = vsel %vm5274_vm15, %v5531_v5, %v5579_v43  ;;  %v6245_v1 = vmul.f32 0.25, %v10080_v23  ;;  %v4266_v13 = vadd.f32 %v9607_v22, %v11654_v9  ;;  %v5441_v38 = vsel %vm5325_vm1, %v5425_v18, %v5210_v37 }
 0x2e6   : > { %v10095_v39 = vsel %vm5291_vm0, %v6011_v29, %v5627_v6  ;;  %v4853_v55 = vrot.slane %v10083_v19, 7  ;;  %v4901_v24 = vrot.slane %v10086_v63, 6  ;;  %v4933_v12 = vrot.slane %v10083_v19, 6 }
 0x2e7   : > { %v6253_v5 = vadd.f32 %v9919_v52, %v6245_v1  ;;  %v4305_v53 = vadd.f32 %v9849_v41, %v4266_v13  ;;  %v10104_v60 = vmul.f32 0.75, %v9707_v62  ;;  %v5457_v11 = vsel %vm5342_vm2, %v5441_v38, %v5242_v17 }
 0x2e8   : > { %v5286_v22 = vsel %vm5274_vm15, %v4453_v30, %v4853_v55  ;;  %v10109_v32 = vmul.f32 0.75, %v9734_v61  ;;  %v10112_v28 = vmul.f32 0.25, %v9616_v10  ;;  %v5473_v52 = vsel %vm5359_vm3, %v5457_v11, %v11650_v2  ;;  %v11657_v30 = vld [vmem:[#allocation18_spill] sm:$0xff]  ;;  %v11658_v61 = vld [vmem:[#allocation11_spill] sm:$0xff] }
 0x2e9   : > { %v5303_v43 = vsel %vm5291_vm0, %v5286_v22, %v4901_v24  ;;  %v4337_v37 = vmax.f32 %v4305_v53, 0.0  ;;  %v10118_v6 = vmul.f32 0.25, %v9645_v51  ;;  %v10125_v17 = vsel %vm5376_vm4, %v5473_v52, %v11657_v30 }
 0x2ea   : > { %11655 = vst [vmem:[#allocation7_spill] sm:$0xff] %v10112_v28  ;;  %v10121_v62 = vsel %vm1225_vm11, %v5303_v43, %v4933_v12  ;;  %v6279_v10 = vadd.f32 %v10112_v28, %v10104_v60  ;;  %v4267_v56 = vadd.f32 %v9641_v0, %v11658_v61  ;;  %v6246_v29 = vmul.f32 0.25, %v10125_v17  ;;  %v11659_v43 = vld [vmem:[#allocation12_spill] sm:$0xff] }
 0x2eb   : > { %11656 = vst [vmem:[#allocation56_spill] sm:$0xff] %v10118_v6  ;;  %v4369_v2 = vmin.f32 %v4337_v37, 6.0  ;;  %v6280_v51 = vadd.f32 %v10118_v6, %v10109_v32  ;;  %v6235_v18 = vmul.f32 0.75, %v10000_v36  ;;  %v6236_v9 = vmul.f32 0.75, %v10032_v50 }
 0x2ec   : > { %v4306_v1 = vadd.f32 %v9849_v41, %v4267_v56  ;;  %v10138_v13 = vmul.f32 0.25, %v9704_v33  ;;  %v10141_v55 = vmul.f32 0.25, %v9730_v44  ;;  %v6254_v0 = vadd.f32 %v9954_v14, %v6246_v29 }
 0x2ed   : > { %v4629_v24 = vmul.f32 0.25, %v4369_v2  ;;  %v4709_v12 = vmul.f32 0.75, %v4369_v2  ;;  %v6496_v38 = vpack.c.bf16 %v6280_v51, %v6279_v10  ;;  %v4268_v52 = vadd.f32 %v9671_v42, %v11659_v43 }
 0x2ee   : > { %v4338_v53 = vmax.f32 %v4306_v1, 0.0  ;;  %v6243_v22 = vadd.f32 %v10138_v13, %v6235_v18  ;;  %v6244_v11 = vadd.f32 %v10141_v55, %v6236_v9  ;;  %v6489_v37 = vpack.c.bf16 %v6254_v0, %v6253_v5 }
 0x2ef   : > { %v4661_v30 = vrot.slane %v4629_v24, 1  ;;  %v4741_v61 = vrot.slane %v4709_v12, 1  ;;  %v10148_v56 = vadd.f32 %v4709_v12, %v4629_v24  ;;  %v4307_v14 = vadd.f32 %v9849_v41, %v4268_v52 }
 0x2f0   : > { %v4370_v6 = vmin.f32 %v4338_v53, 6.0  ;;  %v6488_v28 = vpack.c.bf16 %v6244_v11, %v6243_v22  ;;  %v10152_v29 = vmul.f32 0.75, %v9914_v40  ;;  %v6566_v10 = vsel %vm1532_vm13, %v6489_v37, 0 }
 0x2f1   : > { %v10156_v2 = vadd.f32 %v4661_v30, %v10060_v58  ;;  %v4773_v51 = vadd.f32 %v4741_v61, %v10062_v26  ;;  %v10159_v42 = vadd.f32 %v4709_v12, %v4661_v30  ;;  %7341 = vmatpush3.bf16.xpose.msra.mxu1 %v6566_v10  ;;  %v10161_v5 = vadd.f32 %v4741_v61, %v4629_v24 }
 0x2f2   : > { %v4390_v18 = vmul.f32 0.0, %v4370_v6  ;;  %v4470_v1 = vmul.f32 0.75, %v4370_v6  ;;  %v4486_v9 = vmul.f32 0.25, %v4370_v6  ;;  %7410 = vmatprep.subr.msk.bf16.mxu1 %vm1532_vm13, %v6496_v38  ;;  %v6563_v40 = vsel %vm1532_vm13, %v6488_v28, 0 }
 0x2f3   : > { %v5532_v0 = vrot.slane %v4773_v51, 7  ;;  %v5580_v53 = vrot.slane %v10159_v42, 7  ;;  %v4339_v22 = vmax.f32 %v4307_v14, 0.0  ;;  %v5628_v58 = vrot.slane %v10161_v5, 6 }
 0x2f4   : > { %v4422_v11 = vrot.slane %v4390_v18, 1  ;;  %v4518_v26 = vrot.slane %v4486_v9, 1  ;;  %v4582_v12 = vrot.slane %v4470_v1, 1  ;;  %v10169_v52 = vmul.f32 0.75, %v9948_v59 }
 0x2f5   : > { %v6012_v43 = vsel %vm5274_vm15, %v5532_v0, %v5580_v53  ;;  %v4371_v24 = vmin.f32 %v4339_v22, 6.0  ;;  %v10172_v37 = vmul.f32 0.25, %v9794_v49  ;;  %v10182_v51 = vmul.f32 0.25, %v9840_v54  ;;  %v11662_v53 = vld [vmem:[#allocation13_spill] sm:$0xff] }
 0x2f6   : > { %v10175_v30 = vsel %vm5291_vm0, %v6012_v43, %v5628_v58  ;;  %v4454_v38 = vadd.f32 %v4422_v11, %v4370_v6  ;;  %v10177_v28 = vadd.f32 %v4518_v26, %v4470_v1  ;;  %v10179_v61 = vadd.f32 %v4582_v12, %v4486_v9 }
 0x2f7   : > { %11660 = vst [vmem:[#allocation19_spill] sm:$0xff] %v10172_v37  ;;  %v4630_v14 = vmul.f32 0.25, %v4371_v24  ;;  %v4710_v10 = vmul.f32 0.75, %v4371_v24  ;;  %11661 = vst [vmem:[#allocation21_spill] sm:$0xff] %v10182_v51  ;;  %v6277_v59 = vadd.f32 %v10172_v37, %v10152_v29  ;;  %v4269_v6 = vadd.f32 %v9693_v35, %v11662_v53 }
 0x2f8   : > { %v4854_v18 = vrot.slane %v10177_v28, 7  ;;  %v4902_v49 = vrot.slane %v10179_v61, 6  ;;  %v4934_v0 = vrot.slane %v10177_v28, 6  ;;  %v6278_v54 = vadd.f32 %v10182_v51, %v10169_v52 }
 0x2f9   : > { %v4662_v22 = vrot.slane %v4630_v14, 1  ;;  %v4742_v58 = vrot.slane %v4710_v10, 1  ;;  %v10191_v11 = vadd.f32 %v4710_v10, %v4630_v14  ;;  %7343 = vmatpush3.bf16.xpose.msra.mxu1 %v6563_v40  ;;  %v4308_v12 = vadd.f32 %v9849_v41, %v4269_v6 }
 0x2fa   : > { %v5287_v26 = vsel %vm5274_vm15, %v4454_v38, %v4854_v18  ;;  %v6233_v43 = vmul.f32 0.75, %v10080_v23  ;;  %v6234_v24 = vmul.f32 0.75, %v10125_v17  ;;  %v6495_v38 = vpack.c.bf16 %v6278_v54, %v6277_v59 }
 0x2fb   : > { %v5304_v37 = vsel %vm5291_vm0, %v5287_v26, %v4902_v49  ;;  %v10200_v16 = vadd.f32 %v4662_v22, %v4470_v1  ;;  %v4774_v35 = vadd.f32 %v4742_v58, %v4486_v9  ;;  %v10202_v53 = vadd.f32 %v4710_v10, %v4662_v22  ;;  %v11664_v10 = vld [vmem:[#allocation14_spill] sm:$0xff] }
 0x2fc   : > { %v10205_v31 = vsel %vm1225_vm11, %v5304_v37, %v4934_v0  ;;  %v10207_v51 = vadd.f32 %v4742_v58, %v4630_v14  ;;  %v4340_v40 = vmax.f32 %v4308_v12, 0.0  ;;  %v6238_v27 = vmul.f32 0.25, %v9944_v57  ;;  %7411 = vmatprep.subr.msk.bf16.mxu1 %vm1532_vm13, %v6495_v38 }
 0x2fd   : > { %11663 = vst [vmem:[#allocation24_spill] sm:$0xff] %v10200_v16  ;;  %v5533_v18 = vrot.slane %v4774_v35, 7  ;;  %v5581_v6 = vrot.slane %v10202_v53, 7  ;;  %v4270_v37 = vadd.f32 %v9719_v20, %v11664_v10  ;;  %v6271_v14 = vadd.f32 %v10104_v60, %v10138_v13 }
 0x2fe   : > { %v5629_v1 = vrot.slane %v10207_v51, 6  ;;  %v4372_v9 = vmin.f32 %v4340_v40, 6.0  ;;  %v6241_v49 = vadd.f32 %v6237_v34, %v6233_v43  ;;  %v6242_v0 = vadd.f32 %v6238_v27, %v6234_v24  ;;  %v11665_v40 = vld [vmem:[#allocation20_spill] sm:$0xff] }
 0x2ff   : > { %v6013_v59 = vsel %vm5274_vm15, %v5533_v18, %v5581_v6  ;;  %v6272_v22 = vadd.f32 %v10109_v32, %v10141_v55  ;;  %v4309_v38 = vadd.f32 %v9849_v41, %v4270_v37  ;;  %v4271_v60 = vadd.f32 %v9755_v3, %v11665_v40 }
 0x300   : > { %v10222_v58 = vsel %vm5291_vm0, %v6013_v59, %v5629_v1  ;;  %v4391_v54 = vmul.f32 0.0, %v4372_v9  ;;  %v4471_v26 = vmul.f32 0.75, %v4372_v9  ;;  %v4487_v12 = vmul.f32 0.25, %v4372_v9 }
 0x301   : > { %v6487_v35 = vpack.c.bf16 %v6242_v0, %v6241_v49  ;;  %v6494_v20 = vpack.c.bf16 %v6272_v22, %v6271_v14  ;;  %v6227_v24 = vmul.f32 0.0, %v9704_v33  ;;  %v4341_v55 = vmax.f32 %v4309_v38, 0.0  ;;  %v11668_v0 = vld [vmem:[#allocation23_spill] sm:$0xff] }
 0x302   : > { %v4423_v13 = vrot.slane %v4391_v54, 1  ;;  %v4519_v18 = vrot.slane %v4487_v12, 1  ;;  %v4583_v43 = vrot.slane %v4471_v26, 1  ;;  %v4310_v6 = vadd.f32 %v9849_v41, %v4271_v60 }
 0x303   : > { %v6560_v32 = vsel %vm1532_vm13, %v6487_v35, 0  ;;  %v6228_v1 = vmul.f32 0.0, %v9730_v44  ;;  %v6231_v3 = vadd.f32 %v6227_v24, %v10000_v36  ;;  %v4373_v14 = vmin.f32 %v4341_v55, 6.0 }
 0x304   : > { %v4455_v10 = vadd.f32 %v4423_v13, %v4372_v9  ;;  %v10231_v59 = vadd.f32 %v4519_v18, %v4471_v26  ;;  %v10233_v37 = vadd.f32 %v4583_v43, %v4487_v12  ;;  %7345 = vmatpush3.bf16.xpose.msra.mxu1 %v6560_v32  ;;  %v4342_v49 = vmax.f32 %v4310_v6, 0.0  ;;  %v11669_v18 = vld [vmem:[#allocation27_spill] sm:$0xff]  ;;  %v11670_v43 = vld [vmem:[#allocation72_spill] sm:$0xff] }
 0x305   : > { %7412 = vmatprep.subr.msk.bf16.mxu1 %vm1532_vm13, %v6494_v20  ;;  %v6232_v33 = vadd.f32 %v6228_v1, %v10032_v50  ;;  %v4272_v22 = vadd.f32 %v9769_v46, %v11668_v0  ;;  %v6269_v9 = vadd.f32 %v10152_v29, %v6237_v34  ;;  %v6270_v35 = vadd.f32 %v10169_v52, %v6238_v27 }
 0x306   : > { %11666 = vst [vmem:[#allocation8_spill] sm:$0xff] %v10231_v59  ;;  %11667 = vst [vmem:[#allocation58_spill] sm:$0xff] %v10233_v37  ;;  %v4855_v54 = vrot.slane %v10231_v59, 7  ;;  %v4903_v44 = vrot.slane %v10233_v37, 6  ;;  %v4631_v38 = vmul.f32 0.25, %v4373_v14  ;;  %v4711_v40 = vmul.f32 0.75, %v4373_v14 }
 0x307   : > { %v4374_v36 = vmin.f32 %v4342_v49, 6.0  ;;  %v6486_v60 = vpack.c.bf16 %v6232_v33, %v6231_v3  ;;  %v4311_v13 = vadd.f32 %v9849_v41, %v4272_v22  ;;  %v6493_v50 = vpack.c.bf16 %v6270_v35, %v6269_v9 }
 0x308   : > { %v5288_v20 = vsel %vm5274_vm15, %v4455_v10, %v4855_v54  ;;  %v4273_v46 = vadd.f32 %v11670_v43, %v11669_v18  ;;  %v4663_v32 = vrot.slane %v4631_v38, 1  ;;  %v4743_v55 = vrot.slane %v4711_v40, 1 }
 0x309   : > { %v10249_v24 = vsel %vm5291_vm0, %v5288_v20, %v4903_v44  ;;  %v10251_v34 = vadd.f32 %v4711_v40, %v4631_v38  ;;  %v4392_v27 = vmul.f32 0.0, %v4374_v36  ;;  %v4472_v29 = vmul.f32 0.75, %v4374_v36 }
 0x30a   : > { %11671 = vst [vmem:[#allocation17_spill] sm:$0xff] %v10249_v24  ;;  %v4488_v52 = vmul.f32 0.25, %v4374_v36  ;;  %v6557_v6 = vsel %vm1532_vm13, %v6486_v60, 0  ;;  %v10254_v1 = vadd.f32 %v4663_v32, %v4471_v26  ;;  %v4775_v10 = vadd.f32 %v4743_v55, %v4487_v12 }
 0x30b   : > { %11672 = vst [vmem:[#allocation9_spill] sm:$0xff] %v10251_v34  ;;  %v10256_v3 = vadd.f32 %v4711_v40, %v4663_v32  ;;  %v10258_v14 = vadd.f32 %v4743_v55, %v4631_v38  ;;  %v4424_v49 = vrot.slane %v4392_v27, 1  ;;  %v4584_v0 = vrot.slane %v4472_v29, 1 }
 0x30c   : > { %11673 = vst [vmem:[#allocation60_spill] sm:$0xff] %v10254_v1  ;;  %v4520_v33 = vrot.slane %v4488_v52, 1  ;;  %7347 = vmatpush3.bf16.xpose.msra.mxu1 %v6557_v6  ;;  %v4343_v22 = vmax.f32 %v4311_v13, 0.0  ;;  %v5534_v54 = vrot.slane %v4775_v10, 7  ;;  %v4312_v26 = vadd.f32 %v9849_v41, %v4273_v46  ;;  %v11691_v1 = vld [vmem:[#allocation71_spill] sm:$0xff] }
 0x30d   : > { %11674 = vst [vmem:[#allocation16_spill] sm:$0xff] %v10256_v3  ;;  %11675 = vst [vmem:[#allocation15_spill] sm:$0xff] %v10258_v14  ;;  %v5582_v44 = vrot.slane %v10256_v3, 7  ;;  %v5630_v9 = vrot.slane %v10258_v14, 6  ;;  %7413 = vmatprep.subr.msk.bf16.mxu1 %vm1532_vm13, %v6493_v50  ;;  %v4456_v35 = vadd.f32 %v4424_v49, %v4374_v36  ;;  %v10266_v40 = vadd.f32 %v4584_v0, %v4488_v52  ;;  %v11681_v0 = vld [vmem:[#allocation54_spill] sm:$0xff] }
 0x30e   : > { %v10264_v12 = vadd.f32 %v4520_v33, %v4472_v29  ;;  %v4375_v38 = vmin.f32 %v4343_v22, 6.0  ;;  %v4344_v20 = vmax.f32 %v4312_v26, 0.0  ;;  %v6225_v13 = vmul.f32 0.0, %v9911_v45  ;;  %v11679_v45 = vld [vmem:[#allocation30_spill] sm:$0xff]  ;;  %v11680_v33 = vld [vmem:[#allocation77_spill] sm:$0xff] }
 0x30f   : > { %11677 = vst [vmem:[#allocation10_spill] sm:$0xff] %v10266_v40  ;;  %v6014_v60 = vsel %vm5274_vm15, %v5534_v54, %v5582_v44  ;;  %v6226_v18 = vmul.f32 0.0, %v9944_v57  ;;  %v4904_v46 = vrot.slane %v10266_v40, 6  ;;  %v4274_v57 = vadd.f32 %v11680_v33, %v11679_v45 }
 0x310   : > { %11676 = vst [vmem:[#allocation22_spill] sm:$0xff] %v10264_v12  ;;  %v10272_v43 = vsel %vm5291_vm0, %v6014_v60, %v5630_v9  ;;  %v4856_v50 = vrot.slane %v10264_v12, 7  ;;  %v4632_v36 = vmul.f32 0.25, %v4375_v38  ;;  %v4712_v32 = vmul.f32 0.75, %v4375_v38 }
 0x311   : > { %11678 = vst [vmem:[#allocation18_spill] sm:$0xff] %v10272_v43  ;;  %v4376_v55 = vmin.f32 %v4344_v20, 6.0  ;;  %v6229_v27 = vadd.f32 %v6225_v13, %v10080_v23  ;;  %v6230_v6 = vadd.f32 %v6226_v18, %v10125_v17  ;;  %v5848_v12 = vrot.slane %v11681_v0, 3 }
 0x312   : > { %v5289_v10 = vsel %vm5274_vm15, %v4456_v35, %v4856_v50  ;;  %v4664_v49 = vrot.slane %v4632_v36, 1  ;;  %v4744_v44 = vrot.slane %v4712_v32, 1  ;;  %v10285_v9 = vadd.f32 %v4712_v32, %v4632_v36 }
 0x313   : > { %v10283_v54 = vsel %vm5291_vm0, %v5289_v10, %v4904_v46  ;;  %v4393_v26 = vmul.f32 0.0, %v4376_v55  ;;  %v4473_v17 = vmul.f32 0.75, %v4376_v55  ;;  %v4489_v60 = vmul.f32 0.25, %v4376_v55 }
 0x314   : > { %11682 = vst [vmem:[#allocation11_spill] sm:$0xff] %v10283_v54  ;;  %11683 = vst [vmem:[#allocation12_spill] sm:$0xff] %v10285_v9  ;;  %v10287_v38 = vadd.f32 %v4664_v49, %v4472_v29  ;;  %v10289_v23 = vadd.f32 %v4712_v32, %v4664_v49  ;;  %v4776_v35 = vadd.f32 %v4744_v44, %v4488_v52  ;;  %v11699_v14 = vrot.slane %v11681_v0, 6 }
 0x315   : > { %v10291_v20 = vadd.f32 %v4744_v44, %v4632_v36  ;;  %v4425_v13 = vrot.slane %v4393_v26, 1  ;;  %v6485_v18 = vpack.c.bf16 %v6230_v6, %v6229_v27  ;;  %v4521_v45 = vrot.slane %v4489_v60, 1  ;;  %v11689_v36 = vld [vmem:[#allocation70_spill] sm:$0xff]  ;;  %v11690_v44 = vld [vmem:[#allocation55_spill] sm:$0xff] }
 0x316   : > { %11684 = vst [vmem:[#allocation13_spill] sm:$0xff] %v10287_v38  ;;  %11685 = vst [vmem:[#allocation14_spill] sm:$0xff] %v10289_v23  ;;  %v5583_v50 = vrot.slane %v10289_v23, 7  ;;  %v4585_v46 = vrot.slane %v4473_v17, 1  ;;  %v4313_v10 = vadd.f32 %v9849_v41, %v4274_v57  ;;  %v5535_v33 = vrot.slane %v4776_v35, 7  ;;  %v11700_v23 = vld [vmem:[#allocation59_spill] sm:$0xff] }
 0x317   : > { %11686 = vst [vmem:[#allocation20_spill] sm:$0xff] %v10291_v20  ;;  %v5631_v22 = vrot.slane %v10291_v20, 6  ;;  %v4457_v29 = vadd.f32 %v4425_v13, %v4376_v55  ;;  %v6554_v32 = vsel %vm1532_vm13, %v6485_v18, 0  ;;  %v10297_v49 = vadd.f32 %v4521_v45, %v4473_v17 }
 0x318   : > { %v10299_v38 = vadd.f32 %v4585_v46, %v4489_v60  ;;  %7349 = vmatpush3.bf16.xpose.msra.mxu1 %v6554_v32  ;;  %v4345_v52 = vmax.f32 %v4313_v10, 0.0  ;;  %v5657_v27 = vrot.slane %v11689_v36, 6  ;;  %v6015_v6 = vsel %vm5274_vm15, %v5535_v33, %v5583_v50 }
 0x319   : > { %11687 = vst [vmem:[#allocation23_spill] sm:$0xff] %v10297_v49  ;;  %v5688_v26 = vrot.slane %v11690_v44, 5  ;;  %v5689_v41 = vrot.slane %v11691_v1, 5  ;;  %v5720_v57 = vrot.slane %v11681_v0, 5  ;;  %v10307_v55 = vsel %vm5291_vm0, %v6015_v6, %v5631_v22 }
 0x31a   : > { %11688 = vst [vmem:[#allocation27_spill] sm:$0xff] %v10299_v38  ;;  %11692 = vst [vmem:[#allocation72_spill] sm:$0xff] %v10307_v55  ;;  %v4857_v35 = vrot.slane %v10297_v49, 7  ;;  %v4905_v13 = vrot.slane %v10299_v38, 6  ;;  %v4937_v18 = vrot.slane %v10297_v49, 6  ;;  %v4377_v45 = vmin.f32 %v4345_v52, 6.0 }
 0x31b   : > { %v5721_v46 = vrot.slane %v11689_v36, 5  ;;  %v5752_v50 = vrot.slane %v11690_v44, 4  ;;  %v5753_v10 = vrot.slane %v11691_v1, 4  ;;  %v5784_v32 = vrot.slane %v11681_v0, 4 }
 0x31c   : > { %v5290_v33 = vsel %vm5274_vm15, %v4457_v29, %v4857_v35  ;;  %v5785_v22 = vrot.slane %v11689_v36, 4  ;;  %v5816_v6 = vrot.slane %v11690_v44, 3  ;;  %v4633_v24 = vmul.f32 0.25, %v4377_v45 }
 0x31d   : > { %v5307_v54 = vsel %vm5291_vm0, %v5290_v33, %v4905_v13  ;;  %v4713_v40 = vmul.f32 0.75, %v4377_v45  ;;  %v5817_v52 = vrot.slane %v11691_v1, 3  ;;  %v5849_v59 = vrot.slane %v11689_v36, 3  ;;  %v11695_v13 = vld [vmem:[#allocation74_spill] sm:$0xff] }
 0x31e   : > { %v10322_v37 = vsel %vm1225_vm11, %v5307_v54, %v4937_v18  ;;  %v5880_v29 = vrot.slane %v11690_v44, 2  ;;  %v4665_v35 = vrot.slane %v4633_v24, 1  ;;  %v5881_v38 = vrot.slane %v11691_v1, 2 }
 0x31f   : > { %11693 = vst [vmem:[#allocation30_spill] sm:$0xff] %v10322_v37  ;;  %v4745_v9 = vrot.slane %v4713_v40, 1  ;;  %v10327_v49 = vadd.f32 %v4713_v40, %v4633_v24  ;;  %7351 = vmatmul.mubr.msk.bf16.vlgmr.msra.gmra.mxu1 %vm1532_vm13, %v11695_v13  ;;  %v5912_v45 = vrot.slane %v11681_v0, 2  ;;  %v5913_v54 = vrot.slane %v11689_v36, 2 }
 0x320   : > { %v5944_v18 = vrot.slane %v11690_v44, 1  ;;  %v5945_v33 = vrot.slane %v11691_v1, 1  ;;  %7368 = vmatprep.mubr.msk.bf16.mxu1 %vm1532_vm13, %v11695_v13  ;;  %v10338_v37 = vadd.f32 %v4665_v35, %v4473_v17  ;;  %v10340_v55 = vadd.f32 %v4713_v40, %v4665_v35 }
 0x321   : > { %11694 = vst [vmem:[#allocation77_spill] sm:$0xff] %v10327_v49  ;;  %v4777_v34 = vadd.f32 %v4745_v9, %v4489_v60  ;;  %v10342_v43 = vadd.f32 %v4745_v9, %v4633_v24  ;;  %v5976_v49 = vrot.slane %v11681_v0, 1  ;;  %v5977_v20 = vrot.slane %v11689_v36, 1 }
 0x322   : > { %11696 = vst [vmem:[#allocation54_spill] sm:$0xff] %v10338_v37  ;;  %11697 = vst [vmem:[#allocation70_spill] sm:$0xff] %v10340_v55  ;;  %v6040_v3 = vsel %vm1225_vm11, %v11700_v23, %v11699_v14  ;;  %v6041_v16 = vsel %vm1225_vm11, %v11701_v25, %v5657_v27  ;;  %v5584_v17 = vrot.slane %v10340_v55, 7  ;;  %v6120_v36 = vsel %vm5274_vm15, %v5816_v6, %v5848_v12 }
 0x323   : > { %11698 = vst [vmem:[#allocation55_spill] sm:$0xff] %v10342_v43  ;;  %v5536_v13 = vrot.slane %v4777_v34, 7  ;;  %v5632_v40 = vrot.slane %v10342_v43, 6  ;;  %v6056_v24 = vsel %vm5325_vm1, %v6040_v3, %v5688_v26  ;;  %v6057_v9 = vsel %vm5325_vm1, %v6041_v16, %v5689_v41 }
 0x324   : > { %v6072_v60 = vsel %vm5342_vm2, %v6056_v24, %v5720_v57  ;;  %v6121_v0 = vsel %vm5274_vm15, %v5817_v52, %v5849_v59  ;;  %v6073_v23 = vsel %vm5342_vm2, %v6057_v9, %v5721_v46  ;;  %v6136_v34 = vsel %vm5291_vm0, %v6120_v36, %v5880_v29 }
 0x325   : > { %v6016_v14 = vsel %vm5274_vm15, %v5536_v13, %v5584_v17  ;;  %v6088_v25 = vsel %vm5359_vm3, %v6072_v60, %v5752_v50  ;;  %v6089_v3 = vsel %vm5359_vm3, %v6073_v23, %v5753_v10  ;;  %v6137_v12 = vsel %vm5291_vm0, %v6121_v0, %v5881_v38 }
 0x326   : > { %v10364_v27 = vsel %vm5291_vm0, %v6016_v14, %v5632_v40  ;;  %v10368_v16 = vsel %vm5376_vm4, %v6088_v25, %v5784_v32  ;;  %v10372_v59 = vsel %vm5376_vm4, %v6089_v3, %v5785_v22  ;;  %v6152_v26 = vsel %vm1225_vm11, %v6136_v34, %v5912_v45 }
 0x327   : > { %11702 = vst [vmem:[#allocation71_spill] sm:$0xff] %v10364_v27  ;;  %11703 = vst [vmem:[#allocation74_spill] sm:$0xff] %v10372_v59  ;;  %v6153_v41 = vsel %vm1225_vm11, %v6137_v12, %v5913_v54  ;;  %v10377_v57 = vmul.f32 0.75, %v10368_v16  ;;  %v6168_v46 = vsel %vm5325_vm1, %v6152_v26, %v5944_v18  ;;  %v10382_v10 = vmul.f32 0.25, %v10372_v59  ;;  %v11704_v18 = vld [vmem:[#allocation52_spill] sm:$0xff] }
 0x328   : > { %v6169_v50 = vsel %vm5325_vm1, %v6153_v41, %v5945_v33  ;;  %v5660_v32 = vrot.slane %v10159_v42, 6  ;;  %v6184_v38 = vsel %vm5342_vm2, %v6168_v46, %v5976_v49  ;;  %v5661_v6 = vrot.slane %v10202_v53, 6 }
 0x329   : > { %v6185_v22 = vsel %vm5342_vm2, %v6169_v50, %v5977_v20  ;;  %v5692_v52 = vrot.slane %v10161_v5, 5  ;;  %v6200_v29 = vsel %vm5359_vm3, %v6184_v38, %v11690_v44  ;;  %v6359_v45 = vadd.f32 %v10382_v10, %v10377_v57  ;;  %v11705_v20 = vld [vmem:[#allocation68_spill] sm:$0xff] }
 0x32a   : > { %v6201_v35 = vsel %vm5359_vm3, %v6185_v22, %v11691_v1  ;;  %v5693_v54 = vrot.slane %v10207_v51, 5  ;;  %v10398_v49 = vsel %vm5376_vm4, %v6200_v29, %v11704_v18  ;;  %v5724_v13 = vrot.slane %v10159_v42, 5 }
 0x32b   : > { %v10402_v33 = vsel %vm5376_vm4, %v6201_v35, %v11705_v20  ;;  %v5725_v44 = vrot.slane %v10202_v53, 5  ;;  %v10407_v17 = vmul.f32 0.75, %v10398_v49  ;;  %v5756_v40 = vrot.slane %v10161_v5, 4 }
 0x32c   : > { %11706 = vst [vmem:[#allocation59_spill] sm:$0xff] %v10402_v33  ;;  %v10410_v1 = vmul.f32 0.25, %v10402_v33  ;;  %v5757_v24 = vrot.slane %v10207_v51, 4  ;;  %v5788_v9 = vrot.slane %v10159_v42, 4  ;;  %v5789_v60 = vrot.slane %v10202_v53, 4 }
 0x32d   : > { %v5820_v36 = vrot.slane %v10161_v5, 3  ;;  %v5821_v0 = vrot.slane %v10207_v51, 3  ;;  %v5852_v23 = vrot.slane %v10159_v42, 3  ;;  %v5853_v25 = vrot.slane %v10202_v53, 3 }
 0x32e   : > { %v6360_v14 = vadd.f32 %v10410_v1, %v10407_v17  ;;  %v5884_v34 = vrot.slane %v10161_v5, 2  ;;  %v5885_v3 = vrot.slane %v10207_v51, 2  ;;  %v5916_v12 = vrot.slane %v10159_v42, 2 }
 0x32f   : > { %v5917_v26 = vrot.slane %v10202_v53, 2  ;;  %v5948_v41 = vrot.slane %v10161_v5, 1  ;;  %v5949_v50 = vrot.slane %v10207_v51, 1  ;;  %v5980_v38 = vrot.slane %v10159_v42, 1 }
 0x330   : > { %v6516_v46 = vpack.c.bf16 %v6360_v14, %v6359_v45  ;;  %v5981_v22 = vrot.slane %v10202_v53, 1  ;;  %v6044_v29 = vsel %vm1225_vm11, %v10175_v30, %v5660_v32  ;;  %v6045_v35 = vsel %vm1225_vm11, %v10222_v58, %v5661_v6 }
 0x331   : > { %v6124_v18 = vsel %vm5274_vm15, %v5820_v36, %v5852_v23  ;;  %v6125_v20 = vsel %vm5274_vm15, %v5821_v0, %v5853_v25  ;;  %v6060_v45 = vsel %vm5325_vm1, %v6044_v29, %v5692_v52  ;;  %v6061_v14 = vsel %vm5325_vm1, %v6045_v35, %v5693_v54 }
 0x332   : > { %7414 = vmatprep.subr.msk.bf16.mxu1 %vm1532_vm13, %v6516_v46  ;;  %v6140_v42 = vsel %vm5291_vm0, %v6124_v18, %v5884_v34  ;;  %v6141_v53 = vsel %vm5291_vm0, %v6125_v20, %v5885_v3  ;;  %v6076_v37 = vsel %vm5342_vm2, %v6060_v45, %v5724_v13  ;;  %v6077_v30 = vsel %vm5342_vm2, %v6061_v14, %v5725_v44  ;;  %v11712_v34 = vld [vmem:[#allocation38_spill] sm:$0xff]  ;;  %v11715_v46 = vld [vmem:[#allocation39_spill] sm:$0xff] }
 0x333   : > { %v6156_v58 = vsel %vm1225_vm11, %v6140_v42, %v5916_v12  ;;  %v6157_v32 = vsel %vm1225_vm11, %v6141_v53, %v5917_v26  ;;  %v6092_v6 = vsel %vm5359_vm3, %v6076_v37, %v5756_v40  ;;  %v6093_v36 = vsel %vm5359_vm3, %v6077_v30, %v5757_v24 }
 0x334   : > { %v6172_v52 = vsel %vm5325_vm1, %v6156_v58, %v5948_v41  ;;  %v6173_v54 = vsel %vm5325_vm1, %v6157_v32, %v5949_v50  ;;  %v10450_v0 = vsel %vm5376_vm4, %v6092_v6, %v5788_v9  ;;  %v10453_v23 = vsel %vm5376_vm4, %v6093_v36, %v5789_v60  ;;  %v11716_v50 = vld [vmem:[#allocation46_spill] sm:$0xff] }
 0x335   : > { %11707 = vst [vmem:[#allocation76_spill] sm:$0xff] %v10450_v0  ;;  %11708 = vst [vmem:[#allocation52_spill] sm:$0xff] %v10453_v23  ;;  %v6188_v13 = vsel %vm5342_vm2, %v6172_v52, %v5980_v38  ;;  %v6189_v44 = vsel %vm5342_vm2, %v6173_v54, %v5981_v22  ;;  %v10462_v40 = vmul.f32 0.75, %v10450_v0  ;;  %v10465_v24 = vmul.f32 0.25, %v10453_v23 }
 0x336   : > { %v6204_v25 = vsel %vm5359_vm3, %v6188_v13, %v10161_v5  ;;  %v6205_v37 = vsel %vm5359_vm3, %v6189_v44, %v10207_v51  ;;  %v5654_v3 = vrot.slane %v11712_v34, 6  ;;  %v11713_v5 = vld [vmem:[#allocation45_spill] sm:$0xff]  ;;  %v5687_v38 = vrot.slane %v11716_v50, 5 }
 0x337   : > { %11709 = vst [vmem:[#allocation68_spill] sm:$0xff] %v10465_v24  ;;  %v10469_v9 = vsel %vm5376_vm4, %v6204_v25, %v10148_v56  ;;  %v10473_v60 = vsel %vm5376_vm4, %v6205_v37, %v10191_v11  ;;  %v5655_v12 = vrot.slane %v11713_v5, 6  ;;  %v6423_v41 = vadd.f32 %v10465_v24, %v10462_v40  ;;  %v11717_v37 = vld [vmem:[#allocation43_spill] sm:$0xff] }
 0x338   : > { %11710 = vst [vmem:[#allocation80_spill] sm:$0xff] %v10469_v9  ;;  %11711 = vst [vmem:[#allocation81_spill] sm:$0xff] %v10473_v60  ;;  %v10478_v51 = vmul.f32 0.75, %v10469_v9  ;;  %v10481_v26 = vmul.f32 0.25, %v10473_v60  ;;  %v5686_v56 = vrot.slane %v11715_v46, 5  ;;  %v5718_v11 = vrot.slane %v11712_v34, 5 }
 0x339   : > { %v5719_v22 = vrot.slane %v11713_v5, 5  ;;  %v5750_v29 = vrot.slane %v11715_v46, 4  ;;  %v5751_v18 = vrot.slane %v11716_v50, 4  ;;  %v5782_v20 = vrot.slane %v11712_v34, 4 }
 0x33a   : > { %11714 = vst [vmem:[#allocation38_spill] sm:$0xff] %v10481_v26  ;;  %v6424_v35 = vadd.f32 %v10481_v26, %v10478_v51  ;;  %v5783_v45 = vrot.slane %v11713_v5, 4  ;;  %v5814_v14 = vrot.slane %v11715_v46, 3  ;;  %v5815_v42 = vrot.slane %v11716_v50, 3 }
 0x33b   : > { %v5846_v53 = vrot.slane %v11712_v34, 3  ;;  %v5847_v30 = vrot.slane %v11713_v5, 3  ;;  %v5878_v32 = vrot.slane %v11715_v46, 2  ;;  %v5879_v6 = vrot.slane %v11716_v50, 2 }
 0x33c   : > { %v6532_v58 = vpack.c.bf16 %v6424_v35, %v6423_v41  ;;  %v5910_v36 = vrot.slane %v11712_v34, 2  ;;  %v5911_v52 = vrot.slane %v11713_v5, 2  ;;  %v5942_v54 = vrot.slane %v11715_v46, 1  ;;  %v11718_v35 = vld [vmem:[#allocation49_spill] sm:$0xff] }
 0x33d   : > { %v5943_v13 = vrot.slane %v11716_v50, 1  ;;  %v5974_v44 = vrot.slane %v11712_v34, 1  ;;  %v5975_v25 = vrot.slane %v11713_v5, 1  ;;  %v6038_v41 = vsel %vm1225_vm11, %v11717_v37, %v5654_v3 }
 0x33e   : > { %7422 = vmatprep.subr.msk.bf16.mxu0 %vm1532_vm13, %v6532_v58  ;;  %v6039_v60 = vsel %vm1225_vm11, %v11718_v35, %v5655_v12  ;;  %v6118_v23 = vsel %vm5274_vm15, %v5814_v14, %v5846_v53  ;;  %v6054_v26 = vsel %vm5325_vm1, %v6038_v41, %v5686_v56  ;;  %v6119_v27 = vsel %vm5274_vm15, %v5815_v42, %v5847_v30  ;;  %v11722_v53 = vld [vmem:[#allocation42_spill] sm:$0xff] }
 0x33f   : > { %v6055_v24 = vsel %vm5325_vm1, %v6039_v60, %v5687_v38  ;;  %v6134_v34 = vsel %vm5291_vm0, %v6118_v23, %v5878_v32  ;;  %v6070_v58 = vsel %vm5342_vm2, %v6054_v26, %v5718_v11  ;;  %v6135_v43 = vsel %vm5291_vm0, %v6119_v27, %v5879_v6 }
 0x340   : > { %v6071_v5 = vsel %vm5342_vm2, %v6055_v24, %v5719_v22  ;;  %v6150_v3 = vsel %vm1225_vm11, %v6134_v34, %v5910_v36  ;;  %v6086_v12 = vsel %vm5359_vm3, %v6070_v58, %v5750_v29  ;;  %v6151_v56 = vsel %vm1225_vm11, %v6135_v43, %v5911_v52 }
 0x341   : > { %v6087_v14 = vsel %vm5359_vm3, %v6071_v5, %v5751_v18  ;;  %v6166_v60 = vsel %vm5325_vm1, %v6150_v3, %v5942_v54  ;;  %v10526_v38 = vsel %vm5376_vm4, %v6086_v12, %v5782_v20  ;;  %v6167_v24 = vsel %vm5325_vm1, %v6151_v56, %v5943_v13  ;;  %v11720_v18 = vld [vmem:[#allocation36_spill] sm:$0xff] }
 0x342   : > { %11719 = vst [vmem:[#allocation45_spill] sm:$0xff] %v10526_v38  ;;  %v10529_v23 = vsel %vm5376_vm4, %v6087_v14, %v5783_v45  ;;  %v6182_v27 = vsel %vm5342_vm2, %v6166_v60, %v5974_v44  ;;  %v6183_v26 = vsel %vm5342_vm2, %v6167_v24, %v5975_v25  ;;  %v10537_v22 = vmul.f32 0.75, %v10526_v38 }
 0x343   : > { %v6198_v11 = vsel %vm5359_vm3, %v6182_v27, %v11715_v46  ;;  %v10540_v43 = vmul.f32 0.25, %v10529_v23  ;;  %v6199_v29 = vsel %vm5359_vm3, %v6183_v26, %v11716_v50  ;;  %v5658_v45 = vrot.slane %v9993_v21, 6 }
 0x344   : > { %v10546_v20 = vsel %vm5376_vm4, %v6198_v11, %v11720_v18  ;;  %v5659_v42 = vrot.slane %v10069_v7, 6  ;;  %v10552_v46 = vsel %vm5376_vm4, %v6199_v29, %v11722_v53  ;;  %v5690_v50 = vrot.slane %v9995_v47, 5 }
 0x345   : > { %11721 = vst [vmem:[#allocation39_spill] sm:$0xff] %v10546_v20  ;;  %v10555_v30 = vmul.f32 0.75, %v10546_v20  ;;  %v6327_v32 = vadd.f32 %v10540_v43, %v10537_v22  ;;  %v10561_v6 = vmul.f32 0.25, %v10552_v46  ;;  %v5691_v36 = vrot.slane %v10071_v8, 5 }
 0x346   : > { %v5722_v52 = vrot.slane %v9993_v21, 5  ;;  %v5723_v54 = vrot.slane %v10069_v7, 5  ;;  %v5754_v13 = vrot.slane %v9995_v47, 4  ;;  %v5755_v44 = vrot.slane %v10071_v8, 4 }
 0x347   : > { %v5786_v25 = vrot.slane %v9993_v21, 4  ;;  %v5787_v37 = vrot.slane %v10069_v7, 4  ;;  %v6328_v41 = vadd.f32 %v10561_v6, %v10555_v30  ;;  %v5818_v35 = vrot.slane %v9995_v47, 3 }
 0x348   : > { %v5819_v34 = vrot.slane %v10071_v8, 3  ;;  %v5850_v58 = vrot.slane %v9993_v21, 3  ;;  %v5851_v5 = vrot.slane %v10069_v7, 3  ;;  %v5882_v3 = vrot.slane %v9995_v47, 2 }
 0x349   : > { %v5883_v12 = vrot.slane %v10071_v8, 2  ;;  %v5914_v14 = vrot.slane %v9993_v21, 2  ;;  %v6508_v56 = vpack.c.bf16 %v6328_v41, %v6327_v32  ;;  %v5915_v60 = vrot.slane %v10069_v7, 2 }
 0x34a   : > { %v5946_v24 = vrot.slane %v9995_v47, 1  ;;  %v5947_v27 = vrot.slane %v10071_v8, 1  ;;  %v5978_v26 = vrot.slane %v9993_v21, 1  ;;  %v5979_v11 = vrot.slane %v10069_v7, 1 }
 0x34b   : > { %v6042_v29 = vsel %vm1225_vm11, %v10018_v4, %v5658_v45  ;;  %v6043_v18 = vsel %vm1225_vm11, %v10095_v39, %v5659_v42  ;;  %v6623_v53 = vsel %vm1532_vm13, %v6508_v56, 0  ;;  %v6122_v55 = vsel %vm5274_vm15, %v5818_v35, %v5850_v58 }
 0x34c   : > { %v6058_v32 = vsel %vm5325_vm1, %v6042_v29, %v5690_v50  ;;  %v6059_v41 = vsel %vm5325_vm1, %v6043_v18, %v5691_v36  ;;  %7353 = vmatpush3.bf16.xpose.msra.mxu1 %v6623_v53  ;;  %v6123_v7 = vsel %vm5274_vm15, %v5819_v34, %v5851_v5  ;;  %v6138_v4 = vsel %vm5291_vm0, %v6122_v55, %v5882_v3  ;;  %v11725_v34 = vld [vmem:[#allocation51_spill] sm:$0xff]  ;;  %v11726_v5 = vld [vmem:[#allocation62_spill] sm:$0xff] }
 0x34d   : > { %v6074_v33 = vsel %vm5342_vm2, %v6058_v32, %v5722_v52  ;;  %v6075_v21 = vsel %vm5342_vm2, %v6059_v41, %v5723_v54  ;;  %v6139_v42 = vsel %vm5291_vm0, %v6123_v7, %v5883_v12  ;;  %v6154_v50 = vsel %vm1225_vm11, %v6138_v4, %v5914_v14 }
 0x34e   : > { %v6090_v45 = vsel %vm5359_vm3, %v6074_v33, %v5754_v13  ;;  %v6091_v39 = vsel %vm5359_vm3, %v6075_v21, %v5755_v44  ;;  %v6155_v52 = vsel %vm1225_vm11, %v6139_v42, %v5915_v60  ;;  %v6170_v54 = vsel %vm5325_vm1, %v6154_v50, %v5946_v24  ;;  %v11728_v60 = vld [vmem:[#allocation50_spill] sm:$0xff] }
 0x34f   : > { %v10601_v36 = vsel %vm5376_vm4, %v6090_v45, %v5786_v25  ;;  %v10604_v35 = vsel %vm5376_vm4, %v6091_v39, %v5787_v37  ;;  %v6171_v55 = vsel %vm5325_vm1, %v6155_v52, %v5947_v27  ;;  %v6186_v33 = vsel %vm5342_vm2, %v6170_v54, %v5978_v26  ;;  %v11730_v26 = vld [vmem:[#allocation61_spill] sm:$0xff] }
 0x350   : > { %11723 = vst [vmem:[#allocation46_spill] sm:$0xff] %v10601_v36  ;;  %11724 = vst [vmem:[#allocation43_spill] sm:$0xff] %v10604_v35  ;;  %v10611_v13 = vmul.f32 0.75, %v10601_v36  ;;  %v10614_v44 = vmul.f32 0.25, %v10604_v35  ;;  %v6187_v25 = vsel %vm5342_vm2, %v6171_v55, %v5979_v11  ;;  %v6202_v37 = vsel %vm5359_vm3, %v6186_v33, %v9995_v47 }
 0x351   : > { %v4961_v58 = vrot.slane %v11725_v34, 5  ;;  %v4962_v3 = vrot.slane %v11726_v5, 5  ;;  %v6203_v12 = vsel %vm5359_vm3, %v6187_v25, %v10071_v8  ;;  %v10625_v14 = vsel %vm5376_vm4, %v6202_v37, %v9980_v48  ;;  %v11731_v25 = vld [vmem:[#allocation57_spill] sm:$0xff] }
 0x352   : > { %11727 = vst [vmem:[#allocation49_spill] sm:$0xff] %v10625_v14  ;;  %v6391_v56 = vadd.f32 %v10614_v44, %v10611_v13  ;;  %v4993_v24 = vrot.slane %v11728_v60, 5  ;;  %v10632_v27 = vsel %vm5376_vm4, %v6203_v12, %v10058_v15  ;;  %v10635_v47 = vmul.f32 0.75, %v10625_v14  ;;  %v11732_v12 = vld [vmem:[#allocation63_spill] sm:$0xff] }
 0x353   : > { %11729 = vst [vmem:[#allocation36_spill] sm:$0xff] %v10632_v27  ;;  %v4994_v11 = vrot.slane %v11730_v26, 5  ;;  %v5025_v8 = vrot.slane %v11725_v34, 4  ;;  %v10640_v29 = vmul.f32 0.25, %v10632_v27  ;;  %v5026_v48 = vrot.slane %v11726_v5, 4 }
 0x354   : > { %v5057_v18 = vrot.slane %v11728_v60, 4  ;;  %v5058_v53 = vrot.slane %v11730_v26, 4  ;;  %v5089_v32 = vrot.slane %v11725_v34, 3  ;;  %v5090_v15 = vrot.slane %v11726_v5, 3 }
 0x355   : > { %v5121_v41 = vrot.slane %v11728_v60, 3  ;;  %v5122_v21 = vrot.slane %v11730_v26, 3  ;;  %v6392_v7 = vadd.f32 %v10640_v29, %v10635_v47  ;;  %v5153_v4 = vrot.slane %v11725_v34, 2 }
 0x356   : > { %v5154_v45 = vrot.slane %v11726_v5, 2  ;;  %v5185_v39 = vrot.slane %v11728_v60, 2  ;;  %v5186_v42 = vrot.slane %v11730_v26, 2  ;;  %v5217_v50 = vrot.slane %v11725_v34, 1 }
 0x357   : > { %v5218_v52 = vrot.slane %v11726_v5, 1  ;;  %v5249_v54 = vrot.slane %v11728_v60, 1  ;;  %v6524_v55 = vpack.c.bf16 %v6392_v7, %v6391_v56  ;;  %v5250_v33 = vrot.slane %v11730_v26, 1 }
 0x358   : > { %v5333_v37 = vsel %vm5325_vm1, %v11731_v25, %v4961_v58  ;;  %v5334_v14 = vsel %vm5325_vm1, %v11732_v12, %v4962_v3  ;;  %v5400_v20 = vsel %vm5274_vm15, %v5089_v32, %v5121_v41  ;;  %v5401_v38 = vsel %vm5274_vm15, %v5090_v15, %v5122_v21  ;;  %v11735_v21 = vld [vmem:[#allocation53_spill] sm:$0xff] }
 0x359   : > { %v5350_v36 = vsel %vm5342_vm2, %v5333_v37, %v4993_v24  ;;  %v5351_v59 = vsel %vm5342_vm2, %v5334_v14, %v4994_v11  ;;  %v6671_v9 = vsel %vm1532_vm13, %v6524_v55, 0  ;;  %v5416_v26 = vsel %vm5291_vm0, %v5400_v20, %v5153_v4 }
 0x35a   : > { %v5367_v56 = vsel %vm5359_vm3, %v5350_v36, %v5025_v8  ;;  %v5368_v60 = vsel %vm5359_vm3, %v5351_v59, %v5026_v48  ;;  %7371 = vmatpush3.bf16.xpose.msra.mxu0 %v6671_v9  ;;  %v5417_v14 = vsel %vm5291_vm0, %v5401_v38, %v5154_v45  ;;  %v5432_v24 = vsel %vm1225_vm11, %v5416_v26, %v5185_v39  ;;  %v11737_v39 = vld [vmem:[#allocation69_spill] sm:$0xff] }
 0x35b   : > { %v10672_v58 = vsel %vm5376_vm4, %v5367_v56, %v5057_v18  ;;  %v10675_v3 = vsel %vm5376_vm4, %v5368_v60, %v5058_v53  ;;  %v5433_v11 = vsel %vm1225_vm11, %v5417_v14, %v5186_v42  ;;  %v5448_v32 = vsel %vm5325_vm1, %v5432_v24, %v5217_v50 }
 0x35c   : > { %11733 = vst [vmem:[#allocation42_spill] sm:$0xff] %v10672_v58  ;;  %11734 = vst [vmem:[#allocation51_spill] sm:$0xff] %v10675_v3  ;;  %v10682_v36 = vmul.f32 0.75, %v10672_v58  ;;  %v10685_v59 = vmul.f32 0.25, %v10675_v3  ;;  %v5449_v9 = vsel %vm5325_vm1, %v5433_v11, %v5218_v52  ;;  %v5464_v20 = vsel %vm5342_vm2, %v5448_v32, %v5249_v54  ;;  %v11762_v58 = vld [vmem:[#allocation32_spill] sm:$0xff] }
 0x35d   : > { %v4965_v8 = vrot.slane %v10086_v63, 5  ;;  %v4966_v38 = vrot.slane %v10179_v61, 5  ;;  %v5465_v48 = vsel %vm5342_vm2, %v5449_v9, %v5250_v33  ;;  %v5480_v18 = vsel %vm5359_vm3, %v5464_v20, %v11725_v34 }
 0x35e   : > { %v6357_v53 = vadd.f32 %v10685_v59, %v10682_v36  ;;  %v4997_v15 = vrot.slane %v10083_v19, 5  ;;  %v5481_v41 = vsel %vm5359_vm3, %v5465_v48, %v11726_v5  ;;  %v10701_v7 = vsel %vm5376_vm4, %v5480_v18, %v11735_v21 }
 0x35f   : > { %11736 = vst [vmem:[#allocation62_spill] sm:$0xff] %v10701_v7  ;;  %v4998_v4 = vrot.slane %v10177_v28, 5  ;;  %v5029_v45 = vrot.slane %v10086_v63, 4  ;;  %v10707_v42 = vsel %vm5376_vm4, %v5481_v41, %v11737_v39  ;;  %v10710_v34 = vmul.f32 0.75, %v10701_v7 }
 0x360   : > { %11738 = vst [vmem:[#allocation50_spill] sm:$0xff] %v10707_v42  ;;  %v5030_v50 = vrot.slane %v10179_v61, 4  ;;  %v5061_v52 = vrot.slane %v10083_v19, 4  ;;  %v10715_v5 = vmul.f32 0.25, %v10707_v42  ;;  %v5062_v54 = vrot.slane %v10177_v28, 4 }
 0x361   : > { %v5093_v55 = vrot.slane %v10086_v63, 3  ;;  %v5094_v33 = vrot.slane %v10179_v61, 3  ;;  %v5125_v25 = vrot.slane %v10083_v19, 3  ;;  %v5126_v37 = vrot.slane %v10177_v28, 3 }
 0x362   : > { %v5157_v12 = vrot.slane %v10086_v63, 2  ;;  %v5158_v56 = vrot.slane %v10179_v61, 2  ;;  %v6358_v60 = vadd.f32 %v10715_v5, %v10710_v34  ;;  %v5189_v26 = vrot.slane %v10083_v19, 2 }
 0x363   : > { %v5190_v14 = vrot.slane %v10177_v28, 2  ;;  %v5221_v24 = vrot.slane %v10086_v63, 1  ;;  %v5222_v11 = vrot.slane %v10179_v61, 1  ;;  %v5253_v32 = vrot.slane %v10083_v19, 1 }
 0x364   : > { %v5254_v9 = vrot.slane %v10177_v28, 1  ;;  %v5337_v20 = vsel %vm5325_vm1, %v10121_v62, %v4965_v8  ;;  %v6515_v48 = vpack.c.bf16 %v6358_v60, %v6357_v53  ;;  %v5338_v18 = vsel %vm5325_vm1, %v10205_v31, %v4966_v38 }
 0x365   : > { %v5354_v41 = vsel %vm5342_vm2, %v5337_v20, %v4997_v15  ;;  %v5404_v21 = vsel %vm5274_vm15, %v5093_v55, %v5125_v25  ;;  %v5355_v39 = vsel %vm5342_vm2, %v5338_v18, %v4998_v4  ;;  %v5405_v3 = vsel %vm5274_vm15, %v5094_v33, %v5126_v37  ;;  %v11743_v33 = vld [vmem:[#allocation40_spill] sm:$0xff]  ;;  %v11744_v37 = vld [vmem:[#allocation33_spill] sm:$0xff] }
 0x366   : > { %v5371_v42 = vsel %vm5359_vm3, %v5354_v41, %v5029_v45  ;;  %v5420_v19 = vsel %vm5291_vm0, %v5404_v21, %v5157_v12  ;;  %7415 = vmatprep.subr.msk.bf16.mxu1 %vm1532_vm13, %v6515_v48  ;;  %v5372_v62 = vsel %vm5359_vm3, %v5355_v39, %v5030_v50  ;;  %v5421_v31 = vsel %vm5291_vm0, %v5405_v3, %v5158_v56  ;;  %v11742_v3 = vld [vmem:[#allocation34_spill] sm:$0xff] }
 0x367   : > { %v10745_v28 = vsel %vm5376_vm4, %v5371_v42, %v5061_v52  ;;  %v5436_v8 = vsel %vm1225_vm11, %v5420_v19, %v5189_v26  ;;  %v10750_v38 = vsel %vm5376_vm4, %v5372_v62, %v5062_v54  ;;  %v5437_v53 = vsel %vm1225_vm11, %v5421_v31, %v5190_v14  ;;  %v11746_v14 = vld [vmem:[#allocation41_spill] sm:$0xff] }
 0x368   : > { %11739 = vst [vmem:[#allocation61_spill] sm:$0xff] %v10745_v28  ;;  %11740 = vst [vmem:[#allocation57_spill] sm:$0xff] %v10750_v38  ;;  %v5452_v15 = vsel %vm5325_vm1, %v5436_v8, %v5221_v24  ;;  %v10755_v4 = vmul.f32 0.75, %v10745_v28  ;;  %v5453_v45 = vsel %vm5325_vm1, %v5437_v53, %v5222_v11  ;;  %v10760_v42 = vmul.f32 0.25, %v10750_v38  ;;  %v11747_v11 = vld [vmem:[#allocation24_spill] sm:$0xff] }
 0x369   : > { %v5468_v50 = vsel %vm5342_vm2, %v5452_v15, %v5253_v32  ;;  %v4927_v52 = vrot.slane %v11742_v3, 6  ;;  %v5469_v55 = vsel %vm5342_vm2, %v5453_v45, %v5254_v9  ;;  %v4928_v25 = vrot.slane %v11743_v33, 6 }
 0x36a   : > { %11741 = vst [vmem:[#allocation63_spill] sm:$0xff] %v10760_v42  ;;  %v5484_v54 = vsel %vm5359_vm3, %v5468_v50, %v10086_v63  ;;  %v4959_v12 = vrot.slane %v11744_v37, 5  ;;  %v5485_v56 = vsel %vm5359_vm3, %v5469_v55, %v10179_v61  ;;  %v6421_v26 = vadd.f32 %v10760_v42, %v10755_v4 }
 0x36b   : > { %v10772_v60 = vsel %vm5376_vm4, %v5484_v54, %v10156_v2  ;;  %v4960_v24 = vrot.slane %v11746_v14, 5  ;;  %v10779_v32 = vsel %vm5376_vm4, %v5485_v56, %v11747_v11  ;;  %v4991_v9 = vrot.slane %v11742_v3, 5 }
 0x36c   : > { %11745 = vst [vmem:[#allocation53_spill] sm:$0xff] %v10772_v60  ;;  %11748 = vst [vmem:[#allocation69_spill] sm:$0xff] %v10779_v32  ;;  %v10782_v63 = vmul.f32 0.75, %v10772_v60  ;;  %v4992_v61 = vrot.slane %v11743_v33, 5  ;;  %v10787_v20 = vmul.f32 0.25, %v10779_v32  ;;  %v5023_v2 = vrot.slane %v11744_v37, 4 }
 0x36d   : > { %v5024_v48 = vrot.slane %v11746_v14, 4  ;;  %v5055_v18 = vrot.slane %v11742_v3, 4  ;;  %v5056_v41 = vrot.slane %v11743_v33, 4  ;;  %v5087_v21 = vrot.slane %v11744_v37, 3  ;;  %v11750_v32 = vld [vmem:[#allocation35_spill] sm:$0xff] }
 0x36e   : > { %11749 = vst [vmem:[#allocation34_spill] sm:$0xff] %v10787_v20  ;;  %v5088_v39 = vrot.slane %v11746_v14, 3  ;;  %v5119_v19 = vrot.slane %v11742_v3, 3  ;;  %v6422_v62 = vadd.f32 %v10787_v20, %v10782_v63  ;;  %v5120_v31 = vrot.slane %v11743_v33, 3  ;;  %v11751_v20 = vld [vmem:[#allocation47_spill] sm:$0xff] }
 0x36f   : > { %v5151_v8 = vrot.slane %v11744_v37, 2  ;;  %v5152_v53 = vrot.slane %v11746_v14, 2  ;;  %v5183_v15 = vrot.slane %v11742_v3, 2  ;;  %v5184_v45 = vrot.slane %v11743_v33, 2 }
 0x370   : > { %v5215_v50 = vrot.slane %v11744_v37, 1  ;;  %v5216_v55 = vrot.slane %v11746_v14, 1  ;;  %v6531_v54 = vpack.c.bf16 %v6422_v62, %v6421_v26  ;;  %v5247_v56 = vrot.slane %v11742_v3, 1 }
 0x371   : > { %v5248_v11 = vrot.slane %v11743_v33, 1  ;;  %v5314_v38 = vsel %vm1225_vm11, %v11750_v32, %v4927_v52  ;;  %v5315_v42 = vsel %vm1225_vm11, %v11751_v20, %v4928_v25  ;;  %v5398_v28 = vsel %vm5274_vm15, %v5087_v21, %v5119_v19  ;;  %v11757_v19 = vld [vmem:[#allocation44_spill] sm:$0xff] }
 0x372   : > { %v5331_v60 = vsel %vm5325_vm1, %v5314_v38, %v4959_v12  ;;  %v5399_v7 = vsel %vm5274_vm15, %v5088_v39, %v5120_v31  ;;  %7423 = vmatprep.subr.msk.bf16.mxu0 %vm1532_vm13, %v6531_v54  ;;  %v5332_v26 = vsel %vm5325_vm1, %v5315_v42, %v4960_v24  ;;  %v5414_v33 = vsel %vm5291_vm0, %v5398_v28, %v5151_v8  ;;  %v11759_v8 = vld [vmem:[#allocation6_spill] sm:$0xff] }
 0x373   : > { %v5348_v3 = vsel %vm5342_vm2, %v5331_v60, %v4991_v9  ;;  %v5415_v62 = vsel %vm5291_vm0, %v5399_v7, %v5152_v53  ;;  %v5349_v52 = vsel %vm5342_vm2, %v5332_v26, %v4992_v61  ;;  %v5430_v38 = vsel %vm1225_vm11, %v5414_v33, %v5183_v15  ;;  %v11760_v15 = vld [vmem:[#allocation26_spill] sm:$0xff] }
 0x374   : > { %v5365_v25 = vsel %vm5359_vm3, %v5348_v3, %v5023_v2  ;;  %v5431_v12 = vsel %vm1225_vm11, %v5415_v62, %v5184_v45  ;;  %v5366_v32 = vsel %vm5359_vm3, %v5349_v52, %v5024_v48  ;;  %v5446_v42 = vsel %vm5325_vm1, %v5430_v38, %v5215_v50 }
 0x375   : > { %v10825_v20 = vsel %vm5376_vm4, %v5365_v25, %v5055_v18  ;;  %v5447_v60 = vsel %vm5325_vm1, %v5431_v12, %v5216_v55  ;;  %v10830_v28 = vsel %vm5376_vm4, %v5366_v32, %v5056_v41  ;;  %v5462_v7 = vsel %vm5342_vm2, %v5446_v42, %v5247_v56  ;;  %v11754_v18 = vld [vmem:[#allocation25_spill] sm:$0xff]  ;;  %v11761_v55 = vld [vmem:[#allocation48_spill] sm:$0xff] }
 0x376   : > { %11752 = vst [vmem:[#allocation40_spill] sm:$0xff] %v10825_v20  ;;  %11753 = vst [vmem:[#allocation33_spill] sm:$0xff] %v10830_v28  ;;  %v5463_v24 = vsel %vm5342_vm2, %v5447_v60, %v5248_v11  ;;  %v10835_v9 = vmul.f32 0.75, %v10825_v20  ;;  %v5478_v61 = vsel %vm5359_vm3, %v5462_v7, %v11744_v37  ;;  %v10842_v48 = vmul.f32 0.25, %v10830_v28  ;;  %v11755_v41 = vld [vmem:[#allocation37_spill] sm:$0xff] }
 0x377   : > { %v5479_v2 = vsel %vm5359_vm3, %v5463_v24, %v11746_v14  ;;  %v4931_v21 = vrot.slane %v11754_v18, 6  ;;  %v10847_v39 = vsel %vm5376_vm4, %v5478_v61, %v11755_v41  ;;  %v4932_v53 = vrot.slane %v11759_v8, 6 }
 0x378   : > { %11756 = vst [vmem:[#allocation41_spill] sm:$0xff] %v10847_v39  ;;  %v10851_v31 = vsel %vm5376_vm4, %v5479_v2, %v11757_v19  ;;  %v4963_v37 = vrot.slane %v11760_v15, 5  ;;  %v10856_v45 = vmul.f32 0.75, %v10847_v39  ;;  %v6325_v50 = vadd.f32 %v10842_v48, %v10835_v9 }
 0x379   : > { %11758 = vst [vmem:[#allocation24_spill] sm:$0xff] %v10851_v31  ;;  %v10859_v14 = vmul.f32 0.25, %v10851_v31  ;;  %v4964_v54 = vrot.slane %v11761_v55, 5  ;;  %v4995_v56 = vrot.slane %v11754_v18, 5  ;;  %v4996_v11 = vrot.slane %v11759_v8, 5 }
 0x37a   : > { %v5027_v26 = vrot.slane %v11760_v15, 4  ;;  %v5028_v3 = vrot.slane %v11761_v55, 4  ;;  %v5059_v62 = vrot.slane %v11754_v18, 4  ;;  %v5060_v52 = vrot.slane %v11759_v8, 4 }
 0x37b   : > { %v6326_v33 = vadd.f32 %v10859_v14, %v10856_v45  ;;  %v5091_v25 = vrot.slane %v11760_v15, 3  ;;  %v5092_v38 = vrot.slane %v11761_v55, 3  ;;  %v5123_v12 = vrot.slane %v11754_v18, 3 }
 0x37c   : > { %v5124_v32 = vrot.slane %v11759_v8, 3  ;;  %v5155_v42 = vrot.slane %v11760_v15, 2  ;;  %v5156_v7 = vrot.slane %v11761_v55, 2  ;;  %v5187_v24 = vrot.slane %v11754_v18, 2 }
 0x37d   : > { %v6507_v60 = vpack.c.bf16 %v6326_v33, %v6325_v50  ;;  %v5188_v61 = vrot.slane %v11759_v8, 2  ;;  %v5219_v2 = vrot.slane %v11760_v15, 1  ;;  %v5220_v41 = vrot.slane %v11761_v55, 1  ;;  %v11763_v50 = vld [vmem:[#allocation28_spill] sm:$0xff] }
 0x37e   : > { %v5251_v19 = vrot.slane %v11754_v18, 1  ;;  %v5252_v39 = vrot.slane %v11759_v8, 1  ;;  %v5318_v31 = vsel %vm1225_vm11, %v11762_v58, %v4931_v21  ;;  %v5319_v33 = vsel %vm1225_vm11, %v11763_v50, %v4932_v53  ;;  %v11769_v50 = vld [vmem:[#allocation79_spill] sm:$0xff] }
 0x37f   : > { %v6620_v20 = vsel %vm1532_vm13, %v6507_v60, 0  ;;  %v5402_v28 = vsel %vm5274_vm15, %v5091_v25, %v5123_v12  ;;  %v5335_v0 = vsel %vm5325_vm1, %v5318_v31, %v4963_v37  ;;  %v5336_v27 = vsel %vm5325_vm1, %v5319_v33, %v4964_v54 }
 0x380   : > { %7355 = vmatpush3.bf16.xpose.msra.mxu1 %v6620_v20  ;;  %v5403_v35 = vsel %vm5274_vm15, %v5092_v38, %v5124_v32  ;;  %v5418_v18 = vsel %vm5291_vm0, %v5402_v28, %v5155_v42  ;;  %v5352_v8 = vsel %vm5342_vm2, %v5335_v0, %v4995_v56  ;;  %v5353_v60 = vsel %vm5342_vm2, %v5336_v27, %v4996_v11  ;;  %v11765_v38 = vld [vmem:[#allocation31_spill] sm:$0xff] }
 0x381   : > { %v5419_v58 = vsel %vm5291_vm0, %v5403_v35, %v5156_v7  ;;  %v5434_v21 = vsel %vm1225_vm11, %v5418_v18, %v5187_v24  ;;  %v5369_v53 = vsel %vm5359_vm3, %v5352_v8, %v5027_v26  ;;  %v5370_v20 = vsel %vm5359_vm3, %v5353_v60, %v5028_v3 }
 0x382   : > { %v5435_v31 = vsel %vm1225_vm11, %v5419_v58, %v5188_v61  ;;  %v5450_v37 = vsel %vm5325_vm1, %v5434_v21, %v5219_v2  ;;  %v10903_v54 = vsel %vm5376_vm4, %v5369_v53, %v5059_v62  ;;  %v10906_v28 = vsel %vm5376_vm4, %v5370_v20, %v5060_v52  ;;  %v11764_v62 = vld [vmem:[#allocation29_spill] sm:$0xff]  ;;  %v11771_v21 = vld [vmem:[#allocation36_spill] sm:$0xff] }
 0x383   : > { %v5451_v0 = vsel %vm5325_vm1, %v5435_v31, %v5220_v41  ;;  %v5466_v35 = vsel %vm5342_vm2, %v5450_v37, %v5251_v19  ;;  %v6377_v11 = vmul.f32 0.75, %v10903_v54  ;;  %v6385_v26 = vmul.f32 0.25, %v10906_v28  ;;  %v11773_v31 = vld [vmem:[#allocation80_spill] sm:$0xff] }
 0x384   : > { %v5467_v27 = vsel %vm5342_vm2, %v5451_v0, %v5252_v39  ;;  %v5482_v56 = vsel %vm5359_vm3, %v5466_v35, %v11760_v15  ;;  %v6351_v25 = vadd.f32 %v10377_v57, %v10540_v43  ;;  %v6352_v39 = vadd.f32 %v10407_v17, %v10561_v6  ;;  %v11766_v57 = vld [vmem:[#allocation65_spill] sm:$0xff]  ;;  %v11767_v17 = vld [vmem:[#allocation67_spill] sm:$0xff]  ;;  %v11774_v35 = vld [vmem:[#allocation64_spill] sm:$0xff] }
 0x385   : > { %v5483_v3 = vsel %vm5359_vm3, %v5467_v27, %v11761_v55  ;;  %v10919_v52 = vsel %vm5376_vm4, %v5482_v56, %v11764_v62  ;;  %v6389_v32 = vadd.f32 %v6385_v26, %v6377_v11  ;;  %v6415_v55 = vadd.f32 %v10462_v40, %v10614_v44  ;;  %v11776_v62 = vld [vmem:[#allocation45_spill] sm:$0xff] }
 0x386   : > { %v10927_v15 = vsel %vm5376_vm4, %v5483_v3, %v11765_v38  ;;  %v6378_v12 = vmul.f32 0.75, %v10919_v52  ;;  %v6514_v7 = vpack.c.bf16 %v6352_v39, %v6351_v25  ;;  %v6416_v24 = vadd.f32 %v10478_v51, %v10640_v29  ;;  %v11777_v38 = vld [vmem:[#allocation39_spill] sm:$0xff] }
 0x387   : > { %v6386_v42 = vmul.f32 0.25, %v10927_v15  ;;  %v6319_v43 = vadd.f32 %v10537_v22, %v11766_v57  ;;  %v6320_v6 = vadd.f32 %v10555_v30, %v11767_v17  ;;  %v6383_v61 = vadd.f32 %v10611_v13, %v10382_v10  ;;  %v11768_v10 = vld [vmem:[#allocation75_spill] sm:$0xff] }
 0x388   : > { %v6384_v2 = vadd.f32 %v10635_v47, %v10410_v1  ;;  %v6349_v40 = vadd.f32 %v10682_v36, %v10842_v48  ;;  %7416 = vmatprep.subr.msk.bf16.mxu1 %vm1532_vm13, %v6514_v7  ;;  %v6530_v41 = vpack.c.bf16 %v6416_v24, %v6415_v55  ;;  %v6350_v51 = vadd.f32 %v10710_v34, %v10859_v14 }
 0x389   : > { %v6390_v44 = vadd.f32 %v6386_v42, %v6378_v12  ;;  %v6413_v22 = vadd.f32 %v10755_v4, %v6385_v26  ;;  %v6506_v29 = vpack.c.bf16 %v6320_v6, %v6319_v43  ;;  %v6414_v19 = vadd.f32 %v10782_v63, %v6386_v42  ;;  %v11775_v26 = vld [vmem:[#allocation66_spill] sm:$0xff]  ;;  %v11779_v42 = vld [vmem:[#allocation59_spill] sm:$0xff]  ;;  %v11781_v6 = vld [vmem:[#allocation49_spill] sm:$0xff] }
 0x38a   : > { %v6522_v30 = vpack.c.bf16 %v6384_v2, %v6383_v61  ;;  %v6317_v13 = vadd.f32 %v10835_v9, %v11768_v10  ;;  %v6513_v47 = vpack.c.bf16 %v6350_v51, %v6349_v40  ;;  %v6318_v36 = vadd.f32 %v10856_v45, %v11769_v50  ;;  %v11780_v43 = vld [vmem:[#allocation46_spill] sm:$0xff]  ;;  %v11782_v40 = vld [vmem:[#allocation33_spill] sm:$0xff] }
 0x38b   : > { %v6523_v1 = vpack.c.bf16 %v6390_v44, %v6389_v32  ;;  %v6381_v48 = vadd.f32 %v6377_v11, %v10685_v59  ;;  %v6617_v33 = vsel %vm1532_vm13, %v6506_v29, 0  ;;  %v6529_v14 = vpack.c.bf16 %v6414_v19, %v6413_v22  ;;  %v11778_v32 = vld [vmem:[#allocation74_spill] sm:$0xff] }
 0x38c   : > { %v6665_v34 = vsel %vm1532_vm13, %v6522_v30, 0  ;;  %v6382_v4 = vadd.f32 %v6378_v12, %v10715_v5  ;;  %7357 = vmatpush3.bf16.xpose.msra.mxu1 %v6617_v33  ;;  %v6505_v63 = vpack.c.bf16 %v6318_v36, %v6317_v13  ;;  %v10960_v9 = vmul.f32 0.75, %v10529_v23  ;;  %v11770_v5 = vld [vmem:[#allocation43_spill] sm:$0xff]  ;;  %v11784_v22 = vld [vmem:[#allocation42_spill] sm:$0xff] }
 0x38d   : > { %v6668_v18 = vsel %vm1532_vm13, %v6523_v1, 0  ;;  %v10963_v8 = vmul.f32 0.75, %v10552_v46  ;;  %7417 = vmatprep.subr.msk.bf16.mxu1 %vm1532_vm13, %v6513_v47  ;;  %v10967_v45 = vmul.f32 0.25, %v10368_v16  ;;  %v10970_v60 = vmul.f32 0.25, %v10398_v49  ;;  %v11772_v46 = vld [vmem:[#allocation76_spill] sm:$0xff]  ;;  %v11785_v10 = vld [vmem:[#allocation62_spill] sm:$0xff] }
 0x38e   : > { %7373 = vmatpush3.bf16.xpose.msra.mxu0 %v6668_v18  ;;  %v6521_v59 = vpack.c.bf16 %v6382_v4, %v6381_v48  ;;  %v6395_v58 = vmul.f32 0.75, %v11770_v5  ;;  %v6614_v23 = vsel %vm1532_vm13, %v6505_v63, 0  ;;  %v6396_v53 = vmul.f32 0.75, %v11771_v21  ;;  %v11786_v48 = vld [vmem:[#allocation61_spill] sm:$0xff]  ;;  %v11789_v21 = vld [vmem:[#allocation78_spill] sm:$0xff] }
 0x38f   : > { %7424 = vmatprep.subr.msk.bf16.mxu0 %vm1532_vm13, %v6530_v41  ;;  %v10977_v20 = vmul.f32 0.25, %v11772_v46  ;;  %v10980_v37 = vmul.f32 0.25, %v11773_v31  ;;  %v6343_v49 = vadd.f32 %v10967_v45, %v10960_v9  ;;  %v6344_v0 = vadd.f32 %v10970_v60, %v10963_v8  ;;  %v11783_v41 = vld [vmem:[#allocation24_spill] sm:$0xff]  ;;  %v11787_v63 = vld [vmem:[#allocation53_spill] sm:$0xff] }
 0x390   : > { %v6662_v16 = vsel %vm1532_vm13, %v6521_v59, 0  ;;  %v6299_v27 = vmul.f32 0.75, %v11774_v35  ;;  %v6300_v3 = vmul.f32 0.75, %v11775_v26  ;;  %v6307_v25 = vmul.f32 0.25, %v11776_v62  ;;  %v11788_v5 = vld [vmem:[#allocation73_spill] sm:$0xff]  ;;  %v11792_v26 = vld [vmem:[#allocation51_spill] sm:$0xff] }
 0x391   : > { %v10989_v56 = vadd.f32 %v10977_v20, %v6395_v58  ;;  %v10992_v11 = vadd.f32 %v10980_v37, %v6396_v53  ;;  %v6512_v39 = vpack.c.bf16 %v6344_v0, %v6343_v49  ;;  %v6308_v12 = vmul.f32 0.25, %v11777_v38  ;;  %v11791_v35 = vld [vmem:[#allocation41_spill] sm:$0xff] }
 0x392   : > { %v6363_v55 = vmul.f32 0.75, %v11778_v32  ;;  %v6364_v7 = vmul.f32 0.75, %v11779_v42  ;;  %v6311_v57 = vadd.f32 %v6307_v25, %v6299_v27  ;;  %v6371_v17 = vmul.f32 0.25, %v11780_v43 }
 0x393   : > { %v6528_v24 = vpack.c.bf16 %v10992_v11, %v10989_v56  ;;  %v6372_v61 = vmul.f32 0.25, %v11781_v6  ;;  %v6312_v2 = vadd.f32 %v6308_v12, %v6300_v3  ;;  %v6329_v44 = vmul.f32 0.75, %v11782_v40 }
 0x394   : > { %v6330_v51 = vmul.f32 0.75, %v11783_v41  ;;  %v11006_v29 = vmul.f32 0.25, %v11784_v22  ;;  %7359 = vmatpush3.bf16.xpose.msra.mxu1 %v6614_v23  ;;  %v6375_v30 = vadd.f32 %v6371_v17, %v6363_v55  ;;  %v6338_v13 = vmul.f32 0.25, %v11785_v10  ;;  %v11794_v10 = vld [vmem:[#allocation7_spill] sm:$0xff] }
 0x395   : > { %v6376_v19 = vadd.f32 %v6372_v61, %v6364_v7  ;;  %v6393_v1 = vmul.f32 0.75, %v10906_v28  ;;  %7418 = vmatprep.subr.msk.bf16.mxu1 %vm1532_vm13, %v6512_v39  ;;  %v6504_v47 = vpack.c.bf16 %v6312_v2, %v6311_v57  ;;  %v6394_v36 = vmul.f32 0.75, %v10927_v15  ;;  %v11790_v15 = vld [vmem:[#allocation40_spill] sm:$0xff]  ;;  %v11793_v39 = vld [vmem:[#allocation50_spill] sm:$0xff] }
 0x396   : > { %7375 = vmatpush3.bf16.xpose.msra.mxu0 %v6665_v34  ;;  %v6341_v50 = vadd.f32 %v11006_v29, %v6329_v44  ;;  %v11014_v33 = vmul.f32 0.25, %v11786_v48  ;;  %v6342_v18 = vadd.f32 %v6338_v13, %v6330_v51  ;;  %v11018_v59 = vmul.f32 0.25, %v11787_v63 }
 0x397   : > { %7425 = vmatprep.subr.msk.bf16.mxu0 %vm1532_vm13, %v6529_v14  ;;  %v6520_v4 = vpack.c.bf16 %v6376_v19, %v6375_v30  ;;  %v6297_v28 = vmul.f32 0.75, %v11788_v5  ;;  %v6611_v34 = vsel %vm1532_vm13, %v6504_v47, 0  ;;  %v6298_v46 = vmul.f32 0.75, %v11789_v21 }
 0x398   : > { %v11023_v23 = vadd.f32 %v11014_v33, %v6393_v1  ;;  %v6305_v31 = vmul.f32 0.25, %v11790_v15  ;;  %v6511_v0 = vpack.c.bf16 %v6342_v18, %v6341_v50  ;;  %v6406_v14 = vadd.f32 %v11018_v59, %v6394_v36  ;;  %v11797_v18 = vld [vmem:[#allocation19_spill] sm:$0xff] }
 0x399   : > { %v6659_v49 = vsel %vm1532_vm13, %v6520_v4, 0  ;;  %v6306_v56 = vmul.f32 0.25, %v11791_v35  ;;  %v6361_v62 = vmul.f32 0.75, %v11792_v26  ;;  %v6362_v38 = vmul.f32 0.75, %v11793_v39 }
 0x39a   : > { %v6309_v11 = vadd.f32 %v6305_v31, %v6297_v28  ;;  %v6369_v32 = vmul.f32 0.25, %v10903_v54  ;;  %v6527_v42 = vpack.c.bf16 %v6406_v14, %v11023_v23  ;;  %v6370_v43 = vmul.f32 0.25, %v10919_v52  ;;  %v11795_v54 = vld [vmem:[#allocation56_spill] sm:$0xff] }
 0x39b   : > { %v6310_v57 = vadd.f32 %v6306_v56, %v6298_v46  ;;  %v6335_v6 = vadd.f32 %v10960_v9, %v6307_v25  ;;  %v6336_v40 = vadd.f32 %v10963_v8, %v6308_v12  ;;  %v11037_v41 = vadd.f32 %v6395_v58, %v6371_v17  ;;  %v11796_v58 = vld [vmem:[#allocation70_spill] sm:$0xff] }
 0x39c   : > { %v6373_v2 = vadd.f32 %v6369_v32, %v6361_v62  ;;  %v11039_v22 = vadd.f32 %v6396_v53, %v6372_v61  ;;  %7361 = vmatpush3.bf16.xpose.msra.mxu1 %v6611_v34  ;;  %v6374_v19 = vadd.f32 %v6370_v43, %v6362_v38  ;;  %v6303_v47 = vadd.f32 %v6299_v27, %v11794_v10  ;;  %v11804_v10 = vld [vmem:[#allocation20_spill] sm:$0xff] }
 0x39d   : > { %v6503_v30 = vpack.c.bf16 %v6310_v57, %v6309_v11  ;;  %v6304_v50 = vadd.f32 %v6300_v3, %v11795_v54  ;;  %7419 = vmatprep.subr.msk.bf16.mxu1 %vm1532_vm13, %v6511_v0  ;;  %v6510_v52 = vpack.c.bf16 %v6336_v40, %v6335_v6  ;;  %v6367_v8 = vadd.f32 %v6363_v55, %v10967_v45  ;;  %v11800_v11 = vld [vmem:[#allocation71_spill] sm:$0xff]  ;;  %v11802_v6 = vld [vmem:[#allocation14_spill] sm:$0xff] }
 0x39e   : > { %7377 = vmatpush3.bf16.xpose.msra.mxu0 %v6662_v16  ;;  %v6526_v9 = vpack.c.bf16 %v11039_v22, %v11037_v41  ;;  %v5664_v25 = vrot.slane %v11796_v58, 6  ;;  %v6519_v12 = vpack.c.bf16 %v6374_v19, %v6373_v2  ;;  %v6368_v27 = vadd.f32 %v6364_v7, %v10970_v60  ;;  %v11798_v60 = vld [vmem:[#allocation21_spill] sm:$0xff]  ;;  %v11803_v40 = vld [vmem:[#allocation15_spill] sm:$0xff]  ;;  %v11806_v41 = vld [vmem:[#allocation18_spill] sm:$0xff] }
 0x39f   : > { %7426 = vmatprep.subr.msk.bf16.mxu0 %vm1532_vm13, %v6528_v24  ;;  %v6608_v53 = vsel %vm1532_vm13, %v6503_v30, 0  ;;  %v6502_v17 = vpack.c.bf16 %v6304_v50, %v6303_v47  ;;  %v11051_v3 = vadd.f32 %v6329_v44, %v6305_v31  ;;  %v6334_v16 = vadd.f32 %v6330_v51, %v6306_v56 }
 0x3a0   : > { %v11053_v61 = vadd.f32 %v6393_v1, %v6369_v32  ;;  %v11055_v48 = vadd.f32 %v6394_v36, %v6370_v43  ;;  %v6656_v4 = vsel %vm1532_vm13, %v6519_v12, 0  ;;  %v6518_v55 = vpack.c.bf16 %v6368_v27, %v6367_v8  ;;  %v11799_v36 = vld [vmem:[#allocation55_spill] sm:$0xff] }
 0x3a1   : > { %v6605_v45 = vsel %vm1532_vm13, %v6502_v17, 0  ;;  %v6301_v24 = vadd.f32 %v6297_v28, %v11797_v18  ;;  %v6509_v63 = vpack.c.bf16 %v6334_v16, %v11051_v3  ;;  %v6302_v7 = vadd.f32 %v6298_v46, %v11798_v60  ;;  %v11805_v18 = vld [vmem:[#allocation77_spill] sm:$0xff] }
 0x3a2   : > { %v6525_v5 = vpack.c.bf16 %v11055_v48, %v11053_v61  ;;  %v6365_v44 = vadd.f32 %v6361_v62, %v11006_v29  ;;  %v11066_v51 = vsel %vm1532_vm13, %v6518_v55, 0  ;;  %v6366_v1 = vadd.f32 %v6362_v38, %v6338_v13  ;;  %v11801_v38 = vld [vmem:[#allocation16_spill] sm:$0xff] }
 0x3a3   : > { %v5696_v34 = vrot.slane %v11799_v36, 5  ;;  %v5728_v23 = vrot.slane %v11796_v58, 5  ;;  %v6501_v21 = vpack.c.bf16 %v6302_v7, %v6301_v24  ;;  %v5760_v28 = vrot.slane %v11799_v36, 4 }
 0x3a4   : > { %v5792_v15 = vrot.slane %v11796_v58, 4  ;;  %v5824_v31 = vrot.slane %v11799_v36, 3  ;;  %7363 = vmatpush3.bf16.xpose.msra.mxu1 %v6608_v53  ;;  %v6517_v0 = vpack.c.bf16 %v6366_v1, %v6365_v44  ;;  %v5856_v46 = vrot.slane %v11796_v58, 3 }
 0x3a5   : > { %v5888_v29 = vrot.slane %v11799_v36, 2  ;;  %v5920_v14 = vrot.slane %v11796_v58, 2  ;;  %7420 = vmatprep.subr.msk.bf16.mxu1 %vm1532_vm13, %v6510_v52  ;;  %v11078_v13 = vsel %vm1532_vm13, %v6501_v21, 0  ;;  %v5952_v35 = vrot.slane %v11799_v36, 1 }
 0x3a6   : > { %7379 = vmatpush3.bf16.xpose.msra.mxu0 %v6659_v49  ;;  %v5984_v56 = vrot.slane %v11796_v58, 1  ;;  %v6048_v26 = vsel %vm1225_vm11, %v11800_v11, %v5664_v25  ;;  %v11086_v62 = vsel %vm1532_vm13, %v6517_v0, 0  ;;  %v6128_v49 = vsel %vm5274_vm15, %v5824_v31, %v5856_v46 }
 0x3a7   : > { %7427 = vmatprep.subr.msk.bf16.mxu0 %vm1532_vm13, %v6527_v42  ;;  %v6064_v39 = vsel %vm5325_vm1, %v6048_v26, %v5696_v34  ;;  %v5662_v32 = vrot.slane %v11801_v38, 6  ;;  %v6144_v43 = vsel %vm5291_vm0, %v6128_v49, %v5888_v29  ;;  %v5663_v2 = vrot.slane %v11802_v6, 6 }
 0x3a8   : > { %v6080_v57 = vsel %vm5342_vm2, %v6064_v39, %v5728_v23  ;;  %v5694_v30 = vrot.slane %v11803_v40, 5  ;;  %v6160_v42 = vsel %vm1225_vm11, %v6144_v43, %v5920_v14  ;;  %v5695_v47 = vrot.slane %v11804_v10, 5 }
 0x3a9   : > { %v6096_v19 = vsel %vm5359_vm3, %v6080_v57, %v5760_v28  ;;  %v5726_v54 = vrot.slane %v11801_v38, 5  ;;  %v6176_v52 = vsel %vm5325_vm1, %v6160_v42, %v5952_v35  ;;  %v5727_v8 = vrot.slane %v11802_v6, 5 }
 0x3aa   : > { %v6112_v50 = vsel %vm5376_vm4, %v6096_v19, %v5792_v15  ;;  %v5758_v58 = vrot.slane %v11803_v40, 4  ;;  %v6192_v25 = vsel %vm5342_vm2, %v6176_v52, %v5984_v56  ;;  %v5759_v17 = vrot.slane %v11804_v10, 4 }
 0x3ab   : > { %v11104_v53 = vmul.f32 0.25, %v6112_v50  ;;  %v11106_v12 = vmul.f32 0.75, %v6112_v50  ;;  %v6208_v27 = vsel %vm5359_vm3, %v6192_v25, %v11799_v36  ;;  %v5790_v3 = vrot.slane %v11801_v38, 4  ;;  %v11809_v25 = vld [vmem:[#allocation27_spill] sm:$0xff] }
 0x3ac   : > { %v5791_v16 = vrot.slane %v11802_v6, 4  ;;  %v5822_v55 = vrot.slane %v11803_v40, 3  ;;  %7365 = vmatpush3.bf16.xpose.msra.mxu1 %v6605_v45  ;;  %v6224_v24 = vsel %vm5376_vm4, %v6208_v27, %v11805_v18  ;;  %v5823_v7 = vrot.slane %v11804_v10, 3 }
 0x3ad   : > { %v6483_v60 = vadd.f32 %v11106_v12, %v11104_v53  ;;  %v5854_v44 = vrot.slane %v11801_v38, 3  ;;  %7421 = vmatprep.subr.msk.bf16.mxu1 %vm1532_vm13, %v6509_v63  ;;  %v11121_v1 = vmul.f32 0.25, %v6224_v24  ;;  %v11123_v36 = vmul.f32 0.75, %v6224_v24 }
 0x3ae   : > { %7381 = vmatpush3.bf16.xpose.msra.mxu0 %v6656_v4  ;;  %v5855_v34 = vrot.slane %v11802_v6, 3  ;;  %v5886_v45 = vrot.slane %v11803_v40, 2  ;;  %v5887_v23 = vrot.slane %v11804_v10, 2  ;;  %v5918_v21 = vrot.slane %v11801_v38, 2 }
 0x3af   : > { %7428 = vmatprep.subr.msk.bf16.mxu0 %vm1532_vm13, %v6526_v9  ;;  %v5919_v4 = vrot.slane %v11802_v6, 2  ;;  %v5950_v63 = vrot.slane %v11803_v40, 1  ;;  %v6484_v28 = vadd.f32 %v11123_v36, %v11121_v1  ;;  %v5951_v15 = vrot.slane %v11804_v10, 1  ;;  %v11807_v9 = vld [vmem:[#allocation72_spill] sm:$0xff] }
 0x3b0   : > { %v5982_v31 = vrot.slane %v11801_v38, 1  ;;  %v5983_v0 = vrot.slane %v11802_v6, 1  ;;  %v6046_v22 = vsel %vm1225_vm11, %v11806_v41, %v5662_v32  ;;  %v6047_v46 = vsel %vm1225_vm11, %v11807_v9, %v5663_v2  ;;  %v11814_v41 = vld [vmem:[#allocation22_spill] sm:$0xff] }
 0x3b1   : > { %v6126_v29 = vsel %vm5274_vm15, %v5822_v55, %v5854_v44  ;;  %v6127_v14 = vsel %vm5274_vm15, %v5823_v7, %v5855_v34  ;;  %v6548_v35 = vpack.c.bf16 %v6484_v28, %v6483_v60  ;;  %v6062_v56 = vsel %vm5325_vm1, %v6046_v22, %v5694_v30  ;;  %v11815_v9 = vld [vmem:[#allocation58_spill] sm:$0xff] }
 0x3b2   : > { %v6063_v11 = vsel %vm5325_vm1, %v6047_v46, %v5695_v47  ;;  %v6142_v26 = vsel %vm5291_vm0, %v6126_v29, %v5886_v45  ;;  %v6078_v39 = vsel %vm5342_vm2, %v6062_v56, %v5726_v54  ;;  %v6143_v38 = vsel %vm5291_vm0, %v6127_v14, %v5887_v23  ;;  %v11812_v23 = vld [vmem:[#allocation30_spill] sm:$0xff] }
 0x3b3   : > { %v6079_v49 = vsel %vm5342_vm2, %v6063_v11, %v5727_v8  ;;  %v6158_v32 = vsel %vm1225_vm11, %v6142_v26, %v5918_v21  ;;  %v6094_v57 = vsel %vm5359_vm3, %v6078_v39, %v5758_v58  ;;  %v6159_v6 = vsel %vm1225_vm11, %v6143_v38, %v5919_v4  ;;  %v11808_v8 = vld [vmem:[#allocation9_spill] sm:$0xff]  ;;  %v11816_v56 = vld [vmem:[#allocation10_spill] sm:$0xff] }
 0x3b4   : > { %v6095_v43 = vsel %vm5359_vm3, %v6079_v49, %v5759_v17  ;;  %v6174_v2 = vsel %vm5325_vm1, %v6158_v32, %v5950_v63  ;;  %7367 = vmatpush3.bf16.xpose.msra.mxu1 %v11078_v13  ;;  %v11159_v30 = vsel %vm5376_vm4, %v6094_v57, %v5790_v3  ;;  %v6175_v42 = vsel %vm5325_vm1, %v6159_v6, %v5951_v15  ;;  %v11810_v17 = vld [vmem:[#allocation23_spill] sm:$0xff]  ;;  %v11811_v3 = vld [vmem:[#allocation12_spill] sm:$0xff] }
 0x3b5   : > { %v11162_v19 = vsel %vm5376_vm4, %v6095_v43, %v5791_v16  ;;  %v6190_v47 = vsel %vm5342_vm2, %v6174_v2, %v5982_v31  ;;  %7430 = vmatprep.subr.msk.bf16.mxu1 %vm1532_vm13, %v6548_v35  ;;  %v6191_v54 = vsel %vm5342_vm2, %v6175_v42, %v5983_v0  ;;  %v11172_v13 = vmul.f32 0.75, %v11159_v30  ;;  %v11813_v63 = vld [vmem:[#allocation8_spill] sm:$0xff]  ;;  %v11218_v15 = vld [vmem:[%s11402_s3] sm:$0xf] }
 0x3b6   : > { %7383 = vmatpush3.bf16.xpose.msra.mxu0 %v11066_v51  ;;  %v6206_v50 = vsel %vm5359_vm3, %v6190_v47, %v11803_v40  ;;  %v11175_v52 = vmul.f32 0.25, %v11162_v19  ;;  %v6207_v51 = vsel %vm5359_vm3, %v6191_v54, %v11804_v10  ;;  %v4969_v40 = vrot.slane %v11809_v25, 5  ;;  %v11817_v54 = vld [vmem:[#allocation54_spill] sm:$0xff] }
 0x3b7   : > { %7429 = vmatprep.subr.msk.bf16.mxu0 %vm1532_vm13, %v6525_v5  ;;  %v11185_v58 = vsel %vm5376_vm4, %v6206_v50, %v11808_v8  ;;  %v5001_v27 = vrot.slane %v11810_v17, 5  ;;  %v11191_v16 = vsel %vm5376_vm4, %v6207_v51, %v11811_v3  ;;  %v5033_v48 = vrot.slane %v11809_v25, 4 }
 0x3b8   : > { %v11194_v55 = vmul.f32 0.75, %v11185_v58  ;;  %v6455_v61 = vadd.f32 %v11175_v52, %v11172_v13  ;;  %v11200_v5 = vmul.f32 0.25, %v11191_v16  ;;  %v5065_v10 = vrot.slane %v11810_v17, 4 }
 0x3b9   : > { %v5097_v18 = vrot.slane %v11809_v25, 3  ;;  %v5129_v24 = vrot.slane %v11810_v17, 3  ;;  %v5161_v60 = vrot.slane %v11809_v25, 2  ;;  %v5193_v7 = vrot.slane %v11810_v17, 2 }
 0x3ba   : > { %v5225_v44 = vrot.slane %v11809_v25, 1  ;;  %v5257_v34 = vrot.slane %v11810_v17, 1  ;;  %v6456_v45 = vadd.f32 %v11200_v5, %v11194_v55  ;;  %v5341_v21 = vsel %vm5325_vm1, %v11812_v23, %v4969_v40  ;;  %v11818_v23 = vld [vmem:[#allocation17_spill] sm:$0xff] }
 0x3bb   : > { %v5408_v4 = vsel %vm5274_vm15, %v5097_v18, %v5129_v24  ;;  %v4935_v28 = vrot.slane %v11813_v63, 6  ;;  %7369 = vmatmul.mubr.msk.bf16.vlgmr.msra.gmra.mxu1 %vm1532_vm13, %v11218_v15  ;;  %v5358_v31 = vsel %vm5342_vm2, %v5341_v21, %v5001_v27  ;;  %v4936_v22 = vrot.slane %v11814_v41, 6 }
 0x3bc   : > { %v5424_v0 = vsel %vm5291_vm0, %v5408_v4, %v5161_v60  ;;  %v4967_v46 = vrot.slane %v11815_v9, 5  ;;  %v6540_v29 = vpack.c.bf16 %v6456_v45, %v6455_v61  ;;  %v5375_v14 = vsel %vm5359_vm3, %v5358_v31, %v5033_v48  ;;  %7404 = vmatprep.mubr.msk.bf16.mxu1 %vm1532_vm13, %v11218_v15  ;;  %v11819_v4 = vld [vmem:[#allocation11_spill] sm:$0xff] }
 0x3bd   : > { %v5440_v35 = vsel %vm1225_vm11, %v5424_v0, %v5193_v7  ;;  %v4968_v11 = vrot.slane %v11816_v56, 5  ;;  %v5392_v26 = vsel %vm5376_vm4, %v5375_v14, %v5065_v10  ;;  %v4999_v49 = vrot.slane %v11813_v63, 5 }
 0x3be   : > { %7385 = vmatpush3.bf16.xpose.msra.mxu0 %v11086_v62  ;;  %v5456_v39 = vsel %vm5325_vm1, %v5440_v35, %v5225_v44  ;;  %v5000_v38 = vrot.slane %v11814_v41, 5  ;;  %v6719_v32 = vsel %vm1532_vm13, %v6540_v29, 0  ;;  %v11238_v43 = vmul.f32 0.25, %v5392_v26 }
 0x3bf   : > { %v5472_v57 = vsel %vm5342_vm2, %v5456_v39, %v5257_v34  ;;  %v6473_v6 = vmul.f32 0.75, %v5392_v26  ;;  %7389 = vmatpush3.bf16.xpose.msra.mxu1 %v6719_v32  ;;  %v5031_v62 = vrot.slane %v11815_v9, 4  ;;  %v5032_v42 = vrot.slane %v11816_v56, 4 }
 0x3c0   : > { %v5488_v2 = vsel %vm5359_vm3, %v5472_v57, %v11809_v25  ;;  %v5063_v47 = vrot.slane %v11813_v63, 4  ;;  %v5064_v8 = vrot.slane %v11814_v41, 4  ;;  %v5095_v40 = vrot.slane %v11815_v9, 3 }
 0x3c1   : > { %v5504_v50 = vsel %vm5376_vm4, %v5488_v2, %v11817_v54  ;;  %v6481_v51 = vadd.f32 %v6473_v6, %v11238_v43  ;;  %v5096_v25 = vrot.slane %v11816_v56, 3  ;;  %v5127_v3 = vrot.slane %v11813_v63, 3 }
 0x3c2   : > { %v11250_v17 = vmul.f32 0.25, %v5504_v50  ;;  %v6474_v27 = vmul.f32 0.75, %v5504_v50  ;;  %v5128_v61 = vrot.slane %v11814_v41, 3  ;;  %v5159_v48 = vrot.slane %v11815_v9, 2 }
 0x3c3   : > { %v5160_v10 = vrot.slane %v11816_v56, 2  ;;  %v5191_v18 = vrot.slane %v11813_v63, 2  ;;  %v5192_v60 = vrot.slane %v11814_v41, 2  ;;  %v5223_v7 = vrot.slane %v11815_v9, 1 }
 0x3c4   : > { %v6482_v24 = vadd.f32 %v6474_v27, %v11250_v17  ;;  %v5224_v44 = vrot.slane %v11816_v56, 1  ;;  %v5255_v34 = vrot.slane %v11813_v63, 1  ;;  %v5256_v45 = vrot.slane %v11814_v41, 1 }
 0x3c5   : > { %v5322_v21 = vsel %vm1225_vm11, %v11818_v23, %v4935_v28  ;;  %v5323_v31 = vsel %vm1225_vm11, %v11819_v4, %v4936_v22  ;;  %7387 = vmatmul.mubr.msk.bf16.vlgmr.msra.gmra.mxu0 %vm1532_vm13, %v11218_v15  ;;  %v5406_v35 = vsel %vm5274_vm15, %v5095_v40, %v5127_v3  ;;  %v5407_v26 = vsel %vm5274_vm15, %v5096_v25, %v5128_v61  ;;  %v11820_v25 = vld [vmem:[#allocation60_spill] sm:$0xff] }
 0x3c6   : > { %v6547_v0 = vpack.c.bf16 %v6482_v24, %v6481_v51  ;;  %v5339_v29 = vsel %vm5325_vm1, %v5322_v21, %v4967_v46  ;;  %v5340_v14 = vsel %vm5325_vm1, %v5323_v31, %v4968_v11  ;;  %v5422_v28 = vsel %vm5291_vm0, %v5406_v35, %v5159_v48  ;;  %v11821_v48 = vld [vmem:[#allocation68_spill] sm:$0xff]  ;;  %v11827_v35 = vld [vmem:[#allocation81_spill] sm:$0xff] }
 0x3c7   : > { %v5356_v63 = vsel %vm5342_vm2, %v5339_v29, %v4999_v49  ;;  %v5357_v41 = vsel %vm5342_vm2, %v5340_v14, %v5000_v38  ;;  %v5423_v46 = vsel %vm5291_vm0, %v5407_v26, %v5160_v10  ;;  %v5438_v11 = vsel %vm1225_vm11, %v5422_v28, %v5191_v18  ;;  %v11822_v18 = vld [vmem:[#allocation13_spill] sm:$0xff] }
 0x3c8   : > { %7431 = vmatprep.subr.msk.bf16.mxu1 %vm1532_vm13, %v6547_v0  ;;  %v5373_v22 = vsel %vm5359_vm3, %v5356_v63, %v5031_v62  ;;  %v5374_v39 = vsel %vm5359_vm3, %v5357_v41, %v5032_v42  ;;  %v5439_v38 = vsel %vm1225_vm11, %v5423_v46, %v5192_v60  ;;  %v5454_v57 = vsel %vm5325_vm1, %v5438_v11, %v5223_v7  ;;  %v11823_v7 = vld [vmem:[#allocation38_spill] sm:$0xff]  ;;  %v11826_v0 = vld [vmem:[#allocation52_spill] sm:$0xff]  ;;  %v11828_v11 = vld [vmem:[#allocation57_spill] sm:$0xff] }
 0x3c9   : > { %v5390_v32 = vsel %vm5376_vm4, %v5373_v22, %v5063_v47  ;;  %v5391_v49 = vsel %vm5376_vm4, %v5374_v39, %v5064_v8  ;;  %v5455_v2 = vsel %vm5325_vm1, %v5439_v38, %v5224_v44  ;;  %v5470_v54 = vsel %vm5342_vm2, %v5454_v57, %v5255_v34 }
 0x3ca   : > { %v6441_v50 = vmul.f32 0.75, %v5390_v32  ;;  %v6449_v62 = vmul.f32 0.25, %v5391_v49  ;;  %v5471_v42 = vsel %vm5342_vm2, %v5455_v2, %v5256_v45  ;;  %v5486_v51 = vsel %vm5359_vm3, %v5470_v54, %v11815_v9  ;;  %v11825_v45 = vld [vmem:[#allocation34_spill] sm:$0xff] }
 0x3cb   : > { %v6479_v47 = vadd.f32 %v11106_v12, %v11175_v52  ;;  %v6480_v8 = vadd.f32 %v11123_v36, %v11200_v5  ;;  %v5487_v40 = vsel %vm5359_vm3, %v5471_v42, %v11816_v56  ;;  %v5502_v3 = vsel %vm5376_vm4, %v5486_v51, %v11820_v25  ;;  %v11824_v5 = vld [vmem:[#allocation63_spill] sm:$0xff] }
 0x3cc   : > { %v6453_v61 = vadd.f32 %v6449_v62, %v6441_v50  ;;  %v6447_v10 = vadd.f32 %v11172_v13, %v11821_v48  ;;  %v5503_v24 = vsel %vm5376_vm4, %v5487_v40, %v11822_v18  ;;  %v6442_v9 = vmul.f32 0.75, %v5502_v3 }
 0x3cd   : > { %v6546_v60 = vpack.c.bf16 %v6480_v8, %v6479_v47  ;;  %v6448_v12 = vadd.f32 %v11194_v55, %v11823_v7  ;;  %v6450_v52 = vmul.f32 0.25, %v5503_v24  ;;  %v6477_v36 = vadd.f32 %v6473_v6, %v6449_v62 }
 0x3ce   : > { %v6445_v44 = vadd.f32 %v6441_v50, %v11824_v5  ;;  %v6459_v56 = vmul.f32 0.75, %v11162_v19  ;;  %v6446_v23 = vadd.f32 %v6442_v9, %v11825_v45  ;;  %v6460_v21 = vmul.f32 0.75, %v11191_v16 }
 0x3cf   : > { %v6538_v34 = vpack.c.bf16 %v6448_v12, %v6447_v10  ;;  %v6454_v13 = vadd.f32 %v6450_v52, %v6442_v9  ;;  %v6478_v4 = vadd.f32 %v6474_v27, %v6450_v52  ;;  %v6427_v29 = vmul.f32 0.75, %v11826_v0 }
 0x3d0   : > { %v6471_v31 = vadd.f32 %v11104_v53, %v6459_v56  ;;  %v6537_v14 = vpack.c.bf16 %v6446_v23, %v6445_v44  ;;  %v6472_v55 = vadd.f32 %v11121_v1, %v6460_v21  ;;  %v6428_v6 = vmul.f32 0.75, %v11827_v35 }
 0x3d1   : > { %v6435_v63 = vmul.f32 0.25, %v11159_v30  ;;  %v6539_v41 = vpack.c.bf16 %v6454_v13, %v6453_v61  ;;  %v6545_v19 = vpack.c.bf16 %v6478_v4, %v6477_v36  ;;  %v6436_v26 = vmul.f32 0.25, %v11185_v58  ;;  %v11829_v30 = vld [vmem:[#allocation69_spill] sm:$0xff] }
 0x3d2   : > { %v6457_v28 = vmul.f32 0.75, %v5391_v49  ;;  %v6544_v22 = vpack.c.bf16 %v6472_v55, %v6471_v31  ;;  %v6458_v39 = vmul.f32 0.75, %v5503_v24  ;;  %v6425_v1 = vmul.f32 0.75, %v11828_v11 }
 0x3d3   : > { %v6439_v16 = vadd.f32 %v6435_v63, %v6427_v29  ;;  %v6716_v27 = vsel %vm1532_vm13, %v6539_v41, 0  ;;  %v6440_v53 = vadd.f32 %v6436_v26, %v6428_v6  ;;  %v6426_v57 = vmul.f32 0.75, %v11829_v30 }
 0x3d4   : > { %v6469_v46 = vadd.f32 %v11238_v43, %v6457_v28  ;;  %7391 = vmatpush3.bf16.xpose.msra.mxu1 %v6716_v27  ;;  %v6470_v38 = vadd.f32 %v11250_v17, %v6458_v39  ;;  %v6433_v2 = vmul.f32 0.25, %v5390_v32  ;;  %v6434_v58 = vmul.f32 0.25, %v5502_v3 }
 0x3d5   : > { %7432 = vmatprep.subr.msk.bf16.mxu1 %vm1532_vm13, %v6546_v60  ;;  %v6536_v49 = vpack.c.bf16 %v6440_v53, %v6439_v16  ;;  %v6463_v54 = vadd.f32 %v6459_v56, %v6435_v63  ;;  %v6464_v50 = vadd.f32 %v6460_v21, %v6436_v26  ;;  %v6713_v17 = vsel %vm1532_vm13, %v6538_v34, 0 }
 0x3d6   : > { %v6543_v62 = vpack.c.bf16 %v6470_v38, %v6469_v46  ;;  %v6437_v42 = vadd.f32 %v6433_v2, %v6425_v1  ;;  %v6438_v51 = vadd.f32 %v6434_v58, %v6426_v57  ;;  %v6461_v47 = vadd.f32 %v6457_v28, %v6433_v2 }
 0x3d7   : > { %v6542_v43 = vpack.c.bf16 %v6464_v50, %v6463_v54  ;;  %v6462_v8 = vadd.f32 %v6458_v39, %v6434_v58  ;;  %v6710_v48 = vsel %vm1532_vm13, %v6537_v14, 0  ;;  %v6707_v18 = vsel %vm1532_vm13, %v6536_v49, 0 }
 0x3d8   : > { %v6535_v40 = vpack.c.bf16 %v6438_v51, %v6437_v42  ;;  %v6431_v9 = vadd.f32 %v6427_v29, %v10977_v20  ;;  %v6432_v60 = vadd.f32 %v6428_v6, %v10980_v37  ;;  %v6429_v52 = vadd.f32 %v6425_v1, %v11014_v33 }
 0x3d9   : > { %v6541_v25 = vpack.c.bf16 %v6462_v8, %v6461_v47  ;;  %v6430_v36 = vadd.f32 %v6426_v57, %v11018_v59 }
 0x3da   : > { %v6704_v24 = vsel %vm1532_vm13, %v6535_v40, 0  ;;  %v6534_v7 = vpack.c.bf16 %v6432_v60, %v6431_v9 }
 0x3db   : > { %v6533_v5 = vpack.c.bf16 %v6430_v36, %v6429_v52 }
 0x3dc   : > { %7393 = vmatpush3.bf16.xpose.msra.mxu1 %v6713_v17  ;;  %v6701_v12 = vsel %vm1532_vm13, %v6534_v7, 0 }
 0x3dd   : > { %7433 = vmatprep.subr.msk.bf16.mxu1 %vm1532_vm13, %v6545_v19  ;;  %v6698_v20 = vsel %vm1532_vm13, %v6533_v5, 0 }
 0x3df   : > { %v6779_v32 = vpop.f32.mrf.mxu1 }
 0x3e0   : > { %6909 = vst [vmem:[%s11326_s9] sm:$0xff] %v6779_v32 }
 0x3e1   : > { %v6781_v3 = vpop.f32.mrf.mxu1 }
 0x3e2   : > { %6910 = vst [vmem:[%s11326_s9 + $0x8] sm:$0xff] %v6781_v3 }
 0x3e3   : > { %v6783_v61 = vpop.f32.mrf.mxu1 }
 0x3e4   : > { %7395 = vmatpush3.bf16.xpose.msra.mxu1 %v6710_v48 }
 0x3e5   : > { %v6784_v10 = vpop.f32.mrf.mxu1  ;;  %7434 = vmatprep.subr.msk.bf16.mxu1 %vm1532_vm13, %v6544_v22 }
 0x3ec   : > { %7397 = vmatpush3.bf16.xpose.msra.mxu1 %v6707_v18 }
 0x3ed   : > { %7435 = vmatprep.subr.msk.bf16.mxu1 %vm1532_vm13, %v6543_v62 }
 0x3f4   : > { %7399 = vmatpush3.bf16.xpose.msra.mxu1 %v6704_v24 }
 0x3f5   : > { %7436 = vmatprep.subr.msk.bf16.mxu1 %vm1532_vm13, %v6542_v43 }
 0x3fc   : > { %7401 = vmatpush3.bf16.xpose.msra.mxu1 %v6701_v12 }
 0x3fd   : > { %7437 = vmatprep.subr.msk.bf16.mxu1 %vm1532_vm13, %v6541_v25 }
 0x404   : > { %7403 = vmatpush3.bf16.xpose.msra.mxu1 %v6698_v20 }
 0x40b   : > { %7405 = vmatmul.mubr.msk.bf16.vlgmr.msra.gmra.mxu1 %vm1532_vm13, %v11218_v15 }
 0x47b   : > { %v6820_v37 = vpop.f32.mrf.mxu1 }
 0x47c   : > { %6911 = vst [vmem:[%s11326_s9 + $0x10] sm:$0xff] %v6820_v37 }
 0x47d   : > { %v6822_v44 = vpop.f32.mrf.mxu1 }
 0x47e   : > { %6912 = vst [vmem:[%s11326_s9 + $0x18] sm:$0xff] %v6822_v44 }
 0x47f   : > { %v6824_v33 = vpop.f32.mrf.mxu1 }
 0x481   : > { %v6825_v59 = vpop.f32.mrf.mxu1 }
 0x485   : > { %v6861_v56 = vpop.f32.mrf.mxu0 }
 0x486   : > { %6913 = vst [vmem:[%s11326_s9 + $0x20] sm:$0xff] %v6861_v56 }
 0x487   : > { %v6863_v34 = vpop.f32.mrf.mxu0 }
 0x488   : > { %6914 = vst [vmem:[%s11326_s9 + $0x28] sm:$0xff] %v6863_v34 }
 0x489   : > { %v6865_v45 = vpop.f32.mrf.mxu0 }
 0x48b   : > { %v6866_v23 = vpop.f32.mrf.mxu0 }
 0x4cb   : > { %v6902_v21 = vpop.f32.mrf.mxu1 }
 0x4cc   : > { %6915 = vst [vmem:[%s11326_s9 + $0x30] sm:$0xff] %v6902_v21 }
 0x4cd   : > { %v6904_v15 = vpop.f32.mrf.mxu1 }
 0x4ce   : > { %6916 = vst [vmem:[%s11326_s9 + $0x38] sm:$0xff] %v6904_v15 }
 0x4cf   : > { %v6906_v13 = vpop.f32.mrf.mxu1 }
 0x4d0   : > { %7658 = shalt.err (!%p7655_p3)
}
 0x4d1   : > { %s7659_s28 = scalar_lea.hbm %s11355_s20, 1024  ;;  %s7663_s5 = scalar_lea.hbm %s11403_s4, 2048 }
 0x4d2   : > { %p7660_p4 = scmp.ne.s32.totalorder %s11355_s20, %s7659_s28  ;;  %p7664_p9 = scmp.lt.s32.totalorder %s11355_s20, %s11403_s4 }
 0x4d3   : > { %p7665_p10 = scmp.lt.s32.totalorder %s7663_s5, %s7659_s28 }
 0x4d4   : > { %p7661_p7 = pnand %p7660_p4, %p7773_p5 }
 0x4d5   : > { %p7666_p11 = por %p7665_p10, %p7664_p9 }
 0x4d6   : > { %p7662_p8 = pneg %p7661_p7 }
 0x4d8   : > { %p7667_p12 = pnand %p7666_p11, %p7662_p8 }
 0x4da   : > { %7670 = shalt.err (!%p7667_p12)
}
 0x4db   : > { %7438 = dma.vmem_to_hbm [thread:$0]  (%p7773_p5), %s11357_s11, 1024, %s11355_s20, %s6918_s22   ;;  %v6907_v4 = vpop.f32.mrf.mxu1 }
 0x4dc PF: > { %p7444_p13 = scmp.ge.s32.totalorder %s7705_s18, 2  ;;  %s6944_s7 = sand.u32 1, %s7693_s15  }
 0x4dd   : > { %s6945_s9 = scalar_lea.sflag [#allocation4], %s6944_s7 }
 0x4de   : > { %p7441_p0 = pnand %p7444_p13, %p7777_p6 }
 0x4e0   : > { %p7442_p1 = pneg %p7441_p0 }
 0x4e2   : > { %7688 = dma.done.wait (%p7442_p1), %s6945_s9, 1024  }
 0x4e3   : > { %7690 = vsyncadd (%p7442_p1), %s6945_s9, 4294966272  ;;  %p14_p2 = scmp.ge.s32.totalorder %s7760_s21, 4   ;;  %s11830_s15 = smov %s7697_s16 }
 0x4e4   : > { %s11831_s16 = smov %s7701_s17  ;;  %s11832_s17 = smov %s7771_s24 }
 0x4e5   : > { %s11833_s18 = smov %s7760_s21  ;;  %16 = sbr.rel (!%p14_p2) target bundleno = 3 (0x3), region = 75 }
 0x4ea   :  { %6950 = vsyncpa [#allocation4], 1 }
 0x4eb   :  { %6952 = vsyncpa [#allocation4 + $0x1], 1 }

</bundles_post_ra>
